<compile_context>
chip_gen: v7x
topology: tpu7x:2x2x1
jax: 0.10.0
libtpu: 0.0.40
codegen_flags: <defaults>
</compile_context>

<pallas_src>
import math

import jax
import jax.numpy as jnp
from jax import lax
from jax.experimental import pallas as pl
from jax.experimental.pallas import tpu as pltpu

BN_EPS = 1e-5
BN_SCALE = 1.0 / math.sqrt(1.0 + BN_EPS)   # eval BN with default running stats

# Scaled-down SA configuration for the small demo
# (original module: SAModule(512, 0.2, 32) and SAModule(128, 0.4, 64);
#  channel widths of every MLP / Linear are kept exactly as in the module).
NPOINT1, NSAMPLE1, R1 = 32, 8, 0.2
NPOINT2, NSAMPLE2, R2 = 16, 8, 0.4
CLASS_COUNT = 10
LOGIT_PAD = 128                      # lane-dense logits, sliced in the wrapper
NEG_INF = -1e30


# --------------------------------------------------------------------------
# Hardware-dependent budgets
# --------------------------------------------------------------------------
def _hw_config():
    try:
        kind = jax.devices()[0].device_kind.lower()
    except Exception:
        kind = ""
    if "v5" in kind or "v6" in kind:
        # 128 MiB physical VMEM: larger tiles amortize per-step overhead.
        return {"row_budget": 8192, "vmem_limit": 64 * 1024 * 1024}
    # v7x (64 MiB VMEM, 2 TCs) and unknown: conservative.
    return {"row_budget": 4096, "vmem_limit": 32 * 1024 * 1024}


# --------------------------------------------------------------------------
# Pallas kernels
# --------------------------------------------------------------------------
def _mlp3_max_kernel(rel_ref, w1_ref, b1_ref, w2_ref, b2_ref, w3_ref, b3_ref,
                     out_ref):
    """SA1 shared 3-layer point MLP (BN folded) + max over the neighbor axis.
    rel_ref: (T*S, 8) bf16 — T groups of S neighbors; out_ref: (T, Cout)."""
    T, cout = out_ref.shape
    S = rel_ref.shape[0] // T
    h = jnp.dot(rel_ref[...], w1_ref[...],
                preferred_element_type=jnp.float32) + b1_ref[...]
    h = jnp.maximum(h, 0.0)
    h = jnp.maximum(jnp.dot(h.astype(jnp.bfloat16), w2_ref[...],
                            preferred_element_type=jnp.float32) + b2_ref[...], 0.0)
    h = jnp.maximum(jnp.dot(h.astype(jnp.bfloat16), w3_ref[...],
                            preferred_element_type=jnp.float32) + b3_ref[...], 0.0)
    out_ref[...] = jnp.max(h.reshape(T, S, cout), axis=1).astype(out_ref.dtype)


def _mlp3_max_split_kernel(x_ref, rel_ref, w1x_ref, w1r_ref, b1_ref,
                           w2_ref, b2_ref, w3_ref, b3_ref, out_ref):
    """SA2 shared MLP with split layer-1: x @ W1x + rel @ W1r (both lane-dense),
    then two more layers and a max over the neighbor axis."""
    T, cout = out_ref.shape
    S = x_ref.shape[0] // T
    h = jnp.dot(x_ref[...], w1x_ref[...], preferred_element_type=jnp.float32)
    h = h + jnp.dot(rel_ref[...], w1r_ref[...], preferred_element_type=jnp.float32)
    h = jnp.maximum(h + b1_ref[...], 0.0)
    h = jnp.maximum(jnp.dot(h.astype(jnp.bfloat16), w2_ref[...],
                            preferred_element_type=jnp.float32) + b2_ref[...], 0.0)
    h = jnp.maximum(jnp.dot(h.astype(jnp.bfloat16), w3_ref[...],
                            preferred_element_type=jnp.float32) + b3_ref[...], 0.0)
    out_ref[...] = jnp.max(h.reshape(T, S, cout), axis=1).astype(out_ref.dtype)


def _global_head_kernel(x_ref, pos_ref, w1x_ref, w1p_ref, b1_ref,
                        w2_ref, b2_ref, w3_ref, b3_ref,
                        hw1_ref, hb1_ref, hw2_ref, hb2_ref, hw3_ref, hb3_ref,
                        out_ref):
    """Fused GlobalSAModule + classification head for ONE cloud (grid over B):
    split layer-1 MLP (x, pos) -> 2 more layers -> global max over points ->
    lin/bn/relu x2 (dropout = identity) -> lin -> log_softmax.
    Logits are padded to 128 lanes; pad biases are -1e30 so they do not affect
    the log-sum-exp.  x_ref: (P, Cx) bf16; pos_ref: (P, 8) bf16; out: (1, 128)."""
    h = jnp.dot(x_ref[...], w1x_ref[...], preferred_element_type=jnp.float32)
    h = h + jnp.dot(pos_ref[...], w1p_ref[...], preferred_element_type=jnp.float32)
    h = jnp.maximum(h + b1_ref[...], 0.0)
    h = jnp.maximum(jnp.dot(h.astype(jnp.bfloat16), w2_ref[...],
                            preferred_element_type=jnp.float32) + b2_ref[...], 0.0)
    h = jnp.maximum(jnp.dot(h.astype(jnp.bfloat16), w3_ref[...],
                            preferred_element_type=jnp.float32) + b3_ref[...], 0.0)
    g = jnp.max(h, axis=0, keepdims=True)                       # (1, 1024)

    h = jnp.maximum(jnp.dot(g.astype(jnp.bfloat16), hw1_ref[...],
                            preferred_element_type=jnp.float32) + hb1_ref[...], 0.0)
    h = jnp.maximum(jnp.dot(h.astype(jnp.bfloat16), hw2_ref[...],
                            preferred_element_type=jnp.float32) + hb2_ref[...], 0.0)
    z = jnp.dot(h.astype(jnp.bfloat16), hw3_ref[...],
                preferred_element_type=jnp.float32) + hb3_ref[...]   # (1, 128)
    m = jnp.max(z, axis=-1, keepdims=True)
    lse = m + jnp.log(jnp.sum(jnp.exp(z - m), axis=-1, keepdims=True))
    out_ref[...] = z - lse


# --------------------------------------------------------------------------
# Pallas wrappers
# --------------------------------------------------------------------------
def _const_spec(a):
    """Constant index map -> weights/biases stay resident across grid steps."""
    n = a.ndim
    return pl.BlockSpec(a.shape, lambda *args, _n=n: (0,) * _n)


def _bytes(*arrs):
    return int(sum(int(a.size) * a.dtype.itemsize for a in arrs))


def _pick_tile(M, S, row_budget):
    """Groups per grid step: largest multiple of 8 under the row budget, capped
    at M//2 when M >= 32 so both v7x TensorCores get work."""
    cap = max(8, (row_budget // max(S, 1)) // 8 * 8)
    if M >= 32:
        cap = min(cap, max(8, (M // 2) // 8 * 8))
    tile = min(cap, max(8, M))
    return max(8, (tile // 8) * 8)


def mlp3_max_single(rel2d, S, params, tile, padded_M, cfg):
    """rel2d: (padded_M*S, 8) bf16 -> (padded_M, Cout) bf16 (SA1)."""
    (w1, b1), (w2, b2), (w3, b3) = params
    cout = w3.shape[1]
    rows = tile * S
    weights = [w1, b1, w2, b2, w3, b3]
    R = padded_M * S
    flops = 2 * R * (w1.shape[0] * w1.shape[1] + w2.shape[0] * w2.shape[1]
                     + w3.shape[0] * w3.shape[1])
    cost = pl.CostEstimate(flops=int(flops), transcendentals=0,
                           bytes_accessed=_bytes(rel2d, *weights) + padded_M * cout * 2)
    return pl.pallas_call(
        _mlp3_max_kernel,
        out_shape=jax.ShapeDtypeStruct((padded_M, cout), jnp.bfloat16),
        grid=(padded_M // tile,),
        in_specs=[pl.BlockSpec((rows, rel2d.shape[1]), lambda i: (i, 0))]
                 + [_const_spec(w) for w in weights],
        out_specs=pl.BlockSpec((tile, cout), lambda i: (i, 0)),
        compiler_params=pltpu.CompilerParams(
            dimension_semantics=("parallel",),
            vmem_limit_bytes=cfg["vmem_limit"]),
        cost_estimate=cost,
    )(rel2d, *weights)


def mlp3_max_split(x2d, rel2d, S, params, tile, padded_M, cfg):
    """x2d: (padded_M*S, Cx), rel2d: (padded_M*S, 8) -> (padded_M, Cout) (SA2)."""
    (w1x, w1r, b1), (w2, b2), (w3, b3) = params
    cout = w3.shape[1]
    rows = tile * S
    weights = [w1x, w1r, b1, w2, b2, w3, b3]
    R = padded_M * S
    flops = 2 * R * (w1x.shape[0] * w1x.shape[1] + w1r.shape[0] * w1r.shape[1]
                     + w2.shape[0] * w2.shape[1] + w3.shape[0] * w3.shape[1])
    cost = pl.CostEstimate(flops=int(flops), transcendentals=0,
                           bytes_accessed=_bytes(x2d, rel2d, *weights) + padded_M * cout * 2)
    return pl.pallas_call(
        _mlp3_max_split_kernel,
        out_shape=jax.ShapeDtypeStruct((padded_M, cout), jnp.bfloat16),
        grid=(padded_M // tile,),
        in_specs=[pl.BlockSpec((rows, x2d.shape[1]), lambda i: (i, 0)),
                  pl.BlockSpec((rows, rel2d.shape[1]), lambda i: (i, 0))]
                 + [_const_spec(w) for w in weights],
        out_specs=pl.BlockSpec((tile, cout), lambda i: (i, 0)),
        compiler_params=pltpu.CompilerParams(
            dimension_semantics=("parallel",),
            vmem_limit_bytes=cfg["vmem_limit"]),
        cost_estimate=cost,
    )(x2d, rel2d, *weights)


def global_sa_and_head(x, pos, sa3_params, head_params, class_count, cfg):
    """Fused GlobalSAModule + head, grid=(B,) parallel, one cloud per step."""
    B, P, Cx = x.shape
    x_b = x.astype(jnp.bfloat16)
    pos_b = pad_last(pos, 8).astype(jnp.bfloat16)
    Cp = pos_b.shape[-1]
    (w1x, w1p, b1), (w2, b2), (w3, b3) = sa3_params
    (hw1, hb1), (hw2, hb2), (hw3, hb3) = head_params
    weights = [w1x, w1p, b1, w2, b2, w3, b3, hw1, hb1, hw2, hb2, hw3, hb3]
    flops = 2 * B * P * (w1x.shape[0] * w1x.shape[1] + w1p.shape[0] * w1p.shape[1]
                         + w2.shape[0] * w2.shape[1] + w3.shape[0] * w3.shape[1]) \
            + 2 * B * (hw1.shape[0] * hw1.shape[1] + hw2.shape[0] * hw2.shape[1]
                       + hw3.shape[0] * hw3.shape[1])
    cost = pl.CostEstimate(flops=int(flops), transcendentals=int(B * LOGIT_PAD),
                           bytes_accessed=_bytes(x_b, pos_b, *weights) + B * LOGIT_PAD * 4)
    out = pl.pallas_call(
        _global_head_kernel,
        out_shape=jax.ShapeDtypeStruct((B, 1, LOGIT_PAD), jnp.float32),
        grid=(B,),
        in_specs=[pl.BlockSpec((None, P, Cx), lambda b: (b, 0, 0)),
                  pl.BlockSpec((None, P, Cp), lambda b: (b, 0, 0))]
                 + [_const_spec(w) for w in weights],
        out_specs=pl.BlockSpec((None, 1, LOGIT_PAD), lambda b: (b, 0, 0)),
        compiler_params=pltpu.CompilerParams(
            dimension_semantics=("parallel",),
            vmem_limit_bytes=cfg["vmem_limit"]),
        cost_estimate=cost,
    )(x_b, pos_b, *weights)
    return out.reshape(B, LOGIT_PAD)[:, :class_count]


# --------------------------------------------------------------------------
# Plain-JAX glue: FPS, ball query, gathers (data-dependent indexing)
# TODO(synk): port FPS / ball query to Pallas (dominant at production sizes).
# --------------------------------------------------------------------------
def farthest_point_sample(pos, npoint):
    """pos: (B, N, 3) -> (B, npoint) indices.  Deterministic start at index 0.
    O(N*npoint): per iteration only the distance to the new point is computed."""
    B, N, _ = pos.shape

    def one(p):
        def body(i, state):
            idx, dists, far = state
            idx = idx.at[i].set(far)
            d = jnp.sum((p - p[far]) ** 2, axis=-1)
            dists = jnp.minimum(dists, d)
            return idx, dists, jnp.argmax(dists).astype(jnp.int32)

        idx0 = jnp.zeros((npoint,), jnp.int32)
        d0 = jnp.full((N,), 1e10, jnp.float32)
        idx, _, _ = lax.fori_loop(0, npoint, body, (idx0, d0, jnp.int32(0)))
        return idx

    return jax.vmap(one)(pos)


def ball_query(pos, centers, radius, nsample):
    """pos: (B, N, 3), centers: (B, S, 3) -> (B, S, nsample) neighbor indices.
    First-k in-radius selection via masked cumsum + scatter (no sort).  Slots
    beyond the in-radius count are filled with the first in-radius neighbor
    (the center itself is always in range)."""
    B, N, _ = pos.shape
    S = centers.shape[1]
    d2 = jnp.sum((centers[:, :, None, :] - pos[:, None, :, :]) ** 2, axis=-1)
    in_r = d2 <= radius * radius
    rank = jnp.cumsum(in_r.astype(jnp.int32), axis=-1) - 1            # rank among in-radius
    slot = jnp.where(in_r & (rank < nsample), rank, nsample)          # nsample = garbage slot
    src = jnp.broadcast_to(jnp.arange(N, dtype=jnp.int32), (B, S, N))

    def scatter_row(slot_row, src_row):
        return jnp.full((nsample + 1,), N, jnp.int32).at[slot_row].set(src_row)

    sel = jax.vmap(jax.vmap(scatter_row))(slot, src)[..., :nsample]   # (B, S, nsample)
    first = sel[:, :, :1]
    return jnp.where(sel == N, first, sel)


def gather(x, idx):
    """x: (B, N, C), idx: (B, ...) -> (B, ..., C)."""
    return jax.vmap(lambda xb, ib: xb[ib])(x, idx)


def pad_last(a, multiple):
    p = (-a.shape[-1]) % multiple
    if p == 0:
        return a
    cfg = [(0, 0)] * a.ndim
    cfg[-1] = (0, p)
    return jnp.pad(a, cfg)


def pad_rows(w, multiple):
    p = (-w.shape[0]) % multiple
    if p == 0:
        return w
    return jnp.pad(w, ((0, p), (0, 0)))


def pad_rows_to(a, rows):
    if a.shape[0] == rows:
        return a
    return jnp.pad(a, ((0, rows - a.shape[0]),) + ((0, 0),) * (a.ndim - 1))


# --------------------------------------------------------------------------
# PointNet++ modules
# --------------------------------------------------------------------------
def sa_module(x, pos, npoint, radius, nsample, mlp_params, cfg):
    """Set abstraction: FPS -> ball query -> shared MLP over
    [x_j, pos_j - pos_i] -> max over neighbors (PyG PointConv semantics).
    The x / rel operands are kept separate (lane-dense) and the layer-1 matmul
    is split inside the kernel."""
    B, N, _ = pos.shape
    idx_fps = farthest_point_sample(pos, npoint)          # (B, npoint)
    centers = gather(pos, idx_fps)                        # (B, npoint, 3)
    nidx = ball_query(pos, centers, radius, nsample)      # (B, npoint, nsample)
    rel = gather(pos, nidx) - centers[:, :, None, :]      # (B, npoint, nsample, 3)
    M = B * npoint
    tile = _pick_tile(M, nsample, cfg["row_budget"])
    padded_M = pl.cdiv(M, tile) * tile
    rel2d = pad_last(rel, 8).astype(jnp.bfloat16).reshape(M * nsample, -1)
    rel2d = pad_rows_to(rel2d, padded_M * nsample)
    if x is None:                                          # first SA: data.x is None
        # TODO(synk): the 8-lane SA1 grouped input is lane-sparse in HBM; move
        # the gather + (pos_j - pos_i) into the kernel to avoid the inflated DMA.
        out = mlp3_max_single(rel2d, nsample, mlp_params, tile, padded_M, cfg)
    else:
        xg = gather(x, nidx).astype(jnp.bfloat16).reshape(M * nsample, -1)
        xg = pad_rows_to(xg, padded_M * nsample)
        out = mlp3_max_split(xg, rel2d, nsample, mlp_params, tile, padded_M, cfg)
    out = out[:M]
    return out.reshape(B, npoint, -1), centers


def pointnet2_forward(pos, kparams, cfg):
    # sa0_out = (data.x=None, data.pos, data.batch) — batch implicit in dense layout
    x1, pos1 = sa_module(None, pos, NPOINT1, R1, NSAMPLE1, kparams["sa1"], cfg)
    x2, pos2 = sa_module(x1, pos1, NPOINT2, R2, NSAMPLE2, kparams["sa2"], cfg)
    return global_sa_and_head(x2, pos2, kparams["sa3"], kparams["head"],
                              CLASS_COUNT, cfg)            # (B, class_count) log-probs


# --------------------------------------------------------------------------
# Deterministic parameter initialization (shapes from __init__) + kernel prep
# --------------------------------------------------------------------------
def init_linear(key, cin, cout):
    kw, kb = jax.random.split(key)
    lim = 1.0 / math.sqrt(cin)
    w = jax.random.uniform(kw, (cin, cout), minval=-lim, maxval=lim, dtype=jnp.float32)
    b = jax.random.uniform(kb, (1, cout), minval=-lim, maxval=lim, dtype=jnp.float32)
    return w, b


def init_mlp(key, channels):
    keys = jax.random.split(key, len(channels) - 1)
    return [init_linear(k, channels[i], channels[i + 1]) for i, k in enumerate(keys)]


def init_params(key, class_count):
    k1, k2, k3, k4 = jax.random.split(key, 4)
    return {
        "sa1": init_mlp(k1, [3, 64, 64, 128]),
        "sa2": init_mlp(k2, [128 + 3, 128, 128, 256]),
        "sa3": init_mlp(k3, [256 + 3, 256, 512, 1024]),
        "head": init_mlp(k4, [1024, 512, 256, class_count]),
    }


def prepare_params(params):
    """Fold eval-mode BN (scale 1/sqrt(1+eps), commutes with ReLU) into W/b,
    split layer-1 weights into [x | rel] halves (rel rows zero-padded to 8),
    pad head logits to 128 lanes (pad bias = -1e30), cast weights to bf16
    (biases stay f32)."""
    def layer(w, b):
        return (w * BN_SCALE).astype(jnp.bfloat16), (b * BN_SCALE).astype(jnp.float32)

    def first_single(w, b):
        w = pad_rows(w * BN_SCALE, 8)
        return w.astype(jnp.bfloat16), (b * BN_SCALE).astype(jnp.float32)

    def first_split(w, b, cx):
        w = w * BN_SCALE
        wx = w[:cx].astype(jnp.bfloat16)
        wr = pad_rows(w[cx:], 8).astype(jnp.bfloat16)
        return wx, wr, (b * BN_SCALE).astype(jnp.float32)

    def prep_head(mlp):
        (w1, b1), (w2, b2), (w3, b3) = mlp
        w1, b1 = layer(w1, b1)                   # lin1 -> bn1
        w2, b2 = layer(w2, b2)                   # lin2 -> bn2
        padc = LOGIT_PAD - w3.shape[1]           # lin3: pad logits lane-dense
        w3p = jnp.pad(w3, ((0, 0), (0, padc))).astype(jnp.bfloat16)
        b3p = jnp.concatenate([b3, jnp.full((1, padc), NEG_INF, jnp.float32)], axis=-1)
        return [(w1, b1), (w2, b2), (w3p, b3p.astype(jnp.float32))]

    sa1 = params["sa1"]
    sa2 = params["sa2"]
    sa3 = params["sa3"]
    return {
        "sa1": [first_single(*sa1[0]), layer(*sa1[1]), layer(*sa1[2])],
        "sa2": [first_split(*sa2[0], 128), layer(*sa2[1]), layer(*sa2[2])],
        "sa3": [first_split(*sa3[0], 256), layer(*sa3[1]), layer(*sa3[2])],
        "head": prep_head(params["head"]),
    }


# --------------------------------------------------------------------------
# Pure-JAX f32 reference (same sampling glue, unsplit/unpadded matmuls)
# --------------------------------------------------------------------------
def _ref_mlp(h, layers):
    for w, b in layers:
        h = jnp.maximum((h @ w + b) * BN_SCALE, 0.0)
    return h


def _ref_sa(x, pos, npoint, radius, nsample, layers):
    idx_fps = farthest_point_sample(pos, npoint)
    centers = gather(pos, idx_fps)
    nidx = ball_query(pos, centers, radius, nsample)
    rel = gather(pos, nidx) - centers[:, :, None, :]
    feats = rel if x is None else jnp.concatenate([gather(x, nidx), rel], axis=-1)
    h = _ref_mlp(feats, layers)
    return jnp.max(h, axis=2), centers


def reference_forward(pos, params):
    x1, pos1 = _ref_sa(None, pos, NPOINT1, R1, NSAMPLE1, params["sa1"])
    x2, pos2 = _ref_sa(x1, pos1, NPOINT2, R2, NSAMPLE2, params["sa2"])
    feats = jnp.concatenate([x2, pos2], axis=-1)
    g = jnp.max(_ref_mlp(feats, params["sa3"]), axis=1)
    (hw1, hb1), (hw2, hb2), (hw3, hb3) = params["head"]
    h = jnp.maximum((g @ hw1 + hb1) * BN_SCALE, 0.0)
    h = jnp.maximum((h @ hw2 + hb2) * BN_SCALE, 0.0)
    z = h @ hw3 + hb3
    return jax.nn.log_softmax(z, axis=-1)


if __name__ == "__main__":
    key = jax.random.PRNGKey(0)
    kpos, kparam = jax.random.split(key)
    B, N = 2, 128
    # data.pos ~ U[0,1)^3 so the radii 0.2 / 0.4 are meaningful; data.x is None.
    pos = jax.random.uniform(kpos, (B, N, 3), dtype=jnp.float32)
    params = init_params(kparam, CLASS_COUNT)
    kparams = prepare_params(params)     # BN folded, split, padded, bf16 — done once
    cfg = _hw_config()

    fwd = jax.jit(lambda p, kp: pointnet2_forward(p, kp, cfg))
    logp = fwd(pos, kparams)
    jax.block_until_ready(logp)

    assert logp.shape == (B, CLASS_COUNT)
    assert bool(jnp.all(jnp.isfinite(logp)))
    # log_softmax rows must normalize to 1 in probability space
    assert bool(jnp.allclose(jnp.sum(jnp.exp(logp), axis=-1), 1.0, atol=1e-3))
    # bf16-path drift vs f32 pure-JAX reference
    ref = reference_forward(pos, params)
    err = float(jnp.max(jnp.abs(logp - ref)))
    assert err < 5e-2, f"max |logp - ref| = {err}"
    print("KERNEL_OK")
</pallas_src>

<mosaic_0001>
module attributes {stable_mosaic.version = 11 : i64} {
  func.func @_mlp3_max_kernel(%arg0: i32, %arg1: memref<256x8xbf16, #tpu.memory_space<vmem>>, %arg2: memref<8x64xbf16, #tpu.memory_space<vmem>>, %arg3: memref<1x64xf32, #tpu.memory_space<vmem>>, %arg4: memref<64x64xbf16, #tpu.memory_space<vmem>>, %arg5: memref<1x64xf32, #tpu.memory_space<vmem>>, %arg6: memref<64x128xbf16, #tpu.memory_space<vmem>>, %arg7: memref<1x128xf32, #tpu.memory_space<vmem>>, %arg8: memref<32x128xbf16, #tpu.memory_space<vmem>>) attributes {dimension_semantics = [#tpu.dimension_semantics<parallel>], iteration_bounds = array<i64: 2>, scalar_prefetch = 0 : i64, scratch_operands = 0 : i64, tpu.core_type = #tpu.core_type<tc>, window_params = [{transform_indices = @transform_0, window_bounds = array<i64: 256, 8>}, {pipeline_mode = #tpu.pipeline_mode<synchronous>, transform_indices = @transform_1, window_bounds = array<i64: 8, 64>}, {pipeline_mode = #tpu.pipeline_mode<synchronous>, transform_indices = @transform_2, window_bounds = array<i64: 1, 64>}, {pipeline_mode = #tpu.pipeline_mode<synchronous>, transform_indices = @transform_3, window_bounds = array<i64: 64, 64>}, {pipeline_mode = #tpu.pipeline_mode<synchronous>, transform_indices = @transform_4, window_bounds = array<i64: 1, 64>}, {pipeline_mode = #tpu.pipeline_mode<synchronous>, transform_indices = @transform_5, window_bounds = array<i64: 64, 128>}, {pipeline_mode = #tpu.pipeline_mode<synchronous>, transform_indices = @transform_6, window_bounds = array<i64: 1, 128>}, {transform_indices = @transform_7, window_bounds = array<i64: 32, 128>}]} {
    %c0 = arith.constant 0 : index
    %c0_0 = arith.constant 0 : index
    %0 = vector.load %arg1[%c0, %c0_0] : memref<256x8xbf16, #tpu.memory_space<vmem>>, vector<256x8xbf16>
    %c0_1 = arith.constant 0 : index
    %c0_2 = arith.constant 0 : index
    %1 = vector.load %arg2[%c0_1, %c0_2] : memref<8x64xbf16, #tpu.memory_space<vmem>>, vector<8x64xbf16>
    %cst = arith.constant dense<0.000000e+00> : vector<256x64xf32>
    %2 = tpu.matmul %0, %1, %cst {dimension_numbers = #tpu.dot_dimension_numbers<[1], [0], [0], [1], [0, 0, 1, 1], [], []>} : vector<256x8xbf16>, vector<8x64xbf16>, vector<256x64xf32> -> vector<256x64xf32>
    %c0_3 = arith.constant 0 : index
    %c0_4 = arith.constant 0 : index
    %3 = vector.load %arg3[%c0_3, %c0_4] : memref<1x64xf32, #tpu.memory_space<vmem>>, vector<1x64xf32>
    %4 = vector.broadcast %3 : vector<1x64xf32> to vector<256x64xf32>
    %5 = arith.addf %2, %4 : vector<256x64xf32>
    %cst_5 = arith.constant 0.000000e+00 : f32
    %6 = vector.broadcast %cst_5 : f32 to vector<256x64xf32>
    %7 = arith.maximumf %5, %6 : vector<256x64xf32>
    %8 = arith.truncf %7 : vector<256x64xf32> to vector<256x64xbf16>
    %c0_6 = arith.constant 0 : index
    %c0_7 = arith.constant 0 : index
    %9 = vector.load %arg4[%c0_6, %c0_7] : memref<64x64xbf16, #tpu.memory_space<vmem>>, vector<64x64xbf16>
    %cst_8 = arith.constant dense<0.000000e+00> : vector<256x64xf32>
    %10 = tpu.matmul %8, %9, %cst_8 {dimension_numbers = #tpu.dot_dimension_numbers<[1], [0], [0], [1], [0, 0, 1, 1], [], []>} : vector<256x64xbf16>, vector<64x64xbf16>, vector<256x64xf32> -> vector<256x64xf32>
    %c0_9 = arith.constant 0 : index
    %c0_10 = arith.constant 0 : index
    %11 = vector.load %arg5[%c0_9, %c0_10] : memref<1x64xf32, #tpu.memory_space<vmem>>, vector<1x64xf32>
    %12 = vector.broadcast %11 : vector<1x64xf32> to vector<256x64xf32>
    %13 = arith.addf %10, %12 : vector<256x64xf32>
    %cst_11 = arith.constant 0.000000e+00 : f32
    %14 = vector.broadcast %cst_11 : f32 to vector<256x64xf32>
    %15 = arith.maximumf %13, %14 : vector<256x64xf32>
    %16 = arith.truncf %15 : vector<256x64xf32> to vector<256x64xbf16>
    %c0_12 = arith.constant 0 : index
    %c0_13 = arith.constant 0 : index
    %17 = vector.load %arg6[%c0_12, %c0_13] : memref<64x128xbf16, #tpu.memory_space<vmem>>, vector<64x128xbf16>
    %cst_14 = arith.constant dense<0.000000e+00> : vector<256x128xf32>
    %18 = tpu.matmul %16, %17, %cst_14 {dimension_numbers = #tpu.dot_dimension_numbers<[1], [0], [0], [1], [0, 0, 1, 1], [], []>} : vector<256x64xbf16>, vector<64x128xbf16>, vector<256x128xf32> -> vector<256x128xf32>
    %c0_15 = arith.constant 0 : index
    %c0_16 = arith.constant 0 : index
    %19 = vector.load %arg7[%c0_15, %c0_16] : memref<1x128xf32, #tpu.memory_space<vmem>>, vector<1x128xf32>
    %20 = vector.broadcast %19 : vector<1x128xf32> to vector<256x128xf32>
    %21 = arith.addf %18, %20 : vector<256x128xf32>
    %cst_17 = arith.constant 0.000000e+00 : f32
    %22 = vector.broadcast %cst_17 : f32 to vector<256x128xf32>
    %23 = arith.maximumf %21, %22 : vector<256x128xf32>
    %24 = vector.shape_cast %23 : vector<256x128xf32> to vector<32x8x128xf32>
    %cst_18 = arith.constant dense<0xFF800000> : vector<32x128xf32>
    %25 = vector.multi_reduction <maximumf>, %24, %cst_18 [1] : vector<32x8x128xf32> to vector<32x128xf32>
    %26 = arith.truncf %25 : vector<32x128xf32> to vector<32x128xbf16>
    %c0_19 = arith.constant 0 : index
    %c0_20 = arith.constant 0 : index
    %27 = vector.load %arg8[%c0_19, %c0_20] : memref<32x128xbf16, #tpu.memory_space<vmem>>, vector<32x128xbf16>
    tpu.vector_store %arg8[%c0_19, %c0_20], %26 {strides = array<i32>} : memref<32x128xbf16, #tpu.memory_space<vmem>>, vector<32x128xbf16>,
    return
  }
  func.func @transform_0(%arg0: i32) -> (i32, i32) {
    %c0_i32 = arith.constant 0 : i32
    %c0_i32_0 = arith.constant 0 : i32
    return %arg0, %c0_i32 : i32, i32
  }
  func.func @transform_1(%arg0: i32) -> (i32, i32) {
    %c0_i32 = arith.constant 0 : i32
    %c0_i32_0 = arith.constant 0 : i32
    %c0_i32_1 = arith.constant 0 : i32
    return %c0_i32, %c0_i32_0 : i32, i32
  }
  func.func @transform_2(%arg0: i32) -> (i32, i32) {
    %c0_i32 = arith.constant 0 : i32
    %c0_i32_0 = arith.constant 0 : i32
    %c0_i32_1 = arith.constant 0 : i32
    return %c0_i32, %c0_i32_0 : i32, i32
  }
  func.func @transform_3(%arg0: i32) -> (i32, i32) {
    %c0_i32 = arith.constant 0 : i32
    %c0_i32_0 = arith.constant 0 : i32
    %c0_i32_1 = arith.constant 0 : i32
    return %c0_i32, %c0_i32_0 : i32, i32
  }
  func.func @transform_4(%arg0: i32) -> (i32, i32) {
    %c0_i32 = arith.constant 0 : i32
    %c0_i32_0 = arith.constant 0 : i32
    %c0_i32_1 = arith.constant 0 : i32
    return %c0_i32, %c0_i32_0 : i32, i32
  }
  func.func @transform_5(%arg0: i32) -> (i32, i32) {
    %c0_i32 = arith.constant 0 : i32
    %c0_i32_0 = arith.constant 0 : i32
    %c0_i32_1 = arith.constant 0 : i32
    return %c0_i32, %c0_i32_0 : i32, i32
  }
  func.func @transform_6(%arg0: i32) -> (i32, i32) {
    %c0_i32 = arith.constant 0 : i32
    %c0_i32_0 = arith.constant 0 : i32
    %c0_i32_1 = arith.constant 0 : i32
    return %c0_i32, %c0_i32_0 : i32, i32
  }
  func.func @transform_7(%arg0: i32) -> (i32, i32) {
    %c0_i32 = arith.constant 0 : i32
    %c0_i32_0 = arith.constant 0 : i32
    return %arg0, %c0_i32 : i32, i32
  }
}

module attributes {stable_mosaic.version = 11 : i64} {
  func.func @_mlp3_max_split_kernel(%arg0: i32, %arg1: memref<128x128xbf16, #tpu.memory_space<vmem>>, %arg2: memref<128x8xbf16, #tpu.memory_space<vmem>>, %arg3: memref<128x128xbf16, #tpu.memory_space<vmem>>, %arg4: memref<8x128xbf16, #tpu.memory_space<vmem>>, %arg5: memref<1x128xf32, #tpu.memory_space<vmem>>, %arg6: memref<128x128xbf16, #tpu.memory_space<vmem>>, %arg7: memref<1x128xf32, #tpu.memory_space<vmem>>, %arg8: memref<128x256xbf16, #tpu.memory_space<vmem>>, %arg9: memref<1x256xf32, #tpu.memory_space<vmem>>, %arg10: memref<16x256xbf16, #tpu.memory_space<vmem>>) attributes {dimension_semantics = [#tpu.dimension_semantics<parallel>], iteration_bounds = array<i64: 2>, scalar_prefetch = 0 : i64, scratch_operands = 0 : i64, tpu.core_type = #tpu.core_type<tc>, window_params = [{transform_indices = @transform_0, window_bounds = array<i64: 128, 128>}, {transform_indices = @transform_1, window_bounds = array<i64: 128, 8>}, {pipeline_mode = #tpu.pipeline_mode<synchronous>, transform_indices = @transform_2, window_bounds = array<i64: 128, 128>}, {pipeline_mode = #tpu.pipeline_mode<synchronous>, transform_indices = @transform_3, window_bounds = array<i64: 8, 128>}, {pipeline_mode = #tpu.pipeline_mode<synchronous>, transform_indices = @transform_4, window_bounds = array<i64: 1, 128>}, {pipeline_mode = #tpu.pipeline_mode<synchronous>, transform_indices = @transform_5, window_bounds = array<i64: 128, 128>}, {pipeline_mode = #tpu.pipeline_mode<synchronous>, transform_indices = @transform_6, window_bounds = array<i64: 1, 128>}, {pipeline_mode = #tpu.pipeline_mode<synchronous>, transform_indices = @transform_7, window_bounds = array<i64: 128, 256>}, {pipeline_mode = #tpu.pipeline_mode<synchronous>, transform_indices = @transform_8, window_bounds = array<i64: 1, 256>}, {transform_indices = @transform_9, window_bounds = array<i64: 16, 256>}]} {
    %c0 = arith.constant 0 : index
    %c0_0 = arith.constant 0 : index
    %0 = vector.load %arg1[%c0, %c0_0] : memref<128x128xbf16, #tpu.memory_space<vmem>>, vector<128x128xbf16>
    %c0_1 = arith.constant 0 : index
    %c0_2 = arith.constant 0 : index
    %1 = vector.load %arg3[%c0_1, %c0_2] : memref<128x128xbf16, #tpu.memory_space<vmem>>, vector<128x128xbf16>
    %cst = arith.constant dense<0.000000e+00> : vector<128x128xf32>
    %2 = tpu.matmul %0, %1, %cst {dimension_numbers = #tpu.dot_dimension_numbers<[1], [0], [0], [1], [0, 0, 1, 1], [], []>} : vector<128x128xbf16>, vector<128x128xbf16>, vector<128x128xf32> -> vector<128x128xf32>
    %c0_3 = arith.constant 0 : index
    %c0_4 = arith.constant 0 : index
    %3 = vector.load %arg2[%c0_3, %c0_4] : memref<128x8xbf16, #tpu.memory_space<vmem>>, vector<128x8xbf16>
    %c0_5 = arith.constant 0 : index
    %c0_6 = arith.constant 0 : index
    %4 = vector.load %arg4[%c0_5, %c0_6] : memref<8x128xbf16, #tpu.memory_space<vmem>>, vector<8x128xbf16>
    %cst_7 = arith.constant dense<0.000000e+00> : vector<128x128xf32>
    %5 = tpu.matmul %3, %4, %cst_7 {dimension_numbers = #tpu.dot_dimension_numbers<[1], [0], [0], [1], [0, 0, 1, 1], [], []>} : vector<128x8xbf16>, vector<8x128xbf16>, vector<128x128xf32> -> vector<128x128xf32>
    %6 = arith.addf %2, %5 : vector<128x128xf32>
    %c0_8 = arith.constant 0 : index
    %c0_9 = arith.constant 0 : index
    %7 = vector.load %arg5[%c0_8, %c0_9] : memref<1x128xf32, #tpu.memory_space<vmem>>, vector<1x128xf32>
    %8 = vector.broadcast %7 : vector<1x128xf32> to vector<128x128xf32>
    %9 = arith.addf %6, %8 : vector<128x128xf32>
    %cst_10 = arith.constant 0.000000e+00 : f32
    %10 = vector.broadcast %cst_10 : f32 to vector<128x128xf32>
    %11 = arith.maximumf %9, %10 : vector<128x128xf32>
    %12 = arith.truncf %11 : vector<128x128xf32> to vector<128x128xbf16>
    %c0_11 = arith.constant 0 : index
    %c0_12 = arith.constant 0 : index
    %13 = vector.load %arg6[%c0_11, %c0_12] : memref<128x128xbf16, #tpu.memory_space<vmem>>, vector<128x128xbf16>
    %cst_13 = arith.constant dense<0.000000e+00> : vector<128x128xf32>
    %14 = tpu.matmul %12, %13, %cst_13 {dimension_numbers = #tpu.dot_dimension_numbers<[1], [0], [0], [1], [0, 0, 1, 1], [], []>} : vector<128x128xbf16>, vector<128x128xbf16>, vector<128x128xf32> -> vector<128x128xf32>
    %c0_14 = arith.constant 0 : index
    %c0_15 = arith.constant 0 : index
    %15 = vector.load %arg7[%c0_14, %c0_15] : memref<1x128xf32, #tpu.memory_space<vmem>>, vector<1x128xf32>
    %16 = vector.broadcast %15 : vector<1x128xf32> to vector<128x128xf32>
    %17 = arith.addf %14, %16 : vector<128x128xf32>
    %cst_16 = arith.constant 0.000000e+00 : f32
    %18 = vector.broadcast %cst_16 : f32 to vector<128x128xf32>
    %19 = arith.maximumf %17, %18 : vector<128x128xf32>
    %20 = arith.truncf %19 : vector<128x128xf32> to vector<128x128xbf16>
    %c0_17 = arith.constant 0 : index
    %c0_18 = arith.constant 0 : index
    %21 = vector.load %arg8[%c0_17, %c0_18] : memref<128x256xbf16, #tpu.memory_space<vmem>>, vector<128x256xbf16>
    %cst_19 = arith.constant dense<0.000000e+00> : vector<128x256xf32>
    %22 = tpu.matmul %20, %21, %cst_19 {dimension_numbers = #tpu.dot_dimension_numbers<[1], [0], [0], [1], [0, 0, 1, 1], [], []>} : vector<128x128xbf16>, vector<128x256xbf16>, vector<128x256xf32> -> vector<128x256xf32>
    %c0_20 = arith.constant 0 : index
    %c0_21 = arith.constant 0 : index
    %23 = vector.load %arg9[%c0_20, %c0_21] : memref<1x256xf32, #tpu.memory_space<vmem>>, vector<1x256xf32>
    %24 = vector.broadcast %23 : vector<1x256xf32> to vector<128x256xf32>
    %25 = arith.addf %22, %24 : vector<128x256xf32>
    %cst_22 = arith.constant 0.000000e+00 : f32
    %26 = vector.broadcast %cst_22 : f32 to vector<128x256xf32>
    %27 = arith.maximumf %25, %26 : vector<128x256xf32>
    %28 = vector.shape_cast %27 : vector<128x256xf32> to vector<16x8x256xf32>
    %cst_23 = arith.constant dense<0xFF800000> : vector<16x256xf32>
    %29 = vector.multi_reduction <maximumf>, %28, %cst_23 [1] : vector<16x8x256xf32> to vector<16x256xf32>
    %30 = arith.truncf %29 : vector<16x256xf32> to vector<16x256xbf16>
    %c0_24 = arith.constant 0 : index
    %c0_25 = arith.constant 0 : index
    %31 = vector.load %arg10[%c0_24, %c0_25] : memref<16x256xbf16, #tpu.memory_space<vmem>>, vector<16x256xbf16>
    tpu.vector_store %arg10[%c0_24, %c0_25], %30 {strides = array<i32>} : memref<16x256xbf16, #tpu.memory_space<vmem>>, vector<16x256xbf16>,
    return
  }
  func.func @transform_0(%arg0: i32) -> (i32, i32) {
    %c0_i32 = arith.constant 0 : i32
    %c0_i32_0 = arith.constant 0 : i32
    return %arg0, %c0_i32 : i32, i32
  }
  func.func @transform_1(%arg0: i32) -> (i32, i32) {
    %c0_i32 = arith.constant 0 : i32
    %c0_i32_0 = arith.constant 0 : i32
    return %arg0, %c0_i32 : i32, i32
  }
  func.func @transform_2(%arg0: i32) -> (i32, i32) {
    %c0_i32 = arith.constant 0 : i32
    %c0_i32_0 = arith.constant 0 : i32
    %c0_i32_1 = arith.constant 0 : i32
    return %c0_i32, %c0_i32_0 : i32, i32
  }
  func.func @transform_3(%arg0: i32) -> (i32, i32) {
    %c0_i32 = arith.constant 0 : i32
    %c0_i32_0 = arith.constant 0 : i32
    %c0_i32_1 = arith.constant 0 : i32
    return %c0_i32, %c0_i32_0 : i32, i32
  }
  func.func @transform_4(%arg0: i32) -> (i32, i32) {
    %c0_i32 = arith.constant 0 : i32
    %c0_i32_0 = arith.constant 0 : i32
    %c0_i32_1 = arith.constant 0 : i32
    return %c0_i32, %c0_i32_0 : i32, i32
  }
  func.func @transform_5(%arg0: i32) -> (i32, i32) {
    %c0_i32 = arith.constant 0 : i32
    %c0_i32_0 = arith.constant 0 : i32
    %c0_i32_1 = arith.constant 0 : i32
    return %c0_i32, %c0_i32_0 : i32, i32
  }
  func.func @transform_6(%arg0: i32) -> (i32, i32) {
    %c0_i32 = arith.constant 0 : i32
    %c0_i32_0 = arith.constant 0 : i32
    %c0_i32_1 = arith.constant 0 : i32
    return %c0_i32, %c0_i32_0 : i32, i32
  }
  func.func @transform_7(%arg0: i32) -> (i32, i32) {
    %c0_i32 = arith.constant 0 : i32
    %c0_i32_0 = arith.constant 0 : i32
    %c0_i32_1 = arith.constant 0 : i32
    return %c0_i32, %c0_i32_0 : i32, i32
  }
  func.func @transform_8(%arg0: i32) -> (i32, i32) {
    %c0_i32 = arith.constant 0 : i32
    %c0_i32_0 = arith.constant 0 : i32
    %c0_i32_1 = arith.constant 0 : i32
    return %c0_i32, %c0_i32_0 : i32, i32
  }
  func.func @transform_9(%arg0: i32) -> (i32, i32) {
    %c0_i32 = arith.constant 0 : i32
    %c0_i32_0 = arith.constant 0 : i32
    return %arg0, %c0_i32 : i32, i32
  }
}

module attributes {stable_mosaic.version = 11 : i64} {
  func.func @_global_head_kernel(%arg0: i32, %arg1: memref<1x16x256xbf16, #tpu.memory_space<vmem>>, %arg2: memref<1x16x8xbf16, #tpu.memory_space<vmem>>, %arg3: memref<256x256xbf16, #tpu.memory_space<vmem>>, %arg4: memref<8x256xbf16, #tpu.memory_space<vmem>>, %arg5: memref<1x256xf32, #tpu.memory_space<vmem>>, %arg6: memref<256x512xbf16, #tpu.memory_space<vmem>>, %arg7: memref<1x512xf32, #tpu.memory_space<vmem>>, %arg8: memref<512x1024xbf16, #tpu.memory_space<vmem>>, %arg9: memref<1x1024xf32, #tpu.memory_space<vmem>>, %arg10: memref<1024x512xbf16, #tpu.memory_space<vmem>>, %arg11: memref<1x512xf32, #tpu.memory_space<vmem>>, %arg12: memref<512x256xbf16, #tpu.memory_space<vmem>>, %arg13: memref<1x256xf32, #tpu.memory_space<vmem>>, %arg14: memref<256x128xbf16, #tpu.memory_space<vmem>>, %arg15: memref<1x128xf32, #tpu.memory_space<vmem>>, %arg16: memref<1x1x128xf32, #tpu.memory_space<vmem>>) attributes {dimension_semantics = [#tpu.dimension_semantics<parallel>], iteration_bounds = array<i64: 2>, scalar_prefetch = 0 : i64, scratch_operands = 0 : i64, tpu.core_type = #tpu.core_type<tc>, window_params = [{transform_indices = @transform_0, window_bounds = array<i64: 1, 16, 256>}, {transform_indices = @transform_1, window_bounds = array<i64: 1, 16, 8>}, {pipeline_mode = #tpu.pipeline_mode<synchronous>, transform_indices = @transform_2, window_bounds = array<i64: 256, 256>}, {pipeline_mode = #tpu.pipeline_mode<synchronous>, transform_indices = @transform_3, window_bounds = array<i64: 8, 256>}, {pipeline_mode = #tpu.pipeline_mode<synchronous>, transform_indices = @transform_4, window_bounds = array<i64: 1, 256>}, {pipeline_mode = #tpu.pipeline_mode<synchronous>, transform_indices = @transform_5, window_bounds = array<i64: 256, 512>}, {pipeline_mode = #tpu.pipeline_mode<synchronous>, transform_indices = @transform_6, window_bounds = array<i64: 1, 512>}, {pipeline_mode = #tpu.pipeline_mode<synchronous>, transform_indices = @transform_7, window_bounds = array<i64: 512, 1024>}, {pipeline_mode = #tpu.pipeline_mode<synchronous>, transform_indices = @transform_8, window_bounds = array<i64: 1, 1024>}, {pipeline_mode = #tpu.pipeline_mode<synchronous>, transform_indices = @transform_9, window_bounds = array<i64: 1024, 512>}, {pipeline_mode = #tpu.pipeline_mode<synchronous>, transform_indices = @transform_10, window_bounds = array<i64: 1, 512>}, {pipeline_mode = #tpu.pipeline_mode<synchronous>, transform_indices = @transform_11, window_bounds = array<i64: 512, 256>}, {pipeline_mode = #tpu.pipeline_mode<synchronous>, transform_indices = @transform_12, window_bounds = array<i64: 1, 256>}, {pipeline_mode = #tpu.pipeline_mode<synchronous>, transform_indices = @transform_13, window_bounds = array<i64: 256, 128>}, {pipeline_mode = #tpu.pipeline_mode<synchronous>, transform_indices = @transform_14, window_bounds = array<i64: 1, 128>}, {transform_indices = @transform_15, window_bounds = array<i64: 1, 1, 128>}]} {
    %c0 = arith.constant 0 : index
    %c0_0 = arith.constant 0 : index
    %c0_1 = arith.constant 0 : index
    %0 = vector.load %arg1[%c0, %c0_0, %c0_1] : memref<1x16x256xbf16, #tpu.memory_space<vmem>>, vector<1x16x256xbf16>
    %1 = vector.shape_cast %0 : vector<1x16x256xbf16> to vector<16x256xbf16>
    %c0_2 = arith.constant 0 : index
    %c0_3 = arith.constant 0 : index
    %2 = vector.load %arg3[%c0_2, %c0_3] : memref<256x256xbf16, #tpu.memory_space<vmem>>, vector<256x256xbf16>
    %cst = arith.constant dense<0.000000e+00> : vector<16x256xf32>
    %3 = tpu.matmul %1, %2, %cst {dimension_numbers = #tpu.dot_dimension_numbers<[1], [0], [0], [1], [0, 0, 1, 1], [], []>} : vector<16x256xbf16>, vector<256x256xbf16>, vector<16x256xf32> -> vector<16x256xf32>
    %c0_4 = arith.constant 0 : index
    %c0_5 = arith.constant 0 : index
    %c0_6 = arith.constant 0 : index
    %4 = vector.load %arg2[%c0_4, %c0_5, %c0_6] : memref<1x16x8xbf16, #tpu.memory_space<vmem>>, vector<1x16x8xbf16>
    %5 = vector.shape_cast %4 : vector<1x16x8xbf16> to vector<16x8xbf16>
    %c0_7 = arith.constant 0 : index
    %c0_8 = arith.constant 0 : index
    %6 = vector.load %arg4[%c0_7, %c0_8] : memref<8x256xbf16, #tpu.memory_space<vmem>>, vector<8x256xbf16>
    %cst_9 = arith.constant dense<0.000000e+00> : vector<16x256xf32>
    %7 = tpu.matmul %5, %6, %cst_9 {dimension_numbers = #tpu.dot_dimension_numbers<[1], [0], [0], [1], [0, 0, 1, 1], [], []>} : vector<16x8xbf16>, vector<8x256xbf16>, vector<16x256xf32> -> vector<16x256xf32>
    %8 = arith.addf %3, %7 : vector<16x256xf32>
    %c0_10 = arith.constant 0 : index
    %c0_11 = arith.constant 0 : index
    %9 = vector.load %arg5[%c0_10, %c0_11] : memref<1x256xf32, #tpu.memory_space<vmem>>, vector<1x256xf32>
    %10 = vector.broadcast %9 : vector<1x256xf32> to vector<16x256xf32>
    %11 = arith.addf %8, %10 : vector<16x256xf32>
    %cst_12 = arith.constant 0.000000e+00 : f32
    %12 = vector.broadcast %cst_12 : f32 to vector<16x256xf32>
    %13 = arith.maximumf %11, %12 : vector<16x256xf32>
    %14 = arith.truncf %13 : vector<16x256xf32> to vector<16x256xbf16>
    %c0_13 = arith.constant 0 : index
    %c0_14 = arith.constant 0 : index
    %15 = vector.load %arg6[%c0_13, %c0_14] : memref<256x512xbf16, #tpu.memory_space<vmem>>, vector<256x512xbf16>
    %cst_15 = arith.constant dense<0.000000e+00> : vector<16x512xf32>
    %16 = tpu.matmul %14, %15, %cst_15 {dimension_numbers = #tpu.dot_dimension_numbers<[1], [0], [0], [1], [0, 0, 1, 1], [], []>} : vector<16x256xbf16>, vector<256x512xbf16>, vector<16x512xf32> -> vector<16x512xf32>
    %c0_16 = arith.constant 0 : index
    %c0_17 = arith.constant 0 : index
    %17 = vector.load %arg7[%c0_16, %c0_17] : memref<1x512xf32, #tpu.memory_space<vmem>>, vector<1x512xf32>
    %18 = vector.broadcast %17 : vector<1x512xf32> to vector<16x512xf32>
    %19 = arith.addf %16, %18 : vector<16x512xf32>
    %cst_18 = arith.constant 0.000000e+00 : f32
    %20 = vector.broadcast %cst_18 : f32 to vector<16x512xf32>
    %21 = arith.maximumf %19, %20 : vector<16x512xf32>
    %22 = arith.truncf %21 : vector<16x512xf32> to vector<16x512xbf16>
    %c0_19 = arith.constant 0 : index
    %c0_20 = arith.constant 0 : index
    %23 = vector.load %arg8[%c0_19, %c0_20] : memref<512x1024xbf16, #tpu.memory_space<vmem>>, vector<512x1024xbf16>
    %cst_21 = arith.constant dense<0.000000e+00> : vector<16x1024xf32>
    %24 = tpu.matmul %22, %23, %cst_21 {dimension_numbers = #tpu.dot_dimension_numbers<[1], [0], [0], [1], [0, 0, 1, 1], [], []>} : vector<16x512xbf16>, vector<512x1024xbf16>, vector<16x1024xf32> -> vector<16x1024xf32>
    %c0_22 = arith.constant 0 : index
    %c0_23 = arith.constant 0 : index
    %25 = vector.load %arg9[%c0_22, %c0_23] : memref<1x1024xf32, #tpu.memory_space<vmem>>, vector<1x1024xf32>
    %26 = vector.broadcast %25 : vector<1x1024xf32> to vector<16x1024xf32>
    %27 = arith.addf %24, %26 : vector<16x1024xf32>
    %cst_24 = arith.constant 0.000000e+00 : f32
    %28 = vector.broadcast %cst_24 : f32 to vector<16x1024xf32>
    %29 = arith.maximumf %27, %28 : vector<16x1024xf32>
    %cst_25 = arith.constant dense<0xFF800000> : vector<1024xf32>
    %30 = vector.multi_reduction <maximumf>, %29, %cst_25 [0] : vector<16x1024xf32> to vector<1024xf32>
    %31 = vector.shape_cast %30 : vector<1024xf32> to vector<1x1024xf32>
    %32 = arith.truncf %31 : vector<1x1024xf32> to vector<1x1024xbf16>
    %c0_26 = arith.constant 0 : index
    %c0_27 = arith.constant 0 : index
    %33 = vector.load %arg10[%c0_26, %c0_27] : memref<1024x512xbf16, #tpu.memory_space<vmem>>, vector<1024x512xbf16>
    %cst_28 = arith.constant dense<0.000000e+00> : vector<1x512xf32>
    %34 = tpu.matmul %32, %33, %cst_28 {dimension_numbers = #tpu.dot_dimension_numbers<[1], [0], [0], [1], [0, 0, 1, 1], [], []>} : vector<1x1024xbf16>, vector<1024x512xbf16>, vector<1x512xf32> -> vector<1x512xf32>
    %c0_29 = arith.constant 0 : index
    %c0_30 = arith.constant 0 : index
    %35 = vector.load %arg11[%c0_29, %c0_30] : memref<1x512xf32, #tpu.memory_space<vmem>>, vector<1x512xf32>
    %36 = arith.addf %34, %35 : vector<1x512xf32>
    %cst_31 = arith.constant 0.000000e+00 : f32
    %37 = vector.broadcast %cst_31 : f32 to vector<1x512xf32>
    %38 = arith.maximumf %36, %37 : vector<1x512xf32>
    %39 = arith.truncf %38 : vector<1x512xf32> to vector<1x512xbf16>
    %c0_32 = arith.constant 0 : index
    %c0_33 = arith.constant 0 : index
    %40 = vector.load %arg12[%c0_32, %c0_33] : memref<512x256xbf16, #tpu.memory_space<vmem>>, vector<512x256xbf16>
    %cst_34 = arith.constant dense<0.000000e+00> : vector<1x256xf32>
    %41 = tpu.matmul %39, %40, %cst_34 {dimension_numbers = #tpu.dot_dimension_numbers<[1], [0], [0], [1], [0, 0, 1, 1], [], []>} : vector<1x512xbf16>, vector<512x256xbf16>, vector<1x256xf32> -> vector<1x256xf32>
    %c0_35 = arith.constant 0 : index
    %c0_36 = arith.constant 0 : index
    %42 = vector.load %arg13[%c0_35, %c0_36] : memref<1x256xf32, #tpu.memory_space<vmem>>, vector<1x256xf32>
    %43 = arith.addf %41, %42 : vector<1x256xf32>
    %cst_37 = arith.constant 0.000000e+00 : f32
    %44 = vector.broadcast %cst_37 : f32 to vector<1x256xf32>
    %45 = arith.maximumf %43, %44 : vector<1x256xf32>
    %46 = arith.truncf %45 : vector<1x256xf32> to vector<1x256xbf16>
    %c0_38 = arith.constant 0 : index
    %c0_39 = arith.constant 0 : index
    %47 = vector.load %arg14[%c0_38, %c0_39] : memref<256x128xbf16, #tpu.memory_space<vmem>>, vector<256x128xbf16>
    %cst_40 = arith.constant dense<0.000000e+00> : vector<1x128xf32>
    %48 = tpu.matmul %46, %47, %cst_40 {dimension_numbers = #tpu.dot_dimension_numbers<[1], [0], [0], [1], [0, 0, 1, 1], [], []>} : vector<1x256xbf16>, vector<256x128xbf16>, vector<1x128xf32> -> vector<1x128xf32>
    %c0_41 = arith.constant 0 : index
    %c0_42 = arith.constant 0 : index
    %49 = vector.load %arg15[%c0_41, %c0_42] : memref<1x128xf32, #tpu.memory_space<vmem>>, vector<1x128xf32>
    %50 = arith.addf %48, %49 : vector<1x128xf32>
    %cst_43 = arith.constant dense<0xFF800000> : vector<1xf32>
    %51 = vector.multi_reduction <maximumf>, %50, %cst_43 [1] : vector<1x128xf32> to vector<1xf32>
    %52 = vector.shape_cast %51 : vector<1xf32> to vector<1x1xf32>
    %53 = vector.broadcast %52 : vector<1x1xf32> to vector<1x128xf32>
    %54 = arith.subf %50, %53 : vector<1x128xf32>
    %55 = math.exp %54 : vector<1x128xf32>
    %cst_44 = arith.constant dense<0.000000e+00> : vector<1xf32>
    %56 = vector.multi_reduction <add>, %55, %cst_44 [1] : vector<1x128xf32> to vector<1xf32>
    %57 = vector.shape_cast %56 : vector<1xf32> to vector<1x1xf32>
    %58 = math.log %57 : vector<1x1xf32>
    %59 = arith.addf %52, %58 : vector<1x1xf32>
    %60 = vector.broadcast %59 : vector<1x1xf32> to vector<1x128xf32>
    %61 = arith.subf %50, %60 : vector<1x128xf32>
    %c0_45 = arith.constant 0 : index
    %c0_46 = arith.constant 0 : index
    %c0_47 = arith.constant 0 : index
    %62 = vector.load %arg16[%c0_45, %c0_46, %c0_47] : memref<1x1x128xf32, #tpu.memory_space<vmem>>, vector<1x1x128xf32>
    %63 = vector.shape_cast %62 : vector<1x1x128xf32> to vector<1x128xf32>
    %64 = vector.shape_cast %61 : vector<1x128xf32> to vector<1x1x128xf32>
    tpu.vector_store %arg16[%c0_45, %c0_46, %c0_47], %64 {strides = array<i32>} : memref<1x1x128xf32, #tpu.memory_space<vmem>>, vector<1x1x128xf32>,
    return
  }
  func.func @transform_0(%arg0: i32) -> (i32, i32, i32) {
    %c0_i32 = arith.constant 0 : i32
    %c0_i32_0 = arith.constant 0 : i32
    %c0_i32_1 = arith.constant 0 : i32
    return %arg0, %c0_i32, %c0_i32_0 : i32, i32, i32
  }
  func.func @transform_1(%arg0: i32) -> (i32, i32, i32) {
    %c0_i32 = arith.constant 0 : i32
    %c0_i32_0 = arith.constant 0 : i32
    %c0_i32_1 = arith.constant 0 : i32
    return %arg0, %c0_i32, %c0_i32_0 : i32, i32, i32
  }
  func.func @transform_2(%arg0: i32) -> (i32, i32) {
    %c0_i32 = arith.constant 0 : i32
    %c0_i32_0 = arith.constant 0 : i32
    %c0_i32_1 = arith.constant 0 : i32
    return %c0_i32, %c0_i32_0 : i32, i32
  }
  func.func @transform_3(%arg0: i32) -> (i32, i32) {
    %c0_i32 = arith.constant 0 : i32
    %c0_i32_0 = arith.constant 0 : i32
    %c0_i32_1 = arith.constant 0 : i32
    return %c0_i32, %c0_i32_0 : i32, i32
  }
  func.func @transform_4(%arg0: i32) -> (i32, i32) {
    %c0_i32 = arith.constant 0 : i32
    %c0_i32_0 = arith.constant 0 : i32
    %c0_i32_1 = arith.constant 0 : i32
    return %c0_i32, %c0_i32_0 : i32, i32
  }
  func.func @transform_5(%arg0: i32) -> (i32, i32) {
    %c0_i32 = arith.constant 0 : i32
    %c0_i32_0 = arith.constant 0 : i32
    %c0_i32_1 = arith.constant 0 : i32
    return %c0_i32, %c0_i32_0 : i32, i32
  }
  func.func @transform_6(%arg0: i32) -> (i32, i32) {
    %c0_i32 = arith.constant 0 : i32
    %c0_i32_0 = arith.constant 0 : i32
    %c0_i32_1 = arith.constant 0 : i32
    return %c0_i32, %c0_i32_0 : i32, i32
  }
  func.func @transform_7(%arg0: i32) -> (i32, i32) {
    %c0_i32 = arith.constant 0 : i32
    %c0_i32_0 = arith.constant 0 : i32
    %c0_i32_1 = arith.constant 0 : i32
    return %c0_i32, %c0_i32_0 : i32, i32
  }
  func.func @transform_8(%arg0: i32) -> (i32, i32) {
    %c0_i32 = arith.constant 0 : i32
    %c0_i32_0 = arith.constant 0 : i32
    %c0_i32_1 = arith.constant 0 : i32
    return %c0_i32, %c0_i32_0 : i32, i32
  }
  func.func @transform_9(%arg0: i32) -> (i32, i32) {
    %c0_i32 = arith.constant 0 : i32
    %c0_i32_0 = arith.constant 0 : i32
    %c0_i32_1 = arith.constant 0 : i32
    return %c0_i32, %c0_i32_0 : i32, i32
  }
  func.func @transform_10(%arg0: i32) -> (i32, i32) {
    %c0_i32 = arith.constant 0 : i32
    %c0_i32_0 = arith.constant 0 : i32
    %c0_i32_1 = arith.constant 0 : i32
    return %c0_i32, %c0_i32_0 : i32, i32
  }
  func.func @transform_11(%arg0: i32) -> (i32, i32) {
    %c0_i32 = arith.constant 0 : i32
    %c0_i32_0 = arith.constant 0 : i32
    %c0_i32_1 = arith.constant 0 : i32
    return %c0_i32, %c0_i32_0 : i32, i32
  }
  func.func @transform_12(%arg0: i32) -> (i32, i32) {
    %c0_i32 = arith.constant 0 : i32
    %c0_i32_0 = arith.constant 0 : i32
    %c0_i32_1 = arith.constant 0 : i32
    return %c0_i32, %c0_i32_0 : i32, i32
  }
  func.func @transform_13(%arg0: i32) -> (i32, i32) {
    %c0_i32 = arith.constant 0 : i32
    %c0_i32_0 = arith.constant 0 : i32
    %c0_i32_1 = arith.constant 0 : i32
    return %c0_i32, %c0_i32_0 : i32, i32
  }
  func.func @transform_14(%arg0: i32) -> (i32, i32) {
    %c0_i32 = arith.constant 0 : i32
    %c0_i32_0 = arith.constant 0 : i32
    %c0_i32_1 = arith.constant 0 : i32
    return %c0_i32, %c0_i32_0 : i32, i32
  }
  func.func @transform_15(%arg0: i32) -> (i32, i32, i32) {
    %c0_i32 = arith.constant 0 : i32
    %c0_i32_0 = arith.constant 0 : i32
    %c0_i32_1 = arith.constant 0 : i32
    return %arg0, %c0_i32, %c0_i32_0 : i32, i32, i32
  }
}

</mosaic_0001>

<bundles_post_ra>
// kernel: custom-call.14
= control target key start
LH: loop header
LB: loop body
LE: loop exit
PB: predicated region body
PF: predicated region fallthrough
CT: control target
= control target key end

     0   :  { %s6_s0 = inlined_call_operand.vmem [shape: f32[2,128], index: 0, kind: output, shape index: {}]  }

// kernel: custom-call.15
= control target key start
LH: loop header
LB: loop body
LE: loop exit
PB: predicated region body
PF: predicated region fallthrough
CT: control target
= control target key end

     0   :  { %s6_s0 = inlined_call_operand.vmem [shape: f32[2,32], index: 0, kind: output, shape index: {}]  }

// kernel: _lambda_.3
= control target key start
LH: loop header
LB: loop body
LE: loop exit
PB: predicated region body
PF: predicated region fallthrough
CT: control target
= control target key end

     0   :  { %s2102_s24 = smov 0   ;;  %s2400_s0 = inlined_call_operand.vmem [shape: bf16[512,8], index: 0, kind: input, shape index: {}]   ;;  %s2401_s1 = inlined_call_operand.vmem [shape: bf16[8,64], index: 1, kind: input, shape index: {}]   ;;  %s2402_s2 = inlined_call_operand.vmem [shape: f32[1,64], index: 2, kind: input, shape index: {}]   ;;  %s2403_s3 = inlined_call_operand.vmem [shape: bf16[64,64], index: 3, kind: input, shape index: {}]   ;;  %s2404_s4 = inlined_call_operand.vmem [shape: f32[1,64], index: 4, kind: input, shape index: {}]   ;;  %s2405_s5 = inlined_call_operand.vmem [shape: bf16[64,128], index: 5, kind: input, shape index: {}]   ;;  %s2406_s6 = inlined_call_operand.vmem [shape: f32[1,128], index: 6, kind: input, shape index: {}]   ;;  %s2407_s7 = inlined_call_operand.vmem [shape: bf16[64,128], index: 7, kind: output, shape index: {}]  }
   0x1 LB: > { %s1697_s25 = sadd.s32 4294967295, %s2060_s24   ;;  %p1701_p0 = scmp.ge.s32.totalorder %s2060_s24, 1  ;;  %s2060_s24 = sphi %s2102_s24, %s17_s24  }
   0x2   : > { %p238_p1 = scmp.lt.s32.totalorder %s2060_s24, 3 }
   0x4   : > { %p239_p2 = pnand %p1701_p0, %p238_p1 }
   0x5   : > { %v315_v0 = vld [vmem:[%s2401_s1] sm:$0xf] (!%p239_p2)  ;;  %vm452_vm0 = vcmask (!%p239_p2), 1043456   ;;  %s1702_s28 = sshll.u32 (!%p239_p2), %s1697_s25, 5  ;;  %vm403_vm1 = vcmask (!%p239_p2), 64512   ;;  %v2047_v9 = vld [vmem:[%s2403_s3 + $0x8] sm:$0xff] (!%p239_p2)  }
   0x6   : > { %242 = sbr.rel (%p239_p2) target bundleno = 779 (0x30b), region = 48  ;;  %v2046_v1 = vld [vmem:[%s2403_s3] sm:$0xff] (!%p239_p2)   ;;  %2020 = vmatprep.subr.msk.bf16.mxu0 (!%p239_p2), %vm452_vm0, %v315_v0  ;;  %v454_v2 = vsel (!%p239_p2), %vm452_vm0, %v315_v0, 0  ;;  %p271_p3 = scmp.lt.s32.totalorder (!%p239_p2), %s1702_s28, 63  ;;  %2021 = vmatprep.subr.msk.bf16.mxu1 (!%p239_p2), %vm452_vm0, %v315_v0  ;;  %v2048_v12 = vld [vmem:[%s2403_s3 + $0x10] sm:$0xff] (!%p239_p2)   ;;  %v2049_v21 = vld [vmem:[%s2403_s3 + $0x18] sm:$0xff] (!%p239_p2)  }
   0x7   : > { %1905 = vmatpush3.bf16.msra.mxu0 (!%p239_p2), %v454_v2  ;;  %2019 = vmatpush3.bf16.msra.mxu1 (!%p239_p2), %v454_v2  ;;  %v2050_v22 = vld [vmem:[%s2405_s5] sm:$0xff] (!%p239_p2)   ;;  %v2051_v23 = vld [vmem:[%s2405_s5 + $0x8] sm:$0xff] (!%p239_p2)   ;;  %v2052_v24 = vld [vmem:[%s2405_s5 + $0x10] sm:$0xff] (!%p239_p2)   ;;  %vm704_vm2 = vcmask (!%p239_p2), 523264   ;;  %vm1594_vm3 = vcmask (!%p239_p2), 1041409   ;;  %vm1596_vm4 = vcmask (!%p239_p2), 1042434  }
   0x8   : > { %1938 = vmatprep.subr.bf16.mxu1 (!%p239_p2), %v2046_v1  ;;  %1978 = vmatprep.subr.bf16.mxu0 (!%p239_p2), %v2050_v22  ;;  %v2176_v25 = vld [vmem:[%s2402_s2] ss:$0 sm:$0xff] (!%p239_p2)  ;;  %vm1598_vm5 = vcmask (!%p239_p2), 1043459   ;;  %vm1600_vm6 = vcmask (!%p239_p2), 1044484   ;;  %vm1602_vm7 = vcmask (!%p239_p2), 1045509   ;;  %vm1604_vm8 = vcmask (!%p239_p2), 1046534  }
   0x9   : > { %vm1606_vm9 = vcmask (!%p239_p2), 1047559  }
   0xd   : > { %s2409_s28 = smov (!%p271_p3, %s1702_s28), 63 }
   0xe   : > { %s1703_s8 = sshll.u32 %s2409_s28, 2 }
   0xf   : > { %s2121_s11 = scalar_lea.vmem %s2400_s0, %s1703_s8 }
  0x10   : > { %v2030_v3 = vld [vmem:[%s2121_s11] sm:$0xff]   ;;  %v2031_v4 = vld [vmem:[%s2121_s11 + $0x8] sm:$0xff]   ;;  %v2032_v5 = vld [vmem:[%s2121_s11 + $0x10] sm:$0xff]  }
  0x11   : > { %1906 = vmatprep.mubr.msk.bf16.mxu0 %vm403_vm1, %v2030_v3  ;;  %v2033_v6 = vld [vmem:[%s2121_s11 + $0x18] sm:$0xff]   ;;  %v2034_v7 = vld [vmem:[%s2121_s11 + $0x20] sm:$0xff]   ;;  %v2039_v10 = vld [vmem:[%s2121_s11 + $0x48] sm:$0xff]  }
  0x12   : > { %1907 = vmatmul.mubr.msk.bf16.vlgmr.msra.gmra.mrb[0].mxu0 %vm403_vm1, %v2031_v4  ;;  %v2038_v8 = vld [vmem:[%s2121_s11 + $0x40] sm:$0xff]   ;;  %v2040_v11 = vld [vmem:[%s2121_s11 + $0x50] sm:$0xff]   ;;  %v2035_v13 = vld [vmem:[%s2121_s11 + $0x28] sm:$0xff]  }
  0x13   : > { %1910 = vmatprep.mubr.msk.bf16.mxu0 %vm403_vm1, %v2032_v5  ;;  %1922 = vmatprep.mubr.msk.bf16.mxu1 %vm403_vm1, %v2038_v8  ;;  %v2036_v14 = vld [vmem:[%s2121_s11 + $0x30] sm:$0xff]   ;;  %v2041_v15 = vld [vmem:[%s2121_s11 + $0x58] sm:$0xff]   ;;  %v2042_v16 = vld [vmem:[%s2121_s11 + $0x60] sm:$0xff]  }
  0x14   : > { %1923 = vmatmul.mubr.msk.bf16.vlgmr.msra.gmra.mrb[0].mxu1 %vm403_vm1, %v2039_v10  ;;  %v2037_v17 = vld [vmem:[%s2121_s11 + $0x38] sm:$0xff]   ;;  %v2043_v18 = vld [vmem:[%s2121_s11 + $0x68] sm:$0xff]   ;;  %v2044_v19 = vld [vmem:[%s2121_s11 + $0x70] sm:$0xff]   ;;  %1979 = vmatpush3.bf16.msra.mxu0 %v2050_v22 }
  0x15   : > { %1926 = vmatprep.mubr.msk.bf16.mxu1 %vm403_vm1, %v2040_v11  ;;  %1939 = vmatpush3.bf16.msra.mxu1 %v2046_v1  ;;  %v2045_v20 = vld [vmem:[%s2121_s11 + $0x78] sm:$0xff]   ;;  %s2303_s11 = sshll.u32 %s1697_s25, 2 }
  0x16   : > { %1940 = vmatprep.subr.bf16.mxu1 %v2047_v9  ;;  %1980 = vmatprep.subr.bf16.mxu0 %v2051_v23  ;;  %p277_p4 = scmp.lt.s32.totalorder %s2303_s11, 7 }
  0x18   : > { %1981 = vmatpush3.bf16.msra.mxu0 %v2051_v23  ;;  %s2411_s11 = smov (!%p277_p4, %s2303_s11), 7 }
  0x19   : > { %1941 = vmatpush3.bf16.msra.mxu1 %v2047_v9  ;;  %1982 = vmatprep.subr.bf16.mxu0 %v2052_v24  ;;  %s1705_s25 = sshll.u32 %s2411_s11, 2 }
  0x1a   : > { %1911 = vmatmul.mubr.msk.bf16.gmra.mrb[4].mxu0 %vm403_vm1, %v2033_v6  ;;  %1942 = vmatprep.subr.bf16.mxu1 %v2048_v12  ;;  %s2328_s14 = scalar_lea.vmem %s2407_s7, %s1705_s25 }
  0x1b   : > { %1914 = vmatprep.mubr.msk.bf16.mxu0 %vm403_vm1, %v2034_v7 }
  0x1c   : > { %1927 = vmatmul.mubr.msk.bf16.gmra.mrb[4].mxu1 %vm403_vm1, %v2041_v15  ;;  %1983 = vmatpush3.bf16.msra.mxu0 %v2052_v24 }
  0x1d   : > { %1930 = vmatprep.mubr.msk.bf16.mxu1 %vm403_vm1, %v2042_v16  ;;  %1943 = vmatpush3.bf16.msra.mxu1 %v2048_v12 }
  0x1e   : > { %1944 = vmatprep.subr.bf16.mxu1 %v2049_v21 }
  0x21   : > { %1945 = vmatpush3.bf16.msra.mxu1 %v2049_v21 }
  0x22   : > { %1915 = vmatmul.mubr.msk.bf16.gmra.mrb[8].mxu0 %vm403_vm1, %v2035_v13 }
  0x23   : > { %1918 = vmatprep.mubr.msk.bf16.mxu0 %vm403_vm1, %v2036_v14 }
  0x24   : > { %1931 = vmatmul.mubr.msk.bf16.gmra.mrb[8].mxu1 %vm403_vm1, %v2043_v18 }
  0x25   : > { %1934 = vmatprep.mubr.msk.bf16.mxu1 %vm403_vm1, %v2044_v19 }
  0x2a   : > { %1919 = vmatmul.mubr.msk.bf16.gmra.mrb[12].mxu0 %vm403_vm1, %v2037_v17 }
  0x2c   : > { %1935 = vmatmul.mubr.msk.bf16.gmra.mrb[12].mxu1 %vm403_vm1, %v2045_v20 }
  0xe5   : > { %v1908_v26 = vpop.f32.mrb[0].mxu0 }
  0xe6   : > { %v499_v27 = vadd.f32 %v1908_v26, %v2176_v25  ;;  %v490_v28 = vpop.f32.mrb[1].mxu0 }
  0xe7   : > { %v491_v29 = vadd.f32 %v2176_v25, %v490_v28  ;;  %v1909_v30 = vpop.f32.mrb[2].mxu0  ;;  %v1924_v41 = vpop.f32.mrb[0].mxu1 }
  0xe8   : > { %v502_v31 = vadd.f32 %v1909_v30, %v2176_v25  ;;  %v493_v32 = vpop.f32.mrb[3].mxu0  ;;  %v619_v34 = vmax.f32 %v499_v27, 0.0  ;;  %v563_v44 = vadd.f32 %v1924_v41, %v2176_v25  ;;  %v554_v45 = vpop.f32.mrb[1].mxu1 }
  0xe9   : > { %v494_v33 = vadd.f32 %v2176_v25, %v493_v32  ;;  %v617_v36 = vmax.f32 %v491_v29, 0.0  ;;  %v555_v48 = vadd.f32 %v2176_v25, %v554_v45  ;;  %v1925_v49 = vpop.f32.mrb[2].mxu1 }
  0xea   : > { %v620_v35 = vmax.f32 %v502_v31, 0.0  ;;  %v635_v52 = vmax.f32 %v563_v44, 0.0  ;;  %v566_v53 = vadd.f32 %v1925_v49, %v2176_v25  ;;  %v557_v54 = vpop.f32.mrb[3].mxu1 }
  0xeb   : > { %v618_v37 = vmax.f32 %v494_v33, 0.0  ;;  %v633_v56 = vmax.f32 %v555_v48, 0.0  ;;  %v558_v57 = vadd.f32 %v2176_v25, %v557_v54 }
  0xec   : > { %v650_v38 = vpack.c.bf16 %v620_v35, %v619_v34  ;;  %v636_v60 = vmax.f32 %v566_v53, 0.0 }
  0xed   : > { %v649_v39 = vpack.c.bf16 %v618_v37, %v617_v36  ;;  %v1912_v40 = vpop.f32.mrb[4].mxu0  ;;  %v634_v63 = vmax.f32 %v558_v57, 0.0 }
  0xee   : > { %v515_v42 = vadd.f32 %v1912_v40, %v2176_v25  ;;  %v506_v43 = vpop.f32.mrb[5].mxu0  ;;  %v2192_v1 = vpack.c.bf16 %v636_v60, %v635_v52 }
  0xef   : > { %v507_v46 = vadd.f32 %v2176_v25, %v506_v43  ;;  %v1913_v47 = vpop.f32.mrb[6].mxu0  ;;  %1946 = vmatprep.mubr.msk.bf16.mxu1 %vm704_vm2, %v649_v39  ;;  %v2194_v4 = vpack.c.bf16 %v634_v63, %v633_v56  ;;  %v1928_v5 = vpop.f32.mrb[4].mxu1 }
  0xf0   : > { %v518_v50 = vadd.f32 %v1913_v47, %v2176_v25  ;;  %v509_v51 = vpop.f32.mrb[7].mxu0  ;;  %1947 = vmatmul.mubr.msk.bf16.vlgmr.msra.gmra.mrb[16].mxu1 %vm704_vm2, %v650_v38  ;;  %v623_v58 = vmax.f32 %v515_v42, 0.0  ;;  %v579_v8 = vadd.f32 %v1928_v5, %v2176_v25  ;;  %v570_v9 = vpop.f32.mrb[5].mxu1 }
  0xf1   : > { %v510_v55 = vadd.f32 %v2176_v25, %v509_v51  ;;  %v621_v61 = vmax.f32 %v507_v46, 0.0  ;;  %v571_v12 = vadd.f32 %v2176_v25, %v570_v9  ;;  %v1929_v13 = vpop.f32.mrb[6].mxu1 }
  0xf2   : > { %v624_v59 = vmax.f32 %v518_v50, 0.0  ;;  %v639_v16 = vmax.f32 %v579_v8, 0.0  ;;  %v582_v17 = vadd.f32 %v1929_v13, %v2176_v25  ;;  %v573_v18 = vpop.f32.mrb[7].mxu1 }
  0xf3   : > { %v622_v62 = vmax.f32 %v510_v55, 0.0  ;;  %v637_v20 = vmax.f32 %v571_v12, 0.0  ;;  %v574_v21 = vadd.f32 %v2176_v25, %v573_v18 }
  0xf4   : > { %v652_v0 = vpack.c.bf16 %v624_v59, %v623_v58  ;;  %v640_v24 = vmax.f32 %v582_v17, 0.0 }
  0xf5   : > { %v651_v2 = vpack.c.bf16 %v622_v62, %v621_v61  ;;  %v1916_v3 = vpop.f32.mrb[8].mxu0  ;;  %v638_v28 = vmax.f32 %v574_v21, 0.0 }
  0xf6   : > { %v531_v6 = vadd.f32 %v1916_v3, %v2176_v25  ;;  %v522_v7 = vpop.f32.mrb[9].mxu0  ;;  %v660_v30 = vpack.c.bf16 %v640_v24, %v639_v16 }
  0xf7   : > { %v523_v10 = vadd.f32 %v2176_v25, %v522_v7  ;;  %v1917_v11 = vpop.f32.mrb[10].mxu0  ;;  %1950 = vmatprep.mubr.msk.bf16.mxu1 %vm704_vm2, %v651_v2  ;;  %v659_v33 = vpack.c.bf16 %v638_v28, %v637_v20  ;;  %v1932_v34 = vpop.f32.mrb[8].mxu1 }
  0xf8   : > { %v534_v14 = vadd.f32 %v1917_v11, %v2176_v25  ;;  %v525_v15 = vpop.f32.mrb[11].mxu0  ;;  %1951 = vmatmul.mubr.msk.bf16.gmra.mrb[20].mxu1 %vm704_vm2, %v652_v0  ;;  %v627_v22 = vmax.f32 %v531_v6, 0.0  ;;  %v595_v37 = vadd.f32 %v1932_v34, %v2176_v25  ;;  %v586_v38 = vpop.f32.mrb[9].mxu1 }
  0xf9   : > { %v526_v19 = vadd.f32 %v2176_v25, %v525_v15  ;;  %v625_v26 = vmax.f32 %v523_v10, 0.0  ;;  %v587_v41 = vadd.f32 %v2176_v25, %v586_v38  ;;  %v1933_v42 = vpop.f32.mrb[10].mxu1 }
  0xfa   : > { %v628_v23 = vmax.f32 %v534_v14, 0.0  ;;  %v643_v45 = vmax.f32 %v595_v37, 0.0  ;;  %v598_v46 = vadd.f32 %v1933_v42, %v2176_v25  ;;  %v589_v47 = vpop.f32.mrb[11].mxu1 }
  0xfb   : > { %v626_v27 = vmax.f32 %v526_v19, 0.0  ;;  %v641_v49 = vmax.f32 %v587_v41, 0.0  ;;  %v590_v50 = vadd.f32 %v2176_v25, %v589_v47 }
  0xfc   : > { %v654_v29 = vpack.c.bf16 %v628_v23, %v627_v22  ;;  %v644_v53 = vmax.f32 %v598_v46, 0.0 }
  0xfd   : > { %v653_v31 = vpack.c.bf16 %v626_v27, %v625_v26  ;;  %v1920_v32 = vpop.f32.mrb[12].mxu0  ;;  %v642_v56 = vmax.f32 %v590_v50, 0.0 }
  0xfe   : > { %v547_v35 = vadd.f32 %v1920_v32, %v2176_v25  ;;  %v538_v36 = vpop.f32.mrb[13].mxu0  ;;  %v662_v58 = vpack.c.bf16 %v644_v53, %v643_v45 }
  0xff   : > { %v539_v39 = vadd.f32 %v2176_v25, %v538_v36  ;;  %v1921_v40 = vpop.f32.mrb[14].mxu0  ;;  %1954 = vmatprep.mubr.msk.bf16.mxu1 %vm704_vm2, %v653_v31  ;;  %v661_v60 = vpack.c.bf16 %v642_v56, %v641_v49  ;;  %v1936_v61 = vpop.f32.mrb[12].mxu1 }
 0x100   : > { %v550_v43 = vadd.f32 %v1921_v40, %v2176_v25  ;;  %v541_v44 = vpop.f32.mrb[15].mxu0  ;;  %1955 = vmatmul.mubr.msk.bf16.gmra.mrb[24].mxu1 %vm704_vm2, %v654_v29  ;;  %v631_v51 = vmax.f32 %v547_v35, 0.0  ;;  %v611_v62 = vadd.f32 %v1936_v61, %v2176_v25  ;;  %v602_v63 = vpop.f32.mrb[13].mxu1 }
 0x101   : > { %v542_v48 = vadd.f32 %v2176_v25, %v541_v44  ;;  %v629_v54 = vmax.f32 %v539_v39, 0.0  ;;  %v603_v0 = vadd.f32 %v2176_v25, %v602_v63  ;;  %v1937_v2 = vpop.f32.mrb[14].mxu1 }
 0x102   : > { %v632_v52 = vmax.f32 %v550_v43, 0.0  ;;  %v647_v3 = vmax.f32 %v611_v62, 0.0  ;;  %v614_v5 = vadd.f32 %v1937_v2, %v2176_v25  ;;  %v605_v6 = vpop.f32.mrb[15].mxu1 }
 0x103   : > { %v630_v55 = vmax.f32 %v542_v48, 0.0  ;;  %v645_v7 = vmax.f32 %v603_v0, 0.0  ;;  %v606_v8 = vadd.f32 %v2176_v25, %v605_v6  ;;  %v2053_v25 = vld [vmem:[%s2405_s5 + $0x18] sm:$0xff]  }
 0x104   : > { %v656_v57 = vpack.c.bf16 %v632_v52, %v631_v51  ;;  %v648_v9 = vmax.f32 %v614_v5, 0.0  ;;  %1984 = vmatprep.subr.bf16.mxu0 %v2053_v25 }
 0x105   : > { %v655_v59 = vpack.c.bf16 %v630_v55, %v629_v54  ;;  %v646_v10 = vmax.f32 %v606_v8, 0.0  ;;  %1985 = vmatpush3.bf16.msra.mxu0 %v2053_v25 }
 0x106   : > { %v664_v11 = vpack.c.bf16 %v648_v9, %v647_v3 }
 0x107   : > { %1958 = vmatprep.mubr.msk.bf16.mxu1 %vm704_vm2, %v655_v59  ;;  %v663_v12 = vpack.c.bf16 %v646_v10, %v645_v7 }
 0x108   : > { %1959 = vmatmul.mubr.msk.bf16.gmra.mrb[28].mxu1 %vm704_vm2, %v656_v57 }
 0x109   : > { %1962 = vmatprep.mubr.msk.bf16.mxu1 %vm704_vm2, %v2194_v4 }
 0x110   : > { %1963 = vmatmul.mubr.msk.bf16.gmra.mrb[32].mxu1 %vm704_vm2, %v2192_v1  ;;  %v2238_v1 = vld [vmem:[%s2404_s4] ss:$0 sm:$0xff] }
 0x111   : > { %1966 = vmatprep.mubr.msk.bf16.mxu1 %vm704_vm2, %v659_v33 }
 0x118   : > { %1967 = vmatmul.mubr.msk.bf16.gmra.mrb[36].mxu1 %vm704_vm2, %v660_v30 }
 0x119   : > { %1970 = vmatprep.mubr.msk.bf16.mxu1 %vm704_vm2, %v661_v60 }
 0x120   : > { %1971 = vmatmul.mubr.msk.bf16.gmra.mrb[40].mxu1 %vm704_vm2, %v662_v58 }
 0x121   : > { %1974 = vmatprep.mubr.msk.bf16.mxu1 %vm704_vm2, %v663_v12 }
 0x128   : > { %1975 = vmatmul.mubr.msk.bf16.gmra.mrb[44].mxu1 %vm704_vm2, %v664_v11 }
 0x1c3   : > { %v1948_v4 = vpop.f32.mrb[16].mxu1 }
 0x1c4   : > { %v796_v13 = vadd.f32 %v1948_v4, %v2238_v1  ;;  %v787_v14 = vpop.f32.mrb[17].mxu1 }
 0x1c5   : > { %v788_v15 = vadd.f32 %v2238_v1, %v787_v14  ;;  %v1949_v16 = vpop.f32.mrb[18].mxu1 }
 0x1c6   : > { %v799_v17 = vadd.f32 %v1949_v16, %v2238_v1  ;;  %v790_v18 = vpop.f32.mrb[19].mxu1  ;;  %v916_v20 = vmax.f32 %v796_v13, 0.0 }
 0x1c7   : > { %v791_v19 = vadd.f32 %v2238_v1, %v790_v18  ;;  %v914_v22 = vmax.f32 %v788_v15, 0.0 }
 0x1c8   : > { %v917_v21 = vmax.f32 %v799_v17, 0.0 }
 0x1c9   : > { %v915_v23 = vmax.f32 %v791_v19, 0.0 }
 0x1ca   : > { %v947_v24 = vpack.c.bf16 %v917_v21, %v916_v20 }
 0x1cb   : > { %v946_v26 = vpack.c.bf16 %v915_v23, %v914_v22  ;;  %v1952_v27 = vpop.f32.mrb[20].mxu1 }
 0x1cc   : > { %v812_v28 = vadd.f32 %v1952_v27, %v2238_v1  ;;  %v803_v29 = vpop.f32.mrb[21].mxu1 }
 0x1cd   : > { %v804_v30 = vadd.f32 %v2238_v1, %v803_v29  ;;  %v1953_v31 = vpop.f32.mrb[22].mxu1  ;;  %1986 = vmatprep.mubr.msk.bf16.mxu0 %vm704_vm2, %v946_v26 }
 0x1ce   : > { %v815_v32 = vadd.f32 %v1953_v31, %v2238_v1  ;;  %v806_v33 = vpop.f32.mrb[23].mxu1  ;;  %1987 = vmatmul.mubr.msk.bf16.vlgmr.msra.gmra.mrb[16].mxu0 %vm704_vm2, %v947_v24  ;;  %v920_v35 = vmax.f32 %v812_v28, 0.0 }
 0x1cf   : > { %v807_v34 = vadd.f32 %v2238_v1, %v806_v33  ;;  %v918_v37 = vmax.f32 %v804_v30, 0.0 }
 0x1d0   : > { %v921_v36 = vmax.f32 %v815_v32, 0.0 }
 0x1d1   : > { %v919_v38 = vmax.f32 %v807_v34, 0.0 }
 0x1d2   : > { %v949_v39 = vpack.c.bf16 %v921_v36, %v920_v35 }
 0x1d3   : > { %v948_v40 = vpack.c.bf16 %v919_v38, %v918_v37  ;;  %v1956_v41 = vpop.f32.mrb[24].mxu1 }
 0x1d4   : > { %v828_v42 = vadd.f32 %v1956_v41, %v2238_v1  ;;  %v819_v43 = vpop.f32.mrb[25].mxu1 }
 0x1d5   : > { %v820_v44 = vadd.f32 %v2238_v1, %v819_v43  ;;  %v1957_v45 = vpop.f32.mrb[26].mxu1  ;;  %1990 = vmatprep.mubr.msk.bf16.mxu0 %vm704_vm2, %v948_v40 }
 0x1d6   : > { %v831_v46 = vadd.f32 %v1957_v45, %v2238_v1  ;;  %v822_v47 = vpop.f32.mrb[27].mxu1  ;;  %1991 = vmatmul.mubr.msk.bf16.gmra.mrb[20].mxu0 %vm704_vm2, %v949_v39  ;;  %v924_v49 = vmax.f32 %v828_v42, 0.0 }
 0x1d7   : > { %v823_v48 = vadd.f32 %v2238_v1, %v822_v47  ;;  %v922_v51 = vmax.f32 %v820_v44, 0.0 }
 0x1d8   : > { %v925_v50 = vmax.f32 %v831_v46, 0.0 }
 0x1d9   : > { %v923_v52 = vmax.f32 %v823_v48, 0.0 }
 0x1da   : > { %v951_v53 = vpack.c.bf16 %v925_v50, %v924_v49 }
 0x1db   : > { %v950_v54 = vpack.c.bf16 %v923_v52, %v922_v51  ;;  %v1960_v55 = vpop.f32.mrb[28].mxu1 }
 0x1dc   : > { %v844_v56 = vadd.f32 %v1960_v55, %v2238_v1  ;;  %v835_v57 = vpop.f32.mrb[29].mxu1 }
 0x1dd   : > { %v836_v58 = vadd.f32 %v2238_v1, %v835_v57  ;;  %v1961_v59 = vpop.f32.mrb[30].mxu1  ;;  %1994 = vmatprep.mubr.msk.bf16.mxu0 %vm704_vm2, %v950_v54 }
 0x1de   : > { %v847_v60 = vadd.f32 %v1961_v59, %v2238_v1  ;;  %v838_v61 = vpop.f32.mrb[31].mxu1  ;;  %1995 = vmatmul.mubr.msk.bf16.gmra.mrb[24].mxu0 %vm704_vm2, %v951_v53  ;;  %v928_v63 = vmax.f32 %v844_v56, 0.0 }
 0x1df   : > { %v839_v62 = vadd.f32 %v2238_v1, %v838_v61  ;;  %v926_v2 = vmax.f32 %v836_v58, 0.0 }
 0x1e0   : > { %v929_v0 = vmax.f32 %v847_v60, 0.0 }
 0x1e1   : > { %v927_v3 = vmax.f32 %v839_v62, 0.0  ;;  %v2291_v62 = vld [vmem:[%s2406_s6] ss:$0 sm:$0xff] }
 0x1e2   : > { %v953_v5 = vpack.c.bf16 %v929_v0, %v928_v63 }
 0x1e3   : > { %v952_v6 = vpack.c.bf16 %v927_v3, %v926_v2  ;;  %v1964_v7 = vpop.f32.mrb[32].mxu1 }
 0x1e4   : > { %v860_v8 = vadd.f32 %v1964_v7, %v2238_v1  ;;  %v851_v9 = vpop.f32.mrb[33].mxu1 }
 0x1e5   : > { %v852_v10 = vadd.f32 %v2238_v1, %v851_v9  ;;  %v1965_v11 = vpop.f32.mrb[34].mxu1  ;;  %1998 = vmatprep.mubr.msk.bf16.mxu0 %vm704_vm2, %v952_v6 }
 0x1e6   : > { %v863_v12 = vadd.f32 %v1965_v11, %v2238_v1  ;;  %v854_v25 = vpop.f32.mrb[35].mxu1  ;;  %1999 = vmatmul.mubr.msk.bf16.gmra.mrb[28].mxu0 %vm704_vm2, %v953_v5  ;;  %v932_v13 = vmax.f32 %v860_v8, 0.0 }
 0x1e7   : > { %v855_v4 = vadd.f32 %v2238_v1, %v854_v25  ;;  %v930_v15 = vmax.f32 %v852_v10, 0.0 }
 0x1e8   : > { %v933_v14 = vmax.f32 %v863_v12, 0.0 }
 0x1e9   : > { %v931_v16 = vmax.f32 %v855_v4, 0.0 }
 0x1ea   : > { %v955_v17 = vpack.c.bf16 %v933_v14, %v932_v13 }
 0x1eb   : > { %v954_v18 = vpack.c.bf16 %v931_v16, %v930_v15  ;;  %v1968_v19 = vpop.f32.mrb[36].mxu1 }
 0x1ec   : > { %v876_v20 = vadd.f32 %v1968_v19, %v2238_v1  ;;  %v867_v21 = vpop.f32.mrb[37].mxu1 }
 0x1ed   : > { %v868_v22 = vadd.f32 %v2238_v1, %v867_v21  ;;  %v1969_v23 = vpop.f32.mrb[38].mxu1  ;;  %2002 = vmatprep.mubr.msk.bf16.mxu0 %vm704_vm2, %v954_v18 }
 0x1ee   : > { %v879_v24 = vadd.f32 %v1969_v23, %v2238_v1  ;;  %v870_v26 = vpop.f32.mrb[39].mxu1  ;;  %2003 = vmatmul.mubr.msk.bf16.gmra.mrb[32].mxu0 %vm704_vm2, %v955_v17  ;;  %v936_v28 = vmax.f32 %v876_v20, 0.0 }
 0x1ef   : > { %v871_v27 = vadd.f32 %v2238_v1, %v870_v26  ;;  %v934_v30 = vmax.f32 %v868_v22, 0.0 }
 0x1f0   : > { %v937_v29 = vmax.f32 %v879_v24, 0.0 }
 0x1f1   : > { %v935_v31 = vmax.f32 %v871_v27, 0.0 }
 0x1f2   : > { %v957_v32 = vpack.c.bf16 %v937_v29, %v936_v28 }
 0x1f3   : > { %v956_v33 = vpack.c.bf16 %v935_v31, %v934_v30  ;;  %v1972_v34 = vpop.f32.mrb[40].mxu1 }
 0x1f4   : > { %v892_v35 = vadd.f32 %v1972_v34, %v2238_v1  ;;  %v883_v36 = vpop.f32.mrb[41].mxu1 }
 0x1f5   : > { %v884_v37 = vadd.f32 %v2238_v1, %v883_v36  ;;  %v1973_v38 = vpop.f32.mrb[42].mxu1  ;;  %2006 = vmatprep.mubr.msk.bf16.mxu0 %vm704_vm2, %v956_v33 }
 0x1f6   : > { %v895_v39 = vadd.f32 %v1973_v38, %v2238_v1  ;;  %v886_v40 = vpop.f32.mrb[43].mxu1  ;;  %2007 = vmatmul.mubr.msk.bf16.gmra.mrb[36].mxu0 %vm704_vm2, %v957_v32  ;;  %v940_v42 = vmax.f32 %v892_v35, 0.0 }
 0x1f7   : > { %v887_v41 = vadd.f32 %v2238_v1, %v886_v40  ;;  %v938_v44 = vmax.f32 %v884_v37, 0.0 }
 0x1f8   : > { %v941_v43 = vmax.f32 %v895_v39, 0.0 }
 0x1f9   : > { %v939_v45 = vmax.f32 %v887_v41, 0.0 }
 0x1fa   : > { %v959_v46 = vpack.c.bf16 %v941_v43, %v940_v42 }
 0x1fb   : > { %v958_v47 = vpack.c.bf16 %v939_v45, %v938_v44  ;;  %v1976_v48 = vpop.f32.mrb[44].mxu1 }
 0x1fc   : > { %v908_v49 = vadd.f32 %v1976_v48, %v2238_v1  ;;  %v899_v50 = vpop.f32.mrb[45].mxu1 }
 0x1fd   : > { %v900_v51 = vadd.f32 %v2238_v1, %v899_v50  ;;  %v1977_v52 = vpop.f32.mrb[46].mxu1  ;;  %2010 = vmatprep.mubr.msk.bf16.mxu0 %vm704_vm2, %v958_v47 }
 0x1fe   : > { %v911_v53 = vadd.f32 %v1977_v52, %v2238_v1  ;;  %v902_v54 = vpop.f32.mrb[47].mxu1  ;;  %2011 = vmatmul.mubr.msk.bf16.gmra.mrb[40].mxu0 %vm704_vm2, %v959_v46  ;;  %v944_v56 = vmax.f32 %v908_v49, 0.0 }
 0x1ff   : > { %v903_v55 = vadd.f32 %v2238_v1, %v902_v54  ;;  %v942_v58 = vmax.f32 %v900_v51, 0.0 }
 0x200   : > { %v945_v57 = vmax.f32 %v911_v53, 0.0 }
 0x201   : > { %v943_v59 = vmax.f32 %v903_v55, 0.0 }
 0x202   : > { %v961_v60 = vpack.c.bf16 %v945_v57, %v944_v56 }
 0x203   : > { %v960_v61 = vpack.c.bf16 %v943_v59, %v942_v58 }
 0x205   : > { %2014 = vmatprep.mubr.msk.bf16.mxu0 %vm704_vm2, %v960_v61 }
 0x206   : > { %2015 = vmatmul.mubr.msk.bf16.gmra.mrb[44].mxu0 %vm704_vm2, %v961_v60 }
 0x2a1   : > { %v1988_v63 = vpop.f32.mrb[16].mxu0 }
 0x2a2   : > { %v1092_v0 = vadd.f32 %v1988_v63, %v2291_v62  ;;  %v1083_v2 = vpop.f32.mrb[17].mxu0 }
 0x2a3   : > { %v1084_v1 = vadd.f32 %v2291_v62, %v1083_v2  ;;  %v1989_v3 = vpop.f32.mrb[18].mxu0 }
 0x2a4   : > { %v1212_v5 = vmax.f32 %v1092_v0, 0.0  ;;  %v1095_v6 = vadd.f32 %v1989_v3, %v2291_v62  ;;  %v1086_v7 = vpop.f32.mrb[19].mxu0 }
 0x2a5   : > { %v1210_v8 = vmax.f32 %v1084_v1, 0.0  ;;  %v1087_v9 = vadd.f32 %v2291_v62, %v1086_v7 }
 0x2a6   : > { %v1254_v10 = vrot.slane %v1212_v5, 4  ;;  %v1213_v11 = vmax.f32 %v1095_v6, 0.0 }
 0x2a7   : > { %v1242_v12 = vrot.slane %v1210_v8, 4  ;;  %v1211_v25 = vmax.f32 %v1087_v9, 0.0 }
 0x2a8   : > { %v1255_v4 = vmax.f32 %v1212_v5, %v1254_v10  ;;  %v1260_v13 = vrot.slane %v1213_v11, 4 }
 0x2a9   : > { %v1243_v14 = vmax.f32 %v1210_v8, %v1242_v12  ;;  %v1248_v15 = vrot.slane %v1211_v25, 4  ;;  %v1992_v16 = vpop.f32.mrb[20].mxu0 }
 0x2aa   : > { %v1256_v17 = vrot.slane %v1255_v4, 2  ;;  %v1261_v18 = vmax.f32 %v1213_v11, %v1260_v13  ;;  %v1108_v19 = vadd.f32 %v1992_v16, %v2291_v62  ;;  %v1099_v20 = vpop.f32.mrb[21].mxu0 }
 0x2ab   : > { %v1244_v21 = vrot.slane %v1243_v14, 2  ;;  %v1249_v22 = vmax.f32 %v1211_v25, %v1248_v15  ;;  %v1100_v23 = vadd.f32 %v2291_v62, %v1099_v20  ;;  %v1993_v24 = vpop.f32.mrb[22].mxu0 }
 0x2ac   : > { %v1257_v26 = vmax.f32 %v1255_v4, %v1256_v17  ;;  %v1262_v27 = vrot.slane %v1261_v18, 2  ;;  %v1216_v28 = vmax.f32 %v1108_v19, 0.0  ;;  %v1111_v29 = vadd.f32 %v1993_v24, %v2291_v62  ;;  %v1102_v30 = vpop.f32.mrb[23].mxu0 }
 0x2ad   : > { %v1245_v31 = vmax.f32 %v1243_v14, %v1244_v21  ;;  %v1250_v32 = vrot.slane %v1249_v22, 2  ;;  %v1214_v33 = vmax.f32 %v1100_v23, 0.0  ;;  %v1103_v34 = vadd.f32 %v2291_v62, %v1102_v30 }
 0x2ae   : > { %v1258_v35 = vrot.slane %v1257_v26, 1  ;;  %v1263_v36 = vmax.f32 %v1261_v18, %v1262_v27  ;;  %v1278_v37 = vrot.slane %v1216_v28, 4  ;;  %v1217_v38 = vmax.f32 %v1111_v29, 0.0 }
 0x2af   : > { %v1246_v39 = vrot.slane %v1245_v31, 1  ;;  %v1251_v40 = vmax.f32 %v1249_v22, %v1250_v32  ;;  %v1266_v41 = vrot.slane %v1214_v33, 4  ;;  %v1215_v42 = vmax.f32 %v1103_v34, 0.0 }
 0x2b0   : > { %v1259_v43 = vmax.f32 %v1257_v26, %v1258_v35  ;;  %v1264_v44 = vrot.slane %v1263_v36, 1  ;;  %v1279_v45 = vmax.f32 %v1216_v28, %v1278_v37  ;;  %v1284_v46 = vrot.slane %v1217_v38, 4 }
 0x2b1   : > { %v1247_v47 = vmax.f32 %v1245_v31, %v1246_v39  ;;  %v1252_v48 = vrot.slane %v1251_v40, 1  ;;  %v1267_v49 = vmax.f32 %v1214_v33, %v1266_v41  ;;  %v1272_v50 = vrot.slane %v1215_v42, 4  ;;  %v1996_v51 = vpop.f32.mrb[24].mxu0 }
 0x2b2   : > { %v1817_v52 = vpack.c.bf16 %v1259_v43, %v1259_v43  ;;  %v1265_v53 = vmax.f32 %v1263_v36, %v1264_v44  ;;  %v1280_v54 = vrot.slane %v1279_v45, 2  ;;  %v1285_v55 = vmax.f32 %v1217_v38, %v1284_v46  ;;  %v1115_v56 = vpop.f32.mrb[25].mxu0 }
 0x2b3   : > { %v1815_v57 = vpack.c.bf16 %v1247_v47, %v1247_v47  ;;  %v1253_v58 = vmax.f32 %v1251_v40, %v1252_v48  ;;  %v1268_v59 = vrot.slane %v1267_v49, 2  ;;  %v1273_v60 = vmax.f32 %v1215_v42, %v1272_v50  ;;  %v1997_v61 = vpop.f32.mrb[26].mxu0 }
 0x2b4   : > { %v1564_v63 = vunpack.c.l.b16 %v1817_v52  ;;  %v1818_v0 = vpack.c.bf16 %v1265_v53, %v1265_v53  ;;  %v1281_v2 = vmax.f32 %v1279_v45, %v1280_v54  ;;  %v1286_v1 = vrot.slane %v1285_v55, 2  ;;  %v1118_v3 = vpop.f32.mrb[27].mxu0 }
 0x2b5   : > { %v1562_v5 = vunpack.c.l.b16 %v1815_v57  ;;  %v1816_v6 = vpack.c.bf16 %v1253_v58, %v1253_v58  ;;  %v1269_v7 = vmax.f32 %v1267_v49, %v1268_v59  ;;  %v1274_v8 = vrot.slane %v1273_v60, 2 }
 0x2b6   : > { %v1565_v9 = vunpack.c.l.b16 %v1818_v0  ;;  %v1282_v10 = vrot.slane %v1281_v2, 1  ;;  %v1287_v11 = vmax.f32 %v1285_v55, %v1286_v1  ;;  %v1124_v12 = vadd.f32 %v1996_v51, %v2291_v62 }
 0x2b7   : > { %v1563_v25 = vunpack.c.l.b16 %v1816_v6  ;;  %v1270_v4 = vrot.slane %v1269_v7, 1  ;;  %v1275_v13 = vmax.f32 %v1273_v60, %v1274_v8  ;;  %v1116_v14 = vadd.f32 %v2291_v62, %v1115_v56 }
 0x2b8   : > { %v1283_v15 = vmax.f32 %v1281_v2, %v1282_v10  ;;  %v1288_v16 = vrot.slane %v1287_v11, 1  ;;  %v1220_v17 = vmax.f32 %v1124_v12, 0.0  ;;  %v1127_v18 = vadd.f32 %v1997_v61, %v2291_v62 }
 0x2b9   : > { %v1595_v19 = vsel %vm1594_vm3, %v1563_v25, %v1562_v5  ;;  %v1271_v20 = vmax.f32 %v1269_v7, %v1270_v4  ;;  %v1276_v21 = vrot.slane %v1275_v13, 1  ;;  %v1218_v22 = vmax.f32 %v1116_v14, 0.0  ;;  %v2000_v23 = vpop.f32.mrb[28].mxu0 }
 0x2ba   : > { %v1597_v24 = vsel %vm1596_vm4, %v1564_v63, %v1595_v19  ;;  %v1821_v26 = vpack.c.bf16 %v1283_v15, %v1283_v15  ;;  %v1289_v27 = vmax.f32 %v1287_v11, %v1288_v16  ;;  %v1302_v28 = vrot.slane %v1220_v17, 4  ;;  %v1131_v29 = vpop.f32.mrb[29].mxu0 }
 0x2bb   : > { %v1819_v30 = vpack.c.bf16 %v1271_v20, %v1271_v20  ;;  %v1599_v31 = vsel %vm1598_vm5, %v1565_v9, %v1597_v24  ;;  %v1277_v32 = vmax.f32 %v1275_v13, %v1276_v21  ;;  %v1290_v33 = vrot.slane %v1218_v22, 4  ;;  %v2001_v34 = vpop.f32.mrb[30].mxu0 }
 0x2bc   : > { %v1568_v35 = vunpack.c.l.b16 %v1821_v26  ;;  %v1822_v36 = vpack.c.bf16 %v1289_v27, %v1289_v27  ;;  %v1303_v37 = vmax.f32 %v1220_v17, %v1302_v28  ;;  %v1221_v38 = vmax.f32 %v1127_v18, 0.0  ;;  %v1134_v39 = vpop.f32.mrb[31].mxu0 }
 0x2bd   : > { %v1566_v40 = vunpack.c.l.b16 %v1819_v30  ;;  %v1820_v41 = vpack.c.bf16 %v1277_v32, %v1277_v32  ;;  %v1291_v42 = vmax.f32 %v1218_v22, %v1290_v33  ;;  %v1119_v43 = vadd.f32 %v2291_v62, %v1118_v3 }
 0x2be   : > { %v1569_v44 = vunpack.c.l.b16 %v1822_v36  ;;  %v1304_v45 = vrot.slane %v1303_v37, 2  ;;  %v1308_v46 = vrot.slane %v1221_v38, 4  ;;  %v1140_v47 = vadd.f32 %v2000_v23, %v2291_v62 }
 0x2bf   : > { %v1601_v48 = vsel %vm1600_vm6, %v1566_v40, %v1599_v31  ;;  %v1567_v49 = vunpack.c.l.b16 %v1820_v41  ;;  %v1292_v50 = vrot.slane %v1291_v42, 2  ;;  %v1219_v51 = vmax.f32 %v1119_v43, 0.0 }
 0x2c0   : > { %v1305_v52 = vmax.f32 %v1303_v37, %v1304_v45  ;;  %v1309_v53 = vmax.f32 %v1221_v38, %v1308_v46  ;;  %v1224_v54 = vmax.f32 %v1140_v47, 0.0  ;;  %v1132_v55 = vadd.f32 %v2291_v62, %v1131_v29 }
 0x2c1   : > { %v1603_v56 = vsel %vm1602_vm7, %v1567_v49, %v1601_v48  ;;  %v1293_v57 = vmax.f32 %v1291_v42, %v1292_v50  ;;  %v1296_v58 = vrot.slane %v1219_v51, 4  ;;  %v1143_v59 = vadd.f32 %v2001_v34, %v2291_v62  ;;  %v2004_v60 = vpop.f32.mrb[32].mxu0 }
 0x2c2   : > { %v1605_v61 = vsel %vm1604_vm8, %v1568_v35, %v1603_v56  ;;  %v1306_v63 = vrot.slane %v1305_v52, 1  ;;  %v1310_v0 = vrot.slane %v1309_v53, 2  ;;  %v1326_v2 = vrot.slane %v1224_v54, 4  ;;  %v1147_v1 = vpop.f32.mrb[33].mxu0 }
 0x2c3   : > { %v1607_v3 = vsel %vm1606_vm9, %v1569_v44, %v1605_v61  ;;  %v1294_v5 = vrot.slane %v1293_v57, 1  ;;  %v1297_v6 = vmax.f32 %v1219_v51, %v1296_v58  ;;  %v1222_v7 = vmax.f32 %v1132_v55, 0.0  ;;  %v2005_v8 = vpop.f32.mrb[34].mxu0 }
 0x2c4   : > { %v1629_v9 = vpack.c.b16 %v1607_v3, %v1607_v3  ;;  %v1307_v10 = vmax.f32 %v1305_v52, %v1306_v63  ;;  %v1311_v11 = vmax.f32 %v1309_v53, %v1310_v0  ;;  %v1327_v12 = vmax.f32 %v1224_v54, %v1326_v2  ;;  %v2331_v25 = vpop.f32.mrb[35].mxu0 }
 0x2c5   : > { %v1295_v4 = vmax.f32 %v1293_v57, %v1294_v5  ;;  %v1298_v13 = vrot.slane %v1297_v6, 2  ;;  %v1314_v14 = vrot.slane %v1222_v7, 4  ;;  %v1225_v15 = vmax.f32 %v1143_v59, 0.0 }
 0x2c6   : > { %1637 = vst [vmem:[%s2328_s14] sm:$0xf] %v1629_v9  ;;  %v1825_v16 = vpack.c.bf16 %v1307_v10, %v1307_v10  ;;  %v1312_v17 = vrot.slane %v1311_v11, 1  ;;  %v1328_v18 = vrot.slane %v1327_v12, 2  ;;  %v1135_v19 = vadd.f32 %v2291_v62, %v1134_v39 }
 0x2c7   : > { %v1299_v20 = vmax.f32 %v1297_v6, %v1298_v13  ;;  %v1315_v21 = vmax.f32 %v1222_v7, %v1314_v14  ;;  %v1332_v22 = vrot.slane %v1225_v15, 4  ;;  %v1823_v23 = vpack.c.bf16 %v1295_v4, %v1295_v4 }
 0x2c8   : > { %v1313_v24 = vmax.f32 %v1311_v11, %v1312_v17  ;;  %v1329_v26 = vmax.f32 %v1327_v12, %v1328_v18  ;;  %v1223_v27 = vmax.f32 %v1135_v19, 0.0  ;;  %v1572_v32 = vunpack.c.l.b16 %v1825_v16 }
 0x2c9   : > { %v1300_v28 = vrot.slane %v1299_v20, 1  ;;  %v1316_v29 = vrot.slane %v1315_v21, 2  ;;  %v1333_v30 = vmax.f32 %v1225_v15, %v1332_v22  ;;  %v2008_v31 = vpop.f32.mrb[36].mxu0  ;;  %v1156_v35 = vadd.f32 %v2004_v60, %v2291_v62 }
 0x2ca   : > { %v1330_v33 = vrot.slane %v1329_v26, 1  ;;  %v1320_v34 = vrot.slane %v1223_v27, 4  ;;  %v1163_v36 = vpop.f32.mrb[37].mxu0  ;;  %v1148_v40 = vadd.f32 %v2291_v62, %v1147_v1  ;;  %v1570_v42 = vunpack.c.l.b16 %v1823_v23 }
 0x2cb   : > { %v1301_v37 = vmax.f32 %v1299_v20, %v1300_v28  ;;  %v1317_v38 = vmax.f32 %v1315_v21, %v1316_v29  ;;  %v1334_v39 = vrot.slane %v1333_v30, 2  ;;  %v2009_v41 = vpop.f32.mrb[38].mxu0  ;;  %v1826_v43 = vpack.c.bf16 %v1313_v24, %v1313_v24 }
 0x2cc   : > { %v1321_v44 = vmax.f32 %v1223_v27, %v1320_v34  ;;  %v1228_v45 = vmax.f32 %v1156_v35, 0.0  ;;  %v2337_v46 = vpop.f32.mrb[39].mxu0  ;;  %v1226_v50 = vmax.f32 %v1148_v40, 0.0  ;;  %v1331_v51 = vmax.f32 %v1329_v26, %v1330_v33 }
 0x2cd   : > { %v1824_v47 = vpack.c.bf16 %v1301_v37, %v1301_v37  ;;  %v1318_v48 = vrot.slane %v1317_v38, 1  ;;  %v1335_v49 = vmax.f32 %v1333_v30, %v1334_v39  ;;  %v1159_v54 = vadd.f32 %v2005_v8, %v2291_v62 }
 0x2ce   : > { %v1322_v52 = vrot.slane %v1321_v44, 2  ;;  %v1350_v53 = vrot.slane %v1228_v45, 4  ;;  %v1338_v58 = vrot.slane %v1226_v50, 4  ;;  %v1573_v59 = vunpack.c.l.b16 %v1826_v43 }
 0x2cf   : > { %v1571_v55 = vunpack.c.l.b16 %v1824_v47  ;;  %v1319_v56 = vmax.f32 %v1317_v38, %v1318_v48  ;;  %v1336_v57 = vrot.slane %v1335_v49, 1  ;;  %v1229_v63 = vmax.f32 %v1159_v54, 0.0 }
 0x2d0   : > { %v1323_v60 = vmax.f32 %v1321_v44, %v1322_v52  ;;  %v1351_v61 = vmax.f32 %v1228_v45, %v1350_v53  ;;  %v1339_v3 = vmax.f32 %v1226_v50, %v1338_v58  ;;  %v1829_v11 = vpack.c.bf16 %v1331_v51, %v1331_v51 }
 0x2d1   : > { %v1608_v0 = vsel %vm1594_vm3, %v1571_v55, %v1570_v42  ;;  %v1827_v2 = vpack.c.bf16 %v1319_v56, %v1319_v56  ;;  %v1337_v1 = vmax.f32 %v1335_v49, %v1336_v57  ;;  %v2012_v5 = vpop.f32.mrb[40].mxu0  ;;  %v1356_v10 = vrot.slane %v1229_v63, 4 }
 0x2d2   : > { %v1609_v6 = vsel %vm1596_vm4, %v1572_v32, %v1608_v0  ;;  %v1324_v7 = vrot.slane %v1323_v60, 1  ;;  %v1352_v9 = vrot.slane %v1351_v61, 2  ;;  %v1179_v8 = vpop.f32.mrb[41].mxu0  ;;  %v1340_v13 = vrot.slane %v1339_v3, 2 }
 0x2d3   : > { %v1574_v12 = vunpack.c.l.b16 %v1827_v2  ;;  %v1610_v4 = vsel %vm1598_vm5, %v1573_v59, %v1609_v6  ;;  %v2343_v14 = vpop.f32.mrb[42].mxu0  ;;  %v1357_v17 = vmax.f32 %v1229_v63, %v1356_v10  ;;  %v1151_v18 = vadd.f32 %v2291_v62, %v2331_v25 }
 0x2d4   : > { %v1325_v15 = vmax.f32 %v1323_v60, %v1324_v7  ;;  %v1353_v16 = vmax.f32 %v1351_v61, %v1352_v9  ;;  %v2347_v19 = vpop.f32.mrb[43].mxu0  ;;  %v1830_v21 = vpack.c.bf16 %v1337_v1, %v1337_v1  ;;  %v1341_v22 = vmax.f32 %v1339_v3, %v1340_v13 }
 0x2d5   : > { %v1611_v20 = vsel %vm1600_vm6, %v1574_v12, %v1610_v4  ;;  %v1172_v23 = vadd.f32 %v2008_v31, %v2291_v62  ;;  %v1358_v27 = vrot.slane %v1357_v17, 2  ;;  %v1227_v28 = vmax.f32 %v1151_v18, 0.0 }
 0x2d6   : > { %v1828_v24 = vpack.c.bf16 %v1325_v15, %v1325_v15  ;;  %v1354_v26 = vrot.slane %v1353_v16, 1  ;;  %v1576_v29 = vunpack.c.l.b16 %v1829_v11  ;;  %v1164_v32 = vadd.f32 %v2291_v62, %v1163_v36 }
 0x2d7   : > { %v1232_v30 = vmax.f32 %v1172_v23, 0.0  ;;  %v1175_v33 = vadd.f32 %v2009_v41, %v2291_v62  ;;  %v1342_v25 = vrot.slane %v1341_v22, 1  ;;  %v1359_v35 = vmax.f32 %v1357_v17, %v1358_v27 }
 0x2d8   : > { %v1575_v34 = vunpack.c.l.b16 %v1828_v24  ;;  %v1344_v37 = vrot.slane %v1227_v28, 4  ;;  %v1577_v38 = vunpack.c.l.b16 %v1830_v21  ;;  %v1355_v39 = vmax.f32 %v1353_v16, %v1354_v26 }
 0x2d9   : > { %v1374_v40 = vrot.slane %v1232_v30, 4  ;;  %v1230_v42 = vmax.f32 %v1164_v32, 0.0  ;;  %v2353_v43 = vpop.f32.mrb[44].mxu0  ;;  %v1360_v44 = vrot.slane %v1359_v35, 1  ;;  %v1233_v47 = vmax.f32 %v1175_v33, 0.0 }
 0x2da   : > { %v1612_v31 = vsel %vm1602_vm7, %v1575_v34, %v1611_v20  ;;  %v1345_v45 = vmax.f32 %v1227_v28, %v1344_v37  ;;  %v2356_v48 = vpop.f32.mrb[45].mxu0  ;;  %v1343_v52 = vmax.f32 %v1341_v22, %v1342_v25  ;;  %v1833_v59 = vpack.c.bf16 %v1355_v39, %v1355_v39 }
 0x2db   : > { %v1613_v36 = vsel %vm1604_vm8, %v1576_v29, %v1612_v31  ;;  %v1375_v41 = vmax.f32 %v1232_v30, %v1374_v40  ;;  %v1362_v49 = vrot.slane %v1230_v42, 4  ;;  %v2359_v50 = vpop.f32.mrb[46].mxu0  ;;  %v1361_v56 = vmax.f32 %v1359_v35, %v1360_v44 }
 0x2dc   : > { %v1614_v51 = vsel %vm1606_vm9, %v1577_v38, %v1613_v36  ;;  %v1346_v53 = vrot.slane %v1345_v45, 2  ;;  %v2362_v54 = vpop.f32.mrb[47].mxu0  ;;  %v1380_v61 = vrot.slane %v1233_v47, 4  ;;  %v1167_v63 = vadd.f32 %v2291_v62, %v2337_v46 }
 0x2dd   : > { %v1630_v55 = vpack.c.b16 %v1614_v51, %v1614_v51  ;;  %v1376_v57 = vrot.slane %v1375_v41, 2  ;;  %v1363_v58 = vmax.f32 %v1230_v42, %v1362_v49  ;;  %v1188_v1 = vadd.f32 %v2012_v5, %v2291_v62 }
 0x2de   : > { %v1347_v60 = vmax.f32 %v1345_v45, %v1346_v53  ;;  %v1180_v3 = vadd.f32 %v2291_v62, %v1179_v8  ;;  %v1831_v6 = vpack.c.bf16 %v1343_v52, %v1343_v52  ;;  %v1381_v9 = vmax.f32 %v1233_v47, %v1380_v61 }
 0x2df   : > { %1638 = vst [vmem:[%s2328_s14 + $0x4] sm:$0xf] %v1630_v55  ;;  %v1377_v0 = vmax.f32 %v1375_v41, %v1376_v57  ;;  %v1364_v2 = vrot.slane %v1363_v58, 2  ;;  %v1231_v10 = vmax.f32 %v1167_v63, 0.0  ;;  %v1834_v11 = vpack.c.bf16 %v1361_v56, %v1361_v56 }
 0x2e0   : > { %v1348_v7 = vrot.slane %v1347_v60, 1  ;;  %v1236_v4 = vmax.f32 %v1188_v1, 0.0  ;;  %v1234_v13 = vmax.f32 %v1180_v3, 0.0  ;;  %v1382_v16 = vrot.slane %v1381_v9, 2 }
 0x2e1   : > { %v1365_v12 = vmax.f32 %v1363_v58, %v1364_v2  ;;  %v1368_v17 = vrot.slane %v1231_v10, 4  ;;  %v1191_v46 = vadd.f32 %v2343_v14, %v2291_v62  ;;  %v1378_v18 = vrot.slane %v1377_v0, 1 }
 0x2e2   : > { %v1349_v15 = vmax.f32 %v1347_v60, %v1348_v7  ;;  %v1398_v21 = vrot.slane %v1236_v4, 4  ;;  %v1386_v5 = vrot.slane %v1234_v13, 4  ;;  %v1383_v8 = vmax.f32 %v1381_v9, %v1382_v16 }
 0x2e3   : > { %v1366_v20 = vrot.slane %v1365_v12, 1  ;;  %v1369_v23 = vmax.f32 %v1231_v10, %v1368_v17  ;;  %v1237_v24 = vmax.f32 %v1191_v46, 0.0  ;;  %v1578_v26 = vunpack.c.l.b16 %v1831_v6 }
 0x2e4   : > { %v1832_v22 = vpack.c.bf16 %v1349_v15, %v1349_v15  ;;  %v1399_v28 = vmax.f32 %v1236_v4, %v1398_v21  ;;  %v1387_v29 = vmax.f32 %v1234_v13, %v1386_v5  ;;  %v1384_v32 = vrot.slane %v1383_v8, 1 }
 0x2e5   : > { %v1367_v27 = vmax.f32 %v1365_v12, %v1366_v20  ;;  %v1370_v33 = vrot.slane %v1369_v23, 2  ;;  %v1404_v34 = vrot.slane %v1237_v24, 4  ;;  %v1580_v25 = vunpack.c.l.b16 %v1833_v59 }
 0x2e6   : > { %v1579_v30 = vunpack.c.l.b16 %v1832_v22  ;;  %v1581_v35 = vunpack.c.l.b16 %v1834_v11  ;;  %v1379_v37 = vmax.f32 %v1377_v0, %v1378_v18  ;;  %v1388_v40 = vrot.slane %v1387_v29, 2 }
 0x2e7   : > { %v1835_v14 = vpack.c.bf16 %v1367_v27, %v1367_v27  ;;  %v1371_v39 = vmax.f32 %v1369_v23, %v1370_v33  ;;  %v1405_v42 = vmax.f32 %v1237_v24, %v1404_v34  ;;  %v1385_v45 = vmax.f32 %v1383_v8, %v1384_v32 }
 0x2e8   : > { %v1615_v38 = vsel %vm1594_vm3, %v1579_v30, %v1578_v26  ;;  %v1400_v47 = vrot.slane %v1399_v28, 2  ;;  %v1837_v51 = vpack.c.bf16 %v1379_v37, %v1379_v37  ;;  %v1183_v53 = vadd.f32 %v2291_v62, %v2347_v19 }
 0x2e9   : > { %v1616_v31 = vsel %vm1596_vm4, %v1580_v25, %v1615_v38  ;;  %v1582_v44 = vunpack.c.l.b16 %v1835_v14  ;;  %v1372_v41 = vrot.slane %v1371_v39, 1  ;;  %v1406_v49 = vrot.slane %v1405_v42, 2 }
 0x2ea   : > { %v1617_v36 = vsel %vm1598_vm5, %v1581_v35, %v1616_v31  ;;  %v1389_v56 = vmax.f32 %v1387_v29, %v1388_v40  ;;  %v1204_v57 = vadd.f32 %v2353_v43, %v2291_v62  ;;  %v1838_v58 = vpack.c.bf16 %v1385_v45, %v1385_v45 }
 0x2eb   : > { %v1618_v52 = vsel %vm1600_vm6, %v1582_v44, %v1617_v36  ;;  %v1373_v55 = vmax.f32 %v1371_v39, %v1372_v41  ;;  %v1401_v59 = vmax.f32 %v1399_v28, %v1400_v47  ;;  %v1235_v60 = vmax.f32 %v1183_v53, 0.0 }
 0x2ec   : > { %v1196_v61 = vadd.f32 %v2291_v62, %v2356_v48  ;;  %v1407_v0 = vmax.f32 %v1405_v42, %v1406_v49  ;;  %v1240_v2 = vmax.f32 %v1204_v57, 0.0  ;;  %v1207_v1 = vadd.f32 %v2359_v50, %v2291_v62 }
 0x2ed   : > { %v1836_v63 = vpack.c.bf16 %v1373_v55, %v1373_v55  ;;  %v1584_v3 = vunpack.c.l.b16 %v1837_v51  ;;  %v1392_v6 = vrot.slane %v1235_v60, 4  ;;  %v1390_v9 = vrot.slane %v1389_v56, 1 }
 0x2ee   : > { %v1238_v19 = vmax.f32 %v1196_v61, 0.0  ;;  %v1422_v10 = vrot.slane %v1240_v2, 4  ;;  %v1241_v11 = vmax.f32 %v1207_v1, 0.0  ;;  %v1585_v43 = vunpack.c.l.b16 %v1838_v58 }
 0x2ef   : > { %v1583_v7 = vunpack.c.l.b16 %v1836_v63  ;;  %v1402_v12 = vrot.slane %v1401_v59, 1  ;;  %v1393_v4 = vmax.f32 %v1235_v60, %v1392_v6  ;;  %v1408_v48 = vrot.slane %v1407_v0, 1 }
 0x2f0   : > { %v1410_v13 = vrot.slane %v1238_v19, 4  ;;  %v1423_v16 = vmax.f32 %v1240_v2, %v1422_v10  ;;  %v1428_v17 = vrot.slane %v1241_v11, 4  ;;  %v1199_v20 = vadd.f32 %v2291_v62, %v2362_v54 }
 0x2f1   : > { %v1619_v15 = vsel %vm1602_vm7, %v1583_v7, %v1618_v52  ;;  %v1394_v50 = vrot.slane %v1393_v4, 2  ;;  %v1391_v5 = vmax.f32 %v1389_v56, %v1390_v9  ;;  %v1403_v28 = vmax.f32 %v1401_v59, %v1402_v12 }
 0x2f2   : > { %v1620_v46 = vsel %vm1604_vm8, %v1584_v3, %v1619_v15  ;;  %v1411_v18 = vmax.f32 %v1238_v19, %v1410_v13  ;;  %v1424_v22 = vrot.slane %v1423_v16, 2  ;;  %v1429_v8 = vmax.f32 %v1241_v11, %v1428_v17 }
 0x2f3   : > { %v1621_v21 = vsel %vm1606_vm9, %v1585_v43, %v1620_v46  ;;  %v1395_v24 = vmax.f32 %v1393_v4, %v1394_v50  ;;  %v1239_v27 = vmax.f32 %v1199_v20, 0.0  ;;  %v1409_v29 = vmax.f32 %v1407_v0, %v1408_v48 }
 0x2f4   : > { %v1631_v23 = vpack.c.b16 %v1621_v21, %v1621_v21  ;;  %v1412_v26 = vrot.slane %v1411_v18, 2  ;;  %v1425_v30 = vmax.f32 %v1423_v16, %v1424_v22  ;;  %v1430_v32 = vrot.slane %v1429_v8, 2 }
 0x2f5   : > { %v1396_v33 = vrot.slane %v1395_v24, 1  ;;  %v1416_v25 = vrot.slane %v1239_v27, 4  ;;  %v1839_v37 = vpack.c.bf16 %v1391_v5, %v1391_v5  ;;  %v1841_v38 = vpack.c.bf16 %v1403_v28, %v1403_v28 }
 0x2f6   : > { %1639 = vst [vmem:[%s2328_s14 + $0x8] sm:$0xf] %v1631_v23  ;;  %v1413_v34 = vmax.f32 %v1411_v18, %v1412_v26  ;;  %v1431_v35 = vmax.f32 %v1429_v8, %v1430_v32  ;;  %v1842_v39 = vpack.c.bf16 %v1409_v29, %v1409_v29  ;;  %v1426_v40 = vrot.slane %v1425_v30, 1 }
 0x2f7   : > { %v1397_v62 = vmax.f32 %v1395_v24, %v1396_v33  ;;  %v1417_v14 = vmax.f32 %v1239_v27, %v1416_v25  ;;  %v1586_v47 = vunpack.c.l.b16 %v1839_v37  ;;  %v1588_v51 = vunpack.c.l.b16 %v1841_v38 }
 0x2f8   : > { %v1414_v54 = vrot.slane %v1413_v34, 1  ;;  %v1432_v44 = vrot.slane %v1431_v35, 1  ;;  %v1589_v52 = vunpack.c.l.b16 %v1842_v39  ;;  %v1427_v53 = vmax.f32 %v1425_v30, %v1426_v40 }
 0x2f9   : > { %v1840_v42 = vpack.c.bf16 %v1397_v62, %v1397_v62  ;;  %v1418_v45 = vrot.slane %v1417_v14, 2 }
 0x2fa   : > { %v1415_v31 = vmax.f32 %v1413_v34, %v1414_v54  ;;  %v1433_v57 = vmax.f32 %v1431_v35, %v1432_v44  ;;  %v1845_v63 = vpack.c.bf16 %v1427_v53, %v1427_v53 }
 0x2fb   : > { %v1587_v36 = vunpack.c.l.b16 %v1840_v42  ;;  %v1419_v49 = vmax.f32 %v1417_v14, %v1418_v45 }
 0x2fc   : > { %v1843_v41 = vpack.c.bf16 %v1415_v31, %v1415_v31  ;;  %v1846_v2 = vpack.c.bf16 %v1433_v57, %v1433_v57  ;;  %v1592_v6 = vunpack.c.l.b16 %v1845_v63 }
 0x2fd   : > { %v1622_v55 = vsel %vm1594_vm3, %v1587_v36, %v1586_v47  ;;  %v1420_v58 = vrot.slane %v1419_v49, 1 }
 0x2fe   : > { %v1590_v56 = vunpack.c.l.b16 %v1843_v41  ;;  %v1623_v59 = vsel %vm1596_vm4, %v1588_v51, %v1622_v55  ;;  %v1593_v19 = vunpack.c.l.b16 %v1846_v2 }
 0x2ff   : > { %v1624_v60 = vsel %vm1598_vm5, %v1589_v52, %v1623_v59  ;;  %v1421_v61 = vmax.f32 %v1419_v49, %v1420_v58 }
 0x300   : > { %v1625_v0 = vsel %vm1600_vm6, %v1590_v56, %v1624_v60 }
 0x301   : > { %v1844_v1 = vpack.c.bf16 %v1421_v61, %v1421_v61 }
 0x303   : > { %v1591_v3 = vunpack.c.l.b16 %v1844_v1 }
 0x305   : > { %v1626_v7 = vsel %vm1602_vm7, %v1591_v3, %v1625_v0 }
 0x306   : > { %v1627_v9 = vsel %vm1604_vm8, %v1592_v6, %v1626_v7 }
 0x307   : > { %v1628_v10 = vsel %vm1606_vm9, %v1593_v19, %v1627_v9 }
 0x308   : > { %v1632_v11 = vpack.c.b16 %v1628_v10, %v1628_v10 }
 0x30a   : > { %1640 = vst [vmem:[%s2328_s14 + $0xc] sm:$0xf] %v1632_v11 }
 0x30b PF: > { %s17_s24 = sadd.s32 1, %s2060_s24  }
 0x30c   : > { %p14_p5 = scmp.ge.s32.totalorder %s17_s24, 4  }
 0x30e   :  { %16 = sbr.rel (!%p14_p5) target bundleno = 1 (0x1), region = 78 }

// kernel: _lambda_.4
= control target key start
LH: loop header
LB: loop body
LE: loop exit
PB: predicated region body
PF: predicated region fallthrough
CT: control target
= control target key end

     0   :  { %s2077_s30 = smov 0   ;;  %s2334_s0 = inlined_call_operand.vmem [shape: bf16[256,128], index: 0, kind: input, shape index: {}]   ;;  %s2335_s1 = inlined_call_operand.vmem [shape: bf16[256,8], index: 1, kind: input, shape index: {}]   ;;  %s2336_s2 = inlined_call_operand.vmem [shape: bf16[128,128], index: 2, kind: input, shape index: {}]   ;;  %s2337_s3 = inlined_call_operand.vmem [shape: bf16[8,128], index: 3, kind: input, shape index: {}]   ;;  %s2338_s4 = inlined_call_operand.vmem [shape: f32[1,128], index: 4, kind: input, shape index: {}]   ;;  %s2339_s5 = inlined_call_operand.vmem [shape: bf16[128,128], index: 5, kind: input, shape index: {}]   ;;  %s2340_s6 = inlined_call_operand.vmem [shape: f32[1,128], index: 6, kind: input, shape index: {}]   ;;  %s2341_s7 = inlined_call_operand.vmem [shape: bf16[128,256], index: 7, kind: input, shape index: {}]   ;;  %s2342_s8 = inlined_call_operand.vmem [shape: f32[1,256], index: 8, kind: input, shape index: {}]   ;;  %s2343_s9 = inlined_call_operand.vmem [shape: bf16[32,256], index: 9, kind: output, shape index: {}]  }
   0x1 LB: > { %s1708_s10 = sadd.s32 4294967295, %s2024_s30   ;;  %p1712_p0 = scmp.ge.s32.totalorder %s2024_s30, 1  ;;  %s2024_s30 = sphi %s2077_s30, %s19_s30  }
   0x2   : > { %p299_p1 = scmp.lt.s32.totalorder %s2024_s30, 3 }
   0x4   : > { %p300_p2 = pnand %p1712_p0, %p299_p1 }
   0x5   : > { %v409_v0 = vld [vmem:[%s2337_s3] sm:$0xf] (!%p300_p2)  ;;  %vm475_vm0 = vcmask (!%p300_p2), 1043456   ;;  %s1713_s13 = sshll.u32 (!%p300_p2), %s1708_s10, 4  ;;  %vm450_vm1 = vcmask (!%p300_p2), 64512   ;;  %v1965_v3 = vld [vmem:[%s2336_s2 + $0x8] sm:$0xff] (!%p300_p2)  }
   0x6   : > { %303 = sbr.rel (%p300_p2) target bundleno = 807 (0x327), region = 56  ;;  %v1963_v1 = vld [vmem:[%s2336_s2] sm:$0xff] (!%p300_p2)   ;;  %1952 = vmatprep.subr.msk.bf16.mxu0 (!%p300_p2), %vm475_vm0, %v409_v0  ;;  %v477_v2 = vsel (!%p300_p2), %vm475_vm0, %v409_v0, 0  ;;  %p342_p3 = scmp.lt.s32.totalorder (!%p300_p2), %s1713_s13, 31  ;;  %v1967_v7 = vld [vmem:[%s2336_s2 + $0x10] sm:$0xff] (!%p300_p2)   ;;  %v1969_v10 = vld [vmem:[%s2336_s2 + $0x18] sm:$0xff] (!%p300_p2)  }
   0x7   : > { %1855 = vmatpush3.bf16.msra.mxu0 (!%p300_p2), %v477_v2  ;;  %v1971_v11 = vld [vmem:[%s2336_s2 + $0x20] sm:$0xff] (!%p300_p2)   ;;  %v1973_v14 = vld [vmem:[%s2336_s2 + $0x28] sm:$0xff] (!%p300_p2)   ;;  %v1975_v15 = vld [vmem:[%s2336_s2 + $0x30] sm:$0xff] (!%p300_p2)   ;;  %vm1597_vm2 = vcmask (!%p300_p2), 1041409   ;;  %vm1599_vm3 = vcmask (!%p300_p2), 1042434   ;;  %vm1601_vm4 = vcmask (!%p300_p2), 1043459  }
   0x8   : > { %1872 = vmatprep.subr.bf16.mxu0 (!%p300_p2), %v1963_v1  ;;  %v1977_v17 = vld [vmem:[%s2336_s2 + $0x38] sm:$0xff] (!%p300_p2)   ;;  %v1986_v19 = vld [vmem:[%s2339_s5] sm:$0xff] (!%p300_p2)   ;;  %v1987_v22 = vld [vmem:[%s2339_s5 + $0x8] sm:$0xff] (!%p300_p2)   ;;  %vm1603_vm5 = vcmask (!%p300_p2), 1044484   ;;  %vm1605_vm6 = vcmask (!%p300_p2), 1045509   ;;  %vm1607_vm7 = vcmask (!%p300_p2), 1046534  }
   0x9   : > { %v1988_v23 = vld [vmem:[%s2339_s5 + $0x10] sm:$0xff] (!%p300_p2)   ;;  %v1989_v26 = vld [vmem:[%s2339_s5 + $0x18] sm:$0xff] (!%p300_p2)   ;;  %v1990_v27 = vld [vmem:[%s2339_s5 + $0x20] sm:$0xff] (!%p300_p2)   ;;  %vm1609_vm8 = vcmask (!%p300_p2), 1047559  }
   0xa   : > { %v1991_v30 = vld [vmem:[%s2339_s5 + $0x28] sm:$0xff] (!%p300_p2)   ;;  %v1992_v32 = vld [vmem:[%s2339_s5 + $0x30] sm:$0xff] (!%p300_p2)   ;;  %v1993_v33 = vld [vmem:[%s2339_s5 + $0x38] sm:$0xff] (!%p300_p2)  }
   0xb   : > { %v1994_v34 = vld [vmem:[%s2341_s7 + $0x4] ss:$8 sps:$4 sm:$0xff] (!%p300_p2)   ;;  %v1996_v35 = vld [vmem:[%s2341_s7] ss:$8 sps:$4 sm:$0xff] (!%p300_p2)   ;;  %v1997_v36 = vld [vmem:[%s2341_s7 + $0x14] ss:$8 sps:$4 sm:$0xff] (!%p300_p2)  }
   0xc   : > { %1116 = vmatprep.subr.bf16.mxu1 (!%p300_p2), %v1994_v34  ;;  %v1999_v37 = vld [vmem:[%s2341_s7 + $0x10] ss:$8 sps:$4 sm:$0xff] (!%p300_p2)   ;;  %v2000_v38 = vld [vmem:[%s2341_s7 + $0x24] ss:$8 sps:$4 sm:$0xff] (!%p300_p2)   ;;  %v2002_v39 = vld [vmem:[%s2341_s7 + $0x20] ss:$8 sps:$4 sm:$0xff] (!%p300_p2)  }
   0xd   : > { %s2345_s13 = smov (!%p342_p3, %s1713_s13), 31  ;;  %1117 = vmatpush1.bf16.msra.mxu1 %v1996_v35  ;;  %v2003_v40 = vld [vmem:[%s2341_s7 + $0x34] ss:$8 sps:$4 sm:$0xff]   ;;  %v2005_v41 = vld [vmem:[%s2341_s7 + $0x30] ss:$8 sps:$4 sm:$0xff]  }
   0xe   : > { %s1714_s16 = sshll.u32 %s2345_s13, 2  ;;  %1118 = vmatprep.subr.bf16.mxu1 %v1997_v36  ;;  %v2006_v42 = vld [vmem:[%s2341_s7 + $0x44] ss:$8 sps:$4 sm:$0xff]   ;;  %v2008_v43 = vld [vmem:[%s2341_s7 + $0x40] ss:$8 sps:$4 sm:$0xff]  }
   0xf   : > { %s2096_s19 = scalar_lea.vmem %s2335_s1, %s1714_s16  ;;  %s2115_s26 = scalar_lea.vmem %s2334_s0, %s1714_s16  ;;  %v2009_v44 = vld [vmem:[%s2341_s7 + $0x54] ss:$8 sps:$4 sm:$0xff]   ;;  %v2011_v45 = vld [vmem:[%s2341_s7 + $0x50] ss:$8 sps:$4 sm:$0xff]   ;;  %v1752_v46 = vld [vmem:[%s2338_s4] ss:$0 sm:$0xff] }
  0x10   : > { %v1962_v4 = vld [vmem:[%s2096_s19] sm:$0xff]   ;;  %v1964_v5 = vld [vmem:[%s2096_s19 + $0x8] sm:$0xff]   ;;  %v1966_v6 = vld [vmem:[%s2096_s19 + $0x10] sm:$0xff]   ;;  %s2268_s16 = sshll.u32 %s1708_s10, 1 }
  0x11   : > { %1856 = vmatprep.mubr.msk.bf16.mxu0 %vm450_vm1, %v1962_v4  ;;  %v1968_v8 = vld [vmem:[%s2096_s19 + $0x18] sm:$0xff]   ;;  %v1970_v9 = vld [vmem:[%s2096_s19 + $0x20] sm:$0xff]   ;;  %v1972_v12 = vld [vmem:[%s2096_s19 + $0x28] sm:$0xff]   ;;  %1119 = vmatpush1.bf16.msra.mxu1 %v1999_v37  ;;  %p354_p4 = scmp.lt.s32.totalorder %s2268_s16, 3 }
  0x12   : > { %1857 = vmatmul.mubr.msk.bf16.vlgmr.msra.gmra.mrb[0].mxu0 %vm450_vm1, %v1964_v5  ;;  %v1974_v13 = vld [vmem:[%s2096_s19 + $0x30] sm:$0xff]   ;;  %v1976_v16 = vld [vmem:[%s2096_s19 + $0x38] sm:$0xff]   ;;  %v1978_v18 = vld [vmem:[%s2115_s26] sm:$0xff]   ;;  %1120 = vmatprep.subr.bf16.mxu1 %v2000_v38 }
  0x13   : > { %1873 = vmatpush3.bf16.msra.mxu0 %v1963_v1  ;;  %1860 = vmatprep.mubr.msk.bf16.mxu0 %vm450_vm1, %v1966_v6  ;;  %v1979_v20 = vld [vmem:[%s2115_s26 + $0x8] sm:$0xff]   ;;  %v1980_v21 = vld [vmem:[%s2115_s26 + $0x10] sm:$0xff]   ;;  %v1981_v24 = vld [vmem:[%s2115_s26 + $0x18] sm:$0xff]   ;;  %s2347_s16 = smov (!%p354_p4, %s2268_s16), 3 }
  0x14   : > { %1874 = vmatprep.subr.bf16.mxu0 %v1965_v3  ;;  %v1982_v25 = vld [vmem:[%s2115_s26 + $0x20] sm:$0xff]   ;;  %v1983_v28 = vld [vmem:[%s2115_s26 + $0x28] sm:$0xff]   ;;  %v1984_v29 = vld [vmem:[%s2115_s26 + $0x30] sm:$0xff]   ;;  %s1796_s10 = sshll.u32 %s2347_s16, 3 }
  0x15   : > { %v1985_v31 = vld [vmem:[%s2115_s26 + $0x38] sm:$0xff]   ;;  %1121 = vmatpush1.bf16.msra.mxu1 %v2002_v39  ;;  %v2012_v39 = vld [vmem:[%s2341_s7 + $0x64] ss:$8 sps:$4 sm:$0xff]   ;;  %s2294_s26 = scalar_lea.vmem %s2343_s9, %s1796_s10 }
  0x16   : > { %1122 = vmatprep.subr.bf16.mxu1 %v2003_v40  ;;  %v2014_v40 = vld [vmem:[%s2341_s7 + $0x60] ss:$8 sps:$4 sm:$0xff]  }
  0x17   : > { %1875 = vmatpush3.bf16.msra.mxu0 %v1965_v3 }
  0x18   : > { %1876 = vmatprep.subr.bf16.mxu0 %v1967_v7 }
  0x19   : > { %1123 = vmatpush1.bf16.msra.mxu1 %v2005_v41  ;;  %v2015_v41 = vld [vmem:[%s2341_s7 + $0x74] ss:$8 sps:$4 sm:$0xff]  }
  0x1a   : > { %1861 = vmatmul.mubr.msk.bf16.gmra.mrb[4].mxu0 %vm450_vm1, %v1968_v8  ;;  %1124 = vmatprep.subr.bf16.mxu1 %v2006_v42  ;;  %v2017_v42 = vld [vmem:[%s2341_s7 + $0x70] ss:$8 sps:$4 sm:$0xff]  }
  0x1b   : > { %1877 = vmatpush3.bf16.msra.mxu0 %v1967_v7  ;;  %1864 = vmatprep.mubr.msk.bf16.mxu0 %vm450_vm1, %v1970_v9 }
  0x1c   : > { %1878 = vmatprep.subr.bf16.mxu0 %v1969_v10 }
  0x1d   : > { %1125 = vmatpush1.bf16.msra.mxu1 %v2008_v43  ;;  %v2026_v43 = vmov 0  }
  0x1e   : > { %1126 = vmatprep.subr.bf16.mxu1 %v2009_v44  ;;  %1148 = vmatprep.mubr.bf16.mxu1 %v2026_v43  ;;  %v1753_v44 = vld [vmem:[%s2340_s6] ss:$0 sm:$0xff] }
  0x1f   : > { %1879 = vmatpush3.bf16.msra.mxu0 %v1969_v10 }
  0x20   : > { %1880 = vmatprep.subr.bf16.mxu0 %v1971_v11 }
  0x21   : > { %1127 = vmatpush1.bf16.msra.mxu1 %v2011_v45 }
  0x22   : > { %1865 = vmatmul.mubr.msk.bf16.gmra.mrb[8].mxu0 %vm450_vm1, %v1972_v12  ;;  %1128 = vmatprep.subr.bf16.mxu1 %v2012_v39 }
  0x23   : > { %1881 = vmatpush3.bf16.msra.mxu0 %v1971_v11  ;;  %1868 = vmatprep.mubr.msk.bf16.mxu0 %vm450_vm1, %v1974_v13 }
  0x24   : > { %1882 = vmatprep.subr.bf16.mxu0 %v1973_v14 }
  0x25   : > { %1129 = vmatpush1.bf16.msra.mxu1 %v2014_v40  ;;  %v1024_v40 = vld [vmem:[%s2342_s8] sm:$0x3] }
  0x26   : > { %1130 = vmatprep.subr.bf16.mxu1 %v2015_v41 }
  0x27   : > { %1883 = vmatpush3.bf16.msra.mxu0 %v1973_v14 }
  0x28   : > { %1884 = vmatprep.subr.bf16.mxu0 %v1975_v15 }
  0x29   : > { %1131 = vmatpush1.bf16.msra.mxu1 %v2017_v42 }
  0x2a   : > { %1869 = vmatmul.mubr.msk.bf16.gmra.mrb[12].mxu0 %vm450_vm1, %v1976_v16 }
  0x2b   : > { %1885 = vmatpush3.bf16.msra.mxu0 %v1975_v15  ;;  %1888 = vmatprep.mubr.bf16.mxu0 %v1978_v18 }
  0x2c   : > { %1886 = vmatprep.subr.bf16.mxu0 %v1977_v17 }
  0x2f   : > { %1887 = vmatpush3.bf16.msra.mxu0 %v1977_v17 }
  0x30   : > { %1904 = vmatprep.subr.bf16.mxu0 %v1986_v19 }
  0x32   : > { %1889 = vmatmul.mubr.bf16.vlgmr.msra.gmra.mrb[0].mxu0 %v1979_v20 }
  0x33   : > { %1892 = vmatprep.mubr.bf16.mxu0 %v1980_v21  ;;  %1905 = vmatpush3.bf16.msra.mxu0 %v1986_v19 }
  0x34   : > { %1906 = vmatprep.subr.bf16.mxu0 %v1987_v22 }
  0x37   : > { %1907 = vmatpush3.bf16.msra.mxu0 %v1987_v22 }
  0x38   : > { %1908 = vmatprep.subr.bf16.mxu0 %v1988_v23 }
  0x3a   : > { %1893 = vmatmul.mubr.bf16.gmra.mrb[4].mxu0 %v1981_v24 }
  0x3b   : > { %1896 = vmatprep.mubr.bf16.mxu0 %v1982_v25  ;;  %1909 = vmatpush3.bf16.msra.mxu0 %v1988_v23 }
  0x3c   : > { %1910 = vmatprep.subr.bf16.mxu0 %v1989_v26 }
  0x3f   : > { %1911 = vmatpush3.bf16.msra.mxu0 %v1989_v26 }
  0x40   : > { %1912 = vmatprep.subr.bf16.mxu0 %v1990_v27 }
  0x42   : > { %1897 = vmatmul.mubr.bf16.gmra.mrb[8].mxu0 %v1983_v28 }
  0x43   : > { %1900 = vmatprep.mubr.bf16.mxu0 %v1984_v29  ;;  %1913 = vmatpush3.bf16.msra.mxu0 %v1990_v27 }
  0x44   : > { %1914 = vmatprep.subr.bf16.mxu0 %v1991_v30 }
  0x47   : > { %1915 = vmatpush3.bf16.msra.mxu0 %v1991_v30 }
  0x48   : > { %1916 = vmatprep.subr.bf16.mxu0 %v1992_v32 }
  0x4a   : > { %1901 = vmatmul.mubr.bf16.gmra.mrb[12].mxu0 %v1985_v31 }
  0x4b   : > { %1917 = vmatpush3.bf16.msra.mxu0 %v1992_v32 }
  0x4c   : > { %1918 = vmatprep.subr.bf16.mxu0 %v1993_v33 }
  0x4f   : > { %1919 = vmatpush3.bf16.msra.mxu0 %v1993_v33 }
 0x105   : > { %v1890_v47 = vpop.f32.mrb[0].mxu0 }
 0x106   : > { %v778_v48 = vadd.f32 %v1890_v47, %v1752_v46  ;;  %v706_v49 = vpop.f32.mrb[1].mxu0 }
 0x107   : > { %v776_v50 = vadd.f32 %v1752_v46, %v706_v49  ;;  %v1891_v51 = vpop.f32.mrb[2].mxu0 }
 0x108   : > { %v779_v52 = vadd.f32 %v1891_v51, %v1752_v46  ;;  %v709_v53 = vpop.f32.mrb[3].mxu0  ;;  %v794_v55 = vmax.f32 %v778_v48, 0.0 }
 0x109   : > { %v777_v54 = vadd.f32 %v1752_v46, %v709_v53  ;;  %v792_v57 = vmax.f32 %v776_v50, 0.0 }
 0x10a   : > { %v795_v56 = vmax.f32 %v779_v52, 0.0 }
 0x10b   : > { %v793_v58 = vmax.f32 %v777_v54, 0.0 }
 0x10c   : > { %v809_v59 = vpack.c.bf16 %v795_v56, %v794_v55 }
 0x10d   : > { %v808_v60 = vpack.c.bf16 %v793_v58, %v792_v57  ;;  %v1894_v61 = vpop.f32.mrb[4].mxu0 }
 0x10e   : > { %v782_v62 = vadd.f32 %v1894_v61, %v1752_v46  ;;  %v722_v63 = vpop.f32.mrb[5].mxu0 }
 0x10f   : > { %v780_v0 = vadd.f32 %v1752_v46, %v722_v63  ;;  %v1895_v1 = vpop.f32.mrb[6].mxu0  ;;  %1920 = vmatprep.mubr.bf16.mxu0 %v808_v60 }
 0x110   : > { %v783_v2 = vadd.f32 %v1895_v1, %v1752_v46  ;;  %v725_v3 = vpop.f32.mrb[7].mxu0  ;;  %1921 = vmatmul.mubr.bf16.vlgmr.msra.gmra.mrb[16].mxu0 %v809_v59  ;;  %v798_v5 = vmax.f32 %v782_v62, 0.0 }
 0x111   : > { %v781_v4 = vadd.f32 %v1752_v46, %v725_v3  ;;  %v796_v7 = vmax.f32 %v780_v0, 0.0 }
 0x112   : > { %v799_v6 = vmax.f32 %v783_v2, 0.0 }
 0x113   : > { %v797_v8 = vmax.f32 %v781_v4, 0.0 }
 0x114   : > { %v811_v9 = vpack.c.bf16 %v799_v6, %v798_v5 }
 0x115   : > { %v810_v10 = vpack.c.bf16 %v797_v8, %v796_v7  ;;  %v1898_v11 = vpop.f32.mrb[8].mxu0 }
 0x116   : > { %v786_v12 = vadd.f32 %v1898_v11, %v1752_v46  ;;  %v738_v13 = vpop.f32.mrb[9].mxu0 }
 0x117   : > { %v784_v14 = vadd.f32 %v1752_v46, %v738_v13  ;;  %v1899_v15 = vpop.f32.mrb[10].mxu0  ;;  %1924 = vmatprep.mubr.bf16.mxu0 %v810_v10 }
 0x118   : > { %v787_v16 = vadd.f32 %v1899_v15, %v1752_v46  ;;  %v741_v17 = vpop.f32.mrb[11].mxu0  ;;  %1925 = vmatmul.mubr.bf16.gmra.mrb[20].mxu0 %v811_v9  ;;  %v802_v19 = vmax.f32 %v786_v12, 0.0 }
 0x119   : > { %v785_v18 = vadd.f32 %v1752_v46, %v741_v17  ;;  %v800_v21 = vmax.f32 %v784_v14, 0.0 }
 0x11a   : > { %v803_v20 = vmax.f32 %v787_v16, 0.0 }
 0x11b   : > { %v801_v22 = vmax.f32 %v785_v18, 0.0 }
 0x11c   : > { %v813_v23 = vpack.c.bf16 %v803_v20, %v802_v19 }
 0x11d   : > { %v812_v24 = vpack.c.bf16 %v801_v22, %v800_v21  ;;  %v1902_v25 = vpop.f32.mrb[12].mxu0 }
 0x11e   : > { %v790_v26 = vadd.f32 %v1902_v25, %v1752_v46  ;;  %v754_v27 = vpop.f32.mrb[13].mxu0 }
 0x11f   : > { %v788_v28 = vadd.f32 %v1752_v46, %v754_v27  ;;  %v1903_v29 = vpop.f32.mrb[14].mxu0  ;;  %1928 = vmatprep.mubr.bf16.mxu0 %v812_v24 }
 0x120   : > { %v791_v30 = vadd.f32 %v1903_v29, %v1752_v46  ;;  %v757_v31 = vpop.f32.mrb[15].mxu0  ;;  %1929 = vmatmul.mubr.bf16.gmra.mrb[24].mxu0 %v813_v23  ;;  %v806_v33 = vmax.f32 %v790_v26, 0.0 }
 0x121   : > { %v789_v32 = vadd.f32 %v1752_v46, %v757_v31  ;;  %v804_v35 = vmax.f32 %v788_v28, 0.0 }
 0x122   : > { %v807_v34 = vmax.f32 %v791_v30, 0.0 }
 0x123   : > { %v805_v36 = vmax.f32 %v789_v32, 0.0 }
 0x124   : > { %v815_v37 = vpack.c.bf16 %v807_v34, %v806_v33 }
 0x125   : > { %v814_v38 = vpack.c.bf16 %v805_v36, %v804_v35 }
 0x127   : > { %1932 = vmatprep.mubr.bf16.mxu0 %v814_v38 }
 0x128   : > { %1933 = vmatmul.mubr.bf16.gmra.mrb[28].mxu0 %v815_v37  ;;  %v1026_v37 = vlaneseq }
 0x12a   : > { %v1027_v38 = vshrl.u32 %v1026_v37, 7 }
 0x12c   : > { %v1028_v39 = vsub.s32 0, %v1027_v38  ;;  %v1032_v41 = vsub.s32 1, %v1027_v38 }
 0x12e   : > { %v2237_v42 = vrot.slane %v1024_v40, %v1028_v39 }
 0x1e3   : > { %v1922_v45 = vpop.f32.mrb[16].mxu0 }
 0x1e4   : > { %v930_v46 = vadd.f32 %v1922_v45, %v1753_v44  ;;  %v921_v47 = vpop.f32.mrb[17].mxu0 }
 0x1e5   : > { %v922_v48 = vadd.f32 %v1753_v44, %v921_v47  ;;  %v1923_v49 = vpop.f32.mrb[18].mxu0 }
 0x1e6   : > { %v933_v50 = vadd.f32 %v1923_v49, %v1753_v44  ;;  %v924_v51 = vpop.f32.mrb[19].mxu0  ;;  %v986_v53 = vmax.f32 %v930_v46, 0.0 }
 0x1e7   : > { %v925_v52 = vadd.f32 %v1753_v44, %v924_v51  ;;  %v984_v55 = vmax.f32 %v922_v48, 0.0 }
 0x1e8   : > { %v987_v54 = vmax.f32 %v933_v50, 0.0 }
 0x1e9   : > { %v985_v56 = vmax.f32 %v925_v52, 0.0 }
 0x1ea   : > { %v1001_v57 = vpack.c.bf16 %v987_v54, %v986_v53 }
 0x1eb   : > { %v1000_v58 = vpack.c.bf16 %v985_v56, %v984_v55  ;;  %v1926_v59 = vpop.f32.mrb[20].mxu0 }
 0x1ec   : > { %v946_v60 = vadd.f32 %v1926_v59, %v1753_v44  ;;  %v937_v61 = vpop.f32.mrb[21].mxu0 }
 0x1ed   : > { %v938_v62 = vadd.f32 %v1753_v44, %v937_v61  ;;  %v1927_v63 = vpop.f32.mrb[22].mxu0  ;;  %1149 = vmatmul.mubr.bf16.vlgmr.msra.gmra.mrb[0].mxu1 %v1000_v58 }
 0x1ee   : > { %v949_v0 = vadd.f32 %v1927_v63, %v1753_v44  ;;  %v940_v1 = vpop.f32.mrb[23].mxu0  ;;  %1158 = vmatprep.mubr.bf16.mxu1 %v2026_v43  ;;  %v990_v3 = vmax.f32 %v946_v60, 0.0 }
 0x1ef   : > { %v941_v2 = vadd.f32 %v1753_v44, %v940_v1  ;;  %v988_v5 = vmax.f32 %v938_v62, 0.0 }
 0x1f0   : > { %v991_v4 = vmax.f32 %v949_v0, 0.0 }
 0x1f1   : > { %v989_v6 = vmax.f32 %v941_v2, 0.0 }
 0x1f2   : > { %v1003_v7 = vpack.c.bf16 %v991_v4, %v990_v3 }
 0x1f3   : > { %v1002_v8 = vpack.c.bf16 %v989_v6, %v988_v5  ;;  %v1930_v9 = vpop.f32.mrb[24].mxu0 }
 0x1f4   : > { %v962_v10 = vadd.f32 %v1930_v9, %v1753_v44  ;;  %v953_v11 = vpop.f32.mrb[25].mxu0 }
 0x1f5   : > { %v954_v12 = vadd.f32 %v1753_v44, %v953_v11  ;;  %v1931_v13 = vpop.f32.mrb[26].mxu0  ;;  %1159 = vmatmul.mubr.bf16.gmra.mrb[4].mxu1 %v1001_v57 }
 0x1f6   : > { %v965_v14 = vadd.f32 %v1931_v13, %v1753_v44  ;;  %v956_v15 = vpop.f32.mrb[27].mxu0  ;;  %1168 = vmatprep.mubr.bf16.mxu1 %v2026_v43  ;;  %v994_v17 = vmax.f32 %v962_v10, 0.0 }
 0x1f7   : > { %v957_v16 = vadd.f32 %v1753_v44, %v956_v15  ;;  %v992_v19 = vmax.f32 %v954_v12, 0.0 }
 0x1f8   : > { %v995_v18 = vmax.f32 %v965_v14, 0.0 }
 0x1f9   : > { %v993_v20 = vmax.f32 %v957_v16, 0.0 }
 0x1fa   : > { %v1005_v21 = vpack.c.bf16 %v995_v18, %v994_v17 }
 0x1fb   : > { %v1004_v22 = vpack.c.bf16 %v993_v20, %v992_v19  ;;  %v1934_v23 = vpop.f32.mrb[28].mxu0 }
 0x1fc   : > { %v978_v24 = vadd.f32 %v1934_v23, %v1753_v44  ;;  %v969_v25 = vpop.f32.mrb[29].mxu0 }
 0x1fd   : > { %v970_v26 = vadd.f32 %v1753_v44, %v969_v25  ;;  %v1935_v27 = vpop.f32.mrb[30].mxu0  ;;  %1169 = vmatmul.mubr.bf16.gmra.mrb[8].mxu1 %v1002_v8 }
 0x1fe   : > { %v981_v28 = vadd.f32 %v1935_v27, %v1753_v44  ;;  %v972_v29 = vpop.f32.mrb[31].mxu0  ;;  %1178 = vmatprep.mubr.bf16.mxu1 %v2026_v43  ;;  %v998_v31 = vmax.f32 %v978_v24, 0.0 }
 0x1ff   : > { %v973_v30 = vadd.f32 %v1753_v44, %v972_v29  ;;  %v996_v33 = vmax.f32 %v970_v26, 0.0  ;;  %v2239_v44 = vrot.slane %v1024_v40, %v1032_v41 }
 0x200   : > { %v999_v32 = vmax.f32 %v981_v28, 0.0 }
 0x201   : > { %v997_v34 = vmax.f32 %v973_v30, 0.0 }
 0x202   : > { %v1007_v35 = vpack.c.bf16 %v999_v32, %v998_v31 }
 0x203   : > { %v1006_v36 = vpack.c.bf16 %v997_v34, %v996_v33 }
 0x205   : > { %1179 = vmatmul.mubr.bf16.gmra.mrb[12].mxu1 %v1003_v7 }
 0x206   : > { %1188 = vmatprep.mubr.bf16.mxu1 %v2026_v43 }
 0x20d   : > { %1189 = vmatmul.mubr.bf16.gmra.mrb[16].mxu1 %v1004_v22 }
 0x20e   : > { %1198 = vmatprep.mubr.bf16.mxu1 %v2026_v43 }
 0x215   : > { %1199 = vmatmul.mubr.bf16.gmra.mrb[20].mxu1 %v1005_v21 }
 0x216   : > { %1208 = vmatprep.mubr.bf16.mxu1 %v2026_v43 }
 0x21d   : > { %1209 = vmatmul.mubr.bf16.gmra.mrb[24].mxu1 %v1006_v36 }
 0x21e   : > { %1218 = vmatprep.mubr.bf16.mxu1 %v2026_v43 }
 0x225   : > { %1219 = vmatmul.mubr.bf16.gmra.mrb[28].mxu1 %v1007_v35 }
 0x2c0   : > { %v1150_v45 = vpop.f32.mrb[0].mxu1 }
 0x2c1   : > { %v1151_v46 = vadd.f32 %v1150_v45, %v2237_v42  ;;  %v1152_v47 = vpop.f32.mrb[1].mxu1 }
 0x2c2   : > { %v1153_v48 = vadd.f32 %v1152_v47, %v2239_v44  ;;  %v1154_v43 = vpop.f32.mrb[2].mxu1 }
 0x2c3   : > { %v1229_v49 = vmax.f32 %v1151_v46, 0.0  ;;  %v1155_v50 = vadd.f32 %v1154_v43, %v2237_v42  ;;  %v1156_v51 = vpop.f32.mrb[3].mxu1 }
 0x2c4   : > { %v1230_v52 = vmax.f32 %v1153_v48, 0.0  ;;  %v1157_v53 = vadd.f32 %v1156_v51, %v2239_v44 }
 0x2c5   : > { %v1261_v54 = vrot.slane %v1229_v49, 4  ;;  %v1231_v55 = vmax.f32 %v1155_v50, 0.0 }
 0x2c6   : > { %v1267_v56 = vrot.slane %v1230_v52, 4  ;;  %v1232_v57 = vmax.f32 %v1157_v53, 0.0 }
 0x2c7   : > { %v1262_v58 = vmax.f32 %v1229_v49, %v1261_v54  ;;  %v1273_v59 = vrot.slane %v1231_v55, 4 }
 0x2c8   : > { %v1268_v60 = vmax.f32 %v1230_v52, %v1267_v56  ;;  %v1279_v61 = vrot.slane %v1232_v57, 4  ;;  %v1160_v62 = vpop.f32.mrb[4].mxu1 }
 0x2c9   : > { %v1263_v63 = vrot.slane %v1262_v58, 2  ;;  %v1274_v0 = vmax.f32 %v1231_v55, %v1273_v59  ;;  %v1161_v1 = vadd.f32 %v1160_v62, %v2237_v42  ;;  %v1162_v2 = vpop.f32.mrb[5].mxu1 }
 0x2ca   : > { %v1269_v3 = vrot.slane %v1268_v60, 2  ;;  %v1280_v4 = vmax.f32 %v1232_v57, %v1279_v61  ;;  %v1163_v5 = vadd.f32 %v1162_v2, %v2239_v44  ;;  %v1164_v6 = vpop.f32.mrb[6].mxu1 }
 0x2cb   : > { %v1264_v7 = vmax.f32 %v1262_v58, %v1263_v63  ;;  %v1275_v8 = vrot.slane %v1274_v0, 2  ;;  %v1233_v9 = vmax.f32 %v1161_v1, 0.0  ;;  %v1165_v10 = vadd.f32 %v1164_v6, %v2237_v42  ;;  %v1166_v11 = vpop.f32.mrb[7].mxu1 }
 0x2cc   : > { %v1270_v12 = vmax.f32 %v1268_v60, %v1269_v3  ;;  %v1281_v13 = vrot.slane %v1280_v4, 2  ;;  %v1234_v14 = vmax.f32 %v1163_v5, 0.0  ;;  %v1167_v15 = vadd.f32 %v1166_v11, %v2239_v44 }
 0x2cd   : > { %v1265_v16 = vrot.slane %v1264_v7, 1  ;;  %v1276_v17 = vmax.f32 %v1274_v0, %v1275_v8  ;;  %v1285_v18 = vrot.slane %v1233_v9, 4  ;;  %v1235_v19 = vmax.f32 %v1165_v10, 0.0 }
 0x2ce   : > { %v1271_v20 = vrot.slane %v1270_v12, 1  ;;  %v1282_v21 = vmax.f32 %v1280_v4, %v1281_v13  ;;  %v1291_v22 = vrot.slane %v1234_v14, 4  ;;  %v1236_v23 = vmax.f32 %v1167_v15, 0.0 }
 0x2cf   : > { %v1266_v24 = vmax.f32 %v1264_v7, %v1265_v16  ;;  %v1277_v25 = vrot.slane %v1276_v17, 1  ;;  %v1286_v26 = vmax.f32 %v1233_v9, %v1285_v18  ;;  %v1297_v27 = vrot.slane %v1235_v19, 4 }
 0x2d0   : > { %v1272_v28 = vmax.f32 %v1270_v12, %v1271_v20  ;;  %v1283_v29 = vrot.slane %v1282_v21, 1  ;;  %v1292_v30 = vmax.f32 %v1234_v14, %v1291_v22  ;;  %v1303_v31 = vrot.slane %v1236_v23, 4  ;;  %v1170_v32 = vpop.f32.mrb[8].mxu1 }
 0x2d1   : > { %v1278_v33 = vmax.f32 %v1276_v17, %v1277_v25  ;;  %v1287_v34 = vrot.slane %v1286_v26, 2  ;;  %v1298_v35 = vmax.f32 %v1235_v19, %v1297_v27  ;;  %v1171_v36 = vadd.f32 %v1170_v32, %v2237_v42  ;;  %v1172_v37 = vpop.f32.mrb[9].mxu1 }
 0x2d2   : > { %v1797_v38 = vpack.c.bf16 %v1272_v28, %v1266_v24  ;;  %v1284_v39 = vmax.f32 %v1282_v21, %v1283_v29  ;;  %v1293_v40 = vrot.slane %v1292_v30, 2  ;;  %v1304_v41 = vmax.f32 %v1236_v23, %v1303_v31  ;;  %v1174_v45 = vpop.f32.mrb[10].mxu1 }
 0x2d3   : > { %v1288_v46 = vmax.f32 %v1286_v26, %v1287_v34  ;;  %v1299_v47 = vrot.slane %v1298_v35, 2  ;;  %v1237_v48 = vmax.f32 %v1171_v36, 0.0  ;;  %v1173_v43 = vadd.f32 %v1172_v37, %v2239_v44  ;;  %v1176_v49 = vpop.f32.mrb[11].mxu1 }
 0x2d4   : > { %v1565_v50 = vunpack.c.l.b16 %v1797_v38  ;;  %v1566_v51 = vunpack.c.h.b16 %v1797_v38  ;;  %v1798_v52 = vpack.c.bf16 %v1284_v39, %v1278_v33  ;;  %v1294_v53 = vmax.f32 %v1292_v30, %v1293_v40 }
 0x2d5   : > { %v1289_v54 = vrot.slane %v1288_v46, 1  ;;  %v1300_v55 = vmax.f32 %v1298_v35, %v1299_v47  ;;  %v1305_v56 = vrot.slane %v1304_v41, 2  ;;  %v1309_v57 = vrot.slane %v1237_v48, 4 }
 0x2d6   : > { %v1567_v58 = vunpack.c.l.b16 %v1798_v52  ;;  %v1568_v59 = vunpack.c.h.b16 %v1798_v52  ;;  %v1295_v60 = vrot.slane %v1294_v53, 1  ;;  %v1238_v61 = vmax.f32 %v1173_v43, 0.0 }
 0x2d7   : > { %v1290_v62 = vmax.f32 %v1288_v46, %v1289_v54  ;;  %v1301_v63 = vrot.slane %v1300_v55, 1  ;;  %v1306_v0 = vmax.f32 %v1304_v41, %v1305_v56  ;;  %v1310_v1 = vmax.f32 %v1237_v48, %v1309_v57 }
 0x2d8   : > { %v1598_v2 = vsel %vm1597_vm2, %v1567_v58, %v1565_v50  ;;  %v1611_v3 = vsel %vm1597_vm2, %v1568_v59, %v1566_v51  ;;  %v1296_v4 = vmax.f32 %v1294_v53, %v1295_v60  ;;  %v1315_v5 = vrot.slane %v1238_v61, 4  ;;  %v1180_v6 = vpop.f32.mrb[12].mxu1 }
 0x2d9   : > { %v1302_v7 = vmax.f32 %v1300_v55, %v1301_v63  ;;  %v1307_v8 = vrot.slane %v1306_v0, 1  ;;  %v1311_v9 = vrot.slane %v1310_v1, 2  ;;  %v1175_v10 = vadd.f32 %v1174_v45, %v2237_v42  ;;  %v1182_v11 = vpop.f32.mrb[13].mxu1 }
 0x2da   : > { %v1799_v12 = vpack.c.bf16 %v1296_v4, %v1290_v62  ;;  %v1316_v13 = vmax.f32 %v1238_v61, %v1315_v5  ;;  %v1177_v14 = vadd.f32 %v1176_v49, %v2239_v44  ;;  %v1181_v15 = vadd.f32 %v1180_v6, %v2237_v42  ;;  %v1184_v16 = vpop.f32.mrb[14].mxu1 }
 0x2db   : > { %v1308_v17 = vmax.f32 %v1306_v0, %v1307_v8  ;;  %v1312_v18 = vmax.f32 %v1310_v1, %v1311_v9  ;;  %v1239_v19 = vmax.f32 %v1175_v10, 0.0  ;;  %v1183_v20 = vadd.f32 %v1182_v11, %v2239_v44  ;;  %v1186_v21 = vpop.f32.mrb[15].mxu1 }
 0x2dc   : > { %v1569_v22 = vunpack.c.l.b16 %v1799_v12  ;;  %v1570_v23 = vunpack.c.h.b16 %v1799_v12  ;;  %v1317_v24 = vrot.slane %v1316_v13, 2  ;;  %v1240_v25 = vmax.f32 %v1177_v14, 0.0 }
 0x2dd   : > { %v1800_v26 = vpack.c.bf16 %v1308_v17, %v1302_v7  ;;  %v1313_v27 = vrot.slane %v1312_v18, 1  ;;  %v1321_v28 = vrot.slane %v1239_v19, 4  ;;  %v1241_v29 = vmax.f32 %v1181_v15, 0.0 }
 0x2de   : > { %v1600_v30 = vsel %vm1599_vm3, %v1569_v22, %v1598_v2  ;;  %v1612_v31 = vsel %vm1599_vm3, %v1570_v23, %v1611_v3  ;;  %v1318_v32 = vmax.f32 %v1316_v13, %v1317_v24  ;;  %v1327_v33 = vrot.slane %v1240_v25, 4 }
 0x2df   : > { %v1571_v34 = vunpack.c.l.b16 %v1800_v26  ;;  %v1572_v35 = vunpack.c.h.b16 %v1800_v26  ;;  %v1314_v36 = vmax.f32 %v1312_v18, %v1313_v27  ;;  %v1322_v37 = vmax.f32 %v1239_v19, %v1321_v28 }
 0x2e0   : > { %v1319_v38 = vrot.slane %v1318_v32, 1  ;;  %v1328_v39 = vmax.f32 %v1240_v25, %v1327_v33  ;;  %v1333_v40 = vrot.slane %v1241_v29, 4  ;;  %v1242_v41 = vmax.f32 %v1183_v20, 0.0  ;;  %v1190_v45 = vpop.f32.mrb[16].mxu1 }
 0x2e1   : > { %v1602_v46 = vsel %vm1601_vm4, %v1571_v34, %v1600_v30  ;;  %v1613_v47 = vsel %vm1601_vm4, %v1572_v35, %v1612_v31  ;;  %v1323_v48 = vrot.slane %v1322_v37, 2  ;;  %v1185_v43 = vadd.f32 %v1184_v16, %v2237_v42  ;;  %v1192_v49 = vpop.f32.mrb[17].mxu1 }
 0x2e2   : > { %v1320_v50 = vmax.f32 %v1318_v32, %v1319_v38  ;;  %v1329_v51 = vrot.slane %v1328_v39, 2  ;;  %v1334_v52 = vmax.f32 %v1241_v29, %v1333_v40  ;;  %v1339_v53 = vrot.slane %v1242_v41, 4  ;;  %v1194_v54 = vpop.f32.mrb[18].mxu1 }
 0x2e3   : > { %v1324_v55 = vmax.f32 %v1322_v37, %v1323_v48  ;;  %v1243_v56 = vmax.f32 %v1185_v43, 0.0  ;;  %v1187_v57 = vadd.f32 %v1186_v21, %v2239_v44  ;;  %v1191_v58 = vadd.f32 %v1190_v45, %v2237_v42  ;;  %v1196_v59 = vpop.f32.mrb[19].mxu1 }
 0x2e4   : > { %v1801_v60 = vpack.c.bf16 %v1320_v50, %v1314_v36  ;;  %v1330_v61 = vmax.f32 %v1328_v39, %v1329_v51  ;;  %v1335_v62 = vrot.slane %v1334_v52, 2  ;;  %v1340_v63 = vmax.f32 %v1242_v41, %v1339_v53 }
 0x2e5   : > { %v1325_v0 = vrot.slane %v1324_v55, 1  ;;  %v1345_v1 = vrot.slane %v1243_v56, 4  ;;  %v1244_v2 = vmax.f32 %v1187_v57, 0.0  ;;  %v1245_v3 = vmax.f32 %v1191_v58, 0.0 }
 0x2e6   : > { %v1573_v4 = vunpack.c.l.b16 %v1801_v60  ;;  %v1574_v5 = vunpack.c.h.b16 %v1801_v60  ;;  %v1331_v6 = vrot.slane %v1330_v61, 1  ;;  %v1336_v7 = vmax.f32 %v1334_v52, %v1335_v62 }
 0x2e7   : > { %v1326_v8 = vmax.f32 %v1324_v55, %v1325_v0  ;;  %v1341_v9 = vrot.slane %v1340_v63, 2  ;;  %v1346_v10 = vmax.f32 %v1243_v56, %v1345_v1  ;;  %v1351_v11 = vrot.slane %v1244_v2, 4 }
 0x2e8   : > { %v1604_v12 = vsel %vm1603_vm5, %v1573_v4, %v1602_v46  ;;  %v1614_v13 = vsel %vm1603_vm5, %v1574_v5, %v1613_v47  ;;  %v1332_v14 = vmax.f32 %v1330_v61, %v1331_v6  ;;  %v1337_v15 = vrot.slane %v1336_v7, 1  ;;  %v1200_v16 = vpop.f32.mrb[20].mxu1 }
 0x2e9   : > { %v1342_v17 = vmax.f32 %v1340_v63, %v1341_v9  ;;  %v1347_v18 = vrot.slane %v1346_v10, 2  ;;  %v1352_v19 = vmax.f32 %v1244_v2, %v1351_v11  ;;  %v1357_v20 = vrot.slane %v1245_v3, 4  ;;  %v1202_v21 = vpop.f32.mrb[21].mxu1 }
 0x2ea   : > { %v1802_v22 = vpack.c.bf16 %v1332_v14, %v1326_v8  ;;  %v1338_v23 = vmax.f32 %v1336_v7, %v1337_v15  ;;  %v1193_v24 = vadd.f32 %v1192_v49, %v2239_v44  ;;  %v1195_v25 = vadd.f32 %v1194_v54, %v2237_v42  ;;  %v1204_v26 = vpop.f32.mrb[22].mxu1 }
 0x2eb   : > { %v1343_v27 = vrot.slane %v1342_v17, 1  ;;  %v1348_v28 = vmax.f32 %v1346_v10, %v1347_v18  ;;  %v1353_v29 = vrot.slane %v1352_v19, 2  ;;  %v1358_v30 = vmax.f32 %v1245_v3, %v1357_v20  ;;  %v2272_v31 = vpop.f32.mrb[23].mxu1 }
 0x2ec   : > { %v1575_v32 = vunpack.c.l.b16 %v1802_v22  ;;  %v1576_v33 = vunpack.c.h.b16 %v1802_v22  ;;  %v1246_v34 = vmax.f32 %v1193_v24, 0.0  ;;  %v1247_v35 = vmax.f32 %v1195_v25, 0.0 }
 0x2ed   : > { %v1344_v36 = vmax.f32 %v1342_v17, %v1343_v27  ;;  %v1349_v37 = vrot.slane %v1348_v28, 1  ;;  %v1354_v38 = vmax.f32 %v1352_v19, %v1353_v29  ;;  %v1359_v39 = vrot.slane %v1358_v30, 2 }
 0x2ee   : > { %v1606_v40 = vsel %vm1605_vm6, %v1575_v32, %v1604_v12  ;;  %v1615_v41 = vsel %vm1605_vm6, %v1576_v33, %v1614_v13  ;;  %v1363_v45 = vrot.slane %v1246_v34, 4  ;;  %v1369_v46 = vrot.slane %v1247_v35, 4 }
 0x2ef   : > { %v1803_v47 = vpack.c.bf16 %v1344_v36, %v1338_v23  ;;  %v1350_v48 = vmax.f32 %v1348_v28, %v1349_v37  ;;  %v1355_v43 = vrot.slane %v1354_v38, 1  ;;  %v1360_v49 = vmax.f32 %v1358_v30, %v1359_v39 }
 0x2f0   : > { %v1364_v50 = vmax.f32 %v1246_v34, %v1363_v45  ;;  %v1370_v51 = vmax.f32 %v1247_v35, %v1369_v46  ;;  %v1197_v52 = vadd.f32 %v1196_v59, %v2239_v44  ;;  %v1201_v53 = vadd.f32 %v1200_v16, %v2237_v42  ;;  %v1210_v54 = vpop.f32.mrb[24].mxu1 }
 0x2f1   : > { %v1577_v55 = vunpack.c.l.b16 %v1803_v47  ;;  %v1578_v56 = vunpack.c.h.b16 %v1803_v47  ;;  %v1356_v57 = vmax.f32 %v1354_v38, %v1355_v43  ;;  %v1361_v58 = vrot.slane %v1360_v49, 1  ;;  %v1212_v60 = vpop.f32.mrb[25].mxu1 }
 0x2f2   : > { %v1365_v61 = vrot.slane %v1364_v50, 2  ;;  %v1371_v62 = vrot.slane %v1370_v51, 2  ;;  %v1248_v63 = vmax.f32 %v1197_v52, 0.0  ;;  %v1249_v0 = vmax.f32 %v1201_v53, 0.0  ;;  %v1214_v1 = vpop.f32.mrb[26].mxu1 }
 0x2f3   : > { %v1608_v2 = vsel %vm1607_vm7, %v1577_v55, %v1606_v40  ;;  %v1616_v3 = vsel %vm1607_vm7, %v1578_v56, %v1615_v41  ;;  %v1804_v4 = vpack.c.bf16 %v1356_v57, %v1350_v48  ;;  %v1362_v59 = vmax.f32 %v1360_v49, %v1361_v58  ;;  %v2286_v5 = vpop.f32.mrb[27].mxu1 }
 0x2f4   : > { %v1366_v6 = vmax.f32 %v1364_v50, %v1365_v61  ;;  %v1372_v7 = vmax.f32 %v1370_v51, %v1371_v62  ;;  %v1375_v8 = vrot.slane %v1248_v63, 4  ;;  %v1381_v9 = vrot.slane %v1249_v0, 4 }
 0x2f5   : > { %v1579_v10 = vunpack.c.l.b16 %v1804_v4  ;;  %v1580_v11 = vunpack.c.h.b16 %v1804_v4  ;;  %v1203_v12 = vadd.f32 %v1202_v21, %v2239_v44  ;;  %v1205_v13 = vadd.f32 %v1204_v26, %v2237_v42 }
 0x2f6   : > { %v1367_v14 = vrot.slane %v1366_v6, 1  ;;  %v1373_v15 = vrot.slane %v1372_v7, 1  ;;  %v1376_v16 = vmax.f32 %v1248_v63, %v1375_v8  ;;  %v1382_v17 = vmax.f32 %v1249_v0, %v1381_v9 }
 0x2f7   : > { %v1610_v18 = vsel %vm1609_vm8, %v1579_v10, %v1608_v2  ;;  %v1617_v19 = vsel %vm1609_vm8, %v1580_v11, %v1616_v3  ;;  %v1250_v20 = vmax.f32 %v1203_v12, 0.0  ;;  %v1251_v22 = vmax.f32 %v1205_v13, 0.0 }
 0x2f8   : > { %v1632_v23 = vpack.c.b16 %v1617_v19, %v1610_v18  ;;  %v1368_v21 = vmax.f32 %v1366_v6, %v1367_v14  ;;  %v1374_v24 = vmax.f32 %v1372_v7, %v1373_v15  ;;  %v1377_v25 = vrot.slane %v1376_v16, 2  ;;  %v1220_v26 = vpop.f32.mrb[28].mxu1 }
 0x2f9   : > { %v1383_v27 = vrot.slane %v1382_v17, 2  ;;  %v1387_v28 = vrot.slane %v1250_v20, 4  ;;  %v1393_v29 = vrot.slane %v1251_v22, 4  ;;  %v1207_v30 = vadd.f32 %v2272_v31, %v2239_v44  ;;  %v1222_v32 = vpop.f32.mrb[29].mxu1 }
 0x2fa   : > { %1636 = vst [vmem:[%s2294_s26] sm:$0xff] %v1632_v23  ;;  %v1805_v33 = vpack.c.bf16 %v1368_v21, %v1362_v59  ;;  %v1378_v34 = vmax.f32 %v1376_v16, %v1377_v25  ;;  %v1211_v35 = vadd.f32 %v1210_v54, %v2237_v42  ;;  %v1213_v36 = vadd.f32 %v1212_v60, %v2239_v44  ;;  %v2303_v37 = vpop.f32.mrb[30].mxu1 }
 0x2fb   : > { %v1384_v38 = vmax.f32 %v1382_v17, %v1383_v27  ;;  %v1388_v39 = vmax.f32 %v1250_v20, %v1387_v28  ;;  %v1394_v40 = vmax.f32 %v1251_v22, %v1393_v29  ;;  %v1252_v41 = vmax.f32 %v1207_v30, 0.0  ;;  %v2305_v45 = vpop.f32.mrb[31].mxu1 }
 0x2fc   : > { %v1581_v46 = vunpack.c.l.b16 %v1805_v33  ;;  %v1582_v47 = vunpack.c.h.b16 %v1805_v33  ;;  %v1379_v48 = vrot.slane %v1378_v34, 1  ;;  %v1253_v31 = vmax.f32 %v1211_v35, 0.0 }
 0x2fd   : > { %v1385_v43 = vrot.slane %v1384_v38, 1  ;;  %v1389_v49 = vrot.slane %v1388_v39, 2  ;;  %v1395_v50 = vrot.slane %v1394_v40, 2  ;;  %v1399_v51 = vrot.slane %v1252_v41, 4 }
 0x2fe   : > { %v1380_v52 = vmax.f32 %v1378_v34, %v1379_v48  ;;  %v1405_v53 = vrot.slane %v1253_v31, 4  ;;  %v1254_v54 = vmax.f32 %v1213_v36, 0.0  ;;  %v1215_v55 = vadd.f32 %v1214_v1, %v2237_v42 }
 0x2ff   : > { %v1386_v56 = vmax.f32 %v1384_v38, %v1385_v43  ;;  %v1390_v57 = vmax.f32 %v1388_v39, %v1389_v49  ;;  %v1396_v58 = vmax.f32 %v1394_v40, %v1395_v50  ;;  %v1400_v60 = vmax.f32 %v1252_v41, %v1399_v51 }
 0x300   : > { %v1806_v61 = vpack.c.bf16 %v1380_v52, %v1374_v24  ;;  %v1406_v62 = vmax.f32 %v1253_v31, %v1405_v53  ;;  %v1411_v63 = vrot.slane %v1254_v54, 4  ;;  %v1255_v0 = vmax.f32 %v1215_v55, 0.0 }
 0x301   : > { %v1391_v2 = vrot.slane %v1390_v57, 1  ;;  %v1397_v3 = vrot.slane %v1396_v58, 1  ;;  %v1401_v4 = vrot.slane %v1400_v60, 2  ;;  %v1217_v59 = vadd.f32 %v2286_v5, %v2239_v44 }
 0x302   : > { %v1583_v6 = vunpack.c.l.b16 %v1806_v61  ;;  %v1584_v7 = vunpack.c.h.b16 %v1806_v61  ;;  %v1407_v8 = vrot.slane %v1406_v62, 2  ;;  %v1412_v9 = vmax.f32 %v1254_v54, %v1411_v63 }
 0x303   : > { %v1392_v10 = vmax.f32 %v1390_v57, %v1391_v2  ;;  %v1398_v1 = vmax.f32 %v1396_v58, %v1397_v3  ;;  %v1402_v11 = vmax.f32 %v1400_v60, %v1401_v4  ;;  %v1417_v12 = vrot.slane %v1255_v0, 4 }
 0x304   : > { %v1618_v13 = vsel %vm1597_vm2, %v1583_v6, %v1581_v46  ;;  %v1625_v14 = vsel %vm1597_vm2, %v1584_v7, %v1582_v47  ;;  %v1408_v15 = vmax.f32 %v1406_v62, %v1407_v8  ;;  %v1413_v16 = vrot.slane %v1412_v9, 2 }
 0x305   : > { %v1807_v17 = vpack.c.bf16 %v1392_v10, %v1386_v56  ;;  %v1403_v18 = vrot.slane %v1402_v11, 1  ;;  %v1418_v19 = vmax.f32 %v1255_v0, %v1417_v12  ;;  %v1256_v20 = vmax.f32 %v1217_v59, 0.0 }
 0x306   : > { %v1409_v22 = vrot.slane %v1408_v15, 1  ;;  %v1414_v5 = vmax.f32 %v1412_v9, %v1413_v16  ;;  %v1221_v23 = vadd.f32 %v1220_v26, %v2237_v42  ;;  %v1223_v21 = vadd.f32 %v1222_v32, %v2239_v44 }
 0x307   : > { %v1585_v24 = vunpack.c.l.b16 %v1807_v17  ;;  %v1586_v25 = vunpack.c.h.b16 %v1807_v17  ;;  %v1404_v27 = vmax.f32 %v1402_v11, %v1403_v18  ;;  %v1419_v28 = vrot.slane %v1418_v19, 2 }
 0x308   : > { %v1410_v29 = vmax.f32 %v1408_v15, %v1409_v22  ;;  %v1415_v30 = vrot.slane %v1414_v5, 1  ;;  %v1423_v33 = vrot.slane %v1256_v20, 4  ;;  %v1257_v34 = vmax.f32 %v1221_v23, 0.0 }
 0x309   : > { %v1619_v35 = vsel %vm1599_vm3, %v1585_v24, %v1618_v13  ;;  %v1626_v36 = vsel %vm1599_vm3, %v1586_v25, %v1625_v14  ;;  %v1808_v38 = vpack.c.bf16 %v1404_v27, %v1398_v1  ;;  %v1420_v39 = vmax.f32 %v1418_v19, %v1419_v28 }
 0x30a   : > { %v1416_v40 = vmax.f32 %v1414_v5, %v1415_v30  ;;  %v1424_v41 = vmax.f32 %v1256_v20, %v1423_v33  ;;  %v1429_v46 = vrot.slane %v1257_v34, 4  ;;  %v1258_v26 = vmax.f32 %v1223_v21, 0.0 }
 0x30b   : > { %v1587_v47 = vunpack.c.l.b16 %v1808_v38  ;;  %v1588_v32 = vunpack.c.h.b16 %v1808_v38  ;;  %v1421_v48 = vrot.slane %v1420_v39, 1  ;;  %v1225_v31 = vadd.f32 %v2303_v37, %v2237_v42 }
 0x30c   : > { %v1809_v43 = vpack.c.bf16 %v1416_v40, %v1410_v29  ;;  %v1425_v49 = vrot.slane %v1424_v41, 2  ;;  %v1430_v50 = vmax.f32 %v1257_v34, %v1429_v46  ;;  %v1435_v51 = vrot.slane %v1258_v26, 4 }
 0x30d   : > { %v1620_v52 = vsel %vm1601_vm4, %v1587_v47, %v1619_v35  ;;  %v1627_v53 = vsel %vm1601_vm4, %v1588_v32, %v1626_v36  ;;  %v1259_v54 = vmax.f32 %v1225_v31, 0.0  ;;  %v1422_v60 = vmax.f32 %v1420_v39, %v1421_v48 }
 0x30e   : > { %v1589_v55 = vunpack.c.l.b16 %v1809_v43  ;;  %v1590_v56 = vunpack.c.h.b16 %v1809_v43  ;;  %v1426_v57 = vmax.f32 %v1424_v41, %v1425_v49  ;;  %v1431_v58 = vrot.slane %v1430_v50, 2 }
 0x30f   : > { %v1436_v61 = vmax.f32 %v1258_v26, %v1435_v51  ;;  %v1441_v62 = vrot.slane %v1259_v54, 4  ;;  %v1227_v63 = vadd.f32 %v2305_v45, %v2239_v44 }
 0x310   : > { %v1621_v42 = vsel %vm1603_vm5, %v1589_v55, %v1620_v52  ;;  %v1628_v37 = vsel %vm1603_vm5, %v1590_v56, %v1627_v53  ;;  %v1427_v0 = vrot.slane %v1426_v57, 1  ;;  %v1432_v2 = vmax.f32 %v1430_v50, %v1431_v58 }
 0x311   : > { %v1437_v3 = vrot.slane %v1436_v61, 2  ;;  %v1442_v4 = vmax.f32 %v1259_v54, %v1441_v62  ;;  %v1260_v59 = vmax.f32 %v1227_v63, 0.0 }
 0x312   : > { %v1428_v6 = vmax.f32 %v1426_v57, %v1427_v0  ;;  %v1433_v7 = vrot.slane %v1432_v2, 1 }
 0x313   : > { %v1438_v8 = vmax.f32 %v1436_v61, %v1437_v3  ;;  %v1443_v9 = vrot.slane %v1442_v4, 2  ;;  %v1447_v10 = vrot.slane %v1260_v59, 4 }
 0x314   : > { %v1810_v1 = vpack.c.bf16 %v1428_v6, %v1422_v60  ;;  %v1434_v11 = vmax.f32 %v1432_v2, %v1433_v7 }
 0x315   : > { %v1439_v12 = vrot.slane %v1438_v8, 1  ;;  %v1444_v13 = vmax.f32 %v1442_v4, %v1443_v9  ;;  %v1448_v14 = vmax.f32 %v1260_v59, %v1447_v10 }
 0x316   : > { %v1591_v44 = vunpack.c.l.b16 %v1810_v1  ;;  %v1592_v45 = vunpack.c.h.b16 %v1810_v1 }
 0x317   : > { %v1440_v15 = vmax.f32 %v1438_v8, %v1439_v12  ;;  %v1445_v16 = vrot.slane %v1444_v13, 1  ;;  %v1449_v17 = vrot.slane %v1448_v14, 2 }
 0x318   : > { %v1622_v18 = vsel %vm1605_vm6, %v1591_v44, %v1621_v42  ;;  %v1629_v19 = vsel %vm1605_vm6, %v1592_v45, %v1628_v37 }
 0x319   : > { %v1811_v20 = vpack.c.bf16 %v1440_v15, %v1434_v11  ;;  %v1450_v22 = vmax.f32 %v1448_v14, %v1449_v17  ;;  %v1446_v21 = vmax.f32 %v1444_v13, %v1445_v16 }
 0x31b   : > { %v1593_v5 = vunpack.c.l.b16 %v1811_v20  ;;  %v1594_v23 = vunpack.c.h.b16 %v1811_v20  ;;  %v1451_v24 = vrot.slane %v1450_v22, 1 }
 0x31d   : > { %v1623_v25 = vsel %vm1607_vm7, %v1593_v5, %v1622_v18  ;;  %v1630_v27 = vsel %vm1607_vm7, %v1594_v23, %v1629_v19  ;;  %v1452_v28 = vmax.f32 %v1450_v22, %v1451_v24 }
 0x31f   : > { %v1812_v29 = vpack.c.bf16 %v1452_v28, %v1446_v21 }
 0x321   : > { %v1595_v30 = vunpack.c.l.b16 %v1812_v29  ;;  %v1596_v33 = vunpack.c.h.b16 %v1812_v29 }
 0x323   : > { %v1624_v34 = vsel %vm1609_vm8, %v1595_v30, %v1623_v25  ;;  %v1631_v35 = vsel %vm1609_vm8, %v1596_v33, %v1630_v27 }
 0x324   : > { %v1633_v36 = vpack.c.b16 %v1631_v35, %v1624_v34 }
 0x326   : > { %1637 = vst [vmem:[%s2294_s26 + $0x8] sm:$0xff] %v1633_v36 }
 0x327 PF: > { %s19_s30 = sadd.s32 1, %s2024_s30  }
 0x328   : > { %p16_p5 = scmp.ge.s32.totalorder %s19_s30, 4  }
 0x32a   :  { %18 = sbr.rel (!%p16_p5) target bundleno = 1 (0x1), region = 89 }

// kernel: _lambda_.5
= control target key start
LH: loop header
LB: loop body
LE: loop exit
PB: predicated region body
PF: predicated region fallthrough
CT: control target
= control target key end

     0   :  { %s9952_s0 = inlined_call_operand.vmem [shape: bf16[2,16,256], index: 0, kind: input, shape index: {}]   ;;  %s9953_s1 = inlined_call_operand.vmem [shape: bf16[2,16,8], index: 1, kind: input, shape index: {}]   ;;  %s9954_s2 = inlined_call_operand.vmem [shape: bf16[256,256], index: 2, kind: input, shape index: {}]   ;;  %s9955_s3 = inlined_call_operand.vmem [shape: bf16[8,256], index: 3, kind: input, shape index: {}]   ;;  %s9956_s4 = inlined_call_operand.vmem [shape: f32[1,256], index: 4, kind: input, shape index: {}]   ;;  %s9957_s5 = inlined_call_operand.vmem [shape: bf16[256,512], index: 5, kind: input, shape index: {}]   ;;  %s9958_s6 = inlined_call_operand.vmem [shape: f32[1,512], index: 6, kind: input, shape index: {}]   ;;  %s9959_s7 = inlined_call_operand.vmem [shape: bf16[512,1024], index: 7, kind: input, shape index: {}]   ;;  %s9960_s8 = inlined_call_operand.vmem [shape: f32[1,1024], index: 8, kind: input, shape index: {}]   ;;  %s9961_s9 = inlined_call_operand.vmem [shape: bf16[1024,512], index: 9, kind: input, shape index: {}]   ;;  %s9962_s10 = inlined_call_operand.vmem [shape: f32[1,512], index: 10, kind: input, shape index: {}]   ;;  %s9963_s11 = inlined_call_operand.vmem [shape: bf16[512,256], index: 11, kind: input, shape index: {}]   ;;  %s9964_s12 = inlined_call_operand.vmem [shape: f32[1,256], index: 12, kind: input, shape index: {}]   ;;  %s9965_s13 = inlined_call_operand.vmem [shape: bf16[256,128], index: 13, kind: input, shape index: {}]   ;;  %s9966_s14 = inlined_call_operand.vmem [shape: f32[1,128], index: 14, kind: input, shape index: {}]   ;;  %s9967_s15 = inlined_call_operand.hbm [shape: f32[2,1,128], index: 15, kind: output, shape index: {}]  }
   0x1   :  { %9975 = sst [smem:[#allocation11_spill]] %s9967_s15 }
   0x2   :  { %20 = vsyncpa [#allocation3], 0 }
   0x3   :  { %22 = vsyncpa [#allocation3 + $0x1], 0  ;;  %s7631_s18 = smov 0   ;;  %s7633_s19 = smov 0  }
   0x4   :  { %s7635_s20 = smov 0   ;;  %s7637_s21 = smov 0  }
   0x5 LB: > { %9976 = sst [smem:[#allocation5_spill]] %s7535_s18  ;;  %s7652_s22 = sadd.s32 4294967295, %s7547_s21   ;;  %s7547_s21 = sphi %s7637_s21, %s9988_s21   ;;  %s7543_s20 = sphi %s7635_s20, %s9990_s20   ;;  %s7539_s19 = sphi %s7633_s19, %s9992_s19   ;;  %s7535_s18 = sphi %s7631_s18, %s9991_s18  }
   0x6   : > { %9977 = sst [smem:[#allocation6_spill]] %s7543_s20  ;;  %s5995_s23 = sadd.s32 4294967294, %s7547_s21  }
   0x7   : > { %9978 = sst [smem:[#allocation7_spill]] %s7547_s21  ;;  %s7656_s24 = sadd.s32 1, %s7547_s21  }
   0x8   : > { %9979 = sst [smem:[#allocation8_spill]] %s7656_s24  ;;  %s360_s25 = sadd.s32 1, %s7543_s20 }
   0x9   : > { %s357_s26 = ssub.s32 %s7547_s21, %s7656_s24  ;;  %p370_p0 = scmp.ne.s32.totalorder %s7543_s20, %s7539_s19 }
   0xa   : > { %p358_p1 = scmp.eq.s32.totalorder %s357_s26, 0  ;;  %p371_p2 = scmp.eq.s32.totalorder %s7652_s22, 1 }
   0xb   : > { %p376_p3 = scmp.ne.s32.totalorder %s7539_s19, %s7535_s18  ;;  %p377_p4 = scmp.eq.s32.totalorder %s5995_s23, 1 }
   0xc   : > { %s7667_s27 = scalar_select %p358_p1, %s7543_s20, %s360_s25  }
   0xd   : > { %p7669_p5 = por %p371_p2, %p370_p0  ;;  %p7673_p6 = por %p377_p4, %p376_p3 }
   0xe   : > { %9980 = sst [smem:[#allocation9_spill]] %s7667_s27  ;;  %p5998_p7 = scmp.ge.s32.totalorder %s7547_s21, 1 }
   0xf   : > { %s9982_s29 = scalar_select %p7673_p6, 1, 0 }
  0x10   : > { %p450_p8 = scmp.lt.s32.totalorder %s7547_s21, 3 }
  0x11   : > { %9983 = sst [smem:[#allocation10_spill]] %s9982_s29 }
  0x12   : > { %p451_p9 = pnand %p5998_p7, %p450_p8 }
  0x13   : > { %v6835_v0 = vld [vmem:[%s9954_s2 + $0x4] ss:$8 sps:$4 sm:$0xff] (!%p451_p9)   ;;  %v6837_v1 = vld [vmem:[%s9954_s2] ss:$8 sps:$4 sm:$0xff] (!%p451_p9)   ;;  %v7549_v2 = vmov (!%p451_p9), 0   ;;  %p502_p10 = scmp.lt.s32.totalorder (!%p451_p9), %s7652_s22, 1 }
  0x14   : > { %454 = sbr.rel (%p451_p9) target bundleno = 2075 (0x81b), region = 80  ;;  %603 = vmatprep.mubr.bf16.mxu1 (!%p451_p9), %v7549_v2  ;;  %784 = vmatprep.subr.bf16.mxu0 (!%p451_p9), %v6835_v0  ;;  %v6838_v3 = vld [vmem:[%s9954_s2 + $0x14] ss:$8 sps:$4 sm:$0xff] (!%p451_p9)   ;;  %v6840_v4 = vld [vmem:[%s9954_s2 + $0x10] ss:$8 sps:$4 sm:$0xff] (!%p451_p9)   ;;  %v549_v13 = vld [vmem:[%s9955_s3] sm:$0xff] (!%p451_p9) }
  0x15   : > { %785 = vmatpush1.bf16.msra.mxu0 (!%p451_p9), %v6837_v1  ;;  %v6841_v5 = vld [vmem:[%s9954_s2 + $0x24] ss:$8 sps:$4 sm:$0xff] (!%p451_p9)   ;;  %v6843_v6 = vld [vmem:[%s9954_s2 + $0x20] ss:$8 sps:$4 sm:$0xff] (!%p451_p9)   ;;  %v6844_v7 = vld [vmem:[%s9954_s2 + $0x34] ss:$8 sps:$4 sm:$0xff] (!%p451_p9)   ;;  %v6005_v15 = vcombine.high (!%p451_p9), %v549_v13, %v549_v13  ;;  %v6004_v16 = vcombine.low (!%p451_p9), %v549_v13, %v549_v13 }
  0x16   : > { %786 = vmatprep.subr.bf16.mxu0 (!%p451_p9), %v6838_v3  ;;  %v6846_v8 = vld [vmem:[%s9954_s2 + $0x30] ss:$8 sps:$4 sm:$0xff] (!%p451_p9)   ;;  %v6847_v9 = vld [vmem:[%s9954_s2 + $0x44] ss:$8 sps:$4 sm:$0xff] (!%p451_p9)   ;;  %v6849_v10 = vld [vmem:[%s9954_s2 + $0x40] ss:$8 sps:$4 sm:$0xff] (!%p451_p9)  }
  0x17   : > { %v6850_v11 = vld [vmem:[%s9954_s2 + $0x54] ss:$8 sps:$4 sm:$0xff] (!%p451_p9)   ;;  %v6852_v12 = vld [vmem:[%s9954_s2 + $0x50] ss:$8 sps:$4 sm:$0xff] (!%p451_p9)   ;;  %vm564_vm0 = vcmask (!%p451_p9), 1043456   ;;  %vm560_vm1 = vcmask (!%p451_p9), 64512  }
  0x18   : > { %v6853_v14 = vld [vmem:[%s9954_s2 + $0x64] ss:$8 sps:$4 sm:$0xff] (!%p451_p9)   ;;  %v6855_v17 = vld [vmem:[%s9954_s2 + $0x60] ss:$8 sps:$4 sm:$0xff] (!%p451_p9)   ;;  %6006 = vmatprep.subr.msk.bf16.mxu1 (!%p451_p9), %vm564_vm0, %v6005_v15  ;;  %v566_v18 = vsel (!%p451_p9), %vm564_vm0, %v6004_v16, 0  ;;  %vm5900_vm2 = vcmask (!%p451_p9), 1040384  }
  0x19   : > { %787 = vmatpush1.bf16.msra.mxu0 (!%p451_p9), %v6840_v4  ;;  %v6856_v20 = vld [vmem:[%s9954_s2 + $0x74] ss:$8 sps:$4 sm:$0xff] (!%p451_p9)   ;;  %572 = vmatpush1.bf16.msra.mxu1 (!%p451_p9), %v566_v18  ;;  %v6889_v22 = vld [vmem:[%s9957_s5] ss:$16 sps:$4 sm:$0xff] (!%p451_p9)   ;;  %v6859_v26 = vld [vmem:[%s9954_s2 + $0x84] ss:$8 sps:$4 sm:$0xff] (!%p451_p9)  }
  0x1a   : > { %788 = vmatprep.subr.bf16.mxu0 (!%p451_p9), %v6841_v5  ;;  %v6891_v23 = vld [vmem:[%s9957_s5 + $0x4] ss:$16 sps:$4 sm:$0xff] (!%p451_p9)   ;;  %v6858_v25 = vld [vmem:[%s9954_s2 + $0x70] ss:$8 sps:$4 sm:$0xff] (!%p451_p9)   ;;  %v6861_v29 = vld [vmem:[%s9954_s2 + $0x80] ss:$8 sps:$4 sm:$0xff] (!%p451_p9)  }
  0x1b   : > { %s503_s30 = scalar_select %p502_p10, %s7652_s22, 1  ;;  %v6894_v24 = vld [vmem:[%s9957_s5 + $0x24] ss:$16 sps:$4 sm:$0xff]   ;;  %1255 = vmatprep.subr.bf16.mxu1 %v6891_v23  ;;  %v6892_v27 = vld [vmem:[%s9957_s5 + $0x20] ss:$16 sps:$4 sm:$0xff]  }
  0x1c   : > { %v6897_v28 = vld [vmem:[%s9957_s5 + $0x44] ss:$16 sps:$4 sm:$0xff]   ;;  %v6895_v31 = vld [vmem:[%s9957_s5 + $0x40] ss:$16 sps:$4 sm:$0xff]   ;;  %s6698_s15 = sshll.u32 %s7652_s22, 4  ;;  %s9984_s24 = sld [smem:[#allocation11_spill]] }
  0x1d   : > { %789 = vmatpush1.bf16.msra.mxu0 %v6843_v6  ;;  %s6702_s23 = sshll.u32 %s503_s30, 3  ;;  %s6701_s18 = sshll.u32 %s503_s30, 4  ;;  %v6862_v30 = vld [vmem:[%s9954_s2 + $0x94] ss:$8 sps:$4 sm:$0xff]   ;;  %v6864_v33 = vld [vmem:[%s9954_s2 + $0x90] ss:$8 sps:$4 sm:$0xff]  }
  0x1e   : > { %790 = vmatprep.subr.bf16.mxu0 %v6844_v7  ;;  %s511_s17 = scalar_lea.vmem %s9953_s1, %s6702_s23  ;;  %s7729_s25 = scalar_lea.vmem %s9952_s0, %s6701_s18  ;;  %v6900_v32 = vld [vmem:[%s9957_s5 + $0x64] ss:$16 sps:$4 sm:$0xff]   ;;  %v6898_v35 = vld [vmem:[%s9957_s5 + $0x60] ss:$16 sps:$4 sm:$0xff]  }
  0x1f   : > { %v6884_v19 = vld [vmem:[%s511_s17] sm:$0xff]   ;;  %v6868_v38 = vld [vmem:[%s9954_s2 + $0xb4] ss:$8 sps:$4 sm:$0xff]   ;;  %v6870_v40 = vld [vmem:[%s9954_s2 + $0xb0] ss:$8 sps:$4 sm:$0xff]   ;;  %s500_s23 = sand.u32 1, %s7539_s19  }
  0x20   : > { %v6888_v21 = vld [vmem:[%s7729_s25 + $0x4] ss:$8 sps:$4 sm:$0xff]   ;;  %6007 = vmatmul.mubr.msk.bf16.vlgmr.msra.gmra.mrb[0].mxu1 %vm560_vm1, %v6884_v19  ;;  %v6867_v37 = vld [vmem:[%s9954_s2 + $0xa0] ss:$8 sps:$4 sm:$0xff]   ;;  %v6874_v46 = vld [vmem:[%s9954_s2 + $0xd4] ss:$8 sps:$4 sm:$0xff]  }
  0x21   : > { %791 = vmatpush1.bf16.msra.mxu0 %v6846_v8  ;;  %816 = vmatprep.mubr.bf16.mxu0 %v6888_v21  ;;  %v6865_v34 = vld [vmem:[%s9954_s2 + $0xa4] ss:$8 sps:$4 sm:$0xff]   ;;  %v6901_v39 = vld [vmem:[%s9957_s5 + $0x80] ss:$16 sps:$4 sm:$0xff]   ;;  %v6882_v54 = vld [vmem:[%s9954_s2 + $0xf4] ss:$8 sps:$4 sm:$0xff]  }
  0x22   : > { %792 = vmatprep.subr.bf16.mxu0 %v6847_v9  ;;  %1256 = vmatpush1.bf16.msra.mxu1 %v6889_v22  ;;  %v6903_v36 = vld [vmem:[%s9957_s5 + $0x84] ss:$16 sps:$4 sm:$0xff]   ;;  %v6904_v43 = vld [vmem:[%s9957_s5 + $0xa0] ss:$16 sps:$4 sm:$0xff]   ;;  %v6939_v8 = vld [vmem:[%s9957_s5 + $0xc] ss:$16 sps:$4 sm:$0xff]   ;;  %s9910_s30 = scalar_lea.hbm %s9984_s24, %s6698_s15 }
  0x23   : > { %1257 = vmatprep.subr.bf16.mxu1 %v6894_v24  ;;  %v6906_v41 = vld [vmem:[%s9957_s5 + $0xa4] ss:$16 sps:$4 sm:$0xff]   ;;  %v6873_v45 = vld [vmem:[%s9954_s2 + $0xc0] ss:$8 sps:$4 sm:$0xff]   ;;  %v6876_v49 = vld [vmem:[%s9954_s2 + $0xd0] ss:$8 sps:$4 sm:$0xff]  }
  0x24   : > { %v6871_v42 = vld [vmem:[%s9954_s2 + $0xc4] ss:$8 sps:$4 sm:$0xff]   ;;  %v6907_v47 = vld [vmem:[%s9957_s5 + $0xc0] ss:$16 sps:$4 sm:$0xff]   ;;  %s501_s18 = scalar_lea.vmem [#allocation2], %s500_s23  ;;  %s5916_s29 = scalar_lea.sflag [#allocation3], %s500_s23 }
  0x25   : > { %793 = vmatpush1.bf16.msra.mxu0 %v6849_v10  ;;  %v6909_v44 = vld [vmem:[%s9957_s5 + $0xc4] ss:$16 sps:$4 sm:$0xff]   ;;  %v6910_v51 = vld [vmem:[%s9957_s5 + $0xe0] ss:$16 sps:$4 sm:$0xff]   ;;  %s5928_s26 = sshll.u32 %s501_s18, 4  ;;  %s7550_s22 = smov [#allocation2]   ;;  %s9912_s26 = int_to_ptr.vmem [resolvable:$true] %s5928_s26 }
  0x26   : > { %794 = vmatprep.subr.bf16.mxu0 %v6850_v11  ;;  %1258 = vmatpush1.bf16.msra.mxu1 %v6892_v27  ;;  %v6912_v48 = vld [vmem:[%s9957_s5 + $0xe4] ss:$16 sps:$4 sm:$0xff]   ;;  %v6880_v53 = vld [vmem:[%s9954_s2 + $0xe0] ss:$8 sps:$4 sm:$0xff]   ;;  %v6885_v57 = vld [vmem:[%s9954_s2 + $0xf0] ss:$8 sps:$4 sm:$0xff]  }
  0x27   : > { %1259 = vmatprep.subr.bf16.mxu1 %v6897_v28  ;;  %v6877_v50 = vld [vmem:[%s9954_s2 + $0xe4] ss:$8 sps:$4 sm:$0xff]   ;;  %v6913_v55 = vld [vmem:[%s9957_s5 + $0x100] ss:$16 sps:$4 sm:$0xff]   ;;  %s7485_s20 = scalar_lea.vmem %s9912_s26, 16  ;;  %s7489_s27 = sshll.u32 %s7550_s22, 4  ;;  %s7490_s27 = int_to_ptr.vmem [resolvable:$false] %s7489_s27 }
  0x28   : > { %v6915_v52 = vld [vmem:[%s9957_s5 + $0x104] ss:$16 sps:$4 sm:$0xff]   ;;  %v6916_v58 = vld [vmem:[%s9957_s5 + $0x120] ss:$16 sps:$4 sm:$0xff]   ;;  %p7486_p11 = scmp.ne.s32.totalorder %s9912_s26, %s7485_s20  ;;  %s7491_s21 = scalar_lea.vmem %s7490_s27, 32 }
  0x29   : > { %795 = vmatpush1.bf16.msra.mxu0 %v6852_v12  ;;  %v6918_v56 = vld [vmem:[%s9957_s5 + $0x124] ss:$16 sps:$4 sm:$0xff]   ;;  %v6886_v60 = vld [vmem:[%s7729_s25] ss:$8 sps:$4 sm:$0xff]   ;;  %p7492_p0 = scmp.lt.s32.totalorder %s9912_s26, %s7490_s27  ;;  %p7493_p1 = scmp.lt.s32.totalorder %s7491_s21, %s7485_s20 }
  0x2a   : > { %796 = vmatprep.subr.bf16.mxu0 %v6853_v14  ;;  %1260 = vmatpush1.bf16.msra.mxu1 %v6895_v31  ;;  %v6921_v59 = vld [vmem:[%s9957_s5 + $0x144] ss:$16 sps:$4 sm:$0xff]   ;;  %v6919_v61 = vld [vmem:[%s9957_s5 + $0x140] ss:$16 sps:$4 sm:$0xff]   ;;  %p7487_p12 = pnand %p7486_p11, %p7669_p5 }
  0x2b   : > { %1261 = vmatprep.subr.bf16.mxu1 %v6900_v32  ;;  %v6924_v62 = vld [vmem:[%s9957_s5 + $0x164] ss:$16 sps:$4 sm:$0xff]   ;;  %v6922_v63 = vld [vmem:[%s9957_s5 + $0x160] ss:$16 sps:$4 sm:$0xff]   ;;  %p7494_p2 = por %p7493_p1, %p7492_p0 }
  0x2c   : > { %v6927_v0 = vld [vmem:[%s9957_s5 + $0x184] ss:$16 sps:$4 sm:$0xff]   ;;  %v6925_v1 = vld [vmem:[%s9957_s5 + $0x180] ss:$16 sps:$4 sm:$0xff]   ;;  %p7488_p13 = pneg %p7487_p12 }
  0x2d   : > { %797 = vmatpush1.bf16.msra.mxu0 %v6855_v17  ;;  %v6930_v2 = vld [vmem:[%s9957_s5 + $0x1a4] ss:$16 sps:$4 sm:$0xff]   ;;  %v6928_v3 = vld [vmem:[%s9957_s5 + $0x1a0] ss:$16 sps:$4 sm:$0xff]  }
  0x2e   : > { %798 = vmatprep.subr.bf16.mxu0 %v6856_v20  ;;  %1262 = vmatpush1.bf16.msra.mxu1 %v6898_v35  ;;  %v6933_v4 = vld [vmem:[%s9957_s5 + $0x1c4] ss:$16 sps:$4 sm:$0xff]   ;;  %v6931_v5 = vld [vmem:[%s9957_s5 + $0x1c0] ss:$16 sps:$4 sm:$0xff]   ;;  %p7495_p3 = pnand %p7494_p2, %p7488_p13 }
  0x2f   : > { %1263 = vmatprep.subr.bf16.mxu1 %v6903_v36  ;;  %v6936_v6 = vld [vmem:[%s9957_s5 + $0x1e4] ss:$16 sps:$4 sm:$0xff]   ;;  %v6934_v7 = vld [vmem:[%s9957_s5 + $0x1e0] ss:$16 sps:$4 sm:$0xff]  }
  0x30   : > { %v1353_v9 = vld [vmem:[%s9959_s7] sm:$0xff] }
  0x31   : > { %799 = vmatpush1.bf16.msra.mxu0 %v6858_v25  ;;  %v1357_v10 = vld [vmem:[%s9959_s7 + $0x20] sm:$0xff] }
  0x32   : > { %800 = vmatprep.subr.bf16.mxu0 %v6859_v26  ;;  %1264 = vmatpush1.bf16.msra.mxu1 %v6901_v39  ;;  %v6106_v11 = vcombine.low %v1353_v9, %v1357_v10  ;;  %v6107_v12 = vcombine.high %v1353_v9, %v1357_v10  ;;  %v1361_v13 = vld [vmem:[%s9959_s7 + $0x40] sm:$0xff] }
  0x33   : > { %1265 = vmatprep.subr.bf16.mxu1 %v6906_v41  ;;  %v1365_v14 = vld [vmem:[%s9959_s7 + $0x60] sm:$0xff] }
  0x34   : > { %v6115_v15 = vcombine.high %v1361_v13, %v1365_v14  ;;  %v6114_v16 = vcombine.low %v1361_v13, %v1365_v14  ;;  %v1369_v17 = vld [vmem:[%s9959_s7 + $0x80] sm:$0xff] }
  0x35   : > { %801 = vmatpush1.bf16.msra.mxu0 %v6861_v29  ;;  %v1373_v18 = vld [vmem:[%s9959_s7 + $0xa0] sm:$0xff] }
  0x36   : > { %802 = vmatprep.subr.bf16.mxu0 %v6862_v30  ;;  %1266 = vmatpush1.bf16.msra.mxu1 %v6904_v43  ;;  %v6123_v19 = vcombine.high %v1369_v17, %v1373_v18  ;;  %v6122_v20 = vcombine.low %v1369_v17, %v1373_v18  ;;  %v1377_v21 = vld [vmem:[%s9959_s7 + $0xc0] sm:$0xff] }
  0x37   : > { %1267 = vmatprep.subr.bf16.mxu1 %v6909_v44  ;;  %v1381_v22 = vld [vmem:[%s9959_s7 + $0xe0] sm:$0xff] }
  0x38   : > { %v6131_v23 = vcombine.high %v1377_v21, %v1381_v22  ;;  %v6130_v26 = vcombine.low %v1377_v21, %v1381_v22  ;;  %v1385_v28 = vld [vmem:[%s9959_s7 + $0x100] sm:$0xff] }
  0x39   : > { %803 = vmatpush1.bf16.msra.mxu0 %v6864_v33  ;;  %v1389_v29 = vld [vmem:[%s9959_s7 + $0x120] sm:$0xff] }
  0x3a   : > { %804 = vmatprep.subr.bf16.mxu0 %v6865_v34  ;;  %1268 = vmatpush1.bf16.msra.mxu1 %v6907_v47  ;;  %v6139_v31 = vcombine.high %v1385_v28, %v1389_v29  ;;  %v6138_v32 = vcombine.low %v1385_v28, %v1389_v29  ;;  %v1393_v33 = vld [vmem:[%s9959_s7 + $0x140] sm:$0xff] }
  0x3b   : > { %1269 = vmatprep.subr.bf16.mxu1 %v6912_v48  ;;  %v1397_v34 = vld [vmem:[%s9959_s7 + $0x160] sm:$0xff] }
  0x3c   : > { %v6147_v35 = vcombine.high %v1393_v33, %v1397_v34  ;;  %v6146_v36 = vcombine.low %v1393_v33, %v1397_v34  ;;  %v1409_v41 = vld [vmem:[%s9959_s7 + $0x1c0] sm:$0xff]  ;;  %v6945_v33 = vld [vmem:[%s9957_s5 + $0x4c] ss:$16 sps:$4 sm:$0xff]   ;;  %v6943_v34 = vld [vmem:[%s9957_s5 + $0x48] ss:$16 sps:$4 sm:$0xff]  }
  0x3d   : > { %805 = vmatpush1.bf16.msra.mxu0 %v6867_v37  ;;  %v1401_v37 = vld [vmem:[%s9959_s7 + $0x180] sm:$0xff] }
  0x3e   : > { %806 = vmatprep.subr.bf16.mxu0 %v6868_v38  ;;  %1270 = vmatpush1.bf16.msra.mxu1 %v6910_v51  ;;  %v1405_v38 = vld [vmem:[%s9959_s7 + $0x1a0] sm:$0xff] }
  0x3f   : > { %1271 = vmatprep.subr.bf16.mxu1 %v6915_v52  ;;  %v6155_v39 = vcombine.high %v1401_v37, %v1405_v38 }
  0x41   : > { %807 = vmatpush1.bf16.msra.mxu0 %v6870_v40  ;;  %v6154_v40 = vcombine.low %v1401_v37, %v1405_v38  ;;  %v6951_v37 = vld [vmem:[%s9957_s5 + $0x8c] ss:$16 sps:$4 sm:$0xff]   ;;  %v6949_v38 = vld [vmem:[%s9957_s5 + $0x88] ss:$16 sps:$4 sm:$0xff]  }
  0x42   : > { %808 = vmatprep.subr.bf16.mxu0 %v6871_v42  ;;  %1272 = vmatpush1.bf16.msra.mxu1 %v6913_v55  ;;  %v1413_v42 = vld [vmem:[%s9959_s7 + $0x1e0] sm:$0xff]  ;;  %v829_v55 = vlaneseq }
  0x43   : > { %1273 = vmatprep.subr.bf16.mxu1 %v6918_v56  ;;  %v6163_v43 = vcombine.high %v1409_v41, %v1413_v42  ;;  %v6162_v44 = vcombine.low %v1409_v41, %v1413_v42  ;;  %v6957_v41 = vld [vmem:[%s9957_s5 + $0xcc] ss:$16 sps:$4 sm:$0xff]   ;;  %v6955_v42 = vld [vmem:[%s9957_s5 + $0xc8] ss:$16 sps:$4 sm:$0xff]  }
  0x45   : > { %809 = vmatpush1.bf16.msra.mxu0 %v6873_v45  ;;  %v1417_v45 = vld [vmem:[%s9959_s7 + $0x200] sm:$0xff] }
  0x46   : > { %810 = vmatprep.subr.bf16.mxu0 %v6874_v46  ;;  %1274 = vmatpush1.bf16.msra.mxu1 %v6916_v58  ;;  %v1421_v46 = vld [vmem:[%s9959_s7 + $0x220] sm:$0xff] }
  0x47   : > { %1275 = vmatprep.subr.bf16.mxu1 %v6921_v59  ;;  %v6171_v47 = vcombine.high %v1417_v45, %v1421_v46  ;;  %v6170_v48 = vcombine.low %v1417_v45, %v1421_v46  ;;  %v1441_v58 = vld [vmem:[%s9959_s7 + $0x2c0] sm:$0xff]  ;;  %v6963_v45 = vld [vmem:[%s9957_s5 + $0x10c] ss:$16 sps:$4 sm:$0xff]   ;;  %v6961_v46 = vld [vmem:[%s9957_s5 + $0x108] ss:$16 sps:$4 sm:$0xff]  }
  0x48   : > { %v1445_v59 = vld [vmem:[%s9959_s7 + $0x2e0] sm:$0xff] }
  0x49   : > { %811 = vmatpush1.bf16.msra.mxu0 %v6876_v49  ;;  %v1425_v49 = vld [vmem:[%s9959_s7 + $0x240] sm:$0xff] }
  0x4a   : > { %812 = vmatprep.subr.bf16.mxu0 %v6877_v50  ;;  %1276 = vmatpush1.bf16.msra.mxu1 %v6919_v61  ;;  %v1429_v50 = vld [vmem:[%s9959_s7 + $0x260] sm:$0xff]  ;;  %v6195_v61 = vcombine.high %v1441_v58, %v1445_v59 }
  0x4b   : > { %1277 = vmatprep.subr.bf16.mxu1 %v6924_v62  ;;  %v6179_v51 = vcombine.high %v1425_v49, %v1429_v50  ;;  %v6178_v52 = vcombine.low %v1425_v49, %v1429_v50  ;;  %v6194_v62 = vcombine.low %v1441_v58, %v1445_v59  ;;  %v6969_v49 = vld [vmem:[%s9957_s5 + $0x14c] ss:$16 sps:$4 sm:$0xff]   ;;  %v6967_v50 = vld [vmem:[%s9957_s5 + $0x148] ss:$16 sps:$4 sm:$0xff]  }
  0x4c   : > { %v6979_v58 = vld [vmem:[%s9957_s5 + $0x1c8] ss:$16 sps:$4 sm:$0xff]   ;;  %v6984_v59 = vld [vmem:[%s9957_s5 + $0x1ec] ss:$16 sps:$4 sm:$0xff]  }
  0x4d   : > { %813 = vmatpush1.bf16.msra.mxu0 %v6880_v53  ;;  %v1433_v53 = vld [vmem:[%s9959_s7 + $0x280] sm:$0xff] }
  0x4e   : > { %814 = vmatprep.subr.bf16.mxu0 %v6882_v54  ;;  %1278 = vmatpush1.bf16.msra.mxu1 %v6922_v63  ;;  %v1437_v54 = vld [vmem:[%s9959_s7 + $0x2a0] sm:$0xff] }
  0x4f   : > { %1279 = vmatprep.subr.bf16.mxu1 %v6927_v0  ;;  %v6187_v56 = vcombine.high %v1433_v53, %v1437_v54  ;;  %v1449_v63 = vld [vmem:[%s9959_s7 + $0x300] sm:$0xff] }
  0x50   : > { %v1453_v0 = vld [vmem:[%s9959_s7 + $0x320] sm:$0xff] }
  0x51   : > { %815 = vmatpush1.bf16.msra.mxu0 %v6885_v57  ;;  %v6186_v57 = vcombine.low %v1433_v53, %v1437_v54  ;;  %v6975_v53 = vld [vmem:[%s9957_s5 + $0x18c] ss:$16 sps:$4 sm:$0xff]   ;;  %v6973_v54 = vld [vmem:[%s9957_s5 + $0x188] ss:$16 sps:$4 sm:$0xff]  }
  0x52   : > { %1280 = vmatpush1.bf16.msra.mxu1 %v6925_v1  ;;  %2931 = vmatprep.subr.bf16.mxu0 %v6107_v12 }
  0x53   : > { %1281 = vmatprep.subr.bf16.mxu1 %v6930_v2  ;;  %v6203_v2 = vcombine.high %v1449_v63, %v1453_v0 }
  0x54   : > { %817 = vmatmul.mubr.bf16.vlgmr.msra.gmra.mrb[0].mxu0 %v6886_v60  ;;  %v7969_v60 = vshrl.u32 %v829_v55, 7  ;;  %v6978_v55 = vld [vmem:[%s9957_s5 + $0x1ac] ss:$16 sps:$4 sm:$0xff]  }
  0x55   : > { %2932 = vmatpush1.bf16.msra.mxu0 %v6106_v11 }
  0x56   : > { %1282 = vmatpush1.bf16.msra.mxu1 %v6928_v3  ;;  %2933 = vmatprep.subr.bf16.mxu0 %v6115_v15  ;;  %v7978_v1 = vsub.s32 0, %v7969_v60  ;;  %v827_v3 = vld [vmem:[%s9956_s4] sm:$0x3] }
  0x57   : > { %1283 = vmatprep.subr.bf16.mxu1 %v6933_v4  ;;  %v7984_v4 = vsub.s32 1, %v7969_v60 }
  0x59   : > { %2934 = vmatpush1.bf16.msra.mxu0 %v6114_v16  ;;  %v836_v11 = vrot.slane %v827_v3, %v7984_v4 }
  0x5a   : > { %1284 = vmatpush1.bf16.msra.mxu1 %v6931_v5  ;;  %2935 = vmatprep.subr.bf16.mxu0 %v6123_v19  ;;  %v6202_v5 = vcombine.low %v1449_v63, %v1453_v0  ;;  %v6982_v63 = vld [vmem:[%s9957_s5 + $0x1e8] ss:$16 sps:$4 sm:$0xff]  }
  0x5b   : > { %1285 = vmatprep.subr.bf16.mxu1 %v6936_v6  ;;  %v1457_v6 = vld [vmem:[%s9959_s7 + $0x340] sm:$0xff] }
  0x5d   : > { %2936 = vmatpush1.bf16.msra.mxu0 %v6122_v20 }
  0x5e   : > { %1286 = vmatpush1.bf16.msra.mxu1 %v6934_v7  ;;  %2937 = vmatprep.subr.bf16.mxu0 %v6131_v23  ;;  %v1461_v7 = vld [vmem:[%s9959_s7 + $0x360] sm:$0xff] }
  0x5f   : > { %1298 = vmatprep.subr.bf16.mxu1 %v6939_v8  ;;  %v832_v8 = vrot.slane %v827_v3, %v7978_v1  ;;  %v6211_v9 = vcombine.high %v1457_v6, %v1461_v7  ;;  %v6210_v14 = vcombine.low %v1457_v6, %v1461_v7  ;;  %v1366_v3 = vld [vmem:[%s9959_s7 + $0x68] sm:$0xff] }
  0x60   : > { %v1370_v7 = vld [vmem:[%s9959_s7 + $0x88] sm:$0xff] }
  0x61   : > { %2938 = vmatpush1.bf16.msra.mxu0 %v6130_v26 }
  0x62   : > { %2939 = vmatprep.subr.bf16.mxu0 %v6139_v31 }
  0x65   : > { %2940 = vmatpush1.bf16.msra.mxu0 %v6138_v32 }
  0x66   : > { %2941 = vmatprep.subr.bf16.mxu0 %v6147_v35  ;;  %v6948_v35 = vld [vmem:[%s9957_s5 + $0x6c] ss:$16 sps:$4 sm:$0xff]  }
  0x69   : > { %2942 = vmatpush1.bf16.msra.mxu0 %v6146_v36  ;;  %v6946_v36 = vld [vmem:[%s9957_s5 + $0x68] ss:$16 sps:$4 sm:$0xff]  }
  0x6a   : > { %2943 = vmatprep.subr.bf16.mxu0 %v6155_v39  ;;  %v6954_v39 = vld [vmem:[%s9957_s5 + $0xac] ss:$16 sps:$4 sm:$0xff]  }
  0x6d   : > { %2944 = vmatpush1.bf16.msra.mxu0 %v6154_v40  ;;  %v6952_v40 = vld [vmem:[%s9957_s5 + $0xa8] ss:$16 sps:$4 sm:$0xff]  }
  0x6e   : > { %2945 = vmatprep.subr.bf16.mxu0 %v6163_v43  ;;  %v6960_v43 = vld [vmem:[%s9957_s5 + $0xec] ss:$16 sps:$4 sm:$0xff]  }
  0x71   : > { %2946 = vmatpush1.bf16.msra.mxu0 %v6162_v44  ;;  %v6958_v44 = vld [vmem:[%s9957_s5 + $0xe8] ss:$16 sps:$4 sm:$0xff]  }
  0x72   : > { %2947 = vmatprep.subr.bf16.mxu0 %v6171_v47  ;;  %v6966_v47 = vld [vmem:[%s9957_s5 + $0x12c] ss:$16 sps:$4 sm:$0xff]  }
  0x75   : > { %2948 = vmatpush1.bf16.msra.mxu0 %v6170_v48  ;;  %v6964_v48 = vld [vmem:[%s9957_s5 + $0x128] ss:$16 sps:$4 sm:$0xff]  }
  0x76   : > { %2949 = vmatprep.subr.bf16.mxu0 %v6179_v51  ;;  %v6972_v51 = vld [vmem:[%s9957_s5 + $0x16c] ss:$16 sps:$4 sm:$0xff]  }
  0x79   : > { %2950 = vmatpush1.bf16.msra.mxu0 %v6178_v52  ;;  %v6970_v52 = vld [vmem:[%s9957_s5 + $0x168] ss:$16 sps:$4 sm:$0xff]  }
  0x7a   : > { %2951 = vmatprep.subr.bf16.mxu0 %v6187_v56  ;;  %v6976_v56 = vld [vmem:[%s9957_s5 + $0x1a8] ss:$16 sps:$4 sm:$0xff]  }
  0x7d   : > { %2952 = vmatpush1.bf16.msra.mxu0 %v6186_v57  ;;  %v6981_v57 = vld [vmem:[%s9957_s5 + $0x1cc] ss:$16 sps:$4 sm:$0xff]  }
  0x7e   : > { %2953 = vmatprep.subr.bf16.mxu0 %v6195_v61  ;;  %v1354_v61 = vld [vmem:[%s9959_s7 + $0x8] sm:$0xff] }
  0x81   : > { %2954 = vmatpush1.bf16.msra.mxu0 %v6194_v62  ;;  %v1358_v62 = vld [vmem:[%s9959_s7 + $0x28] sm:$0xff] }
  0x82   : > { %2955 = vmatprep.subr.bf16.mxu0 %v6203_v2  ;;  %v6109_v0 = vcombine.high %v1354_v61, %v1358_v62  ;;  %v1362_v2 = vld [vmem:[%s9959_s7 + $0x48] sm:$0xff] }
  0x83   : > { %v6117_v6 = vcombine.high %v1362_v2, %v1366_v3 }
  0x85   : > { %2956 = vmatpush1.bf16.msra.mxu0 %v6202_v5  ;;  %v6108_v5 = vcombine.low %v1354_v61, %v1358_v62 }
  0x86   : > { %2957 = vmatprep.subr.bf16.mxu0 %v6211_v9  ;;  %v6116_v9 = vcombine.low %v1362_v2, %v1366_v3 }
  0x89   : > { %2958 = vmatpush1.bf16.msra.mxu0 %v6210_v14 }
  0xf3   : > { %v7913_v24 = vpop.f32.mrb[0].mxu1 }
  0xf4   : > { %v7915_v25 = vpop.f32.mrb[1].mxu1 }
  0xf5   : > { %v7917_v27 = vpop.f32.mrb[2].mxu1 }
  0xf6   : > { %v7925_v30 = vpop.f32.mrb[3].mxu1 }
 0x127   : > { %v818_v10 = vpop.f32.mrb[0].mxu0 }
 0x128   : > { %v819_v12 = vadd.f32 %v818_v10, %v7913_v24  ;;  %v820_v13 = vpop.f32.mrb[1].mxu0 }
 0x129   : > { %v821_v15 = vadd.f32 %v820_v13, %v7915_v25  ;;  %v822_v16 = vpop.f32.mrb[2].mxu0  ;;  %v6937_v25 = vld [vmem:[%s9957_s5 + $0x8] ss:$16 sps:$4 sm:$0xff]  }
 0x12a   : > { %v839_v17 = vadd.f32 %v832_v8, %v819_v12  ;;  %v823_v18 = vadd.f32 %v822_v16, %v7917_v27  ;;  %v824_v19 = vpop.f32.mrb[3].mxu0  ;;  %v6942_v27 = vld [vmem:[%s9957_s5 + $0x2c] ss:$16 sps:$4 sm:$0xff]  }
 0x12b   : > { %v840_v20 = vadd.f32 %v836_v11, %v821_v15  ;;  %v825_v21 = vadd.f32 %v824_v19, %v7925_v30  ;;  %v6940_v30 = vld [vmem:[%s9957_s5 + $0x28] ss:$16 sps:$4 sm:$0xff]  }
 0x12c   : > { %v841_v22 = vadd.f32 %v832_v8, %v823_v18  ;;  %v843_v26 = vmax.f32 %v839_v17, 0.0  ;;  %v1374_v8 = vld [vmem:[%s9959_s7 + $0xa8] sm:$0xff] }
 0x12d   : > { %v842_v23 = vadd.f32 %v836_v11, %v825_v21  ;;  %v844_v24 = vmax.f32 %v840_v20, 0.0  ;;  %v6125_v10 = vcombine.high %v1370_v7, %v1374_v8  ;;  %v1378_v11 = vld [vmem:[%s9959_s7 + $0xc8] sm:$0xff]  ;;  %v6124_v13 = vcombine.low %v1370_v7, %v1374_v8 }
 0x12e   : > { %v845_v28 = vmax.f32 %v841_v22, 0.0  ;;  %v1382_v12 = vld [vmem:[%s9959_s7 + $0xe8] sm:$0xff] }
 0x12f   : > { %v846_v29 = vmax.f32 %v842_v23, 0.0  ;;  %v6133_v14 = vcombine.high %v1378_v11, %v1382_v12  ;;  %v1386_v15 = vld [vmem:[%s9959_s7 + $0x108] sm:$0xff]  ;;  %v6132_v17 = vcombine.low %v1378_v11, %v1382_v12 }
 0x130   : > { %v7998_v31 = vpack.c.bf16 %v845_v28, %v843_v26  ;;  %v1390_v16 = vld [vmem:[%s9959_s7 + $0x128] sm:$0xff] }
 0x131   : > { %v848_v32 = vpack.c.bf16 %v846_v29, %v844_v24  ;;  %v6141_v18 = vcombine.high %v1386_v15, %v1390_v16  ;;  %v1394_v19 = vld [vmem:[%s9959_s7 + $0x148] sm:$0xff]  ;;  %v6140_v21 = vcombine.low %v1386_v15, %v1390_v16 }
 0x132   : > { %v1398_v20 = vld [vmem:[%s9959_s7 + $0x168] sm:$0xff] }
 0x133   : > { %1287 = vmatprep.mubr.bf16.mxu1 %v848_v32  ;;  %v6149_v22 = vcombine.high %v1394_v19, %v1398_v20  ;;  %v1402_v23 = vld [vmem:[%s9959_s7 + $0x188] sm:$0xff]  ;;  %v6148_v28 = vcombine.low %v1394_v19, %v1398_v20  ;;  %v8234_v19 = vld [vmem:[%s9958_s6] sm:$0xf] }
 0x134   : > { %1288 = vmatmul.mubr.bf16.vlgmr.msra.gmra.mrb[4].mxu1 %v7998_v31  ;;  %v1406_v26 = vld [vmem:[%s9959_s7 + $0x1a8] sm:$0xff]  ;;  %v918_v20 = vrot.slane %v8234_v19, %v7978_v1 }
 0x135   : > { %1299 = vmatpush1.bf16.msra.mxu1 %v6937_v25  ;;  %1330 = vmatprep.mubr.bf16.mxu1 %v848_v32  ;;  %v6157_v24 = vcombine.high %v1402_v23, %v1406_v26  ;;  %v1410_v29 = vld [vmem:[%s9959_s7 + $0x1c8] sm:$0xff]  ;;  %v1465_v32 = vld [vmem:[%s9959_s7 + $0x380] sm:$0xff] }
 0x136   : > { %1300 = vmatprep.subr.bf16.mxu1 %v6942_v27  ;;  %v1469_v25 = vld [vmem:[%s9959_s7 + $0x3a0] sm:$0xff] }
 0x137   : > { %v6219_v27 = vcombine.high %v1465_v32, %v1469_v25 }
 0x139   : > { %1301 = vmatpush1.bf16.msra.mxu1 %v6940_v30  ;;  %v6156_v30 = vcombine.low %v1402_v23, %v1406_v26  ;;  %2959 = vmatprep.subr.bf16.mxu0 %v6219_v27 }
 0x13a   : > { %1302 = vmatprep.subr.bf16.mxu1 %v6945_v33  ;;  %v6218_v33 = vcombine.low %v1465_v32, %v1469_v25 }
 0x13c   : > { %2960 = vmatpush1.bf16.msra.mxu0 %v6218_v33 }
 0x13d   : > { %1303 = vmatpush1.bf16.msra.mxu1 %v6943_v34 }
 0x13e   : > { %1304 = vmatprep.subr.bf16.mxu1 %v6948_v35  ;;  %v1418_v35 = vld [vmem:[%s9959_s7 + $0x208] sm:$0xff] }
 0x141   : > { %1305 = vmatpush1.bf16.msra.mxu1 %v6946_v36  ;;  %v1422_v36 = vld [vmem:[%s9959_s7 + $0x228] sm:$0xff] }
 0x142   : > { %1306 = vmatprep.subr.bf16.mxu1 %v6951_v37  ;;  %v1473_v37 = vld [vmem:[%s9959_s7 + $0x3c0] sm:$0xff] }
 0x145   : > { %1307 = vmatpush1.bf16.msra.mxu1 %v6949_v38  ;;  %v1477_v38 = vld [vmem:[%s9959_s7 + $0x3e0] sm:$0xff] }
 0x146   : > { %1308 = vmatprep.subr.bf16.mxu1 %v6954_v39  ;;  %v6227_v39 = vcombine.high %v1473_v37, %v1477_v38 }
 0x148   : > { %2961 = vmatprep.subr.bf16.mxu0 %v6227_v39 }
 0x149   : > { %1309 = vmatpush1.bf16.msra.mxu1 %v6952_v40 }
 0x14a   : > { %1310 = vmatprep.subr.bf16.mxu1 %v6957_v41  ;;  %v6226_v41 = vcombine.low %v1473_v37, %v1477_v38  ;;  %v1494_v37 = vld [vmem:[%s9959_s7 + $0x468] sm:$0xff] }
 0x14c   : > { %2962 = vmatpush1.bf16.msra.mxu0 %v6226_v41 }
 0x14d   : > { %1311 = vmatpush1.bf16.msra.mxu1 %v6955_v42  ;;  %v6173_v42 = vcombine.high %v1418_v35, %v1422_v36 }
 0x14e   : > { %1312 = vmatprep.subr.bf16.mxu1 %v6960_v43  ;;  %v1426_v43 = vld [vmem:[%s9959_s7 + $0x248] sm:$0xff] }
 0x151   : > { %1313 = vmatpush1.bf16.msra.mxu1 %v6958_v44  ;;  %v1430_v44 = vld [vmem:[%s9959_s7 + $0x268] sm:$0xff] }
 0x152   : > { %1314 = vmatprep.subr.bf16.mxu1 %v6963_v45  ;;  %v8170_v45 = vld [vmem:[%s9959_s7 + $0x400] sm:$0xff] }
 0x155   : > { %1315 = vmatpush1.bf16.msra.mxu1 %v6961_v46  ;;  %v8175_v46 = vld [vmem:[%s9959_s7 + $0x420] sm:$0xff] }
 0x156   : > { %1316 = vmatprep.subr.bf16.mxu1 %v6966_v47  ;;  %v8180_v47 = vld [vmem:[%s9959_s7 + $0x408] sm:$0xff] }
 0x159   : > { %1317 = vmatpush1.bf16.msra.mxu1 %v6964_v48  ;;  %v6235_v48 = vcombine.high %v8170_v45, %v8175_v46 }
 0x15a   : > { %1318 = vmatprep.subr.bf16.mxu1 %v6969_v49  ;;  %v8187_v49 = vld [vmem:[%s9959_s7 + $0x428] sm:$0xff] }
 0x15b   : > { %2974 = vmatprep.subr.bf16.mxu0 %v6235_v48  ;;  %v1502_v48 = vld [vmem:[%s9959_s7 + $0x4a8] sm:$0xff] }
 0x15d   : > { %1319 = vmatpush1.bf16.msra.mxu1 %v6967_v50  ;;  %v6172_v50 = vcombine.low %v1418_v35, %v1422_v36  ;;  %v1493_v35 = vld [vmem:[%s9959_s7 + $0x460] sm:$0xff]  ;;  %v1490_v36 = vld [vmem:[%s9959_s7 + $0x448] sm:$0xff] }
 0x15e   : > { %1320 = vmatprep.subr.bf16.mxu1 %v6972_v51  ;;  %v6234_v51 = vcombine.low %v8170_v45, %v8175_v46  ;;  %v6245_v41 = vcombine.high %v1490_v36, %v1494_v37  ;;  %v1506_v45 = vld [vmem:[%s9959_s7 + $0x4c8] sm:$0xff] }
 0x15f   : > { %v1510_v46 = vld [vmem:[%s9959_s7 + $0x4e8] sm:$0xff] }
 0x161   : > { %1321 = vmatpush1.bf16.msra.mxu1 %v6970_v52  ;;  %v6236_v52 = vcombine.low %v8180_v47, %v8187_v49 }
 0x162   : > { %1322 = vmatprep.subr.bf16.mxu1 %v6975_v53  ;;  %v6181_v53 = vcombine.high %v1426_v43, %v1430_v44 }
 0x165   : > { %1323 = vmatpush1.bf16.msra.mxu1 %v6973_v54  ;;  %v1434_v54 = vld [vmem:[%s9959_s7 + $0x288] sm:$0xff] }
 0x166   : > { %1324 = vmatprep.subr.bf16.mxu1 %v6978_v55  ;;  %v1438_v55 = vld [vmem:[%s9959_s7 + $0x2a8] sm:$0xff] }
 0x167   : > { %v6188_v61 = vcombine.low %v1434_v54, %v1438_v55 }
 0x169   : > { %1325 = vmatpush1.bf16.msra.mxu1 %v6976_v56  ;;  %v6180_v56 = vcombine.low %v1426_v43, %v1430_v44  ;;  %v1501_v43 = vld [vmem:[%s9959_s7 + $0x4a0] sm:$0xff]  ;;  %v1498_v44 = vld [vmem:[%s9959_s7 + $0x488] sm:$0xff] }
 0x16a   : > { %1326 = vmatprep.subr.bf16.mxu1 %v6981_v57  ;;  %v6189_v57 = vcombine.high %v1434_v54, %v1438_v55  ;;  %v6253_v55 = vcombine.high %v1498_v44, %v1502_v48 }
 0x16d   : > { %1327 = vmatpush1.bf16.msra.mxu1 %v6979_v58  ;;  %v1442_v58 = vld [vmem:[%s9959_s7 + $0x2c8] sm:$0xff] }
 0x16e   : > { %1328 = vmatprep.subr.bf16.mxu1 %v6984_v59  ;;  %v1446_v59 = vld [vmem:[%s9959_s7 + $0x2e8] sm:$0xff] }
 0x16f   : > { %v6197_v62 = vcombine.high %v1442_v58, %v1446_v59  ;;  %v6196_v2 = vcombine.low %v1442_v58, %v1446_v59  ;;  %v1513_v58 = vld [vmem:[%s9959_s7 + $0x500] sm:$0xff] }
 0x170   : > { %v1517_v59 = vld [vmem:[%s9959_s7 + $0x520] sm:$0xff] }
 0x171   : > { %1329 = vmatpush1.bf16.msra.mxu1 %v6982_v63  ;;  %v1450_v63 = vld [vmem:[%s9959_s7 + $0x308] sm:$0xff] }
 0x172   : > { %3017 = vmatprep.subr.bf16.mxu1 %v6109_v0  ;;  %v1454_v0 = vld [vmem:[%s9959_s7 + $0x328] sm:$0xff] }
 0x173   : > { %v6205_v3 = vcombine.high %v1450_v63, %v1454_v0  ;;  %v6204_v7 = vcombine.low %v1450_v63, %v1454_v0  ;;  %v6260_v0 = vcombine.low %v1506_v45, %v1510_v46 }
 0x174   : > { %1331 = vmatmul.mubr.bf16.vlgmr.msra.gmra.mrb[8].mxu1 %v7998_v31  ;;  %v1414_v31 = vld [vmem:[%s9959_s7 + $0x1e8] sm:$0xff] }
 0x175   : > { %3018 = vmatpush1.bf16.msra.mxu1 %v6108_v5  ;;  %v6165_v34 = vcombine.high %v1410_v29, %v1414_v31  ;;  %v6164_v40 = vcombine.low %v1410_v29, %v1414_v31  ;;  %v1458_v5 = vld [vmem:[%s9959_s7 + $0x348] sm:$0xff] }
 0x176   : > { %3019 = vmatprep.subr.bf16.mxu1 %v6117_v6  ;;  %v1462_v6 = vld [vmem:[%s9959_s7 + $0x368] sm:$0xff] }
 0x177   : > { %v6213_v8 = vcombine.high %v1458_v5, %v1462_v6  ;;  %v6212_v11 = vcombine.low %v1458_v5, %v1462_v6  ;;  %v1521_v5 = vld [vmem:[%s9959_s7 + $0x540] sm:$0xff] }
 0x178   : > { %v1525_v6 = vld [vmem:[%s9959_s7 + $0x560] sm:$0xff] }
 0x179   : > { %3020 = vmatpush1.bf16.msra.mxu1 %v6116_v9  ;;  %v1466_v9 = vld [vmem:[%s9959_s7 + $0x388] sm:$0xff] }
 0x17a   : > { %3021 = vmatprep.subr.bf16.mxu1 %v6125_v10  ;;  %v1470_v10 = vld [vmem:[%s9959_s7 + $0x3a8] sm:$0xff] }
 0x17b   : > { %v6221_v12 = vcombine.high %v1466_v9, %v1470_v10  ;;  %v6220_v15 = vcombine.low %v1466_v9, %v1470_v10  ;;  %v6266_v9 = vcombine.low %v1513_v58, %v1517_v59 }
 0x17d   : > { %3022 = vmatpush1.bf16.msra.mxu1 %v6124_v13  ;;  %v1474_v13 = vld [vmem:[%s9959_s7 + $0x3c8] sm:$0xff] }
 0x17e   : > { %3023 = vmatprep.subr.bf16.mxu1 %v6133_v14  ;;  %v1478_v14 = vld [vmem:[%s9959_s7 + $0x3e8] sm:$0xff] }
 0x17f   : > { %v6229_v16 = vcombine.high %v1474_v13, %v1478_v14 }
 0x181   : > { %3024 = vmatpush1.bf16.msra.mxu1 %v6132_v17  ;;  %v6228_v17 = vcombine.low %v1474_v13, %v1478_v14  ;;  %v1529_v13 = vld [vmem:[%s9959_s7 + $0x580] sm:$0xff] }
 0x182   : > { %3025 = vmatprep.subr.bf16.mxu1 %v6141_v18  ;;  %v6237_v18 = vcombine.high %v8180_v47, %v8187_v49  ;;  %v6252_v49 = vcombine.low %v1498_v44, %v1502_v48  ;;  %v1533_v14 = vld [vmem:[%s9959_s7 + $0x5a0] sm:$0xff] }
 0x185   : > { %3026 = vmatpush1.bf16.msra.mxu1 %v6140_v21  ;;  %v922_v21 = vrot.slane %v8234_v19, %v7984_v4 }
 0x186   : > { %3027 = vmatprep.subr.bf16.mxu1 %v6149_v22 }
 0x189   : > { %3028 = vmatpush1.bf16.msra.mxu1 %v6148_v28 }
 0x18a   : > { %3029 = vmatprep.subr.bf16.mxu1 %v6157_v24 }
 0x18d   : > { %3030 = vmatpush1.bf16.msra.mxu1 %v6156_v30  ;;  %v1489_v30 = vld [vmem:[%s9959_s7 + $0x440] sm:$0xff] }
 0x18e   : > { %3031 = vmatprep.subr.bf16.mxu1 %v6165_v34 }
 0x191   : > { %3032 = vmatpush1.bf16.msra.mxu1 %v6164_v40  ;;  %v6243_v40 = vcombine.high %v1489_v30, %v1493_v35 }
 0x192   : > { %3033 = vmatprep.subr.bf16.mxu1 %v6173_v42  ;;  %v1497_v42 = vld [vmem:[%s9959_s7 + $0x480] sm:$0xff] }
 0x193   : > { %v6251_v54 = vcombine.high %v1497_v42, %v1501_v43  ;;  %v6250_v47 = vcombine.low %v1497_v42, %v1501_v43  ;;  %v1554_v42 = vld [vmem:[%s9959_s7 + $0x648] sm:$0xff] }
 0x194   : > { %v1558_v43 = vld [vmem:[%s9959_s7 + $0x668] sm:$0xff] }
 0x195   : > { %3034 = vmatpush1.bf16.msra.mxu1 %v6172_v50  ;;  %v6242_v50 = vcombine.low %v1489_v30, %v1493_v35  ;;  %v1546_v30 = vld [vmem:[%s9959_s7 + $0x608] sm:$0xff] }
 0x196   : > { %3035 = vmatprep.subr.bf16.mxu1 %v6181_v53  ;;  %v6244_v53 = vcombine.low %v1490_v36, %v1494_v37 }
 0x199   : > { %3036 = vmatpush1.bf16.msra.mxu1 %v6180_v56  ;;  %v1505_v56 = vld [vmem:[%s9959_s7 + $0x4c0] sm:$0xff] }
 0x19a   : > { %3037 = vmatprep.subr.bf16.mxu1 %v6189_v57  ;;  %v1509_v57 = vld [vmem:[%s9959_s7 + $0x4e0] sm:$0xff] }
 0x19b   : > { %v6258_v63 = vcombine.low %v1505_v56, %v1509_v57 }
 0x19d   : > { %3038 = vmatpush1.bf16.msra.mxu1 %v6188_v61  ;;  %v1514_v61 = vld [vmem:[%s9959_s7 + $0x508] sm:$0xff] }
 0x19e   : > { %3039 = vmatprep.subr.bf16.mxu1 %v6197_v62  ;;  %v1518_v62 = vld [vmem:[%s9959_s7 + $0x528] sm:$0xff] }
 0x19f   : > { %v6268_v10 = vcombine.low %v1514_v61, %v1518_v62 }
 0x1a1   : > { %3040 = vmatpush1.bf16.msra.mxu1 %v6196_v2  ;;  %v6267_v2 = vcombine.high %v1513_v58, %v1517_v59  ;;  %v1570_v58 = vld [vmem:[%s9959_s7 + $0x6c8] sm:$0xff] }
 0x1a2   : > { %3041 = vmatprep.subr.bf16.mxu1 %v6205_v3  ;;  %v6269_v3 = vcombine.high %v1514_v61, %v1518_v62  ;;  %v1574_v59 = vld [vmem:[%s9959_s7 + $0x6e8] sm:$0xff] }
 0x1a5   : > { %3042 = vmatpush1.bf16.msra.mxu1 %v6204_v7  ;;  %v1522_v7 = vld [vmem:[%s9959_s7 + $0x548] sm:$0xff] }
 0x1a6   : > { %3043 = vmatprep.subr.bf16.mxu1 %v6213_v8  ;;  %v1526_v8 = vld [vmem:[%s9959_s7 + $0x568] sm:$0xff] }
 0x1a9   : > { %3044 = vmatpush1.bf16.msra.mxu1 %v6212_v11  ;;  %v6275_v11 = vcombine.high %v1521_v5, %v1525_v6 }
 0x1aa   : > { %3045 = vmatprep.subr.bf16.mxu1 %v6221_v12  ;;  %v6277_v12 = vcombine.high %v1522_v7, %v1526_v8 }
 0x1ad   : > { %3046 = vmatpush1.bf16.msra.mxu1 %v6220_v15  ;;  %v1530_v15 = vld [vmem:[%s9959_s7 + $0x588] sm:$0xff] }
 0x1ae   : > { %3047 = vmatprep.subr.bf16.mxu1 %v6229_v16  ;;  %v1534_v16 = vld [vmem:[%s9959_s7 + $0x5a8] sm:$0xff] }
 0x1b1   : > { %3048 = vmatpush1.bf16.msra.mxu1 %v6228_v17  ;;  %v6274_v17 = vcombine.low %v1521_v5, %v1525_v6  ;;  %v1578_v5 = vld [vmem:[%s9959_s7 + $0x708] sm:$0xff] }
 0x1b2   : > { %3060 = vmatprep.subr.bf16.mxu1 %v6237_v18  ;;  %v6276_v18 = vcombine.low %v1522_v7, %v1526_v8  ;;  %v1582_v6 = vld [vmem:[%s9959_s7 + $0x728] sm:$0xff]  ;;  %v6324_v8 = vcombine.low %v1570_v58, %v1574_v59 }
 0x207   : > { %v1289_v22 = vpop.f32.mrb[4].mxu1 }
 0x208   : > { %v1290_v23 = vadd.f32 %v1289_v22, %v918_v20  ;;  %v1291_v26 = vpop.f32.mrb[5].mxu1  ;;  %v1537_v22 = vld [vmem:[%s9959_s7 + $0x5c0] sm:$0xff] }
 0x209   : > { %v1292_v28 = vadd.f32 %v1291_v26, %v922_v21  ;;  %v1293_v24 = vpop.f32.mrb[6].mxu1  ;;  %v1538_v26 = vld [vmem:[%s9959_s7 + $0x5c8] sm:$0xff] }
 0x20a   : > { %v1294_v29 = vadd.f32 %v1293_v24, %v918_v20  ;;  %v1295_v31 = vpop.f32.mrb[7].mxu1  ;;  %v1341_v25 = vmax.f32 %v1290_v23, 0.0  ;;  %v6283_v20 = vcombine.high %v1529_v13, %v1533_v14  ;;  %v1541_v23 = vld [vmem:[%s9959_s7 + $0x5e0] sm:$0xff]  ;;  %v6282_v24 = vcombine.low %v1529_v13, %v1533_v14  ;;  %v1586_v13 = vld [vmem:[%s9959_s7 + $0x748] sm:$0xff] }
 0x20b   : > { %v1296_v32 = vadd.f32 %v1295_v31, %v922_v21  ;;  %v1342_v33 = vmax.f32 %v1292_v28, 0.0  ;;  %v6285_v21 = vcombine.high %v1530_v15, %v1534_v16  ;;  %v1542_v28 = vld [vmem:[%s9959_s7 + $0x5e8] sm:$0xff]  ;;  %v6291_v31 = vcombine.high %v1537_v22, %v1541_v23 }
 0x20c   : > { %v1345_v27 = vmax.f32 %v1294_v29, 0.0  ;;  %v6284_v29 = vcombine.low %v1530_v15, %v1534_v16  ;;  %v6292_v35 = vcombine.low %v1538_v26, %v1542_v28  ;;  %v1590_v14 = vld [vmem:[%s9959_s7 + $0x768] sm:$0xff]  ;;  %v6332_v16 = vcombine.low %v1578_v5, %v1582_v6 }
 0x20d   : > { %v1346_v34 = vmax.f32 %v1296_v32, 0.0  ;;  %v6293_v32 = vcombine.high %v1538_v26, %v1542_v28  ;;  %v1594_v26 = vld [vmem:[%s9959_s7 + $0x788] sm:$0xff] }
 0x20e   : > { %v8252_v38 = vpack.c.bf16 %v1345_v27, %v1341_v25  ;;  %v1545_v25 = vld [vmem:[%s9959_s7 + $0x600] sm:$0xff]  ;;  %v1598_v28 = vld [vmem:[%s9959_s7 + $0x7a8] sm:$0xff] }
 0x20f   : > { %v8254_v39 = vpack.c.bf16 %v1346_v34, %v1342_v33  ;;  %v1549_v27 = vld [vmem:[%s9959_s7 + $0x620] sm:$0xff]  ;;  %v1550_v33 = vld [vmem:[%s9959_s7 + $0x628] sm:$0xff]  ;;  %v6290_v34 = vcombine.low %v1537_v22, %v1541_v23  ;;  %v8417_v22 = vsub.s32 3, %v7969_v60 }
 0x210   : > { %v6299_v36 = vcombine.high %v1545_v25, %v1549_v27  ;;  %v6301_v37 = vcombine.high %v1546_v30, %v1550_v33  ;;  %v6298_v44 = vcombine.low %v1545_v25, %v1549_v27  ;;  %v6300_v48 = vcombine.low %v1546_v30, %v1550_v33  ;;  %v1597_v23 = vld [vmem:[%s9959_s7 + $0x7a0] sm:$0xff] }
 0x211   : > { %2963 = vmatprep.mubr.bf16.mxu0 %v8254_v39  ;;  %3049 = vmatprep.mubr.bf16.mxu1 %v8254_v39  ;;  %v6349_v25 = vcombine.high %v1594_v26, %v1598_v28  ;;  %v1601_v27 = vld [vmem:[%s9959_s7 + $0x7c0] sm:$0xff]  ;;  %v930_v30 = vrot.slane %v8234_v19, %v8417_v22 }
 0x212   : > { %2964 = vmatmul.mubr.bf16.vlgmr.msra.gmra.mrb[4].mxu0 %v8252_v38  ;;  %3050 = vmatmul.mubr.bf16.vlgmr.msra.gmra.mrb[12].mxu1 %v8252_v38  ;;  %v1605_v33 = vld [vmem:[%s9959_s7 + $0x7e0] sm:$0xff] }
 0x213   : > { %2975 = vmatpush1.bf16.msra.mxu0 %v6234_v51  ;;  %3061 = vmatpush1.bf16.msra.mxu1 %v6236_v52  ;;  %v6259_v51 = vcombine.high %v1505_v56, %v1509_v57  ;;  %v6261_v52 = vcombine.high %v1506_v45, %v1510_v46  ;;  %v1562_v56 = vld [vmem:[%s9959_s7 + $0x688] sm:$0xff]  ;;  %v6308_v46 = vcombine.low %v1554_v42, %v1558_v43 }
 0x214   : > { %2976 = vmatprep.subr.bf16.mxu0 %v6243_v40  ;;  %3062 = vmatprep.subr.bf16.mxu1 %v6245_v41  ;;  %v1553_v40 = vld [vmem:[%s9959_s7 + $0x640] sm:$0xff]  ;;  %v1566_v57 = vld [vmem:[%s9959_s7 + $0x6a8] sm:$0xff] }
 0x215   : > { %v1557_v41 = vld [vmem:[%s9959_s7 + $0x660] sm:$0xff]  ;;  %v6316_v62 = vcombine.low %v1562_v56, %v1566_v57 }
 0x216   : > { %v6306_v45 = vcombine.low %v1553_v40, %v1557_v41 }
 0x217   : > { %2977 = vmatpush1.bf16.msra.mxu0 %v6242_v50  ;;  %3063 = vmatpush1.bf16.msra.mxu1 %v6244_v53  ;;  %v6307_v50 = vcombine.high %v1553_v40, %v1557_v41  ;;  %v6309_v53 = vcombine.high %v1554_v42, %v1558_v43  ;;  %v6348_v40 = vcombine.low %v1594_v26, %v1598_v28 }
 0x218   : > { %2978 = vmatprep.subr.bf16.mxu0 %v6251_v54  ;;  %3064 = vmatprep.subr.bf16.mxu1 %v6253_v55  ;;  %v1561_v54 = vld [vmem:[%s9959_s7 + $0x680] sm:$0xff] }
 0x219   : > { %v1565_v55 = vld [vmem:[%s9959_s7 + $0x6a0] sm:$0xff] }
 0x21a   : > { %v6314_v61 = vcombine.low %v1561_v54, %v1565_v55 }
 0x21b   : > { %2979 = vmatpush1.bf16.msra.mxu0 %v6250_v47  ;;  %3065 = vmatpush1.bf16.msra.mxu1 %v6252_v49  ;;  %v6315_v47 = vcombine.high %v1561_v54, %v1565_v55  ;;  %v6317_v49 = vcombine.high %v1562_v56, %v1566_v57  ;;  %v1356_v54 = vld [vmem:[%s9959_s7 + $0x18] sm:$0xff] }
 0x21c   : > { %2980 = vmatprep.subr.bf16.mxu0 %v6259_v51  ;;  %3066 = vmatprep.subr.bf16.mxu1 %v6261_v52  ;;  %v1569_v51 = vld [vmem:[%s9959_s7 + $0x6c0] sm:$0xff]  ;;  %v1360_v55 = vld [vmem:[%s9959_s7 + $0x38] sm:$0xff] }
 0x21d   : > { %v1573_v52 = vld [vmem:[%s9959_s7 + $0x6e0] sm:$0xff] }
 0x21e   : > { %v6322_v7 = vcombine.low %v1569_v51, %v1573_v52 }
 0x21f   : > { %2981 = vmatpush1.bf16.msra.mxu0 %v6258_v63  ;;  %3067 = vmatpush1.bf16.msra.mxu1 %v6260_v0  ;;  %v6323_v63 = vcombine.high %v1569_v51, %v1573_v52  ;;  %v6325_v0 = vcombine.high %v1570_v58, %v1574_v59  ;;  %v6113_v58 = vcombine.high %v1356_v54, %v1360_v55 }
 0x220   : > { %2982 = vmatprep.subr.bf16.mxu0 %v6267_v2  ;;  %3068 = vmatprep.subr.bf16.mxu1 %v6269_v3  ;;  %v1577_v2 = vld [vmem:[%s9959_s7 + $0x700] sm:$0xff] }
 0x221   : > { %v1581_v3 = vld [vmem:[%s9959_s7 + $0x720] sm:$0xff] }
 0x222   : > { %v6330_v15 = vcombine.low %v1577_v2, %v1581_v3 }
 0x223   : > { %2983 = vmatpush1.bf16.msra.mxu0 %v6266_v9  ;;  %3069 = vmatpush1.bf16.msra.mxu1 %v6268_v10  ;;  %v6331_v9 = vcombine.high %v1577_v2, %v1581_v3  ;;  %v6333_v10 = vcombine.high %v1578_v5, %v1582_v6  ;;  %v1364_v2 = vld [vmem:[%s9959_s7 + $0x58] sm:$0xff] }
 0x224   : > { %2984 = vmatprep.subr.bf16.mxu0 %v6275_v11  ;;  %3070 = vmatprep.subr.bf16.mxu1 %v6277_v12  ;;  %v1585_v11 = vld [vmem:[%s9959_s7 + $0x740] sm:$0xff]  ;;  %v1368_v3 = vld [vmem:[%s9959_s7 + $0x78] sm:$0xff] }
 0x225   : > { %v1589_v12 = vld [vmem:[%s9959_s7 + $0x760] sm:$0xff] }
 0x227   : > { %2985 = vmatpush1.bf16.msra.mxu0 %v6274_v17  ;;  %3071 = vmatpush1.bf16.msra.mxu1 %v6276_v18  ;;  %v6339_v17 = vcombine.high %v1585_v11, %v1589_v12  ;;  %v6341_v18 = vcombine.high %v1586_v13, %v1590_v14 }
 0x228   : > { %2986 = vmatprep.subr.bf16.mxu0 %v6283_v20  ;;  %3072 = vmatprep.subr.bf16.mxu1 %v6285_v21  ;;  %v8411_v20 = vsub.s32 2, %v7969_v60  ;;  %v1593_v21 = vld [vmem:[%s9959_s7 + $0x780] sm:$0xff] }
 0x22b   : > { %2987 = vmatpush1.bf16.msra.mxu0 %v6282_v24  ;;  %3073 = vmatpush1.bf16.msra.mxu1 %v6284_v29  ;;  %v6338_v24 = vcombine.low %v1585_v11, %v1589_v12  ;;  %v6340_v29 = vcombine.low %v1586_v13, %v1590_v14  ;;  %v1375_v11 = vld [vmem:[%s9959_s7 + $0xb0] sm:$0xff]  ;;  %v1372_v12 = vld [vmem:[%s9959_s7 + $0x98] sm:$0xff] }
 0x22c   : > { %2988 = vmatprep.subr.bf16.mxu0 %v6291_v31  ;;  %3074 = vmatprep.subr.bf16.mxu1 %v6293_v32  ;;  %v926_v31 = vrot.slane %v8234_v19, %v8411_v20  ;;  %v6347_v32 = vcombine.high %v1593_v21, %v1597_v23  ;;  %v6355_v19 = vcombine.high %v1601_v27, %v1605_v33  ;;  %v1376_v13 = vld [vmem:[%s9959_s7 + $0xb8] sm:$0xff] }
 0x22d   : > { %v6128_v28 = vcombine.low %v1372_v12, %v1376_v13 }
 0x22f   : > { %2989 = vmatpush1.bf16.msra.mxu0 %v6290_v34  ;;  %3075 = vmatpush1.bf16.msra.mxu1 %v6292_v35  ;;  %v1602_v34 = vld [vmem:[%s9959_s7 + $0x7c8] sm:$0xff] }
 0x230   : > { %2990 = vmatprep.subr.bf16.mxu0 %v6299_v36  ;;  %3076 = vmatprep.subr.bf16.mxu1 %v6301_v37  ;;  %v1606_v35 = vld [vmem:[%s9959_s7 + $0x7e8] sm:$0xff]  ;;  %v6346_v37 = vcombine.low %v1593_v21, %v1597_v23  ;;  %v1383_v21 = vld [vmem:[%s9959_s7 + $0xf0] sm:$0xff]  ;;  %v1380_v23 = vld [vmem:[%s9959_s7 + $0xd8] sm:$0xff] }
 0x231   : > { %v6357_v43 = vcombine.high %v1602_v34, %v1606_v35 }
 0x233   : > { %2991 = vmatpush1.bf16.msra.mxu0 %v6298_v44  ;;  %3077 = vmatpush1.bf16.msra.mxu1 %v6300_v48  ;;  %v1355_v44 = vld [vmem:[%s9959_s7 + $0x10] sm:$0xff] }
 0x234   : > { %2992 = vmatprep.subr.bf16.mxu0 %v6307_v50  ;;  %3078 = vmatprep.subr.bf16.mxu1 %v6309_v53  ;;  %v1359_v53 = vld [vmem:[%s9959_s7 + $0x30] sm:$0xff] }
 0x235   : > { %v6111_v52 = vcombine.high %v1355_v44, %v1359_v53  ;;  %v6110_v6 = vcombine.low %v1355_v44, %v1359_v53  ;;  %v1404_v53 = vld [vmem:[%s9959_s7 + $0x198] sm:$0xff] }
 0x237   : > { %2993 = vmatpush1.bf16.msra.mxu0 %v6306_v45  ;;  %3079 = vmatpush1.bf16.msra.mxu1 %v6308_v46  ;;  %v6354_v46 = vcombine.low %v1601_v27, %v1605_v33  ;;  %v1392_v27 = vld [vmem:[%s9959_s7 + $0x138] sm:$0xff] }
 0x238   : > { %2994 = vmatprep.subr.bf16.mxu0 %v6315_v47  ;;  %3080 = vmatprep.subr.bf16.mxu1 %v6317_v49  ;;  %v6356_v47 = vcombine.low %v1602_v34, %v1606_v35 }
 0x23b   : > { %2995 = vmatpush1.bf16.msra.mxu0 %v6314_v61  ;;  %3081 = vmatpush1.bf16.msra.mxu1 %v6316_v62  ;;  %v1363_v62 = vld [vmem:[%s9959_s7 + $0x50] sm:$0xff] }
 0x23c   : > { %2996 = vmatprep.subr.bf16.mxu0 %v6323_v63  ;;  %3082 = vmatprep.subr.bf16.mxu1 %v6325_v0  ;;  %v1367_v0 = vld [vmem:[%s9959_s7 + $0x70] sm:$0xff] }
 0x23d   : > { %v6118_v14 = vcombine.low %v1363_v62, %v1367_v0 }
 0x23f   : > { %2997 = vmatpush1.bf16.msra.mxu0 %v6322_v7  ;;  %3083 = vmatpush1.bf16.msra.mxu1 %v6324_v8  ;;  %v6112_v7 = vcombine.low %v1356_v54, %v1360_v55  ;;  %v6119_v8 = vcombine.high %v1363_v62, %v1367_v0  ;;  %v1408_v54 = vld [vmem:[%s9959_s7 + $0x1b8] sm:$0xff]  ;;  %v1419_v62 = vld [vmem:[%s9959_s7 + $0x210] sm:$0xff] }
 0x240   : > { %2998 = vmatprep.subr.bf16.mxu0 %v6331_v9  ;;  %3084 = vmatprep.subr.bf16.mxu1 %v6333_v10  ;;  %v6121_v9 = vcombine.high %v1364_v2, %v1368_v3  ;;  %v1371_v10 = vld [vmem:[%s9959_s7 + $0x90] sm:$0xff] }
 0x241   : > { %v6126_v26 = vcombine.low %v1371_v10, %v1375_v11  ;;  %v1423_v0 = vld [vmem:[%s9959_s7 + $0x230] sm:$0xff] }
 0x243   : > { %2999 = vmatpush1.bf16.msra.mxu0 %v6330_v15  ;;  %3085 = vmatpush1.bf16.msra.mxu1 %v6332_v16  ;;  %v6120_v15 = vcombine.low %v1364_v2, %v1368_v3  ;;  %v6127_v16 = vcombine.high %v1371_v10, %v1375_v11  ;;  %v1420_v2 = vld [vmem:[%s9959_s7 + $0x218] sm:$0xff]  ;;  %v1427_v10 = vld [vmem:[%s9959_s7 + $0x250] sm:$0xff] }
 0x244   : > { %3000 = vmatprep.subr.bf16.mxu0 %v6339_v17  ;;  %3086 = vmatprep.subr.bf16.mxu1 %v6341_v18  ;;  %v6129_v17 = vcombine.high %v1372_v12, %v1376_v13  ;;  %v1379_v18 = vld [vmem:[%s9959_s7 + $0xd0] sm:$0xff]  ;;  %v1424_v3 = vld [vmem:[%s9959_s7 + $0x238] sm:$0xff] }
 0x245   : > { %v1431_v11 = vld [vmem:[%s9959_s7 + $0x270] sm:$0xff]  ;;  %v1428_v12 = vld [vmem:[%s9959_s7 + $0x258] sm:$0xff] }
 0x246   : > { %v1432_v13 = vld [vmem:[%s9959_s7 + $0x278] sm:$0xff] }
 0x247   : > { %v1332_v36 = vpop.f32.mrb[8].mxu1  ;;  %3001 = vmatpush1.bf16.msra.mxu0 %v6338_v24  ;;  %3087 = vmatpush1.bf16.msra.mxu1 %v6340_v29  ;;  %v6135_v24 = vcombine.high %v1379_v18, %v1383_v21 }
 0x248   : > { %v1333_v41 = vadd.f32 %v1332_v36, %v926_v31  ;;  %v1334_v42 = vpop.f32.mrb[9].mxu1  ;;  %3002 = vmatprep.subr.bf16.mxu0 %v6347_v32  ;;  %3088 = vmatprep.subr.bf16.mxu1 %v6349_v25  ;;  %v1391_v32 = vld [vmem:[%s9959_s7 + $0x130] sm:$0xff]  ;;  %v1388_v25 = vld [vmem:[%s9959_s7 + $0x118] sm:$0xff] }
 0x249   : > { %v1335_v48 = vadd.f32 %v1334_v42, %v930_v30  ;;  %v1336_v50 = vpop.f32.mrb[10].mxu1  ;;  %v6145_v35 = vcombine.high %v1388_v25, %v1392_v27  ;;  %v1395_v36 = vld [vmem:[%s9959_s7 + $0x150] sm:$0xff] }
 0x24a   : > { %v1337_v56 = vadd.f32 %v1336_v50, %v926_v31  ;;  %v1338_v57 = vpop.f32.mrb[11].mxu1  ;;  %v1343_v49 = vmax.f32 %v1333_v41, 0.0  ;;  %v1387_v31 = vld [vmem:[%s9959_s7 + $0x110] sm:$0xff]  ;;  %v1400_v41 = vld [vmem:[%s9959_s7 + $0x178] sm:$0xff] }
 0x24b   : > { %v1339_v45 = vadd.f32 %v1338_v57, %v930_v30  ;;  %3003 = vmatpush1.bf16.msra.mxu0 %v6346_v37  ;;  %3089 = vmatpush1.bf16.msra.mxu1 %v6348_v40  ;;  %v1344_v59 = vmax.f32 %v1335_v48, 0.0  ;;  %v6134_v30 = vcombine.low %v1379_v18, %v1383_v21  ;;  %v6143_v34 = vcombine.high %v1387_v31, %v1391_v32  ;;  %v1399_v37 = vld [vmem:[%s9959_s7 + $0x170] sm:$0xff]  ;;  %v1396_v40 = vld [vmem:[%s9959_s7 + $0x158] sm:$0xff] }
 0x24c   : > { %v1347_v51 = vmax.f32 %v1337_v56, 0.0  ;;  %3004 = vmatprep.subr.bf16.mxu0 %v6355_v19  ;;  %3090 = vmatprep.subr.bf16.mxu1 %v6357_v43  ;;  %v6142_v42 = vcombine.low %v1387_v31, %v1391_v32  ;;  %v6144_v19 = vcombine.low %v1388_v25, %v1392_v27  ;;  %v6151_v43 = vcombine.high %v1395_v36, %v1399_v37  ;;  %v1403_v48 = vld [vmem:[%s9959_s7 + $0x190] sm:$0xff]  ;;  %v1444_v25 = vld [vmem:[%s9959_s7 + $0x2d8] sm:$0xff] }
 0x24d   : > { %v1348_v61 = vmax.f32 %v1339_v45, 0.0  ;;  %v6153_v44 = vcombine.high %v1396_v40, %v1400_v41  ;;  %v1407_v50 = vld [vmem:[%s9959_s7 + $0x1b0] sm:$0xff]  ;;  %v6150_v55 = vcombine.low %v1395_v36, %v1399_v37  ;;  %v6152_v56 = vcombine.low %v1396_v40, %v1400_v41  ;;  %v1448_v27 = vld [vmem:[%s9959_s7 + $0x2f8] sm:$0xff] }
 0x24e   : > { %v8459_v63 = vpack.c.bf16 %v1347_v51, %v1343_v49  ;;  %v6159_v57 = vcombine.high %v1403_v48, %v1407_v50  ;;  %v6161_v45 = vcombine.high %v1404_v53, %v1408_v54  ;;  %v1412_v49 = vld [vmem:[%s9959_s7 + $0x1d8] sm:$0xff]  ;;  %v1435_v18 = vld [vmem:[%s9959_s7 + $0x290] sm:$0xff] }
 0x24f   : > { %v8470_v5 = vpack.c.bf16 %v1348_v61, %v1344_v59  ;;  %3005 = vmatpush1.bf16.msra.mxu0 %v6354_v46  ;;  %3091 = vmatpush1.bf16.msra.mxu1 %v6356_v47  ;;  %v1411_v46 = vld [vmem:[%s9959_s7 + $0x1d0] sm:$0xff]  ;;  %v1416_v51 = vld [vmem:[%s9959_s7 + $0x1f8] sm:$0xff] }
 0x250   : > { %3103 = vmatprep.subr.bf16.mxu0 %v6111_v52  ;;  %3189 = vmatprep.subr.bf16.mxu1 %v6113_v58  ;;  %v1415_v47 = vld [vmem:[%s9959_s7 + $0x1f0] sm:$0xff]  ;;  %v6158_v52 = vcombine.low %v1403_v48, %v1407_v50  ;;  %v6160_v58 = vcombine.low %v1404_v53, %v1408_v54  ;;  %v6169_v61 = vcombine.high %v1412_v49, %v1416_v51  ;;  %v1452_v40 = vld [vmem:[%s9959_s7 + $0x318] sm:$0xff] }
 0x251   : > { %3006 = vmatprep.mubr.bf16.mxu0 %v8470_v5  ;;  %3092 = vmatprep.mubr.bf16.mxu1 %v8470_v5  ;;  %v6167_v59 = vcombine.high %v1411_v46, %v1415_v47  ;;  %v1439_v21 = vld [vmem:[%s9959_s7 + $0x2b0] sm:$0xff]  ;;  %v1456_v41 = vld [vmem:[%s9959_s7 + $0x338] sm:$0xff] }
 0x252   : > { %3007 = vmatmul.mubr.bf16.vlgmr.msra.gmra.mrb[4].mxu0 %v8459_v63  ;;  %3093 = vmatmul.mubr.bf16.vlgmr.msra.gmra.mrb[12].mxu1 %v8459_v63  ;;  %v1443_v31 = vld [vmem:[%s9959_s7 + $0x2d0] sm:$0xff]  ;;  %v1460_v53 = vld [vmem:[%s9959_s7 + $0x358] sm:$0xff] }
 0x253   : > { %3104 = vmatpush1.bf16.msra.mxu0 %v6110_v6  ;;  %3135 = vmatprep.mubr.bf16.mxu0 %v8254_v39  ;;  %v6166_v6 = vcombine.low %v1411_v46, %v1415_v47  ;;  %v1447_v32 = vld [vmem:[%s9959_s7 + $0x2f0] sm:$0xff]  ;;  %v1464_v54 = vld [vmem:[%s9959_s7 + $0x378] sm:$0xff] }
 0x254   : > { %3190 = vmatpush1.bf16.msra.mxu1 %v6112_v7  ;;  %3221 = vmatprep.mubr.bf16.mxu1 %v8254_v39  ;;  %v1384_v39 = vld [vmem:[%s9959_s7 + $0xf8] sm:$0xff]  ;;  %v6168_v7 = vcombine.low %v1412_v49, %v1416_v51  ;;  %v1451_v36 = vld [vmem:[%s9959_s7 + $0x310] sm:$0xff] }
 0x255   : > { %3105 = vmatprep.subr.bf16.mxu0 %v6119_v8  ;;  %3191 = vmatprep.subr.bf16.mxu1 %v6121_v9  ;;  %v6137_v29 = vcombine.high %v1380_v23, %v1384_v39  ;;  %v6136_v33 = vcombine.low %v1380_v23, %v1384_v39  ;;  %v6175_v8 = vcombine.high %v1419_v62, %v1423_v0  ;;  %v1436_v23 = vld [vmem:[%s9959_s7 + $0x298] sm:$0xff]  ;;  %v1455_v37 = vld [vmem:[%s9959_s7 + $0x330] sm:$0xff] }
 0x256   : > { %v6177_v9 = vcombine.high %v1420_v2, %v1424_v3  ;;  %v1440_v39 = vld [vmem:[%s9959_s7 + $0x2b8] sm:$0xff]  ;;  %v1459_v48 = vld [vmem:[%s9959_s7 + $0x350] sm:$0xff] }
 0x257   : > { %3106 = vmatpush1.bf16.msra.mxu0 %v6118_v14  ;;  %v6174_v14 = vcombine.low %v1419_v62, %v1423_v0  ;;  %v1463_v50 = vld [vmem:[%s9959_s7 + $0x370] sm:$0xff]  ;;  %v1468_v49 = vld [vmem:[%s9959_s7 + $0x398] sm:$0xff] }
 0x258   : > { %3192 = vmatpush1.bf16.msra.mxu1 %v6120_v15  ;;  %3107 = vmatprep.subr.bf16.mxu0 %v6127_v16  ;;  %v6176_v15 = vcombine.low %v1420_v2, %v1424_v3  ;;  %v6183_v16 = vcombine.high %v1427_v10, %v1431_v11  ;;  %v1467_v46 = vld [vmem:[%s9959_s7 + $0x390] sm:$0xff]  ;;  %v1472_v51 = vld [vmem:[%s9959_s7 + $0x3b8] sm:$0xff] }
 0x259   : > { %3193 = vmatprep.subr.bf16.mxu1 %v6129_v17  ;;  %v6185_v17 = vcombine.high %v1428_v12, %v1432_v13  ;;  %v1471_v47 = vld [vmem:[%s9959_s7 + $0x3b0] sm:$0xff]  ;;  %v1476_v2 = vld [vmem:[%s9959_s7 + $0x3d8] sm:$0xff] }
 0x25a   : > { %v1475_v62 = vld [vmem:[%s9959_s7 + $0x3d0] sm:$0xff]  ;;  %v1480_v3 = vld [vmem:[%s9959_s7 + $0x3f8] sm:$0xff] }
 0x25b   : > { %3108 = vmatpush1.bf16.msra.mxu0 %v6126_v26  ;;  %v6182_v26 = vcombine.low %v1427_v10, %v1431_v11  ;;  %v1479_v0 = vld [vmem:[%s9959_s7 + $0x3f0] sm:$0xff] }
 0x25c   : > { %3194 = vmatpush1.bf16.msra.mxu1 %v6128_v28  ;;  %3109 = vmatprep.subr.bf16.mxu0 %v6135_v24  ;;  %v6184_v28 = vcombine.low %v1428_v12, %v1432_v13  ;;  %v6191_v24 = vcombine.high %v1435_v18, %v1439_v21  ;;  %v1483_v10 = vld [vmem:[%s9959_s7 + $0x410] sm:$0xff]  ;;  %v1484_v12 = vld [vmem:[%s9959_s7 + $0x418] sm:$0xff] }
 0x25d   : > { %3195 = vmatprep.subr.bf16.mxu1 %v6137_v29  ;;  %v6193_v29 = vcombine.high %v1436_v23, %v1440_v39  ;;  %v1487_v11 = vld [vmem:[%s9959_s7 + $0x430] sm:$0xff]  ;;  %v1488_v13 = vld [vmem:[%s9959_s7 + $0x438] sm:$0xff] }
 0x25f   : > { %3110 = vmatpush1.bf16.msra.mxu0 %v6134_v30  ;;  %v6190_v30 = vcombine.low %v1435_v18, %v1439_v21  ;;  %v1491_v18 = vld [vmem:[%s9959_s7 + $0x450] sm:$0xff] }
 0x260   : > { %3196 = vmatpush1.bf16.msra.mxu1 %v6136_v33  ;;  %3111 = vmatprep.subr.bf16.mxu0 %v6143_v34  ;;  %v6192_v33 = vcombine.low %v1436_v23, %v1440_v39  ;;  %v6199_v34 = vcombine.high %v1443_v31, %v1447_v32  ;;  %v1495_v21 = vld [vmem:[%s9959_s7 + $0x470] sm:$0xff]  ;;  %v6238_v23 = vcombine.low %v1483_v10, %v1487_v11  ;;  %v1492_v39 = vld [vmem:[%s9959_s7 + $0x458] sm:$0xff] }
 0x261   : > { %3197 = vmatprep.subr.bf16.mxu1 %v6145_v35  ;;  %v6201_v35 = vcombine.high %v1444_v25, %v1448_v27 }
 0x263   : > { %3112 = vmatpush1.bf16.msra.mxu0 %v6142_v42  ;;  %v6198_v42 = vcombine.low %v1443_v31, %v1447_v32  ;;  %v1503_v31 = vld [vmem:[%s9959_s7 + $0x4b0] sm:$0xff] }
 0x264   : > { %3198 = vmatpush1.bf16.msra.mxu1 %v6144_v19  ;;  %3113 = vmatprep.subr.bf16.mxu0 %v6151_v43  ;;  %v6200_v19 = vcombine.low %v1444_v25, %v1448_v27  ;;  %v6207_v43 = vcombine.high %v1451_v36, %v1455_v37  ;;  %v1500_v25 = vld [vmem:[%s9959_s7 + $0x498] sm:$0xff] }
 0x265   : > { %3199 = vmatprep.subr.bf16.mxu1 %v6153_v44  ;;  %v6209_v44 = vcombine.high %v1452_v40, %v1456_v41  ;;  %v1504_v27 = vld [vmem:[%s9959_s7 + $0x4b8] sm:$0xff] }
 0x267   : > { %3114 = vmatpush1.bf16.msra.mxu0 %v6150_v55  ;;  %v6206_v55 = vcombine.low %v1451_v36, %v1455_v37  ;;  %v1507_v36 = vld [vmem:[%s9959_s7 + $0x4d0] sm:$0xff] }
 0x268   : > { %3200 = vmatpush1.bf16.msra.mxu1 %v6152_v56  ;;  %3115 = vmatprep.subr.bf16.mxu0 %v6159_v57  ;;  %v6208_v56 = vcombine.low %v1452_v40, %v1456_v41  ;;  %v6215_v57 = vcombine.high %v1459_v48, %v1463_v50  ;;  %v1511_v37 = vld [vmem:[%s9959_s7 + $0x4f0] sm:$0xff]  ;;  %v1512_v40 = vld [vmem:[%s9959_s7 + $0x4f8] sm:$0xff]  ;;  %v6256_v41 = vcombine.low %v1500_v25, %v1504_v27 }
 0x269   : > { %3201 = vmatprep.subr.bf16.mxu1 %v6161_v45  ;;  %v6217_v45 = vcombine.high %v1460_v53, %v1464_v54 }
 0x26b   : > { %3116 = vmatpush1.bf16.msra.mxu0 %v6158_v52  ;;  %v6214_v52 = vcombine.low %v1459_v48, %v1463_v50  ;;  %v1516_v48 = vld [vmem:[%s9959_s7 + $0x518] sm:$0xff] }
 0x26c   : > { %3202 = vmatpush1.bf16.msra.mxu1 %v6160_v58  ;;  %3117 = vmatprep.subr.bf16.mxu0 %v6167_v59  ;;  %v6216_v58 = vcombine.low %v1460_v53, %v1464_v54  ;;  %v6223_v59 = vcombine.high %v1467_v46, %v1471_v47  ;;  %v1520_v50 = vld [vmem:[%s9959_s7 + $0x538] sm:$0xff]  ;;  %v6262_v53 = vcombine.low %v1507_v36, %v1511_v37 }
 0x26d   : > { %3203 = vmatprep.subr.bf16.mxu1 %v6169_v61  ;;  %v6225_v61 = vcombine.high %v1468_v49, %v1472_v51 }
 0x26f   : > { %3118 = vmatpush1.bf16.msra.mxu0 %v6166_v6  ;;  %v6222_v6 = vcombine.low %v1467_v46, %v1471_v47  ;;  %v1524_v46 = vld [vmem:[%s9959_s7 + $0x558] sm:$0xff] }
 0x270   : > { %3204 = vmatpush1.bf16.msra.mxu1 %v6168_v7  ;;  %3119 = vmatprep.subr.bf16.mxu0 %v6175_v8  ;;  %v6224_v7 = vcombine.low %v1468_v49, %v1472_v51  ;;  %v6231_v8 = vcombine.high %v1475_v62, %v1479_v0  ;;  %v1528_v47 = vld [vmem:[%s9959_s7 + $0x578] sm:$0xff]  ;;  %v6272_v51 = vcombine.low %v1516_v48, %v1520_v50 }
 0x271   : > { %3205 = vmatprep.subr.bf16.mxu1 %v6177_v9  ;;  %v6233_v9 = vcombine.high %v1476_v2, %v1480_v3 }
 0x273   : > { %3120 = vmatpush1.bf16.msra.mxu0 %v6174_v14  ;;  %v6230_v14 = vcombine.low %v1475_v62, %v1479_v0  ;;  %v1532_v62 = vld [vmem:[%s9959_s7 + $0x598] sm:$0xff] }
 0x274   : > { %3206 = vmatpush1.bf16.msra.mxu1 %v6176_v15  ;;  %3121 = vmatprep.subr.bf16.mxu0 %v6183_v16  ;;  %v6232_v15 = vcombine.low %v1476_v2, %v1480_v3  ;;  %v6239_v16 = vcombine.high %v1483_v10, %v1487_v11  ;;  %v1536_v0 = vld [vmem:[%s9959_s7 + $0x5b8] sm:$0xff]  ;;  %v6280_v3 = vcombine.low %v1524_v46, %v1528_v47 }
 0x275   : > { %3207 = vmatprep.subr.bf16.mxu1 %v6185_v17  ;;  %v6241_v17 = vcombine.high %v1484_v12, %v1488_v13  ;;  %v1540_v10 = vld [vmem:[%s9959_s7 + $0x5d8] sm:$0xff] }
 0x276   : > { %v1544_v11 = vld [vmem:[%s9959_s7 + $0x5f8] sm:$0xff] }
 0x277   : > { %3122 = vmatpush1.bf16.msra.mxu0 %v6182_v26  ;;  %v1496_v26 = vld [vmem:[%s9959_s7 + $0x478] sm:$0xff] }
 0x278   : > { %3208 = vmatpush1.bf16.msra.mxu1 %v6184_v28  ;;  %3123 = vmatprep.subr.bf16.mxu0 %v6191_v24  ;;  %v6240_v28 = vcombine.low %v1484_v12, %v1488_v13  ;;  %v6247_v24 = vcombine.high %v1491_v18, %v1495_v21  ;;  %v6249_v32 = vcombine.high %v1492_v39, %v1496_v26 }
 0x279   : > { %3209 = vmatprep.subr.bf16.mxu1 %v6193_v29  ;;  %v1499_v29 = vld [vmem:[%s9959_s7 + $0x490] sm:$0xff]  ;;  %v6288_v13 = vcombine.low %v1532_v62, %v1536_v0 }
 0x27b   : > { %3124 = vmatpush1.bf16.msra.mxu0 %v6190_v30  ;;  %v6246_v30 = vcombine.low %v1491_v18, %v1495_v21  ;;  %v1548_v18 = vld [vmem:[%s9959_s7 + $0x618] sm:$0xff] }
 0x27c   : > { %3210 = vmatpush1.bf16.msra.mxu1 %v6192_v33  ;;  %3125 = vmatprep.subr.bf16.mxu0 %v6199_v34  ;;  %v6248_v33 = vcombine.low %v1492_v39, %v1496_v26  ;;  %v6255_v34 = vcombine.high %v1499_v29, %v1503_v31  ;;  %v1552_v21 = vld [vmem:[%s9959_s7 + $0x638] sm:$0xff]  ;;  %v6296_v39 = vcombine.low %v1540_v10, %v1544_v11 }
 0x27d   : > { %3211 = vmatprep.subr.bf16.mxu1 %v6201_v35  ;;  %v6257_v35 = vcombine.high %v1500_v25, %v1504_v27  ;;  %v6304_v27 = vcombine.low %v1548_v18, %v1552_v21 }
 0x27f   : > { %3126 = vmatpush1.bf16.msra.mxu0 %v6198_v42  ;;  %v6263_v42 = vcombine.high %v1507_v36, %v1511_v37  ;;  %v1564_v36 = vld [vmem:[%s9959_s7 + $0x698] sm:$0xff] }
 0x280   : > { %3212 = vmatpush1.bf16.msra.mxu1 %v6200_v19  ;;  %3127 = vmatprep.subr.bf16.mxu0 %v6207_v43  ;;  %v1515_v43 = vld [vmem:[%s9959_s7 + $0x510] sm:$0xff]  ;;  %v1568_v37 = vld [vmem:[%s9959_s7 + $0x6b8] sm:$0xff] }
 0x281   : > { %3213 = vmatprep.subr.bf16.mxu1 %v6209_v44  ;;  %v1519_v44 = vld [vmem:[%s9959_s7 + $0x530] sm:$0xff] }
 0x282   : > { %v6270_v49 = vcombine.low %v1515_v43, %v1519_v44 }
 0x283   : > { %3128 = vmatpush1.bf16.msra.mxu0 %v6206_v55  ;;  %v6271_v55 = vcombine.high %v1515_v43, %v1519_v44  ;;  %v1572_v43 = vld [vmem:[%s9959_s7 + $0x6d8] sm:$0xff] }
 0x284   : > { %3214 = vmatpush1.bf16.msra.mxu1 %v6208_v56  ;;  %3129 = vmatprep.subr.bf16.mxu0 %v6215_v57  ;;  %v6273_v56 = vcombine.high %v1516_v48, %v1520_v50  ;;  %v1523_v57 = vld [vmem:[%s9959_s7 + $0x550] sm:$0xff]  ;;  %v1576_v44 = vld [vmem:[%s9959_s7 + $0x6f8] sm:$0xff]  ;;  %v6320_v50 = vcombine.low %v1564_v36, %v1568_v37 }
 0x285   : > { %3215 = vmatprep.subr.bf16.mxu1 %v6217_v45  ;;  %v1527_v45 = vld [vmem:[%s9959_s7 + $0x570] sm:$0xff] }
 0x286   : > { %v6278_v2 = vcombine.low %v1523_v57, %v1527_v45 }
 0x287   : > { %3130 = vmatpush1.bf16.msra.mxu0 %v6214_v52  ;;  %v6279_v52 = vcombine.high %v1523_v57, %v1527_v45  ;;  %v1580_v57 = vld [vmem:[%s9959_s7 + $0x718] sm:$0xff] }
 0x288   : > { %3216 = vmatpush1.bf16.msra.mxu1 %v6216_v58  ;;  %3131 = vmatprep.subr.bf16.mxu0 %v6223_v59  ;;  %v6281_v58 = vcombine.high %v1524_v46, %v1528_v47  ;;  %v1531_v59 = vld [vmem:[%s9959_s7 + $0x590] sm:$0xff]  ;;  %v1584_v45 = vld [vmem:[%s9959_s7 + $0x738] sm:$0xff]  ;;  %v6328_v47 = vcombine.low %v1572_v43, %v1576_v44 }
 0x289   : > { %3217 = vmatprep.subr.bf16.mxu1 %v6225_v61  ;;  %v1535_v61 = vld [vmem:[%s9959_s7 + $0x5b0] sm:$0xff] }
 0x28a   : > { %v6286_v12 = vcombine.low %v1531_v59, %v1535_v61 }
 0x28b   : > { %3132 = vmatpush1.bf16.msra.mxu0 %v6222_v6  ;;  %v6287_v6 = vcombine.high %v1531_v59, %v1535_v61  ;;  %v1588_v59 = vld [vmem:[%s9959_s7 + $0x758] sm:$0xff] }
 0x28c   : > { %3218 = vmatpush1.bf16.msra.mxu1 %v6224_v7  ;;  %3133 = vmatprep.subr.bf16.mxu0 %v6231_v8  ;;  %v6289_v7 = vcombine.high %v1532_v62, %v1536_v0  ;;  %v1539_v8 = vld [vmem:[%s9959_s7 + $0x5d0] sm:$0xff]  ;;  %v1592_v61 = vld [vmem:[%s9959_s7 + $0x778] sm:$0xff]  ;;  %v6336_v0 = vcombine.low %v1580_v57, %v1584_v45 }
 0x28d   : > { %3219 = vmatprep.subr.bf16.mxu1 %v6233_v9  ;;  %v1543_v9 = vld [vmem:[%s9959_s7 + $0x5f0] sm:$0xff] }
 0x28f   : > { %3134 = vmatpush1.bf16.msra.mxu0 %v6230_v14  ;;  %v6295_v14 = vcombine.high %v1539_v8, %v1543_v9 }
 0x290   : > { %3220 = vmatpush1.bf16.msra.mxu1 %v6232_v15  ;;  %3146 = vmatprep.subr.bf16.mxu0 %v6239_v16  ;;  %v6297_v15 = vcombine.high %v1540_v10, %v1544_v11  ;;  %v1547_v16 = vld [vmem:[%s9959_s7 + $0x610] sm:$0xff]  ;;  %v6344_v11 = vcombine.low %v1588_v59, %v1592_v61 }
 0x291   : > { %3232 = vmatprep.subr.bf16.mxu1 %v6241_v17  ;;  %v1551_v17 = vld [vmem:[%s9959_s7 + $0x630] sm:$0xff] }
 0x292   : > { %3136 = vmatmul.mubr.bf16.vlgmr.msra.gmra.mrb[8].mxu0 %v8252_v38  ;;  %v6303_v26 = vcombine.high %v1547_v16, %v1551_v17  ;;  %v6302_v25 = vcombine.low %v1547_v16, %v1551_v17  ;;  %v1604_v16 = vld [vmem:[%s9959_s7 + $0x7d8] sm:$0xff] }
 0x293   : > { %3222 = vmatmul.mubr.bf16.vlgmr.msra.gmra.mrb[16].mxu1 %v8252_v38  ;;  %3147 = vmatpush1.bf16.msra.mxu0 %v6238_v23  ;;  %v1508_v38 = vld [vmem:[%s9959_s7 + $0x4d8] sm:$0xff]  ;;  %v6294_v23 = vcombine.low %v1539_v8, %v1543_v9 }
 0x294   : > { %3178 = vmatprep.mubr.bf16.mxu0 %v8470_v5  ;;  %3233 = vmatpush1.bf16.msra.mxu1 %v6240_v28  ;;  %v6265_v19 = vcombine.high %v1508_v38, %v1512_v40  ;;  %v6264_v54 = vcombine.low %v1508_v38, %v1512_v40  ;;  %v6305_v28 = vcombine.high %v1548_v18, %v1552_v21  ;;  %v1596_v8 = vld [vmem:[%s9959_s7 + $0x798] sm:$0xff] }
 0x295   : > { %3264 = vmatprep.mubr.bf16.mxu1 %v8470_v5  ;;  %3148 = vmatprep.subr.bf16.mxu0 %v6247_v24  ;;  %v6254_v5 = vcombine.low %v1499_v29, %v1503_v31  ;;  %v1555_v24 = vld [vmem:[%s9959_s7 + $0x650] sm:$0xff]  ;;  %v1556_v31 = vld [vmem:[%s9959_s7 + $0x658] sm:$0xff] }
 0x296   : > { %3234 = vmatprep.subr.bf16.mxu1 %v6249_v32  ;;  %v1559_v29 = vld [vmem:[%s9959_s7 + $0x670] sm:$0xff]  ;;  %v1560_v32 = vld [vmem:[%s9959_s7 + $0x678] sm:$0xff] }
 0x297   : > { %3149 = vmatpush1.bf16.msra.mxu0 %v6246_v30  ;;  %v6311_v30 = vcombine.high %v1555_v24, %v1559_v29  ;;  %v6310_v38 = vcombine.low %v1555_v24, %v1559_v29  ;;  %v6312_v40 = vcombine.low %v1556_v31, %v1560_v32  ;;  %v1600_v9 = vld [vmem:[%s9959_s7 + $0x7b8] sm:$0xff]  ;;  %v6987_v24 = vld [vmem:[%s9961_s9 + $0x4] ss:$16 sps:$4 sm:$0xff]  }
 0x298   : > { %3235 = vmatpush1.bf16.msra.mxu1 %v6248_v33  ;;  %3150 = vmatprep.subr.bf16.mxu0 %v6255_v34  ;;  %v6313_v33 = vcombine.high %v1556_v31, %v1560_v32  ;;  %v1563_v34 = vld [vmem:[%s9959_s7 + $0x690] sm:$0xff]  ;;  %v1608_v17 = vld [vmem:[%s9959_s7 + $0x7f8] sm:$0xff]  ;;  %v6352_v21 = vcombine.low %v1596_v8, %v1600_v9 }
 0x299   : > { %3236 = vmatprep.subr.bf16.mxu1 %v6257_v35  ;;  %v1567_v35 = vld [vmem:[%s9959_s7 + $0x6b0] sm:$0xff]  ;;  %v6990_v29 = vld [vmem:[%s9961_s9 + $0xc] ss:$16 sps:$4 sm:$0xff]   ;;  %v6988_v32 = vld [vmem:[%s9961_s9 + $0x8] ss:$16 sps:$4 sm:$0xff]  }
 0x29a   : > { %v6318_v48 = vcombine.low %v1563_v34, %v1567_v35  ;;  %v6985_v31 = vld [vmem:[%s9961_s9] ss:$16 sps:$4 sm:$0xff]  }
 0x29b   : > { %3151 = vmatpush1.bf16.msra.mxu0 %v6254_v5  ;;  %v6319_v5 = vcombine.high %v1563_v34, %v1567_v35  ;;  %v6999_v34 = vld [vmem:[%s9961_s9 + $0x44] ss:$16 sps:$4 sm:$0xff]   ;;  %v6997_v35 = vld [vmem:[%s9961_s9 + $0x40] ss:$16 sps:$4 sm:$0xff]  }
 0x29c   : > { %3237 = vmatpush1.bf16.msra.mxu1 %v6256_v41  ;;  %3152 = vmatprep.subr.bf16.mxu0 %v6263_v42  ;;  %v6321_v41 = vcombine.high %v1564_v36, %v1568_v37  ;;  %v1571_v42 = vld [vmem:[%s9959_s7 + $0x6d0] sm:$0xff]  ;;  %v7000_v36 = vld [vmem:[%s9961_s9 + $0x48] ss:$16 sps:$4 sm:$0xff]  }
 0x29d   : > { %3238 = vmatprep.subr.bf16.mxu1 %v6265_v19  ;;  %v1575_v19 = vld [vmem:[%s9959_s7 + $0x6f0] sm:$0xff] }
 0x29e   : > { %v6326_v46 = vcombine.low %v1571_v42, %v1575_v19  ;;  %v7005_v37 = vld [vmem:[%s9961_s9 + $0x64] ss:$16 sps:$4 sm:$0xff]  }
 0x29f   : > { %3153 = vmatpush1.bf16.msra.mxu0 %v6262_v53  ;;  %v6327_v53 = vcombine.high %v1571_v42, %v1575_v19  ;;  %v7014_v42 = vld [vmem:[%s9961_s9 + $0x8c] ss:$16 sps:$4 sm:$0xff]   ;;  %v7009_v19 = vld [vmem:[%s9961_s9 + $0x80] ss:$16 sps:$4 sm:$0xff]  }
 0x2a0   : > { %3239 = vmatpush1.bf16.msra.mxu1 %v6264_v54  ;;  %3154 = vmatprep.subr.bf16.mxu0 %v6271_v55  ;;  %v6329_v54 = vcombine.high %v1572_v43, %v1576_v44  ;;  %v1579_v55 = vld [vmem:[%s9959_s7 + $0x710] sm:$0xff]  ;;  %v7012_v43 = vld [vmem:[%s9961_s9 + $0x88] ss:$16 sps:$4 sm:$0xff]  }
 0x2a1   : > { %3240 = vmatprep.subr.bf16.mxu1 %v6273_v56  ;;  %v1583_v56 = vld [vmem:[%s9959_s7 + $0x730] sm:$0xff] }
 0x2a2   : > { %v6334_v62 = vcombine.low %v1579_v55, %v1583_v56  ;;  %v7017_v44 = vld [vmem:[%s9961_s9 + $0xa4] ss:$16 sps:$4 sm:$0xff]  }
 0x2a3   : > { %3155 = vmatpush1.bf16.msra.mxu0 %v6270_v49  ;;  %v6335_v49 = vcombine.high %v1579_v55, %v1583_v56  ;;  %v7026_v55 = vld [vmem:[%s9961_s9 + $0xcc] ss:$16 sps:$4 sm:$0xff]   ;;  %v7021_v56 = vld [vmem:[%s9961_s9 + $0xc0] ss:$16 sps:$4 sm:$0xff]  }
 0x2a4   : > { %3241 = vmatpush1.bf16.msra.mxu1 %v6272_v51  ;;  %3156 = vmatprep.subr.bf16.mxu0 %v6279_v52  ;;  %v6337_v51 = vcombine.high %v1580_v57, %v1584_v45  ;;  %v1587_v52 = vld [vmem:[%s9959_s7 + $0x750] sm:$0xff]  ;;  %v7024_v57 = vld [vmem:[%s9961_s9 + $0xc8] ss:$16 sps:$4 sm:$0xff]  }
 0x2a5   : > { %3242 = vmatprep.subr.bf16.mxu1 %v6281_v58  ;;  %v1591_v58 = vld [vmem:[%s9959_s7 + $0x770] sm:$0xff] }
 0x2a6   : > { %v6342_v10 = vcombine.low %v1587_v52, %v1591_v58  ;;  %v7029_v45 = vld [vmem:[%s9961_s9 + $0xe4] ss:$16 sps:$4 sm:$0xff]  }
 0x2a7   : > { %3157 = vmatpush1.bf16.msra.mxu0 %v6278_v2  ;;  %v6343_v2 = vcombine.high %v1587_v52, %v1591_v58  ;;  %v7038_v52 = vld [vmem:[%s9961_s9 + $0x10c] ss:$16 sps:$4 sm:$0xff]   ;;  %v7033_v58 = vld [vmem:[%s9961_s9 + $0x100] ss:$16 sps:$4 sm:$0xff]  }
 0x2a8   : > { %3243 = vmatpush1.bf16.msra.mxu1 %v6280_v3  ;;  %3158 = vmatprep.subr.bf16.mxu0 %v6287_v6  ;;  %v6345_v3 = vcombine.high %v1588_v59, %v1592_v61  ;;  %v1595_v6 = vld [vmem:[%s9959_s7 + $0x790] sm:$0xff]  ;;  %v7036_v59 = vld [vmem:[%s9961_s9 + $0x108] ss:$16 sps:$4 sm:$0xff]  }
 0x2a9   : > { %3244 = vmatprep.subr.bf16.mxu1 %v6289_v7  ;;  %v1599_v7 = vld [vmem:[%s9959_s7 + $0x7b0] sm:$0xff] }
 0x2aa   : > { %v6350_v18 = vcombine.low %v1595_v6, %v1599_v7  ;;  %v7041_v61 = vld [vmem:[%s9961_s9 + $0x124] ss:$16 sps:$4 sm:$0xff]  }
 0x2ab   : > { %3159 = vmatpush1.bf16.msra.mxu0 %v6286_v12  ;;  %v6351_v12 = vcombine.high %v1595_v6, %v1599_v7  ;;  %v7050_v6 = vld [vmem:[%s9961_s9 + $0x14c] ss:$16 sps:$4 sm:$0xff]   ;;  %v7045_v7 = vld [vmem:[%s9961_s9 + $0x140] ss:$16 sps:$4 sm:$0xff]  }
 0x2ac   : > { %3245 = vmatpush1.bf16.msra.mxu1 %v6288_v13  ;;  %3160 = vmatprep.subr.bf16.mxu0 %v6295_v14  ;;  %v6353_v13 = vcombine.high %v1596_v8, %v1600_v9  ;;  %v1603_v14 = vld [vmem:[%s9959_s7 + $0x7d0] sm:$0xff]  ;;  %v7048_v8 = vld [vmem:[%s9961_s9 + $0x148] ss:$16 sps:$4 sm:$0xff]  }
 0x2ad   : > { %3246 = vmatprep.subr.bf16.mxu1 %v6297_v15  ;;  %v1607_v15 = vld [vmem:[%s9959_s7 + $0x7f0] sm:$0xff] }
 0x2ae   : > { %v7053_v9 = vld [vmem:[%s9961_s9 + $0x164] ss:$16 sps:$4 sm:$0xff]  }
 0x2af   : > { %3161 = vmatpush1.bf16.msra.mxu0 %v6294_v23  ;;  %v6359_v23 = vcombine.high %v1603_v14, %v1607_v15 }
 0x2b0   : > { %3247 = vmatpush1.bf16.msra.mxu1 %v6296_v39  ;;  %3162 = vmatprep.subr.bf16.mxu0 %v6303_v26  ;;  %v6361_v39 = vcombine.high %v1604_v16, %v1608_v17  ;;  %v6358_v26 = vcombine.low %v1603_v14, %v1607_v15  ;;  %v7062_v14 = vld [vmem:[%s9961_s9 + $0x18c] ss:$16 sps:$4 sm:$0xff]   ;;  %v7057_v15 = vld [vmem:[%s9961_s9 + $0x180] ss:$16 sps:$4 sm:$0xff]  }
 0x2b1   : > { %3248 = vmatprep.subr.bf16.mxu1 %v6305_v28  ;;  %v6360_v28 = vcombine.low %v1604_v16, %v1608_v17  ;;  %v7060_v16 = vld [vmem:[%s9961_s9 + $0x188] ss:$16 sps:$4 sm:$0xff]   ;;  %v7065_v17 = vld [vmem:[%s9961_s9 + $0x1a4] ss:$16 sps:$4 sm:$0xff]  }
 0x2b3   : > { %3163 = vmatpush1.bf16.msra.mxu0 %v6302_v25  ;;  %v6993_v25 = vld [vmem:[%s9961_s9 + $0x24] ss:$16 sps:$4 sm:$0xff]  }
 0x2b4   : > { %3249 = vmatpush1.bf16.msra.mxu1 %v6304_v27  ;;  %3164 = vmatprep.subr.bf16.mxu0 %v6311_v30  ;;  %v6996_v27 = vld [vmem:[%s9961_s9 + $0x2c] ss:$16 sps:$4 sm:$0xff]   ;;  %v6991_v30 = vld [vmem:[%s9961_s9 + $0x20] ss:$16 sps:$4 sm:$0xff]  }
 0x2b5   : > { %3250 = vmatprep.subr.bf16.mxu1 %v6313_v33  ;;  %v6994_v33 = vld [vmem:[%s9961_s9 + $0x28] ss:$16 sps:$4 sm:$0xff]  }
 0x2b7   : > { %3165 = vmatpush1.bf16.msra.mxu0 %v6310_v38  ;;  %v7008_v38 = vld [vmem:[%s9961_s9 + $0x6c] ss:$16 sps:$4 sm:$0xff]  }
 0x2b8   : > { %3251 = vmatpush1.bf16.msra.mxu1 %v6312_v40  ;;  %3166 = vmatprep.subr.bf16.mxu0 %v6319_v5  ;;  %v7003_v40 = vld [vmem:[%s9961_s9 + $0x60] ss:$16 sps:$4 sm:$0xff]   ;;  %v7006_v5 = vld [vmem:[%s9961_s9 + $0x68] ss:$16 sps:$4 sm:$0xff]  }
 0x2b9   : > { %3252 = vmatprep.subr.bf16.mxu1 %v6321_v41  ;;  %v7011_v41 = vld [vmem:[%s9961_s9 + $0x84] ss:$16 sps:$4 sm:$0xff]  }
 0x2bb   : > { %3167 = vmatpush1.bf16.msra.mxu0 %v6318_v48  ;;  %v7020_v48 = vld [vmem:[%s9961_s9 + $0xac] ss:$16 sps:$4 sm:$0xff]  }
 0x2bc   : > { %3253 = vmatpush1.bf16.msra.mxu1 %v6320_v50  ;;  %3168 = vmatprep.subr.bf16.mxu0 %v6327_v53  ;;  %v7015_v50 = vld [vmem:[%s9961_s9 + $0xa0] ss:$16 sps:$4 sm:$0xff]   ;;  %v7018_v53 = vld [vmem:[%s9961_s9 + $0xa8] ss:$16 sps:$4 sm:$0xff]  }
 0x2bd   : > { %3254 = vmatprep.subr.bf16.mxu1 %v6329_v54  ;;  %v7023_v54 = vld [vmem:[%s9961_s9 + $0xc4] ss:$16 sps:$4 sm:$0xff]  }
 0x2bf   : > { %3169 = vmatpush1.bf16.msra.mxu0 %v6326_v46  ;;  %v7032_v46 = vld [vmem:[%s9961_s9 + $0xec] ss:$16 sps:$4 sm:$0xff]  }
 0x2c0   : > { %3255 = vmatpush1.bf16.msra.mxu1 %v6328_v47  ;;  %3170 = vmatprep.subr.bf16.mxu0 %v6335_v49  ;;  %v7027_v47 = vld [vmem:[%s9961_s9 + $0xe0] ss:$16 sps:$4 sm:$0xff]   ;;  %v7030_v49 = vld [vmem:[%s9961_s9 + $0xe8] ss:$16 sps:$4 sm:$0xff]  }
 0x2c1   : > { %3256 = vmatprep.subr.bf16.mxu1 %v6337_v51  ;;  %v7035_v51 = vld [vmem:[%s9961_s9 + $0x104] ss:$16 sps:$4 sm:$0xff]  }
 0x2c3   : > { %3171 = vmatpush1.bf16.msra.mxu0 %v6334_v62  ;;  %v7044_v62 = vld [vmem:[%s9961_s9 + $0x12c] ss:$16 sps:$4 sm:$0xff]  }
 0x2c4   : > { %3257 = vmatpush1.bf16.msra.mxu1 %v6336_v0  ;;  %3172 = vmatprep.subr.bf16.mxu0 %v6343_v2  ;;  %v7039_v0 = vld [vmem:[%s9961_s9 + $0x120] ss:$16 sps:$4 sm:$0xff]   ;;  %v7042_v2 = vld [vmem:[%s9961_s9 + $0x128] ss:$16 sps:$4 sm:$0xff]  }
 0x2c5   : > { %3258 = vmatprep.subr.bf16.mxu1 %v6345_v3  ;;  %v7047_v3 = vld [vmem:[%s9961_s9 + $0x144] ss:$16 sps:$4 sm:$0xff]  }
 0x2c7   : > { %3173 = vmatpush1.bf16.msra.mxu0 %v6342_v10  ;;  %v7056_v10 = vld [vmem:[%s9961_s9 + $0x16c] ss:$16 sps:$4 sm:$0xff]  }
 0x2c8   : > { %3259 = vmatpush1.bf16.msra.mxu1 %v6344_v11  ;;  %3174 = vmatprep.subr.bf16.mxu0 %v6351_v12  ;;  %v7051_v11 = vld [vmem:[%s9961_s9 + $0x160] ss:$16 sps:$4 sm:$0xff]   ;;  %v7054_v12 = vld [vmem:[%s9961_s9 + $0x168] ss:$16 sps:$4 sm:$0xff]  }
 0x2c9   : > { %3260 = vmatprep.subr.bf16.mxu1 %v6353_v13  ;;  %v7059_v13 = vld [vmem:[%s9961_s9 + $0x184] ss:$16 sps:$4 sm:$0xff]  }
 0x2cb   : > { %3175 = vmatpush1.bf16.msra.mxu0 %v6350_v18  ;;  %v7068_v18 = vld [vmem:[%s9961_s9 + $0x1ac] ss:$16 sps:$4 sm:$0xff]  }
 0x2cc   : > { %3261 = vmatpush1.bf16.msra.mxu1 %v6352_v21  ;;  %3176 = vmatprep.subr.bf16.mxu0 %v6359_v23  ;;  %v7063_v21 = vld [vmem:[%s9961_s9 + $0x1a0] ss:$16 sps:$4 sm:$0xff]   ;;  %v7066_v23 = vld [vmem:[%s9961_s9 + $0x1a8] ss:$16 sps:$4 sm:$0xff]  }
 0x2cd   : > { %3262 = vmatprep.subr.bf16.mxu1 %v6361_v39  ;;  %v7071_v39 = vld [vmem:[%s9961_s9 + $0x1c4] ss:$16 sps:$4 sm:$0xff]  }
 0x2cf   : > { %3177 = vmatpush1.bf16.msra.mxu0 %v6358_v26  ;;  %v7074_v26 = vld [vmem:[%s9961_s9 + $0x1cc] ss:$16 sps:$4 sm:$0xff]  }
 0x2d0   : > { %3263 = vmatpush1.bf16.msra.mxu1 %v6360_v28  ;;  %4913 = vmatprep.subr.bf16.mxu0 %v6987_v24  ;;  %v7069_v28 = vld [vmem:[%s9961_s9 + $0x1c0] ss:$16 sps:$4 sm:$0xff]   ;;  %v7072_v24 = vld [vmem:[%s9961_s9 + $0x1c8] ss:$16 sps:$4 sm:$0xff]  }
 0x2d1   : > { %5077 = vmatprep.subr.bf16.mxu1 %v6990_v29  ;;  %v7077_v29 = vld [vmem:[%s9961_s9 + $0x1e4] ss:$16 sps:$4 sm:$0xff]  }
 0x2d2   : > { %3179 = vmatmul.mubr.bf16.vlgmr.msra.gmra.mrb[8].mxu0 %v8459_v63 }
 0x2d3   : > { %3265 = vmatmul.mubr.bf16.vlgmr.msra.gmra.mrb[16].mxu1 %v8459_v63  ;;  %4914 = vmatpush1.bf16.msra.mxu0 %v6985_v31  ;;  %v7002_v63 = vld [vmem:[%s9961_s9 + $0x4c] ss:$16 sps:$4 sm:$0xff]  }
 0x2d4   : > { %5078 = vmatpush1.bf16.msra.mxu1 %v6988_v32  ;;  %4915 = vmatprep.subr.bf16.mxu0 %v6993_v25  ;;  %v7080_v31 = vld [vmem:[%s9961_s9 + $0x1ec] ss:$16 sps:$4 sm:$0xff]   ;;  %v7075_v32 = vld [vmem:[%s9961_s9 + $0x1e0] ss:$16 sps:$4 sm:$0xff]   ;;  %v7078_v25 = vld [vmem:[%s9961_s9 + $0x1e8] ss:$16 sps:$4 sm:$0xff]  }
 0x2d5   : > { %5079 = vmatprep.subr.bf16.mxu1 %v6996_v27  ;;  %v7083_v27 = vld [vmem:[%s9961_s9 + $0x204] ss:$16 sps:$4 sm:$0xff]  }
 0x2d7   : > { %4916 = vmatpush1.bf16.msra.mxu0 %v6991_v30  ;;  %v7086_v30 = vld [vmem:[%s9961_s9 + $0x20c] ss:$16 sps:$4 sm:$0xff]  }
 0x2d8   : > { %5080 = vmatpush1.bf16.msra.mxu1 %v6994_v33  ;;  %4917 = vmatprep.subr.bf16.mxu0 %v6999_v34  ;;  %v9045_v33 = vld [vmem:[%s9960_s8] sm:$0xff] }
 0x2d9   : > { %5081 = vmatprep.subr.bf16.mxu1 %v7002_v63  ;;  %v1614_v34 = vrot.slane %v9045_v33, %v7978_v1  ;;  %v1622_v63 = vrot.slane %v9045_v33, %v8411_v20 }
 0x2db   : > { %4918 = vmatpush1.bf16.msra.mxu0 %v6997_v35  ;;  %v1618_v35 = vrot.slane %v9045_v33, %v7984_v4 }
 0x2dc   : > { %5082 = vmatpush1.bf16.msra.mxu1 %v7000_v36  ;;  %4919 = vmatprep.subr.bf16.mxu0 %v7005_v37  ;;  %v1626_v36 = vrot.slane %v9045_v33, %v8417_v22 }
 0x2dd   : > { %5083 = vmatprep.subr.bf16.mxu1 %v7008_v38 }
 0x2df   : > { %4920 = vmatpush1.bf16.msra.mxu0 %v7003_v40 }
 0x2e0   : > { %5084 = vmatpush1.bf16.msra.mxu1 %v7006_v5  ;;  %4921 = vmatprep.subr.bf16.mxu0 %v7011_v41 }
 0x2e1   : > { %5085 = vmatprep.subr.bf16.mxu1 %v7014_v42 }
 0x2e3   : > { %4922 = vmatpush1.bf16.msra.mxu0 %v7009_v19 }
 0x2e4   : > { %5086 = vmatpush1.bf16.msra.mxu1 %v7012_v43  ;;  %4923 = vmatprep.subr.bf16.mxu0 %v7017_v44 }
 0x2e5   : > { %5087 = vmatprep.subr.bf16.mxu1 %v7020_v48 }
 0x2e7   : > { %4924 = vmatpush1.bf16.msra.mxu0 %v7015_v50 }
 0x2e8   : > { %5088 = vmatpush1.bf16.msra.mxu1 %v7018_v53  ;;  %4925 = vmatprep.subr.bf16.mxu0 %v7023_v54 }
 0x2e9   : > { %5089 = vmatprep.subr.bf16.mxu1 %v7026_v55 }
 0x2eb   : > { %4926 = vmatpush1.bf16.msra.mxu0 %v7021_v56 }
 0x2ec   : > { %5090 = vmatpush1.bf16.msra.mxu1 %v7024_v57  ;;  %4927 = vmatprep.subr.bf16.mxu0 %v7029_v45 }
 0x2ed   : > { %5091 = vmatprep.subr.bf16.mxu1 %v7032_v46 }
 0x2ef   : > { %4928 = vmatpush1.bf16.msra.mxu0 %v7027_v47 }
 0x2f0   : > { %5092 = vmatpush1.bf16.msra.mxu1 %v7030_v49  ;;  %4929 = vmatprep.subr.bf16.mxu0 %v7035_v51 }
 0x2f1   : > { %5093 = vmatprep.subr.bf16.mxu1 %v7038_v52 }
 0x2f3   : > { %4930 = vmatpush1.bf16.msra.mxu0 %v7033_v58 }
 0x2f4   : > { %5094 = vmatpush1.bf16.msra.mxu1 %v7036_v59  ;;  %4931 = vmatprep.subr.bf16.mxu0 %v7041_v61 }
 0x2f5   : > { %5095 = vmatprep.subr.bf16.mxu1 %v7044_v62 }
 0x2f7   : > { %4932 = vmatpush1.bf16.msra.mxu0 %v7039_v0 }
 0x2f8   : > { %5096 = vmatpush1.bf16.msra.mxu1 %v7042_v2  ;;  %4933 = vmatprep.subr.bf16.mxu0 %v7047_v3 }
 0x2f9   : > { %5097 = vmatprep.subr.bf16.mxu1 %v7050_v6 }
 0x2fb   : > { %4934 = vmatpush1.bf16.msra.mxu0 %v7045_v7 }
 0x2fc   : > { %5098 = vmatpush1.bf16.msra.mxu1 %v7048_v8  ;;  %4935 = vmatprep.subr.bf16.mxu0 %v7053_v9 }
 0x2fd   : > { %5099 = vmatprep.subr.bf16.mxu1 %v7056_v10 }
 0x2ff   : > { %4936 = vmatpush1.bf16.msra.mxu0 %v7051_v11 }
 0x300   : > { %5100 = vmatpush1.bf16.msra.mxu1 %v7054_v12  ;;  %4937 = vmatprep.subr.bf16.mxu0 %v7059_v13 }
 0x301   : > { %5101 = vmatprep.subr.bf16.mxu1 %v7062_v14 }
 0x303   : > { %4938 = vmatpush1.bf16.msra.mxu0 %v7057_v15 }
 0x304   : > { %5102 = vmatpush1.bf16.msra.mxu1 %v7060_v16  ;;  %4939 = vmatprep.subr.bf16.mxu0 %v7065_v17 }
 0x305   : > { %5103 = vmatprep.subr.bf16.mxu1 %v7068_v18 }
 0x307   : > { %4940 = vmatpush1.bf16.msra.mxu0 %v7063_v21 }
 0x308   : > { %5104 = vmatpush1.bf16.msra.mxu1 %v7066_v23  ;;  %4941 = vmatprep.subr.bf16.mxu0 %v7071_v39 }
 0x309   : > { %5105 = vmatprep.subr.bf16.mxu1 %v7074_v26 }
 0x30b   : > { %4942 = vmatpush1.bf16.msra.mxu0 %v7069_v28 }
 0x30c   : > { %5106 = vmatpush1.bf16.msra.mxu1 %v7072_v24  ;;  %4943 = vmatprep.subr.bf16.mxu0 %v7077_v29  ;;  %v7081_v24 = vld [vmem:[%s9961_s9 + $0x200] ss:$16 sps:$4 sm:$0xff]   ;;  %v7084_v29 = vld [vmem:[%s9961_s9 + $0x208] ss:$16 sps:$4 sm:$0xff]  }
 0x30d   : > { %5107 = vmatprep.subr.bf16.mxu1 %v7080_v31 }
 0x30f   : > { %4944 = vmatpush1.bf16.msra.mxu0 %v7075_v32  ;;  %v7089_v32 = vld [vmem:[%s9961_s9 + $0x224] ss:$16 sps:$4 sm:$0xff]  }
 0x310   : > { %5108 = vmatpush1.bf16.msra.mxu1 %v7078_v25  ;;  %4954 = vmatprep.subr.bf16.mxu0 %v7083_v27  ;;  %v7092_v25 = vld [vmem:[%s9961_s9 + $0x22c] ss:$16 sps:$4 sm:$0xff]  }
 0x311   : > { %5118 = vmatprep.subr.bf16.mxu1 %v7086_v30  ;;  %v7087_v30 = vld [vmem:[%s9961_s9 + $0x220] ss:$16 sps:$4 sm:$0xff]  }
 0x325   : > { %v3008_v37 = vpop.f32.mrb[4].mxu0  ;;  %v3094_v38 = vpop.f32.mrb[12].mxu1 }
 0x326   : > { %v6729_v40 = vadd.f32 %v3008_v37, %v1614_v34  ;;  %v6733_v5 = vadd.f32 %v3094_v38, %v1622_v63  ;;  %v3010_v41 = vpop.f32.mrb[5].mxu0  ;;  %v3096_v42 = vpop.f32.mrb[13].mxu1  ;;  %v7096_v37 = vld [vmem:[%s9961_s9 + $0x248] ss:$16 sps:$4 sm:$0xff]   ;;  %v7101_v38 = vld [vmem:[%s9961_s9 + $0x264] ss:$16 sps:$4 sm:$0xff]  }
 0x327   : > { %v6730_v19 = vadd.f32 %v3010_v41, %v1618_v35  ;;  %v6734_v43 = vadd.f32 %v3096_v42, %v1626_v36  ;;  %v3012_v44 = vpop.f32.mrb[6].mxu0  ;;  %v3098_v48 = vpop.f32.mrb[14].mxu1  ;;  %v7102_v41 = vld [vmem:[%s9961_s9 + $0x268] ss:$16 sps:$4 sm:$0xff]   ;;  %v7107_v42 = vld [vmem:[%s9961_s9 + $0x284] ss:$16 sps:$4 sm:$0xff]  }
 0x328   : > { %v6731_v50 = vadd.f32 %v3012_v44, %v1614_v34  ;;  %v6735_v53 = vadd.f32 %v3098_v48, %v1622_v63  ;;  %v3014_v54 = vpop.f32.mrb[7].mxu0  ;;  %v3100_v55 = vpop.f32.mrb[15].mxu1  ;;  %v3275_v45 = vmax.f32 %v6729_v40, 0.0  ;;  %v3277_v46 = vmax.f32 %v6733_v5, 0.0  ;;  %v7090_v34 = vld [vmem:[%s9961_s9 + $0x228] ss:$16 sps:$4 sm:$0xff]  }
 0x329   : > { %v6732_v56 = vadd.f32 %v3014_v54, %v1618_v35  ;;  %v6736_v57 = vadd.f32 %v3100_v55, %v1626_v36  ;;  %v3276_v51 = vmax.f32 %v6730_v19, 0.0  ;;  %v3278_v52 = vmax.f32 %v6734_v43, 0.0  ;;  %v7095_v63 = vld [vmem:[%s9961_s9 + $0x244] ss:$16 sps:$4 sm:$0xff]   ;;  %v7098_v35 = vld [vmem:[%s9961_s9 + $0x24c] ss:$16 sps:$4 sm:$0xff]  }
 0x32a   : > { %v3283_v47 = vmax.f32 %v6731_v50, 0.0  ;;  %v3285_v49 = vmax.f32 %v6735_v53, 0.0  ;;  %v7093_v36 = vld [vmem:[%s9961_s9 + $0x240] ss:$16 sps:$4 sm:$0xff]   ;;  %v7104_v40 = vld [vmem:[%s9961_s9 + $0x26c] ss:$16 sps:$4 sm:$0xff]  }
 0x32b   : > { %v3284_v58 = vmax.f32 %v6732_v56, 0.0  ;;  %v3286_v59 = vmax.f32 %v6736_v57, 0.0  ;;  %v7099_v5 = vld [vmem:[%s9961_s9 + $0x260] ss:$16 sps:$4 sm:$0xff]   ;;  %v7110_v19 = vld [vmem:[%s9961_s9 + $0x28c] ss:$16 sps:$4 sm:$0xff]  }
 0x32c   : > { %v3291_v61 = vmax.f32 %v3275_v45, %v3283_v47  ;;  %v9055_v62 = vmax.f32 %v3277_v46, %v3285_v49  ;;  %v7105_v43 = vld [vmem:[%s9961_s9 + $0x280] ss:$16 sps:$4 sm:$0xff]   ;;  %v7108_v44 = vld [vmem:[%s9961_s9 + $0x288] ss:$16 sps:$4 sm:$0xff]   ;;  %v7113_v48 = vld [vmem:[%s9961_s9 + $0x2a4] ss:$16 sps:$4 sm:$0xff]  }
 0x32d   : > { %v3298_v0 = vmax.f32 %v3276_v51, %v3284_v58  ;;  %v3312_v2 = vmax.f32 %v3278_v52, %v3286_v59  ;;  %v7116_v50 = vld [vmem:[%s9961_s9 + $0x2ac] ss:$16 sps:$4 sm:$0xff]   ;;  %v7111_v53 = vld [vmem:[%s9961_s9 + $0x2a0] ss:$16 sps:$4 sm:$0xff]   ;;  %v7114_v54 = vld [vmem:[%s9961_s9 + $0x2a8] ss:$16 sps:$4 sm:$0xff]  }
 0x32e   : > { %v3292_v3 = vrot.slane %v3291_v61, 4  ;;  %v7119_v55 = vld [vmem:[%s9961_s9 + $0x2c4] ss:$16 sps:$4 sm:$0xff]   ;;  %v7122_v56 = vld [vmem:[%s9961_s9 + $0x2cc] ss:$16 sps:$4 sm:$0xff]  }
 0x32f   : > { %v3299_v6 = vrot.slane %v3298_v0, 4  ;;  %v3313_v7 = vrot.slane %v3312_v2, 4  ;;  %v7117_v57 = vld [vmem:[%s9961_s9 + $0x2c0] ss:$16 sps:$4 sm:$0xff]   ;;  %v7120_v45 = vld [vmem:[%s9961_s9 + $0x2c8] ss:$16 sps:$4 sm:$0xff]  }
 0x330   : > { %v3293_v8 = vmax.f32 %v3291_v61, %v3292_v3  ;;  %v7125_v46 = vld [vmem:[%s9961_s9 + $0x2e4] ss:$16 sps:$4 sm:$0xff]   ;;  %v7128_v47 = vld [vmem:[%s9961_s9 + $0x2ec] ss:$16 sps:$4 sm:$0xff]   ;;  %v7123_v49 = vld [vmem:[%s9961_s9 + $0x2e0] ss:$16 sps:$4 sm:$0xff]  }
 0x331   : > { %v3300_v9 = vmax.f32 %v3298_v0, %v3299_v6  ;;  %v3314_v10 = vmax.f32 %v3312_v2, %v3313_v7  ;;  %v7126_v51 = vld [vmem:[%s9961_s9 + $0x2e8] ss:$16 sps:$4 sm:$0xff]   ;;  %v7131_v52 = vld [vmem:[%s9961_s9 + $0x304] ss:$16 sps:$4 sm:$0xff]   ;;  %v7134_v58 = vld [vmem:[%s9961_s9 + $0x30c] ss:$16 sps:$4 sm:$0xff]  }
 0x332   : > { %v3294_v11 = vrot.slane %v3293_v8, 2  ;;  %v7129_v59 = vld [vmem:[%s9961_s9 + $0x300] ss:$16 sps:$4 sm:$0xff]   ;;  %v7132_v61 = vld [vmem:[%s9961_s9 + $0x308] ss:$16 sps:$4 sm:$0xff]  }
 0x333   : > { %v3301_v12 = vrot.slane %v3300_v9, 2  ;;  %v3315_v13 = vrot.slane %v3314_v10, 2  ;;  %v7137_v0 = vld [vmem:[%s9961_s9 + $0x324] ss:$16 sps:$4 sm:$0xff]   ;;  %v7140_v2 = vld [vmem:[%s9961_s9 + $0x32c] ss:$16 sps:$4 sm:$0xff]  }
 0x334   : > { %v3295_v14 = vmax.f32 %v3293_v8, %v3294_v11  ;;  %v7135_v3 = vld [vmem:[%s9961_s9 + $0x320] ss:$16 sps:$4 sm:$0xff]   ;;  %v7138_v6 = vld [vmem:[%s9961_s9 + $0x328] ss:$16 sps:$4 sm:$0xff]   ;;  %v7143_v7 = vld [vmem:[%s9961_s9 + $0x344] ss:$16 sps:$4 sm:$0xff]  }
 0x335   : > { %v3302_v15 = vmax.f32 %v3300_v9, %v3301_v12  ;;  %v3316_v16 = vmax.f32 %v3314_v10, %v3315_v13  ;;  %v7146_v8 = vld [vmem:[%s9961_s9 + $0x34c] ss:$16 sps:$4 sm:$0xff]   ;;  %v7141_v9 = vld [vmem:[%s9961_s9 + $0x340] ss:$16 sps:$4 sm:$0xff]   ;;  %v7144_v10 = vld [vmem:[%s9961_s9 + $0x348] ss:$16 sps:$4 sm:$0xff]  }
 0x336   : > { %v3296_v17 = vrot.slane %v3295_v14, 1  ;;  %v3306_v11 = vrot.slane %v9055_v62, 4  ;;  %v7149_v12 = vld [vmem:[%s9961_s9 + $0x364] ss:$16 sps:$4 sm:$0xff]   ;;  %v7152_v13 = vld [vmem:[%s9961_s9 + $0x36c] ss:$16 sps:$4 sm:$0xff]  }
 0x337   : > { %v3303_v18 = vrot.slane %v3302_v15, 1  ;;  %v3317_v21 = vrot.slane %v3316_v16, 1 }
 0x338   : > { %v3297_v23 = vmax.f32 %v3295_v14, %v3296_v17  ;;  %v7147_v14 = vld [vmem:[%s9961_s9 + $0x360] ss:$16 sps:$4 sm:$0xff]   ;;  %v7155_v17 = vld [vmem:[%s9961_s9 + $0x384] ss:$16 sps:$4 sm:$0xff]  }
 0x339   : > { %v3304_v39 = vmax.f32 %v3302_v15, %v3303_v18  ;;  %v3318_v26 = vmax.f32 %v3316_v16, %v3317_v21  ;;  %v7150_v15 = vld [vmem:[%s9961_s9 + $0x368] ss:$16 sps:$4 sm:$0xff]   ;;  %v3307_v16 = vmax.f32 %v9055_v62, %v3306_v11  ;;  %v7158_v18 = vld [vmem:[%s9961_s9 + $0x38c] ss:$16 sps:$4 sm:$0xff]   ;;  %v7153_v21 = vld [vmem:[%s9961_s9 + $0x380] ss:$16 sps:$4 sm:$0xff]  }
 0x33a   : > { %v3347_v31 = vpack.c.bf16 %v3297_v23, %v3297_v23  ;;  %v7156_v62 = vld [vmem:[%s9961_s9 + $0x388] ss:$16 sps:$4 sm:$0xff]  }
 0x33b   : > { %v3348_v28 = vpack.c.bf16 %v3304_v39, %v3304_v39  ;;  %v3350_v27 = vpack.c.bf16 %v3318_v26, %v3318_v26  ;;  %v3308_v23 = vrot.slane %v3307_v16, 2  ;;  %v7161_v39 = vld [vmem:[%s9961_s9 + $0x3a4] ss:$16 sps:$4 sm:$0xff]   ;;  %v7164_v26 = vld [vmem:[%s9961_s9 + $0x3ac] ss:$16 sps:$4 sm:$0xff]  }
 0x33c   : > { %v7222_v11 = vld [vmem:[%s9961_s9 + $0x4e8] ss:$16 sps:$4 sm:$0xff]  }
 0x33d   : > { %4945 = vmatprep.mubr.bf16.mxu0 %v3348_v28  ;;  %5109 = vmatprep.mubr.bf16.mxu1 %v3348_v28  ;;  %v7159_v28 = vld [vmem:[%s9961_s9 + $0x3a0] ss:$16 sps:$4 sm:$0xff]  }
 0x33e   : > { %4946 = vmatmul.mubr.bf16.vlgmr.msra.gmra.mrb[12].mxu0 %v3347_v31  ;;  %5110 = vmatmul.mubr.bf16.vlgmr.msra.gmra.mrb[20].mxu1 %v3347_v31  ;;  %v7167_v31 = vld [vmem:[%s9961_s9 + $0x3c4] ss:$16 sps:$4 sm:$0xff]  }
 0x33f   : > { %4955 = vmatpush1.bf16.msra.mxu0 %v7081_v24  ;;  %5119 = vmatpush1.bf16.msra.mxu1 %v7084_v29  ;;  %v7162_v24 = vld [vmem:[%s9961_s9 + $0x3a8] ss:$16 sps:$4 sm:$0xff]   ;;  %v3309_v29 = vmax.f32 %v3307_v16, %v3308_v23  ;;  %v7233_v16 = vld [vmem:[%s9961_s9 + $0x524] ss:$16 sps:$4 sm:$0xff]   ;;  %v1637_v23 = vsub.s32 6, %v7969_v60 }
 0x340   : > { %4986 = vmatprep.mubr.bf16.mxu0 %v3350_v27  ;;  %5150 = vmatprep.mubr.bf16.mxu1 %v3350_v27  ;;  %v7168_v27 = vld [vmem:[%s9961_s9 + $0x3c8] ss:$16 sps:$4 sm:$0xff]  }
 0x341   : > { %4956 = vmatprep.subr.bf16.mxu0 %v7089_v32  ;;  %5120 = vmatprep.subr.bf16.mxu1 %v7092_v25  ;;  %v7170_v32 = vld [vmem:[%s9961_s9 + $0x3cc] ss:$16 sps:$4 sm:$0xff]   ;;  %v7165_v25 = vld [vmem:[%s9961_s9 + $0x3c0] ss:$16 sps:$4 sm:$0xff]  }
 0x343   : > { %4957 = vmatpush1.bf16.msra.mxu0 %v7087_v30  ;;  %5121 = vmatpush1.bf16.msra.mxu1 %v7090_v34  ;;  %v3310_v30 = vrot.slane %v3309_v29, 1  ;;  %v7173_v34 = vld [vmem:[%s9961_s9 + $0x3e4] ss:$16 sps:$4 sm:$0xff]  }
 0x344   : > { %4958 = vmatprep.subr.bf16.mxu0 %v7095_v63  ;;  %5122 = vmatprep.subr.bf16.mxu1 %v7098_v35  ;;  %v7176_v63 = vld [vmem:[%s9961_s9 + $0x3ec] ss:$16 sps:$4 sm:$0xff]   ;;  %v7171_v35 = vld [vmem:[%s9961_s9 + $0x3e0] ss:$16 sps:$4 sm:$0xff]  }
 0x347   : > { %4959 = vmatpush1.bf16.msra.mxu0 %v7093_v36  ;;  %5123 = vmatpush1.bf16.msra.mxu1 %v7096_v37  ;;  %v7174_v36 = vld [vmem:[%s9961_s9 + $0x3e8] ss:$16 sps:$4 sm:$0xff]   ;;  %v3311_v37 = vmax.f32 %v3309_v29, %v3310_v30  ;;  %v7245_v30 = vld [vmem:[%s9961_s9 + $0x564] ss:$16 sps:$4 sm:$0xff]  }
 0x348   : > { %4960 = vmatprep.subr.bf16.mxu0 %v7101_v38  ;;  %5124 = vmatprep.subr.bf16.mxu1 %v7104_v40  ;;  %v7179_v38 = vld [vmem:[%s9961_s9 + $0x404] ss:$16 sps:$4 sm:$0xff]   ;;  %v7182_v40 = vld [vmem:[%s9961_s9 + $0x40c] ss:$16 sps:$4 sm:$0xff]  }
 0x34b   : > { %4961 = vmatpush1.bf16.msra.mxu0 %v7099_v5  ;;  %5125 = vmatpush1.bf16.msra.mxu1 %v7102_v41  ;;  %v7177_v5 = vld [vmem:[%s9961_s9 + $0x400] ss:$16 sps:$4 sm:$0xff]   ;;  %v7180_v41 = vld [vmem:[%s9961_s9 + $0x408] ss:$16 sps:$4 sm:$0xff]  }
 0x34c   : > { %4962 = vmatprep.subr.bf16.mxu0 %v7107_v42  ;;  %5126 = vmatprep.subr.bf16.mxu1 %v7110_v19  ;;  %v3349_v42 = vpack.c.bf16 %v3311_v37, %v3311_v37  ;;  %v7185_v19 = vld [vmem:[%s9961_s9 + $0x424] ss:$16 sps:$4 sm:$0xff]  }
 0x34f   : > { %4963 = vmatpush1.bf16.msra.mxu0 %v7105_v43  ;;  %5127 = vmatpush1.bf16.msra.mxu1 %v7108_v44  ;;  %v7188_v43 = vld [vmem:[%s9961_s9 + $0x42c] ss:$16 sps:$4 sm:$0xff]   ;;  %v7183_v44 = vld [vmem:[%s9961_s9 + $0x420] ss:$16 sps:$4 sm:$0xff]  }
 0x350   : > { %4964 = vmatprep.subr.bf16.mxu0 %v7113_v48  ;;  %5128 = vmatprep.subr.bf16.mxu1 %v7116_v50  ;;  %v7186_v48 = vld [vmem:[%s9961_s9 + $0x428] ss:$16 sps:$4 sm:$0xff]   ;;  %v7191_v50 = vld [vmem:[%s9961_s9 + $0x444] ss:$16 sps:$4 sm:$0xff]  }
 0x353   : > { %4965 = vmatpush1.bf16.msra.mxu0 %v7111_v53  ;;  %5129 = vmatpush1.bf16.msra.mxu1 %v7114_v54  ;;  %v7194_v53 = vld [vmem:[%s9961_s9 + $0x44c] ss:$16 sps:$4 sm:$0xff]   ;;  %v7189_v54 = vld [vmem:[%s9961_s9 + $0x440] ss:$16 sps:$4 sm:$0xff]  }
 0x354   : > { %4966 = vmatprep.subr.bf16.mxu0 %v7119_v55  ;;  %5130 = vmatprep.subr.bf16.mxu1 %v7122_v56  ;;  %v7192_v55 = vld [vmem:[%s9961_s9 + $0x448] ss:$16 sps:$4 sm:$0xff]   ;;  %v7197_v56 = vld [vmem:[%s9961_s9 + $0x464] ss:$16 sps:$4 sm:$0xff]  }
 0x357   : > { %4967 = vmatpush1.bf16.msra.mxu0 %v7117_v57  ;;  %5131 = vmatpush1.bf16.msra.mxu1 %v7120_v45  ;;  %v7200_v57 = vld [vmem:[%s9961_s9 + $0x46c] ss:$16 sps:$4 sm:$0xff]   ;;  %v7195_v45 = vld [vmem:[%s9961_s9 + $0x460] ss:$16 sps:$4 sm:$0xff]  }
 0x358   : > { %4968 = vmatprep.subr.bf16.mxu0 %v7125_v46  ;;  %5132 = vmatprep.subr.bf16.mxu1 %v7128_v47  ;;  %v7198_v46 = vld [vmem:[%s9961_s9 + $0x468] ss:$16 sps:$4 sm:$0xff]   ;;  %v7203_v47 = vld [vmem:[%s9961_s9 + $0x484] ss:$16 sps:$4 sm:$0xff]  }
 0x35b   : > { %4969 = vmatpush1.bf16.msra.mxu0 %v7123_v49  ;;  %5133 = vmatpush1.bf16.msra.mxu1 %v7126_v51  ;;  %v7206_v49 = vld [vmem:[%s9961_s9 + $0x48c] ss:$16 sps:$4 sm:$0xff]   ;;  %v7201_v51 = vld [vmem:[%s9961_s9 + $0x480] ss:$16 sps:$4 sm:$0xff]  }
 0x35c   : > { %4970 = vmatprep.subr.bf16.mxu0 %v7131_v52  ;;  %5134 = vmatprep.subr.bf16.mxu1 %v7134_v58  ;;  %v7204_v52 = vld [vmem:[%s9961_s9 + $0x488] ss:$16 sps:$4 sm:$0xff]   ;;  %v7209_v58 = vld [vmem:[%s9961_s9 + $0x4a4] ss:$16 sps:$4 sm:$0xff]  }
 0x35f   : > { %4971 = vmatpush1.bf16.msra.mxu0 %v7129_v59  ;;  %5135 = vmatpush1.bf16.msra.mxu1 %v7132_v61  ;;  %v7212_v59 = vld [vmem:[%s9961_s9 + $0x4ac] ss:$16 sps:$4 sm:$0xff]   ;;  %v7207_v61 = vld [vmem:[%s9961_s9 + $0x4a0] ss:$16 sps:$4 sm:$0xff]  }
 0x360   : > { %4972 = vmatprep.subr.bf16.mxu0 %v7137_v0  ;;  %5136 = vmatprep.subr.bf16.mxu1 %v7140_v2  ;;  %v7210_v0 = vld [vmem:[%s9961_s9 + $0x4a8] ss:$16 sps:$4 sm:$0xff]   ;;  %v7215_v2 = vld [vmem:[%s9961_s9 + $0x4c4] ss:$16 sps:$4 sm:$0xff]  }
 0x363   : > { %4973 = vmatpush1.bf16.msra.mxu0 %v7135_v3  ;;  %5137 = vmatpush1.bf16.msra.mxu1 %v7138_v6  ;;  %v7218_v3 = vld [vmem:[%s9961_s9 + $0x4cc] ss:$16 sps:$4 sm:$0xff]   ;;  %v7213_v6 = vld [vmem:[%s9961_s9 + $0x4c0] ss:$16 sps:$4 sm:$0xff]  }
 0x364   : > { %4974 = vmatprep.subr.bf16.mxu0 %v7143_v7  ;;  %5138 = vmatprep.subr.bf16.mxu1 %v7146_v8  ;;  %v7216_v7 = vld [vmem:[%s9961_s9 + $0x4c8] ss:$16 sps:$4 sm:$0xff]   ;;  %v7221_v8 = vld [vmem:[%s9961_s9 + $0x4e4] ss:$16 sps:$4 sm:$0xff]  }
 0x367   : > { %4975 = vmatpush1.bf16.msra.mxu0 %v7141_v9  ;;  %5139 = vmatpush1.bf16.msra.mxu1 %v7144_v10  ;;  %v7224_v9 = vld [vmem:[%s9961_s9 + $0x4ec] ss:$16 sps:$4 sm:$0xff]   ;;  %v7219_v10 = vld [vmem:[%s9961_s9 + $0x4e0] ss:$16 sps:$4 sm:$0xff]  }
 0x368   : > { %4976 = vmatprep.subr.bf16.mxu0 %v7149_v12  ;;  %5140 = vmatprep.subr.bf16.mxu1 %v7152_v13  ;;  %v7227_v12 = vld [vmem:[%s9961_s9 + $0x504] ss:$16 sps:$4 sm:$0xff]   ;;  %v7230_v13 = vld [vmem:[%s9961_s9 + $0x50c] ss:$16 sps:$4 sm:$0xff]  }
 0x36b   : > { %4977 = vmatpush1.bf16.msra.mxu0 %v7147_v14  ;;  %5141 = vmatpush1.bf16.msra.mxu1 %v7150_v15  ;;  %v7225_v14 = vld [vmem:[%s9961_s9 + $0x500] ss:$16 sps:$4 sm:$0xff]   ;;  %v7228_v15 = vld [vmem:[%s9961_s9 + $0x508] ss:$16 sps:$4 sm:$0xff]  }
 0x36c   : > { %4978 = vmatprep.subr.bf16.mxu0 %v7155_v17  ;;  %5142 = vmatprep.subr.bf16.mxu1 %v7158_v18  ;;  %v7236_v17 = vld [vmem:[%s9961_s9 + $0x52c] ss:$16 sps:$4 sm:$0xff]   ;;  %v1629_v18 = vsub.s32 4, %v7969_v60 }
 0x36e   : > { %v1630_v29 = vrot.slane %v9045_v33, %v1629_v18 }
 0x36f   : > { %4979 = vmatpush1.bf16.msra.mxu0 %v7153_v21  ;;  %5143 = vmatpush1.bf16.msra.mxu1 %v7156_v62  ;;  %v7231_v21 = vld [vmem:[%s9961_s9 + $0x520] ss:$16 sps:$4 sm:$0xff]   ;;  %v7234_v62 = vld [vmem:[%s9961_s9 + $0x528] ss:$16 sps:$4 sm:$0xff]  }
 0x370   : > { %4980 = vmatprep.subr.bf16.mxu0 %v7161_v39  ;;  %5144 = vmatprep.subr.bf16.mxu1 %v7164_v26  ;;  %v1633_v39 = vsub.s32 5, %v7969_v60  ;;  %v7239_v26 = vld [vmem:[%s9961_s9 + $0x544] ss:$16 sps:$4 sm:$0xff]  }
 0x373   : > { %4981 = vmatpush1.bf16.msra.mxu0 %v7159_v28  ;;  %5145 = vmatpush1.bf16.msra.mxu1 %v7162_v24  ;;  %v7242_v28 = vld [vmem:[%s9961_s9 + $0x54c] ss:$16 sps:$4 sm:$0xff]   ;;  %v1641_v24 = vsub.s32 7, %v7969_v60 }
 0x374   : > { %4982 = vmatprep.subr.bf16.mxu0 %v7167_v31  ;;  %5146 = vmatprep.subr.bf16.mxu1 %v7170_v32  ;;  %v1638_v31 = vrot.slane %v9045_v33, %v1637_v23  ;;  %v7237_v32 = vld [vmem:[%s9961_s9 + $0x540] ss:$16 sps:$4 sm:$0xff]  }
 0x375   : > { %v1642_v60 = vrot.slane %v9045_v33, %v1641_v24 }
 0x377   : > { %4983 = vmatpush1.bf16.msra.mxu0 %v7165_v25  ;;  %5147 = vmatpush1.bf16.msra.mxu1 %v7168_v27  ;;  %v7240_v25 = vld [vmem:[%s9961_s9 + $0x548] ss:$16 sps:$4 sm:$0xff]   ;;  %v1634_v27 = vrot.slane %v9045_v33, %v1633_v39  ;;  %v7243_v33 = vld [vmem:[%s9961_s9 + $0x560] ss:$16 sps:$4 sm:$0xff]  }
 0x378   : > { %4984 = vmatprep.subr.bf16.mxu0 %v7173_v34  ;;  %5148 = vmatprep.subr.bf16.mxu1 %v7176_v63  ;;  %v7248_v34 = vld [vmem:[%s9961_s9 + $0x56c] ss:$16 sps:$4 sm:$0xff]   ;;  %v7261_v39 = vld [vmem:[%s9961_s9 + $0x5c0] ss:$16 sps:$4 sm:$0xff]  }
 0x37b   : > { %4985 = vmatpush1.bf16.msra.mxu0 %v7171_v35  ;;  %5149 = vmatpush1.bf16.msra.mxu1 %v7174_v36 }
 0x37c   : > { %4995 = vmatprep.subr.bf16.mxu0 %v7179_v38  ;;  %5159 = vmatprep.subr.bf16.mxu1 %v7182_v40 }
 0x37e   : > { %4987 = vmatmul.mubr.bf16.vlgmr.msra.gmra.mrb[12].mxu0 %v3349_v42  ;;  %5151 = vmatmul.mubr.bf16.vlgmr.msra.gmra.mrb[20].mxu1 %v3349_v42  ;;  %v7246_v42 = vld [vmem:[%s9961_s9 + $0x568] ss:$16 sps:$4 sm:$0xff]  }
 0x37f   : > { %4996 = vmatpush1.bf16.msra.mxu0 %v7177_v5  ;;  %5160 = vmatpush1.bf16.msra.mxu1 %v7180_v41 }
 0x380   : > { %4997 = vmatprep.subr.bf16.mxu0 %v7185_v19  ;;  %5161 = vmatprep.subr.bf16.mxu1 %v7188_v43 }
 0x383   : > { %4998 = vmatpush1.bf16.msra.mxu0 %v7183_v44  ;;  %5162 = vmatpush1.bf16.msra.mxu1 %v7186_v48 }
 0x384   : > { %4999 = vmatprep.subr.bf16.mxu0 %v7191_v50  ;;  %5163 = vmatprep.subr.bf16.mxu1 %v7194_v53  ;;  %v7251_v50 = vld [vmem:[%s9961_s9 + $0x584] ss:$16 sps:$4 sm:$0xff]   ;;  %v7254_v53 = vld [vmem:[%s9961_s9 + $0x58c] ss:$16 sps:$4 sm:$0xff]  }
 0x387   : > { %5000 = vmatpush1.bf16.msra.mxu0 %v7189_v54  ;;  %5164 = vmatpush1.bf16.msra.mxu1 %v7192_v55 }
 0x388   : > { %5001 = vmatprep.subr.bf16.mxu0 %v7197_v56  ;;  %5165 = vmatprep.subr.bf16.mxu1 %v7200_v57 }
 0x38b   : > { %5002 = vmatpush1.bf16.msra.mxu0 %v7195_v45  ;;  %5166 = vmatpush1.bf16.msra.mxu1 %v7198_v46 }
 0x38c   : > { %5003 = vmatprep.subr.bf16.mxu0 %v7203_v47  ;;  %5167 = vmatprep.subr.bf16.mxu1 %v7206_v49  ;;  %v7249_v47 = vld [vmem:[%s9961_s9 + $0x580] ss:$16 sps:$4 sm:$0xff]  }
 0x38f   : > { %5004 = vmatpush1.bf16.msra.mxu0 %v7201_v51  ;;  %5168 = vmatpush1.bf16.msra.mxu1 %v7204_v52 }
 0x390   : > { %5005 = vmatprep.subr.bf16.mxu0 %v7209_v58  ;;  %5169 = vmatprep.subr.bf16.mxu1 %v7212_v59  ;;  %v7252_v59 = vld [vmem:[%s9961_s9 + $0x588] ss:$16 sps:$4 sm:$0xff]  }
 0x393   : > { %5006 = vmatpush1.bf16.msra.mxu0 %v7207_v61  ;;  %5170 = vmatpush1.bf16.msra.mxu1 %v7210_v0 }
 0x394   : > { %5007 = vmatprep.subr.bf16.mxu0 %v7215_v2  ;;  %5171 = vmatprep.subr.bf16.mxu1 %v7218_v3  ;;  %v7257_v3 = vld [vmem:[%s9961_s9 + $0x5a4] ss:$16 sps:$4 sm:$0xff]  }
 0x397   : > { %5008 = vmatpush1.bf16.msra.mxu0 %v7213_v6  ;;  %5172 = vmatpush1.bf16.msra.mxu1 %v7216_v7  ;;  %v7260_v6 = vld [vmem:[%s9961_s9 + $0x5ac] ss:$16 sps:$4 sm:$0xff]  }
 0x398   : > { %5009 = vmatprep.subr.bf16.mxu0 %v7221_v8  ;;  %5173 = vmatprep.subr.bf16.mxu1 %v7224_v9 }
 0x39b   : > { %5010 = vmatpush1.bf16.msra.mxu0 %v7219_v10  ;;  %5174 = vmatpush1.bf16.msra.mxu1 %v7222_v11 }
 0x39c   : > { %5011 = vmatprep.subr.bf16.mxu0 %v7227_v12  ;;  %5175 = vmatprep.subr.bf16.mxu1 %v7230_v13  ;;  %v7255_v12 = vld [vmem:[%s9961_s9 + $0x5a0] ss:$16 sps:$4 sm:$0xff]   ;;  %v7258_v13 = vld [vmem:[%s9961_s9 + $0x5a8] ss:$16 sps:$4 sm:$0xff]  }
 0x39f   : > { %5012 = vmatpush1.bf16.msra.mxu0 %v7225_v14  ;;  %5176 = vmatpush1.bf16.msra.mxu1 %v7228_v15 }
 0x3a0   : > { %5013 = vmatprep.subr.bf16.mxu0 %v7233_v16  ;;  %5177 = vmatprep.subr.bf16.mxu1 %v7236_v17  ;;  %v7263_v16 = vld [vmem:[%s9961_s9 + $0x5c4] ss:$16 sps:$4 sm:$0xff]   ;;  %v7266_v17 = vld [vmem:[%s9961_s9 + $0x5cc] ss:$16 sps:$4 sm:$0xff]  }
 0x3a3   : > { %5014 = vmatpush1.bf16.msra.mxu0 %v7231_v21  ;;  %5178 = vmatpush1.bf16.msra.mxu1 %v7234_v62 }
 0x3a4   : > { %5015 = vmatprep.subr.bf16.mxu0 %v7239_v26  ;;  %5179 = vmatprep.subr.bf16.mxu1 %v7242_v28  ;;  %v7264_v26 = vld [vmem:[%s9961_s9 + $0x5c8] ss:$16 sps:$4 sm:$0xff]  }
 0x3a5   : > { %v3180_v63 = vpop.f32.mrb[8].mxu0 }
 0x3a6   : > { %v6737_v35 = vadd.f32 %v3180_v63, %v1630_v29  ;;  %v3266_v36 = vpop.f32.mrb[16].mxu1  ;;  %v3182_v37 = vpop.f32.mrb[9].mxu0  ;;  %v7275_v63 = vld [vmem:[%s9961_s9 + $0x604] ss:$16 sps:$4 sm:$0xff]  }
 0x3a7   : > { %v6741_v38 = vadd.f32 %v3266_v36, %v1638_v31  ;;  %v6738_v40 = vadd.f32 %v3182_v37, %v1634_v27  ;;  %v3268_v5 = vpop.f32.mrb[17].mxu1  ;;  %5016 = vmatpush1.bf16.msra.mxu0 %v7237_v32  ;;  %5180 = vmatpush1.bf16.msra.mxu1 %v7240_v25  ;;  %v3184_v41 = vpop.f32.mrb[10].mxu0 }
 0x3a8   : > { %v6742_v19 = vadd.f32 %v3268_v5, %v1642_v60  ;;  %v6739_v43 = vadd.f32 %v3184_v41, %v1630_v29  ;;  %v3270_v44 = vpop.f32.mrb[18].mxu1  ;;  %v3186_v48 = vpop.f32.mrb[11].mxu0  ;;  %5017 = vmatprep.subr.bf16.mxu0 %v7245_v30  ;;  %5181 = vmatprep.subr.bf16.mxu1 %v7248_v34  ;;  %v3279_v57 = vmax.f32 %v6737_v35, 0.0  ;;  %v7269_v29 = vld [vmem:[%s9961_s9 + $0x5e4] ss:$16 sps:$4 sm:$0xff]  }
 0x3a9   : > { %v6743_v54 = vadd.f32 %v3270_v44, %v1638_v31  ;;  %v6740_v55 = vadd.f32 %v3186_v48, %v1634_v27  ;;  %v3272_v56 = vpop.f32.mrb[19].mxu1  ;;  %v3281_v49 = vmax.f32 %v6741_v38, 0.0  ;;  %v3280_v51 = vmax.f32 %v6738_v40, 0.0  ;;  %v7272_v31 = vld [vmem:[%s9961_s9 + $0x5ec] ss:$16 sps:$4 sm:$0xff]  }
 0x3aa   : > { %v3287_v45 = vmax.f32 %v6739_v43, 0.0  ;;  %v6744_v46 = vadd.f32 %v3272_v56, %v1642_v60  ;;  %v3282_v61 = vmax.f32 %v6742_v19, 0.0  ;;  %v7267_v60 = vld [vmem:[%s9961_s9 + $0x5e0] ss:$16 sps:$4 sm:$0xff]   ;;  %v7270_v30 = vld [vmem:[%s9961_s9 + $0x5e8] ss:$16 sps:$4 sm:$0xff]  }
 0x3ab   : > { %v3289_v52 = vmax.f32 %v6743_v54, 0.0  ;;  %v3288_v58 = vmax.f32 %v6740_v55, 0.0  ;;  %5018 = vmatpush1.bf16.msra.mxu0 %v7243_v33  ;;  %5182 = vmatpush1.bf16.msra.mxu1 %v7246_v42  ;;  %v7278_v35 = vld [vmem:[%s9961_s9 + $0x60c] ss:$16 sps:$4 sm:$0xff]   ;;  %v7273_v41 = vld [vmem:[%s9961_s9 + $0x600] ss:$16 sps:$4 sm:$0xff]  }
 0x3ac   : > { %v3319_v0 = vmax.f32 %v3279_v57, %v3287_v45  ;;  %v3290_v2 = vmax.f32 %v6744_v46, 0.0  ;;  %5019 = vmatprep.subr.bf16.mxu0 %v7251_v50  ;;  %5183 = vmatprep.subr.bf16.mxu1 %v7254_v53  ;;  %v7276_v33 = vld [vmem:[%s9961_s9 + $0x608] ss:$16 sps:$4 sm:$0xff]   ;;  %v7281_v19 = vld [vmem:[%s9961_s9 + $0x624] ss:$16 sps:$4 sm:$0xff]  }
 0x3ad   : > { %v9415_v7 = vmax.f32 %v3281_v49, %v3289_v52  ;;  %v3326_v8 = vmax.f32 %v3280_v51, %v3288_v58  ;;  %v7284_v43 = vld [vmem:[%s9961_s9 + $0x62c] ss:$16 sps:$4 sm:$0xff]   ;;  %v7279_v48 = vld [vmem:[%s9961_s9 + $0x620] ss:$16 sps:$4 sm:$0xff]   ;;  %v7282_v50 = vld [vmem:[%s9961_s9 + $0x628] ss:$16 sps:$4 sm:$0xff]  }
 0x3ae   : > { %v3320_v9 = vrot.slane %v3319_v0, 4  ;;  %v3340_v10 = vmax.f32 %v3282_v61, %v3290_v2  ;;  %v7287_v53 = vld [vmem:[%s9961_s9 + $0x644] ss:$16 sps:$4 sm:$0xff]   ;;  %v7290_v54 = vld [vmem:[%s9961_s9 + $0x64c] ss:$16 sps:$4 sm:$0xff]  }
 0x3af   : > { %v3327_v11 = vrot.slane %v3326_v8, 4  ;;  %5020 = vmatpush1.bf16.msra.mxu0 %v7249_v47  ;;  %5184 = vmatpush1.bf16.msra.mxu1 %v7252_v59  ;;  %v7285_v55 = vld [vmem:[%s9961_s9 + $0x640] ss:$16 sps:$4 sm:$0xff]   ;;  %v7288_v56 = vld [vmem:[%s9961_s9 + $0x648] ss:$16 sps:$4 sm:$0xff]  }
 0x3b0   : > { %v3321_v14 = vmax.f32 %v3319_v0, %v3320_v9  ;;  %v3341_v15 = vrot.slane %v3340_v10, 4  ;;  %5021 = vmatprep.subr.bf16.mxu0 %v7257_v3  ;;  %5185 = vmatprep.subr.bf16.mxu1 %v7260_v6  ;;  %v7293_v57 = vld [vmem:[%s9961_s9 + $0x664] ss:$16 sps:$4 sm:$0xff]   ;;  %v7296_v45 = vld [vmem:[%s9961_s9 + $0x66c] ss:$16 sps:$4 sm:$0xff]  }
 0x3b1   : > { %v3328_v18 = vmax.f32 %v3326_v8, %v3327_v11  ;;  %v7291_v46 = vld [vmem:[%s9961_s9 + $0x660] ss:$16 sps:$4 sm:$0xff]   ;;  %v7294_v47 = vld [vmem:[%s9961_s9 + $0x668] ss:$16 sps:$4 sm:$0xff]   ;;  %v7299_v49 = vld [vmem:[%s9961_s9 + $0x684] ss:$16 sps:$4 sm:$0xff]  }
 0x3b2   : > { %v3322_v21 = vrot.slane %v3321_v14, 2  ;;  %v3342_v62 = vmax.f32 %v3340_v10, %v3341_v15  ;;  %v7302_v51 = vld [vmem:[%s9961_s9 + $0x68c] ss:$16 sps:$4 sm:$0xff]   ;;  %v7297_v52 = vld [vmem:[%s9961_s9 + $0x680] ss:$16 sps:$4 sm:$0xff]  }
 0x3b3   : > { %v3329_v23 = vrot.slane %v3328_v18, 2  ;;  %5022 = vmatpush1.bf16.msra.mxu0 %v7255_v12  ;;  %5186 = vmatpush1.bf16.msra.mxu1 %v7258_v13  ;;  %v7300_v58 = vld [vmem:[%s9961_s9 + $0x688] ss:$16 sps:$4 sm:$0xff]   ;;  %v7305_v59 = vld [vmem:[%s9961_s9 + $0x6a4] ss:$16 sps:$4 sm:$0xff]  }
 0x3b4   : > { %v3323_v28 = vmax.f32 %v3321_v14, %v3322_v21  ;;  %v3343_v24 = vrot.slane %v3342_v62, 2  ;;  %5023 = vmatprep.subr.bf16.mxu0 %v7263_v16  ;;  %5187 = vmatprep.subr.bf16.mxu1 %v7266_v17  ;;  %v7308_v61 = vld [vmem:[%s9961_s9 + $0x6ac] ss:$16 sps:$4 sm:$0xff]   ;;  %v7303_v0 = vld [vmem:[%s9961_s9 + $0x6a0] ss:$16 sps:$4 sm:$0xff]  }
 0x3b5   : > { %v3330_v32 = vmax.f32 %v3328_v18, %v3329_v23  ;;  %v7306_v2 = vld [vmem:[%s9961_s9 + $0x6a8] ss:$16 sps:$4 sm:$0xff]   ;;  %v7311_v3 = vld [vmem:[%s9961_s9 + $0x6c4] ss:$16 sps:$4 sm:$0xff]   ;;  %v7314_v6 = vld [vmem:[%s9961_s9 + $0x6cc] ss:$16 sps:$4 sm:$0xff]  }
 0x3b6   : > { %v3324_v25 = vrot.slane %v3323_v28, 1  ;;  %v3344_v27 = vmax.f32 %v3342_v62, %v3343_v24  ;;  %v7309_v8 = vld [vmem:[%s9961_s9 + $0x6c0] ss:$16 sps:$4 sm:$0xff]   ;;  %v7312_v9 = vld [vmem:[%s9961_s9 + $0x6c8] ss:$16 sps:$4 sm:$0xff]  }
 0x3b7   : > { %5024 = vmatpush1.bf16.msra.mxu0 %v7261_v39  ;;  %5188 = vmatpush1.bf16.msra.mxu1 %v7264_v26  ;;  %v3331_v34 = vrot.slane %v3330_v32, 1  ;;  %v7317_v10 = vld [vmem:[%s9961_s9 + $0x6e4] ss:$16 sps:$4 sm:$0xff]   ;;  %v7320_v11 = vld [vmem:[%s9961_s9 + $0x6ec] ss:$16 sps:$4 sm:$0xff]  }
 0x3b8   : > { %5025 = vmatprep.subr.bf16.mxu0 %v7269_v29  ;;  %5189 = vmatprep.subr.bf16.mxu1 %v7272_v31  ;;  %v3325_v36 = vmax.f32 %v3323_v28, %v3324_v25  ;;  %v3345_v37 = vrot.slane %v3344_v27, 1  ;;  %v7315_v12 = vld [vmem:[%s9961_s9 + $0x6e0] ss:$16 sps:$4 sm:$0xff]   ;;  %v7318_v13 = vld [vmem:[%s9961_s9 + $0x6e8] ss:$16 sps:$4 sm:$0xff]   ;;  %v3334_v29 = vrot.slane %v9415_v7, 4 }
 0x3b9   : > { %v3332_v38 = vmax.f32 %v3330_v32, %v3331_v34  ;;  %v7323_v14 = vld [vmem:[%s9961_s9 + $0x704] ss:$16 sps:$4 sm:$0xff]   ;;  %v7326_v15 = vld [vmem:[%s9961_s9 + $0x70c] ss:$16 sps:$4 sm:$0xff]   ;;  %v7321_v16 = vld [vmem:[%s9961_s9 + $0x700] ss:$16 sps:$4 sm:$0xff]  }
 0x3ba   : > { %v3346_v40 = vmax.f32 %v3344_v27, %v3345_v37  ;;  %v3351_v42 = vpack.c.bf16 %v3325_v36, %v3325_v36  ;;  %v7324_v17 = vld [vmem:[%s9961_s9 + $0x708] ss:$16 sps:$4 sm:$0xff]   ;;  %v7329_v18 = vld [vmem:[%s9961_s9 + $0x724] ss:$16 sps:$4 sm:$0xff]   ;;  %v7332_v21 = vld [vmem:[%s9961_s9 + $0x72c] ss:$16 sps:$4 sm:$0xff]  }
 0x3bb   : > { %5026 = vmatpush1.bf16.msra.mxu0 %v7267_v60  ;;  %5190 = vmatpush1.bf16.msra.mxu1 %v7270_v30  ;;  %v3352_v5 = vpack.c.bf16 %v3332_v38, %v3332_v38  ;;  %v7327_v62 = vld [vmem:[%s9961_s9 + $0x720] ss:$16 sps:$4 sm:$0xff]   ;;  %v7330_v23 = vld [vmem:[%s9961_s9 + $0x728] ss:$16 sps:$4 sm:$0xff]   ;;  %v7335_v39 = vld [vmem:[%s9961_s9 + $0x744] ss:$16 sps:$4 sm:$0xff]   ;;  %v3335_v60 = vmax.f32 %v9415_v7, %v3334_v29 }
 0x3bc   : > { %5036 = vmatprep.subr.bf16.mxu0 %v7275_v63  ;;  %5200 = vmatprep.subr.bf16.mxu1 %v7278_v35  ;;  %v3354_v44 = vpack.c.bf16 %v3346_v40, %v3346_v40  ;;  %v7338_v26 = vld [vmem:[%s9961_s9 + $0x74c] ss:$16 sps:$4 sm:$0xff]   ;;  %v7333_v28 = vld [vmem:[%s9961_s9 + $0x740] ss:$16 sps:$4 sm:$0xff]   ;;  %v7336_v24 = vld [vmem:[%s9961_s9 + $0x748] ss:$16 sps:$4 sm:$0xff]  }
 0x3bd   : > { %5027 = vmatprep.mubr.bf16.mxu0 %v3352_v5  ;;  %5191 = vmatprep.mubr.bf16.mxu1 %v3352_v5  ;;  %v7341_v31 = vld [vmem:[%s9961_s9 + $0x764] ss:$16 sps:$4 sm:$0xff]   ;;  %v7344_v32 = vld [vmem:[%s9961_s9 + $0x76c] ss:$16 sps:$4 sm:$0xff]   ;;  %v7339_v25 = vld [vmem:[%s9961_s9 + $0x760] ss:$16 sps:$4 sm:$0xff]  }
 0x3be   : > { %5028 = vmatmul.mubr.bf16.vlgmr.msra.gmra.mrb[12].mxu0 %v3351_v42  ;;  %5192 = vmatmul.mubr.bf16.vlgmr.msra.gmra.mrb[20].mxu1 %v3351_v42  ;;  %v7342_v27 = vld [vmem:[%s9961_s9 + $0x768] ss:$16 sps:$4 sm:$0xff]   ;;  %v7347_v30 = vld [vmem:[%s9961_s9 + $0x784] ss:$16 sps:$4 sm:$0xff]   ;;  %v7350_v34 = vld [vmem:[%s9961_s9 + $0x78c] ss:$16 sps:$4 sm:$0xff]  }
 0x3bf   : > { %5037 = vmatpush1.bf16.msra.mxu0 %v7273_v41  ;;  %5201 = vmatpush1.bf16.msra.mxu1 %v7276_v33  ;;  %v7345_v63 = vld [vmem:[%s9961_s9 + $0x780] ss:$16 sps:$4 sm:$0xff]   ;;  %v7348_v7 = vld [vmem:[%s9961_s9 + $0x788] ss:$16 sps:$4 sm:$0xff]   ;;  %v3336_v35 = vrot.slane %v3335_v60, 2 }
 0x3c0   : > { %5068 = vmatprep.mubr.bf16.mxu0 %v3354_v44  ;;  %5232 = vmatprep.mubr.bf16.mxu1 %v3354_v44  ;;  %v7353_v36 = vld [vmem:[%s9961_s9 + $0x7a4] ss:$16 sps:$4 sm:$0xff]   ;;  %v7356_v37 = vld [vmem:[%s9961_s9 + $0x7ac] ss:$16 sps:$4 sm:$0xff]   ;;  %v7351_v38 = vld [vmem:[%s9961_s9 + $0x7a0] ss:$16 sps:$4 sm:$0xff]  }
 0x3c1   : > { %5038 = vmatprep.subr.bf16.mxu0 %v7281_v19  ;;  %5202 = vmatprep.subr.bf16.mxu1 %v7284_v43  ;;  %v7354_v40 = vld [vmem:[%s9961_s9 + $0x7a8] ss:$16 sps:$4 sm:$0xff]   ;;  %v3337_v5 = vmax.f32 %v3335_v60, %v3336_v35  ;;  %v7359_v41 = vld [vmem:[%s9961_s9 + $0x7c4] ss:$16 sps:$4 sm:$0xff]   ;;  %v7362_v33 = vld [vmem:[%s9961_s9 + $0x7cc] ss:$16 sps:$4 sm:$0xff]  }
 0x3c2   : > { %v7357_v42 = vld [vmem:[%s9961_s9 + $0x7c0] ss:$16 sps:$4 sm:$0xff]   ;;  %v7360_v19 = vld [vmem:[%s9961_s9 + $0x7c8] ss:$16 sps:$4 sm:$0xff]   ;;  %v7365_v44 = vld [vmem:[%s9961_s9 + $0x7e4] ss:$16 sps:$4 sm:$0xff]  }
 0x3c3   : > { %5039 = vmatpush1.bf16.msra.mxu0 %v7279_v48  ;;  %5203 = vmatpush1.bf16.msra.mxu1 %v7282_v50  ;;  %v3338_v43 = vrot.slane %v3337_v5, 1  ;;  %v7368_v48 = vld [vmem:[%s9961_s9 + $0x7ec] ss:$16 sps:$4 sm:$0xff]   ;;  %v7363_v50 = vld [vmem:[%s9961_s9 + $0x7e0] ss:$16 sps:$4 sm:$0xff]  }
 0x3c4   : > { %5040 = vmatprep.subr.bf16.mxu0 %v7287_v53  ;;  %5204 = vmatprep.subr.bf16.mxu1 %v7290_v54  ;;  %v7366_v53 = vld [vmem:[%s9961_s9 + $0x7e8] ss:$16 sps:$4 sm:$0xff]   ;;  %v7465_v29 = vld [vmem:[%s9965_s13 + $0x40] sm:$0xff]   ;;  %v7470_v60 = vld [vmem:[%s9965_s13 + $0x10] sm:$0xff]  }
 0x3c5   : > { %v3339_v54 = vmax.f32 %v3337_v5, %v3338_v43  ;;  %v7475_v35 = vld [vmem:[%s9965_s13 + $0x68] sm:$0xff]  }
 0x3c7   : > { %5041 = vmatpush1.bf16.msra.mxu0 %v7285_v55  ;;  %5205 = vmatpush1.bf16.msra.mxu1 %v7288_v56  ;;  %v7371_v55 = vld [vmem:[%s9963_s11 + $0x4] ss:$8 sps:$4 sm:$0xff]   ;;  %v7369_v56 = vld [vmem:[%s9963_s11] ss:$8 sps:$4 sm:$0xff]  }
 0x3c8   : > { %5042 = vmatprep.subr.bf16.mxu0 %v7293_v57  ;;  %5206 = vmatprep.subr.bf16.mxu1 %v7296_v45  ;;  %v3353_v57 = vpack.c.bf16 %v3339_v54, %v3339_v54  ;;  %v7374_v45 = vld [vmem:[%s9963_s11 + $0x14] ss:$8 sps:$4 sm:$0xff]  }
 0x3cb   : > { %5043 = vmatpush1.bf16.msra.mxu0 %v7291_v46  ;;  %5207 = vmatpush1.bf16.msra.mxu1 %v7294_v47  ;;  %v7372_v46 = vld [vmem:[%s9963_s11 + $0x10] ss:$8 sps:$4 sm:$0xff]   ;;  %v7377_v47 = vld [vmem:[%s9963_s11 + $0x24] ss:$8 sps:$4 sm:$0xff]  }
 0x3cc   : > { %5044 = vmatprep.subr.bf16.mxu0 %v7299_v49  ;;  %5208 = vmatprep.subr.bf16.mxu1 %v7302_v51  ;;  %v7375_v49 = vld [vmem:[%s9963_s11 + $0x20] ss:$8 sps:$4 sm:$0xff]   ;;  %v7380_v51 = vld [vmem:[%s9963_s11 + $0x34] ss:$8 sps:$4 sm:$0xff]  }
 0x3cf   : > { %5045 = vmatpush1.bf16.msra.mxu0 %v7297_v52  ;;  %5209 = vmatpush1.bf16.msra.mxu1 %v7300_v58  ;;  %v7378_v52 = vld [vmem:[%s9963_s11 + $0x30] ss:$8 sps:$4 sm:$0xff]   ;;  %v7383_v58 = vld [vmem:[%s9963_s11 + $0x44] ss:$8 sps:$4 sm:$0xff]  }
 0x3d0   : > { %5046 = vmatprep.subr.bf16.mxu0 %v7305_v59  ;;  %5210 = vmatprep.subr.bf16.mxu1 %v7308_v61  ;;  %v7381_v59 = vld [vmem:[%s9963_s11 + $0x40] ss:$8 sps:$4 sm:$0xff]   ;;  %v7386_v61 = vld [vmem:[%s9963_s11 + $0x54] ss:$8 sps:$4 sm:$0xff]  }
 0x3d3   : > { %5047 = vmatpush1.bf16.msra.mxu0 %v7303_v0  ;;  %5211 = vmatpush1.bf16.msra.mxu1 %v7306_v2  ;;  %v7384_v0 = vld [vmem:[%s9963_s11 + $0x50] ss:$8 sps:$4 sm:$0xff]   ;;  %v7389_v2 = vld [vmem:[%s9963_s11 + $0x64] ss:$8 sps:$4 sm:$0xff]  }
 0x3d4   : > { %5048 = vmatprep.subr.bf16.mxu0 %v7311_v3  ;;  %5212 = vmatprep.subr.bf16.mxu1 %v7314_v6  ;;  %v7387_v3 = vld [vmem:[%s9963_s11 + $0x60] ss:$8 sps:$4 sm:$0xff]   ;;  %v7392_v6 = vld [vmem:[%s9963_s11 + $0x74] ss:$8 sps:$4 sm:$0xff]  }
 0x3d7   : > { %5049 = vmatpush1.bf16.msra.mxu0 %v7309_v8  ;;  %5213 = vmatpush1.bf16.msra.mxu1 %v7312_v9  ;;  %v7390_v8 = vld [vmem:[%s9963_s11 + $0x70] ss:$8 sps:$4 sm:$0xff]   ;;  %v7395_v9 = vld [vmem:[%s9963_s11 + $0x84] ss:$8 sps:$4 sm:$0xff]  }
 0x3d8   : > { %5050 = vmatprep.subr.bf16.mxu0 %v7317_v10  ;;  %5214 = vmatprep.subr.bf16.mxu1 %v7320_v11  ;;  %v7393_v10 = vld [vmem:[%s9963_s11 + $0x80] ss:$8 sps:$4 sm:$0xff]   ;;  %v7398_v11 = vld [vmem:[%s9963_s11 + $0x94] ss:$8 sps:$4 sm:$0xff]  }
 0x3db   : > { %5051 = vmatpush1.bf16.msra.mxu0 %v7315_v12  ;;  %5215 = vmatpush1.bf16.msra.mxu1 %v7318_v13  ;;  %v7396_v12 = vld [vmem:[%s9963_s11 + $0x90] ss:$8 sps:$4 sm:$0xff]   ;;  %v7401_v13 = vld [vmem:[%s9963_s11 + $0xa4] ss:$8 sps:$4 sm:$0xff]  }
 0x3dc   : > { %5052 = vmatprep.subr.bf16.mxu0 %v7323_v14  ;;  %5216 = vmatprep.subr.bf16.mxu1 %v7326_v15  ;;  %v7399_v14 = vld [vmem:[%s9963_s11 + $0xa0] ss:$8 sps:$4 sm:$0xff]   ;;  %v7404_v15 = vld [vmem:[%s9963_s11 + $0xb4] ss:$8 sps:$4 sm:$0xff]  }
 0x3df   : > { %5053 = vmatpush1.bf16.msra.mxu0 %v7321_v16  ;;  %5217 = vmatpush1.bf16.msra.mxu1 %v7324_v17  ;;  %v7402_v16 = vld [vmem:[%s9963_s11 + $0xb0] ss:$8 sps:$4 sm:$0xff]   ;;  %v7407_v17 = vld [vmem:[%s9963_s11 + $0xc4] ss:$8 sps:$4 sm:$0xff]  }
 0x3e0   : > { %5054 = vmatprep.subr.bf16.mxu0 %v7329_v18  ;;  %5218 = vmatprep.subr.bf16.mxu1 %v7332_v21  ;;  %v7405_v18 = vld [vmem:[%s9963_s11 + $0xc0] ss:$8 sps:$4 sm:$0xff]   ;;  %v7410_v21 = vld [vmem:[%s9963_s11 + $0xd4] ss:$8 sps:$4 sm:$0xff]  }
 0x3e3   : > { %5055 = vmatpush1.bf16.msra.mxu0 %v7327_v62  ;;  %5219 = vmatpush1.bf16.msra.mxu1 %v7330_v23  ;;  %v7408_v62 = vld [vmem:[%s9963_s11 + $0xd0] ss:$8 sps:$4 sm:$0xff]   ;;  %v7413_v23 = vld [vmem:[%s9963_s11 + $0xe4] ss:$8 sps:$4 sm:$0xff]  }
 0x3e4   : > { %5056 = vmatprep.subr.bf16.mxu0 %v7335_v39  ;;  %5220 = vmatprep.subr.bf16.mxu1 %v7338_v26  ;;  %v7411_v39 = vld [vmem:[%s9963_s11 + $0xe0] ss:$8 sps:$4 sm:$0xff]   ;;  %v7416_v26 = vld [vmem:[%s9963_s11 + $0xf4] ss:$8 sps:$4 sm:$0xff]  }
 0x3e7   : > { %5057 = vmatpush1.bf16.msra.mxu0 %v7333_v28  ;;  %5221 = vmatpush1.bf16.msra.mxu1 %v7336_v24  ;;  %v7414_v28 = vld [vmem:[%s9963_s11 + $0xf0] ss:$8 sps:$4 sm:$0xff]   ;;  %v7419_v24 = vld [vmem:[%s9963_s11 + $0x104] ss:$8 sps:$4 sm:$0xff]  }
 0x3e8   : > { %5058 = vmatprep.subr.bf16.mxu0 %v7341_v31  ;;  %5222 = vmatprep.subr.bf16.mxu1 %v7344_v32  ;;  %v7466_v31 = vld [vmem:[%s9965_s13] sm:$0xff]   ;;  %v7467_v32 = vld [vmem:[%s9965_s13 + $0x48] sm:$0xff]  }
 0x3eb   : > { %5059 = vmatpush1.bf16.msra.mxu0 %v7339_v25  ;;  %5223 = vmatpush1.bf16.msra.mxu1 %v7342_v27  ;;  %v7468_v25 = vld [vmem:[%s9965_s13 + $0x8] sm:$0xff]   ;;  %v7469_v27 = vld [vmem:[%s9965_s13 + $0x50] sm:$0xff]  }
 0x3ec   : > { %5060 = vmatprep.subr.bf16.mxu0 %v7347_v30  ;;  %5224 = vmatprep.subr.bf16.mxu1 %v7350_v34  ;;  %v7471_v30 = vld [vmem:[%s9965_s13 + $0x58] sm:$0xff]  }
 0x3ed   : > { %v7472_v34 = vld [vmem:[%s9965_s13 + $0x18] sm:$0xff]  }
 0x3ef   : > { %5061 = vmatpush1.bf16.msra.mxu0 %v7345_v63  ;;  %5225 = vmatpush1.bf16.msra.mxu1 %v7348_v7  ;;  %v7473_v63 = vld [vmem:[%s9965_s13 + $0x60] sm:$0xff]  }
 0x3f0   : > { %5062 = vmatprep.subr.bf16.mxu0 %v7353_v36  ;;  %5226 = vmatprep.subr.bf16.mxu1 %v7356_v37  ;;  %v7474_v7 = vld [vmem:[%s9965_s13 + $0x20] sm:$0xff]   ;;  %v7476_v36 = vld [vmem:[%s9965_s13 + $0x28] sm:$0xff]  }
 0x3f1   : > { %v9779_v37 = vld [vmem:[%s9962_s10] sm:$0xf] }
 0x3f2   : > { %v4908_v5 = vrot.slane %v9779_v37, %v8417_v22  ;;  %v7417_v22 = vld [vmem:[%s9963_s11 + $0x100] ss:$8 sps:$4 sm:$0xff]  }
 0x3f3   : > { %5063 = vmatpush1.bf16.msra.mxu0 %v7351_v38  ;;  %5227 = vmatpush1.bf16.msra.mxu1 %v7354_v40  ;;  %v4896_v38 = vrot.slane %v9779_v37, %v7978_v1  ;;  %v4900_v40 = vrot.slane %v9779_v37, %v7984_v4 }
 0x3f4   : > { %5064 = vmatprep.subr.bf16.mxu0 %v7359_v41  ;;  %5228 = vmatprep.subr.bf16.mxu1 %v7362_v33 }
 0x3f7   : > { %5065 = vmatpush1.bf16.msra.mxu0 %v7357_v42  ;;  %5229 = vmatpush1.bf16.msra.mxu1 %v7360_v19 }
 0x3f8   : > { %5066 = vmatprep.subr.bf16.mxu0 %v7365_v44  ;;  %5230 = vmatprep.subr.bf16.mxu1 %v7368_v48 }
 0x3fb   : > { %5067 = vmatpush1.bf16.msra.mxu0 %v7363_v50  ;;  %5231 = vmatpush1.bf16.msra.mxu1 %v7366_v53 }
 0x3fc   : > { %5645 = vmatprep.subr.bf16.mxu0 %v7371_v55  ;;  %6703 = vmatprep.subr.bf16.mxu1 %v7465_v29  ;;  %v7461_v29 = vld [vmem:[%s9963_s11 + $0x1e4] ss:$8 sps:$4 sm:$0xff]  }
 0x3fe   : > { %5069 = vmatmul.mubr.bf16.vlgmr.msra.gmra.mrb[12].mxu0 %v3353_v57  ;;  %5233 = vmatmul.mubr.bf16.vlgmr.msra.gmra.mrb[20].mxu1 %v3353_v57 }
 0x3ff   : > { %5646 = vmatpush1.bf16.msra.mxu0 %v7369_v56  ;;  %6704 = vmatpush3.bf16.msra.mxu1 %v7466_v31  ;;  %v7459_v31 = vld [vmem:[%s9963_s11 + $0x1e0] ss:$8 sps:$4 sm:$0xff]  }
 0x400   : > { %5647 = vmatprep.subr.bf16.mxu0 %v7374_v45  ;;  %6705 = vmatprep.subr.bf16.mxu1 %v7467_v32 }
 0x403   : > { %5648 = vmatpush1.bf16.msra.mxu0 %v7372_v46  ;;  %6706 = vmatpush3.bf16.msra.mxu1 %v7468_v25  ;;  %v7464_v25 = vld [vmem:[%s9963_s11 + $0x1f4] ss:$8 sps:$4 sm:$0xff]  }
 0x404   : > { %5649 = vmatprep.subr.bf16.mxu0 %v7377_v47  ;;  %6707 = vmatprep.subr.bf16.mxu1 %v7469_v27 }
 0x407   : > { %5650 = vmatpush1.bf16.msra.mxu0 %v7375_v49  ;;  %6708 = vmatpush3.bf16.msra.mxu1 %v7470_v60  ;;  %v7422_v49 = vld [vmem:[%s9963_s11 + $0x114] ss:$8 sps:$4 sm:$0xff]  }
 0x408   : > { %5651 = vmatprep.subr.bf16.mxu0 %v7380_v51  ;;  %6709 = vmatprep.subr.bf16.mxu1 %v7471_v30  ;;  %v7477_v30 = vld [vmem:[%s9965_s13 + $0x70] sm:$0xff]  }
 0x40b   : > { %5652 = vmatpush1.bf16.msra.mxu0 %v7378_v52  ;;  %6710 = vmatpush3.bf16.msra.mxu1 %v7472_v34  ;;  %v7420_v52 = vld [vmem:[%s9963_s11 + $0x110] ss:$8 sps:$4 sm:$0xff]  }
 0x40c   : > { %5653 = vmatprep.subr.bf16.mxu0 %v7383_v58  ;;  %6711 = vmatprep.subr.bf16.mxu1 %v7473_v63  ;;  %v7425_v58 = vld [vmem:[%s9963_s11 + $0x124] ss:$8 sps:$4 sm:$0xff]   ;;  %v7478_v34 = vld [vmem:[%s9965_s13 + $0x30] sm:$0xff]   ;;  %v7479_v63 = vld [vmem:[%s9965_s13 + $0x78] sm:$0xff]  }
 0x40f   : > { %5654 = vmatpush1.bf16.msra.mxu0 %v7381_v59  ;;  %6712 = vmatpush3.bf16.msra.mxu1 %v7474_v7  ;;  %v7423_v59 = vld [vmem:[%s9963_s11 + $0x120] ss:$8 sps:$4 sm:$0xff]   ;;  %v7480_v7 = vld [vmem:[%s9965_s13 + $0x38] sm:$0xff]  }
 0x410   : > { %5655 = vmatprep.subr.bf16.mxu0 %v7386_v61  ;;  %6713 = vmatprep.subr.bf16.mxu1 %v7475_v35  ;;  %v7428_v61 = vld [vmem:[%s9963_s11 + $0x134] ss:$8 sps:$4 sm:$0xff]   ;;  %v5313_v35 = vld [vmem:[%s9964_s12] sm:$0x3] }
 0x413   : > { %5656 = vmatpush1.bf16.msra.mxu0 %v7384_v0  ;;  %6714 = vmatpush3.bf16.msra.mxu1 %v7476_v36  ;;  %v7426_v0 = vld [vmem:[%s9963_s11 + $0x130] ss:$8 sps:$4 sm:$0xff]   ;;  %v5638_v36 = vrot.slane %v5313_v35, %v7978_v1 }
 0x414   : > { %5657 = vmatprep.subr.bf16.mxu0 %v7389_v2  ;;  %v7431_v2 = vld [vmem:[%s9963_s11 + $0x144] ss:$8 sps:$4 sm:$0xff]   ;;  %6715 = vmatprep.subr.bf16.mxu1 %v7477_v30 }
 0x417   : > { %5658 = vmatpush1.bf16.msra.mxu0 %v7387_v3  ;;  %v7429_v3 = vld [vmem:[%s9963_s11 + $0x140] ss:$8 sps:$4 sm:$0xff]   ;;  %6716 = vmatpush3.bf16.msra.mxu1 %v7478_v34 }
 0x418   : > { %5659 = vmatprep.subr.bf16.mxu0 %v7392_v6  ;;  %v7434_v6 = vld [vmem:[%s9963_s11 + $0x154] ss:$8 sps:$4 sm:$0xff]   ;;  %6717 = vmatprep.subr.bf16.mxu1 %v7479_v63 }
 0x41b   : > { %5660 = vmatpush1.bf16.msra.mxu0 %v7390_v8  ;;  %v7432_v8 = vld [vmem:[%s9963_s11 + $0x150] ss:$8 sps:$4 sm:$0xff]   ;;  %6718 = vmatpush3.bf16.msra.mxu1 %v7480_v7 }
 0x41c   : > { %5661 = vmatprep.subr.bf16.mxu0 %v7395_v9  ;;  %v7437_v9 = vld [vmem:[%s9963_s11 + $0x164] ss:$8 sps:$4 sm:$0xff]  }
 0x41f   : > { %5662 = vmatpush1.bf16.msra.mxu0 %v7393_v10  ;;  %v7435_v10 = vld [vmem:[%s9963_s11 + $0x160] ss:$8 sps:$4 sm:$0xff]  }
 0x420   : > { %5663 = vmatprep.subr.bf16.mxu0 %v7398_v11  ;;  %v7440_v11 = vld [vmem:[%s9963_s11 + $0x174] ss:$8 sps:$4 sm:$0xff]  }
 0x423   : > { %5664 = vmatpush1.bf16.msra.mxu0 %v7396_v12  ;;  %v7438_v12 = vld [vmem:[%s9963_s11 + $0x170] ss:$8 sps:$4 sm:$0xff]  }
 0x424   : > { %5665 = vmatprep.subr.bf16.mxu0 %v7401_v13  ;;  %v7443_v13 = vld [vmem:[%s9963_s11 + $0x184] ss:$8 sps:$4 sm:$0xff]  }
 0x427   : > { %5666 = vmatpush1.bf16.msra.mxu0 %v7399_v14  ;;  %v7441_v14 = vld [vmem:[%s9963_s11 + $0x180] ss:$8 sps:$4 sm:$0xff]  }
 0x428   : > { %5667 = vmatprep.subr.bf16.mxu0 %v7404_v15  ;;  %v7446_v15 = vld [vmem:[%s9963_s11 + $0x194] ss:$8 sps:$4 sm:$0xff]  }
 0x42b   : > { %5668 = vmatpush1.bf16.msra.mxu0 %v7402_v16  ;;  %v7444_v16 = vld [vmem:[%s9963_s11 + $0x190] ss:$8 sps:$4 sm:$0xff]  }
 0x42c   : > { %5669 = vmatprep.subr.bf16.mxu0 %v7407_v17  ;;  %v7449_v17 = vld [vmem:[%s9963_s11 + $0x1a4] ss:$8 sps:$4 sm:$0xff]  }
 0x42f   : > { %5670 = vmatpush1.bf16.msra.mxu0 %v7405_v18  ;;  %v7447_v18 = vld [vmem:[%s9963_s11 + $0x1a0] ss:$8 sps:$4 sm:$0xff]  }
 0x430   : > { %5671 = vmatprep.subr.bf16.mxu0 %v7410_v21  ;;  %v7452_v21 = vld [vmem:[%s9963_s11 + $0x1b4] ss:$8 sps:$4 sm:$0xff]  }
 0x433   : > { %5672 = vmatpush1.bf16.msra.mxu0 %v7408_v62  ;;  %v7450_v62 = vld [vmem:[%s9963_s11 + $0x1b0] ss:$8 sps:$4 sm:$0xff]  }
 0x434   : > { %5673 = vmatprep.subr.bf16.mxu0 %v7413_v23  ;;  %v7455_v23 = vld [vmem:[%s9963_s11 + $0x1c4] ss:$8 sps:$4 sm:$0xff]  }
 0x437   : > { %5674 = vmatpush1.bf16.msra.mxu0 %v7411_v39  ;;  %v7453_v39 = vld [vmem:[%s9963_s11 + $0x1c0] ss:$8 sps:$4 sm:$0xff]  }
 0x438   : > { %5675 = vmatprep.subr.bf16.mxu0 %v7416_v26  ;;  %v7458_v26 = vld [vmem:[%s9963_s11 + $0x1d4] ss:$8 sps:$4 sm:$0xff]  }
 0x43b   : > { %5676 = vmatpush1.bf16.msra.mxu0 %v7414_v28  ;;  %v7456_v28 = vld [vmem:[%s9963_s11 + $0x1d0] ss:$8 sps:$4 sm:$0xff]  }
 0x43c   : > { %5686 = vmatprep.subr.bf16.mxu0 %v7419_v24  ;;  %v4904_v24 = vrot.slane %v9779_v37, %v8411_v20  ;;  %v7462_v20 = vld [vmem:[%s9963_s11 + $0x1f0] ss:$8 sps:$4 sm:$0xff]   ;;  %v5642_v37 = vrot.slane %v5313_v35, %v7984_v4 }
 0x4d1   : > { %v5070_v41 = vpop.f32.mrb[12].mxu0  ;;  %v9787_v33 = vpop.f32.mrb[20].mxu1 }
 0x4d2   : > { %v6745_v42 = vadd.f32 %v5070_v41, %v4896_v38  ;;  %v5072_v19 = vpop.f32.mrb[13].mxu0  ;;  %v5236_v43 = vpop.f32.mrb[21].mxu1  ;;  %v6747_v32 = vadd.f32 %v9787_v33, %v4904_v24 }
 0x4d3   : > { %v6746_v44 = vadd.f32 %v5072_v19, %v4900_v40  ;;  %v6748_v48 = vadd.f32 %v5236_v43, %v4908_v5  ;;  %v5074_v50 = vpop.f32.mrb[14].mxu0  ;;  %v5238_v53 = vpop.f32.mrb[22].mxu1 }
 0x4d4   : > { %v5241_v54 = vmax.f32 %v6745_v42, 0.0  ;;  %v5075_v55 = vpop.f32.mrb[15].mxu0  ;;  %v5239_v56 = vpop.f32.mrb[23].mxu1  ;;  %v5243_v27 = vmax.f32 %v6747_v32, 0.0  ;;  %v5763_v53 = vld [vmem:[%s9966_s14] sm:$0x1] }
 0x4d5   : > { %v5242_v57 = vmax.f32 %v6746_v44, 0.0  ;;  %v5244_v45 = vmax.f32 %v6748_v48, 0.0 }
 0x4d6   : > { %v5245_v47 = vpack.c.bf16 %v5241_v54, %v5241_v54  ;;  %v5247_v60 = vpack.c.bf16 %v5243_v27, %v5243_v27 }
 0x4d7   : > { %v5246_v46 = vpack.c.bf16 %v5242_v57, %v5242_v57  ;;  %v5248_v51 = vpack.c.bf16 %v5244_v45, %v5244_v45 }
 0x4d9   : > { %5677 = vmatprep.mubr.bf16.mxu0 %v5246_v46 }
 0x4da   : > { %5678 = vmatmul.mubr.bf16.vlgmr.msra.gmra.mrb[16].mxu0 %v5245_v47 }
 0x4db   : > { %5687 = vmatpush1.bf16.msra.mxu0 %v7417_v22  ;;  %5718 = vmatprep.mubr.bf16.mxu0 %v5248_v51 }
 0x4dc   : > { %5688 = vmatprep.subr.bf16.mxu0 %v7422_v49 }
 0x4df   : > { %5689 = vmatpush1.bf16.msra.mxu0 %v7420_v52 }
 0x4e0   : > { %5690 = vmatprep.subr.bf16.mxu0 %v7425_v58 }
 0x4e3   : > { %5691 = vmatpush1.bf16.msra.mxu0 %v7423_v59 }
 0x4e4   : > { %5692 = vmatprep.subr.bf16.mxu0 %v7428_v61 }
 0x4e7   : > { %5693 = vmatpush1.bf16.msra.mxu0 %v7426_v0 }
 0x4e8   : > { %5694 = vmatprep.subr.bf16.mxu0 %v7431_v2 }
 0x4eb   : > { %5695 = vmatpush1.bf16.msra.mxu0 %v7429_v3 }
 0x4ec   : > { %5696 = vmatprep.subr.bf16.mxu0 %v7434_v6 }
 0x4ef   : > { %5697 = vmatpush1.bf16.msra.mxu0 %v7432_v8 }
 0x4f0   : > { %5698 = vmatprep.subr.bf16.mxu0 %v7437_v9 }
 0x4f3   : > { %5699 = vmatpush1.bf16.msra.mxu0 %v7435_v10 }
 0x4f4   : > { %5700 = vmatprep.subr.bf16.mxu0 %v7440_v11 }
 0x4f7   : > { %5701 = vmatpush1.bf16.msra.mxu0 %v7438_v12 }
 0x4f8   : > { %5702 = vmatprep.subr.bf16.mxu0 %v7443_v13 }
 0x4fb   : > { %5703 = vmatpush1.bf16.msra.mxu0 %v7441_v14 }
 0x4fc   : > { %5704 = vmatprep.subr.bf16.mxu0 %v7446_v15 }
 0x4ff   : > { %5705 = vmatpush1.bf16.msra.mxu0 %v7444_v16 }
 0x500   : > { %5706 = vmatprep.subr.bf16.mxu0 %v7449_v17 }
 0x503   : > { %5707 = vmatpush1.bf16.msra.mxu0 %v7447_v18 }
 0x504   : > { %5708 = vmatprep.subr.bf16.mxu0 %v7452_v21 }
 0x507   : > { %5709 = vmatpush1.bf16.msra.mxu0 %v7450_v62 }
 0x508   : > { %5710 = vmatprep.subr.bf16.mxu0 %v7455_v23 }
 0x50b   : > { %5711 = vmatpush1.bf16.msra.mxu0 %v7453_v39 }
 0x50c   : > { %5712 = vmatprep.subr.bf16.mxu0 %v7458_v26 }
 0x50f   : > { %5713 = vmatpush1.bf16.msra.mxu0 %v7456_v28 }
 0x510   : > { %5714 = vmatprep.subr.bf16.mxu0 %v7461_v29 }
 0x513   : > { %5715 = vmatpush1.bf16.msra.mxu0 %v7459_v31 }
 0x514   : > { %5716 = vmatprep.subr.bf16.mxu0 %v7464_v25 }
 0x517   : > { %5717 = vmatpush1.bf16.msra.mxu0 %v7462_v20 }
 0x51a   : > { %5719 = vmatmul.mubr.bf16.vlgmr.msra.gmra.mrb[16].mxu0 %v5247_v60 }
 0x5ed   : > { %v5720_v38 = vpop.f32.mrb[16].mxu0 }
 0x5ee   : > { %v6749_v40 = vadd.f32 %v5720_v38, %v5638_v36  ;;  %v5722_v5 = vpop.f32.mrb[17].mxu0 }
 0x5ef   : > { %v6750_v41 = vadd.f32 %v5722_v5, %v5642_v37  ;;  %v5724_v33 = vpop.f32.mrb[18].mxu0 }
 0x5f0   : > { %v5727_v42 = vmax.f32 %v6749_v40, 0.0  ;;  %v5725_v19 = vpop.f32.mrb[19].mxu0 }
 0x5f1   : > { %v5728_v43 = vmax.f32 %v6750_v41, 0.0 }
 0x5f2   : > { %v5729_v48 = vpack.c.bf16 %v5727_v42, %v5727_v42 }
 0x5f3   : > { %v5730_v44 = vpack.c.bf16 %v5728_v43, %v5728_v43 }
 0x5f5   : > { %5892 = vmatprep.mubr.bf16.mxu1 %v5730_v44 }
 0x5f6   : > { %5893 = vmatmul.mubr.bf16.vlgmr.msra.gmra.mrb[24].mxu1 %v5729_v48 }
 0x6c9   : > { %v6719_v50 = vpop.f32.mrb[24].mxu1 }
 0x6ca   : > { %v6720_v1 = vpop.f32.mrb[25].mxu1 }
 0x6cb   : > { %v6721_v54 = vadd.f32 %v6720_v1, %v6719_v50  ;;  %v6722_v4 = vpop.f32.mrb[26].mxu1 }
 0x6cc   : > { %v6723_v55 = vpop.f32.mrb[27].mxu1 }
 0x6cd   : > { %v5895_v56 = vadd.f32 %v6721_v54, %v5763_v53 }
 0x6cf   : > { %v5901_v57 = vsel %vm5900_vm2, %v5895_v56, -inf }
 0x6d0   : > { %5902 = vmax.xlane.f32.xlu0 %v5901_v57 }
 0x75d   : > { %v5903_v45 = vpop.xlane.xlu0 %5902 }
 0x75e   : > { %v5904_v46 = vsub.f32 %v5895_v56, %v5903_v45 }
 0x760   : > { %v5905_v22 = vmul.f32 1.442695, %v5904_v46 }
 0x762   : > { %7481 = vpow2.f32 %v5905_v22 }
 0x76c   : > { %v7482_v47 = vpop.eup %7481 }
 0x76d   : > { %v5907_v49 = vsel %vm5900_vm2, %v7482_v47, 0.0 }
 0x76e   : > { %5908 = vadd.xlane.f32.xlu0 %v5907_v49 }
 0x7fb   : > { %v5909_v51 = vpop.xlane.xlu0 %5908 }
 0x7fc   : > { %7483 = vlog2.f32 %v5909_v51 }
 0x806   : > { %v7484_v52 = vpop.eup %7483 }
 0x807   : > { %v5911_v58 = vmul.f32 0.6931472, %v7484_v52 }
 0x809   : > { %v5912_v59 = vadd.f32 %v5911_v58, %v5903_v45 }
 0x80b   : > { %v5913_v61 = vsub.f32 %v5895_v56, %v5912_v59 }
 0x80d   : > { %5914 = vst [vmem:[%s501_s18] sm:$0x1] %v5913_v61 }
 0x80e   : > { %7498 = shalt.err (!%p7495_p3)
}
 0x80f   : > { %s7499_s25 = scalar_lea.hbm %s9910_s30, 16  ;;  %s7503_s18 = scalar_lea.hbm %s9984_s24, 32 }
 0x810   : > { %p7500_p4 = scmp.ne.s32.totalorder %s9910_s30, %s7499_s25  ;;  %p7504_p9 = scmp.lt.u32.totalorder %s9910_s30, %s9984_s24 }
 0x811   : > { %p7505_p10 = scmp.lt.u32.totalorder %s7503_s18, %s7499_s25  ;;  %p7507_p12 = scmp.lt.u32.totalorder %s7499_s25, %s9910_s30 }
 0x812   : > { %p7501_p7 = pnand %p7500_p4, %p7669_p5 }
 0x813   : > { %p7506_p11 = por %p7505_p10, %p7504_p9 }
 0x814   : > { %p7502_p8 = pneg %p7501_p7 }
 0x815   : > { %p7508_p13 = por %p7507_p12, %p7506_p11 }
 0x817   : > { %p7509_p0 = pnand %p7508_p13, %p7502_p8 }
 0x819   : > { %7512 = shalt.err (!%p7509_p0)
}
 0x81a   : > { %6795 = dma.vmem_to_hbm [thread:$0]  (%p7669_p5), %s9912_s26, 16, %s9910_s30, %s5916_s29  }
 0x81b PF: > { %s9985_s20 = sld [smem:[#allocation7_spill]]  ;;  %s9986_s22 = sld [smem:[#allocation5_spill]] }
 0x821   : > { %p6801_p1 = scmp.ge.s32.totalorder %s9985_s20, 2  ;;  %s5940_s21 = sand.u32 1, %s9986_s22  }
 0x822   : > { %s5941_s23 = scalar_lea.sflag [#allocation3], %s5940_s21 }
 0x823   : > { %p6798_p2 = pnand %p6801_p1, %p7673_p6 }
 0x825   : > { %7530 = dma.done.wait (!%p6798_p2), %s5941_s23, 16  }
 0x826   : > { %7532 = vsyncadd (!%p6798_p2), %s5941_s23, 4294967280  ;;  %s9988_s21 = sld [smem:[#allocation8_spill]]  ;;  %s9989_s25 = sld [smem:[#allocation6_spill]] }
 0x827   : > { %s9990_s20 = sld [smem:[#allocation9_spill]]  ;;  %s9991_s18 = smov %s7539_s19 }
 0x82c   : > { %p25_p3 = scmp.ge.s32.totalorder %s9988_s21, 4   ;;  %s9992_s19 = smov %s9989_s25 }
 0x82e   :  { %27 = sbr.rel (!%p25_p3) target bundleno = 5 (0x5), region = 118 }
 0x835   :  { %5945 = vsyncpa [#allocation3], 1 }
 0x836   :  { %5947 = vsyncpa [#allocation3 + $0x1], 1 }

</bundles_post_ra>
